<compile_context>
chip_gen: v7x
topology: tpu7x:2x2x1
jax: 0.10.0
libtpu: 0.0.40
codegen_flags: <defaults>
</compile_context>

<pallas_src>
import functools

import jax
import jax.numpy as jnp
from jax import lax
from jax.experimental import pallas as pl
from jax.experimental.pallas import tpu as pltpu

N_PAD = 128                      # lane-dense padded width for the fc2 output
_VMEM_LIMIT = 32 * 1024 * 1024   # safe on v5e/v6e/v7x for these buffer sizes


def _conv_out(n, k, s):
    return (n - k) // s + 1


# ----------------------------------------------------------------------------
# Fused kernel: conv1 -> conv2 -> conv3 -> flatten -> fc1 -> fc2 (one sample).
# ----------------------------------------------------------------------------
def _fused_dqn_kernel(x_ref, w1_ref, b1_ref, w2_ref, b2_ref, w3_ref, b3_ref,
                      fw1_ref, fb1_ref, fw2_ref, fb2_ref, o_ref,
                      p1_ref, h1_ref, p2_ref, h2_ref, p3_ref, flat_ref,
                      *, c0, oh1, ow1, oh2, ow2, oh3, ow3):
    c1 = w1_ref.shape[1]              # conv1 out channels (32)
    c2 = w2_ref.shape[1]              # conv2 out channels (64)
    c3 = w3_ref.shape[1]              # conv3 out channels (64)
    half = ow1 // 2
    gw = 8 * c0                       # lanes per W-group of the input (8 taps * C)
    hw = gw // 2                      # half a group (4 taps * C)

    b1 = b1_ref[...]
    b2 = b2_ref[...]
    b3 = b3_ref[...]

    # ---- conv1 (k=8, s=4): in-kernel im2col from the grouped input ---------
    # Input layout: x[0, hg, hp, wg, wq*c0 + c] == x_nhwc[hg*4+hp, wg*8+wq, c].
    # p1 rows: [0, half) = even output columns (ow = 2m), [half, ow1) = odd.
    for i in range(8):                # kernel rows
        hg, hp = i // 4, i % 4
        # even ow: all 8 taps of kernel-row i come from W-group m, lanes [0, gw)
        p1_ref[:, pl.ds(0, half), pl.ds(i * gw, gw)] = \
            x_ref[0, pl.ds(hg, oh1), hp, pl.ds(0, half), pl.ds(0, gw)]
        # odd ow: taps j<4 come from group m (lanes [hw, gw)), taps j>=4 from
        # group m+1 (lanes [0, hw)).
        p1_ref[:, pl.ds(half, half), pl.ds(i * gw, hw)] = \
            x_ref[0, pl.ds(hg, oh1), hp, pl.ds(0, half), pl.ds(hw, hw)]
        p1_ref[:, pl.ds(half, half), pl.ds(i * gw + hw, hw)] = \
            x_ref[0, pl.ds(hg, oh1), hp, pl.ds(1, half), pl.ds(0, hw)]

    # conv1 matmuls: one (ow1, 64*c0) @ (64*c0, c1) per output row.  The
    # result is written into an (oh1/2, 2, ow1/2, 2*c1) grouped layout so the
    # stride-2 conv2 extraction below is contiguous.
    for oh in range(oh1):
        acc = jnp.dot(p1_ref[oh], w1_ref[...],
                      preferred_element_type=jnp.float32)          # (ow1, c1)
        act = jnp.maximum(acc + b1, 0.0).astype(jnp.bfloat16)
        h1_ref[oh // 2, oh % 2, :, pl.ds(0, c1)] = act[0:half, :]   # even ow
        h1_ref[oh // 2, oh % 2, :, pl.ds(c1, c1)] = act[half:ow1, :]  # odd ow

    # ---- conv2 (k=4, s=2): contiguous extraction from the grouped h1 -------
    for i in range(4):                # kernel rows
        hg, hp = i // 2, i % 2
        p2_ref[:, :, pl.ds(i * 4 * c1, 2 * c1)] = \
            h1_ref[pl.ds(hg, oh2), hp, pl.ds(0, ow2), :]            # taps j=0,1
        p2_ref[:, :, pl.ds(i * 4 * c1 + 2 * c1, 2 * c1)] = \
            h1_ref[pl.ds(hg, oh2), hp, pl.ds(1, ow2), :]            # taps j=2,3
    for oh in range(oh2):
        acc = jnp.dot(p2_ref[oh], w2_ref[...],
                      preferred_element_type=jnp.float32)           # (ow2, c2)
        h2_ref[oh] = jnp.maximum(acc + b2, 0.0).astype(jnp.bfloat16)

    # ---- conv3 (k=3, s=1) + NHWC flatten into a single staging row ---------
    for i in range(3):
        for j in range(3):
            p3_ref[:, :, pl.ds((i * 3 + j) * c2, c2)] = \
                h2_ref[pl.ds(i, oh3), pl.ds(j, ow3), :]
    for oh in range(oh3):
        acc = jnp.dot(p3_ref[oh], w3_ref[...],
                      preferred_element_type=jnp.float32)           # (ow3, c3)
        act = jnp.maximum(acc + b3, 0.0).astype(jnp.bfloat16)
        for ow in range(ow3):
            flat_ref[:, pl.ds((oh * ow3 + ow) * c3, c3)] = act[ow:ow + 1, :]

    # ---- fc1 (single K = oh3*ow3*c3 matmul) -> fc2 (lane-dense, padded) ----
    h4 = jnp.dot(flat_ref[...], fw1_ref[...],
                 preferred_element_type=jnp.float32)                # (1, 512)
    h4 = jnp.maximum(h4 + fb1_ref[...], 0.0).astype(jnp.bfloat16)
    out = jnp.dot(h4, fw2_ref[...],
                  preferred_element_type=jnp.float32) + fb2_ref[...]  # (1, N_PAD)
    o_ref[0] = out


# ----------------------------------------------------------------------------
# Forward wrapper: one cheap layout prep on the input, then one pallas_call.
# ----------------------------------------------------------------------------
def dqn_forward(kp, x, *, ac_space):
    """x: (B, C, H, W) float32 (PyTorch layout) -> (B, ac_space) float32."""
    B, c0, H, W = x.shape
    oh1, ow1 = _conv_out(H, 8, 4), _conv_out(W, 8, 4)
    oh2, ow2 = _conv_out(oh1, 4, 2), _conv_out(ow1, 4, 2)
    oh3, ow3 = _conv_out(oh2, 3, 1), _conv_out(ow2, 3, 1)
    assert oh1 % 2 == 0 and ow1 % 2 == 0, "conv1 output spatial dims must be even"
    assert min(oh2, ow2, oh3, ow3) >= 1

    c1 = kp["c1_w"].shape[1]
    c2 = kp["c2_w"].shape[1]
    c3 = kp["c3_w"].shape[1]
    hdim = kp["fc1_w"].shape[1]
    assert kp["fc1_w"].shape[0] == oh3 * ow3 * c3

    # One NCHW->NHWC transpose and ONE bf16 cast, then a cheap crop/pad and a
    # contiguous reshape into the (H/4, 4, W/8, 8*C) grouped layout used by
    # the in-kernel im2col (padded/cropped region is never read by the convs).
    xg = jnp.transpose(x, (0, 2, 3, 1)).astype(jnp.bfloat16)
    hpad = 4 * (oh1 + 1)
    wpad = 8 * (ow1 // 2 + 1)
    xg = xg[:, :min(H, hpad), :min(W, wpad), :]
    xg = jnp.pad(xg, ((0, 0), (0, hpad - xg.shape[1]),
                      (0, wpad - xg.shape[2]), (0, 0)))
    xg = xg.reshape(B, hpad // 4, 4, wpad // 8, 8 * c0)

    kernel = functools.partial(_fused_dqn_kernel, c0=c0, oh1=oh1, ow1=ow1,
                               oh2=oh2, ow2=ow2, oh3=oh3, ow3=ow3)

    def _resident(shape):
        return pl.BlockSpec(shape, lambda b: (0,) * len(shape))

    out = pl.pallas_call(
        kernel,
        out_shape=jax.ShapeDtypeStruct((B, 1, N_PAD), jnp.float32),
        grid=(B,),
        in_specs=[
            pl.BlockSpec((1, hpad // 4, 4, wpad // 8, 8 * c0),
                         lambda b: (b, 0, 0, 0, 0)),                 # input
            _resident((8 * 8 * c0, c1)), _resident((1, c1)),         # conv1
            _resident((4 * 4 * c1, c2)), _resident((1, c2)),         # conv2
            _resident((3 * 3 * c2, c3)), _resident((1, c3)),         # conv3
            _resident((oh3 * ow3 * c3, hdim)), _resident((1, hdim)),  # fc1
            _resident((hdim, N_PAD)), _resident((1, N_PAD)),         # fc2
        ],
        out_specs=pl.BlockSpec((1, 1, N_PAD), lambda b: (b, 0, 0)),
        scratch_shapes=[
            pltpu.VMEM((oh1, ow1, 8 * 8 * c0), jnp.bfloat16),        # p1
            pltpu.VMEM((oh1 // 2, 2, ow1 // 2, 2 * c1), jnp.bfloat16),  # h1
            pltpu.VMEM((oh2, ow2, 4 * 4 * c1), jnp.bfloat16),        # p2
            pltpu.VMEM((oh2, ow2, c2), jnp.bfloat16),                # h2
            pltpu.VMEM((oh3, ow3, 3 * 3 * c2), jnp.bfloat16),        # p3
            pltpu.VMEM((1, oh3 * ow3 * c3), jnp.bfloat16),           # flat
        ],
        compiler_params=pltpu.CompilerParams(
            dimension_semantics=("parallel",),
            vmem_limit_bytes=_VMEM_LIMIT),
    )(xg, kp["c1_w"], kp["c1_b"], kp["c2_w"], kp["c2_b"],
      kp["c3_w"], kp["c3_b"], kp["fc1_w"], kp["fc1_b"],
      kp["fc2_w"], kp["fc2_b"])

    return out.reshape(B, N_PAD)[:, :ac_space]


# ----------------------------------------------------------------------------
# Parameters (PyTorch layout) + one-time kernel-ready re-layout
# ----------------------------------------------------------------------------
def init_params(key, nc, nh, nw, ac_space):
    """Synthetic params in PyTorch layout (Conv2d OIHW, Linear (out, in))."""
    h1, w1 = _conv_out(nh, 8, 4), _conv_out(nw, 8, 4)
    h2, w2 = _conv_out(h1, 4, 2), _conv_out(w1, 4, 2)
    h3, w3 = _conv_out(h2, 3, 1), _conv_out(w2, 3, 1)
    flat = 64 * h3 * w3
    keys = jax.random.split(key, 10)
    s = 0.05
    return {
        "conv1_w": s * jax.random.normal(keys[0], (32, nc, 8, 8), jnp.float32),
        "conv1_b": s * jax.random.normal(keys[1], (32,), jnp.float32),
        "conv2_w": s * jax.random.normal(keys[2], (64, 32, 4, 4), jnp.float32),
        "conv2_b": s * jax.random.normal(keys[3], (64,), jnp.float32),
        "conv3_w": s * jax.random.normal(keys[4], (64, 64, 3, 3), jnp.float32),
        "conv3_b": s * jax.random.normal(keys[5], (64,), jnp.float32),
        "fc1_w": s * jax.random.normal(keys[6], (512, flat), jnp.float32),
        "fc1_b": s * jax.random.normal(keys[7], (512,), jnp.float32),
        "fc2_w": s * jax.random.normal(keys[8], (ac_space, 512), jnp.float32),
        "fc2_b": s * jax.random.normal(keys[9], (ac_space,), jnp.float32),
    }


def prepare_params(params, nh, nw):
    """One-time re-layout of PyTorch-style params into kernel-ready form:
    conv weights -> (KH*KW*IC, OC) bf16 (tap-major, channel-fastest), fc1 rows
    permuted from NCHW- to NHWC-flatten order, fc2 zero-padded to N_PAD lanes."""
    def conv_w(w):
        oc, ic, kh, kw = w.shape
        return (jnp.transpose(w, (2, 3, 1, 0))
                .reshape(kh * kw * ic, oc).astype(jnp.bfloat16))

    def bias(b):
        return b.reshape(1, -1).astype(jnp.float32)

    h1, w1 = _conv_out(nh, 8, 4), _conv_out(nw, 8, 4)
    h2, w2 = _conv_out(h1, 4, 2), _conv_out(w1, 4, 2)
    h3, w3 = _conv_out(h2, 3, 1), _conv_out(w2, 3, 1)
    c3 = params["conv3_w"].shape[0]

    # fc1: PyTorch stores (512, C3*H3*W3) over an NCHW flatten; permute rows to
    # the NHWC flatten order (h, w, c) used by the kernel's flatten buffer.
    fc1 = params["fc1_w"].T.reshape(c3, h3, w3, -1)              # (C3, H3, W3, 512)
    fc1 = jnp.transpose(fc1, (1, 2, 0, 3)).reshape(h3 * w3 * c3, -1)

    ac = params["fc2_w"].shape[0]
    assert ac <= N_PAD
    fc2 = jnp.pad(params["fc2_w"].T, ((0, 0), (0, N_PAD - ac)))
    fc2_b = jnp.pad(params["fc2_b"], (0, N_PAD - ac))

    return {
        "c1_w": conv_w(params["conv1_w"]), "c1_b": bias(params["conv1_b"]),
        "c2_w": conv_w(params["conv2_w"]), "c2_b": bias(params["conv2_b"]),
        "c3_w": conv_w(params["conv3_w"]), "c3_b": bias(params["conv3_b"]),
        "fc1_w": fc1.astype(jnp.bfloat16), "fc1_b": bias(params["fc1_b"]),
        "fc2_w": fc2.astype(jnp.bfloat16), "fc2_b": bias(fc2_b),
    }


# ----------------------------------------------------------------------------
# Pure-JAX f32 reference with exact PyTorch semantics (NCHW, NCHW flatten)
# ----------------------------------------------------------------------------
def dqn_reference(params, x):
    hp = lax.Precision.HIGHEST

    def conv(x, w, b, s):
        y = lax.conv_general_dilated(
            x, w, window_strides=(s, s), padding="VALID",
            dimension_numbers=("NCHW", "OIHW", "NCHW"), precision=hp)
        return jax.nn.relu(y + b[None, :, None, None])

    x = conv(x, params["conv1_w"], params["conv1_b"], 4)
    x = conv(x, params["conv2_w"], params["conv2_b"], 2)
    x = conv(x, params["conv3_w"], params["conv3_b"], 1)
    x = x.reshape(x.shape[0], -1)
    x = jax.nn.relu(jnp.dot(x, params["fc1_w"].T, precision=hp) + params["fc1_b"])
    return jnp.dot(x, params["fc2_w"].T, precision=hp) + params["fc2_b"]


if __name__ == "__main__":
    # Small Atari-like config: nc = 1 * frame_history_len(4) = 4, spatial 44x44
    # -> conv chain 44 -> 10 -> 4 -> 2, flatten = 64*2*2 = 256.
    batch, nc, nh, nw = 2, 4, 44, 44
    ac_space = 6

    key = jax.random.PRNGKey(0)
    pkey, xkey = jax.random.split(key)
    params = init_params(pkey, nc, nh, nw, ac_space)
    x = jax.random.normal(xkey, (batch, nc, nh, nw), jnp.float32)

    kparams = prepare_params(params, nh, nw)
    fwd = jax.jit(functools.partial(dqn_forward, ac_space=ac_space))
    out = jax.block_until_ready(fwd(kparams, x))
    assert out.shape == (batch, ac_space), out.shape

    ref = dqn_reference(params, x)
    err = float(jnp.max(jnp.abs(out - ref)))
    # bf16 MXU operands / bf16 intermediates (f32 accumulation) -> loosened
    # tolerance vs the f32 reference.
    assert jnp.allclose(out, ref, atol=5e-2, rtol=5e-2), f"mismatch: max|diff|={err}"

    print("KERNEL_OK")
</pallas_src>

<mosaic_0001>
module attributes {stable_mosaic.version = 11 : i64} {
  func.func @_fused_dqn_kernel(%arg0: i32, %arg1: memref<1x11x4x6x32xbf16, #tpu.memory_space<vmem>>, %arg2: memref<256x32xbf16, #tpu.memory_space<vmem>>, %arg3: memref<1x32xf32, #tpu.memory_space<vmem>>, %arg4: memref<512x64xbf16, #tpu.memory_space<vmem>>, %arg5: memref<1x64xf32, #tpu.memory_space<vmem>>, %arg6: memref<576x64xbf16, #tpu.memory_space<vmem>>, %arg7: memref<1x64xf32, #tpu.memory_space<vmem>>, %arg8: memref<256x512xbf16, #tpu.memory_space<vmem>>, %arg9: memref<1x512xf32, #tpu.memory_space<vmem>>, %arg10: memref<512x128xbf16, #tpu.memory_space<vmem>>, %arg11: memref<1x128xf32, #tpu.memory_space<vmem>>, %arg12: memref<1x1x128xf32, #tpu.memory_space<vmem>>, %arg13: memref<10x10x256xbf16, #tpu.memory_space<vmem>>, %arg14: memref<5x2x5x64xbf16, #tpu.memory_space<vmem>>, %arg15: memref<4x4x512xbf16, #tpu.memory_space<vmem>>, %arg16: memref<4x4x64xbf16, #tpu.memory_space<vmem>>, %arg17: memref<2x2x576xbf16, #tpu.memory_space<vmem>>, %arg18: memref<1x256xbf16, #tpu.memory_space<vmem>>) attributes {dimension_semantics = [#tpu.dimension_semantics<parallel>], iteration_bounds = array<i64: 2>, scalar_prefetch = 0 : i64, scratch_operands = 6 : i64, tpu.core_type = #tpu.core_type<tc>, window_params = [{transform_indices = @transform_0, window_bounds = array<i64: 1, 11, 4, 6, 32>}, {pipeline_mode = #tpu.pipeline_mode<synchronous>, transform_indices = @transform_1, window_bounds = array<i64: 256, 32>}, {pipeline_mode = #tpu.pipeline_mode<synchronous>, transform_indices = @transform_2, window_bounds = array<i64: 1, 32>}, {pipeline_mode = #tpu.pipeline_mode<synchronous>, transform_indices = @transform_3, window_bounds = array<i64: 512, 64>}, {pipeline_mode = #tpu.pipeline_mode<synchronous>, transform_indices = @transform_4, window_bounds = array<i64: 1, 64>}, {pipeline_mode = #tpu.pipeline_mode<synchronous>, transform_indices = @transform_5, window_bounds = array<i64: 576, 64>}, {pipeline_mode = #tpu.pipeline_mode<synchronous>, transform_indices = @transform_6, window_bounds = array<i64: 1, 64>}, {pipeline_mode = #tpu.pipeline_mode<synchronous>, transform_indices = @transform_7, window_bounds = array<i64: 256, 512>}, {pipeline_mode = #tpu.pipeline_mode<synchronous>, transform_indices = @transform_8, window_bounds = array<i64: 1, 512>}, {pipeline_mode = #tpu.pipeline_mode<synchronous>, transform_indices = @transform_9, window_bounds = array<i64: 512, 128>}, {pipeline_mode = #tpu.pipeline_mode<synchronous>, transform_indices = @transform_10, window_bounds = array<i64: 1, 128>}, {transform_indices = @transform_11, window_bounds = array<i64: 1, 1, 128>}]} {
    %c0 = arith.constant 0 : index
    %c0_0 = arith.constant 0 : index
    %0 = vector.load %arg3[%c0, %c0_0] : memref<1x32xf32, #tpu.memory_space<vmem>>, vector<1x32xf32>
    %c0_1 = arith.constant 0 : index
    %c0_2 = arith.constant 0 : index
    %1 = vector.load %arg5[%c0_1, %c0_2] : memref<1x64xf32, #tpu.memory_space<vmem>>, vector<1x64xf32>
    %c0_3 = arith.constant 0 : index
    %c0_4 = arith.constant 0 : index
    %2 = vector.load %arg7[%c0_3, %c0_4] : memref<1x64xf32, #tpu.memory_space<vmem>>, vector<1x64xf32>
    %c0_5 = arith.constant 0 : index
    %c0_6 = arith.constant 0 : index
    %c0_7 = arith.constant 0 : index
    %c0_8 = arith.constant 0 : index
    %c0_9 = arith.constant 0 : index
    %3 = vector.load %arg1[%c0_5, %c0_6, %c0_7, %c0_8, %c0_9] : memref<1x11x4x6x32xbf16, #tpu.memory_space<vmem>>, vector<1x10x1x5x32xbf16>
    %4 = vector.shape_cast %3 : vector<1x10x1x5x32xbf16> to vector<10x5x32xbf16>
    %c0_10 = arith.constant 0 : index
    %c0_11 = arith.constant 0 : index
    %c0_12 = arith.constant 0 : index
    %5 = vector.load %arg13[%c0_10, %c0_11, %c0_12] : memref<10x10x256xbf16, #tpu.memory_space<vmem>>, vector<10x5x32xbf16>
    tpu.vector_store %arg13[%c0_10, %c0_11, %c0_12], %4 {strides = array<i32>} : memref<10x10x256xbf16, #tpu.memory_space<vmem>>, vector<10x5x32xbf16>,
    %c0_13 = arith.constant 0 : index
    %c0_14 = arith.constant 0 : index
    %c0_15 = arith.constant 0 : index
    %c0_16 = arith.constant 0 : index
    %c16 = arith.constant 16 : index
    %6 = vector.load %arg1[%c0_13, %c0_14, %c0_15, %c0_16, %c16] : memref<1x11x4x6x32xbf16, #tpu.memory_space<vmem>>, vector<1x10x1x5x16xbf16>
    %7 = vector.shape_cast %6 : vector<1x10x1x5x16xbf16> to vector<10x5x16xbf16>
    %c0_17 = arith.constant 0 : index
    %c5 = arith.constant 5 : index
    %c0_18 = arith.constant 0 : index
    %8 = vector.load %arg13[%c0_17, %c5, %c0_18] : memref<10x10x256xbf16, #tpu.memory_space<vmem>>, vector<10x5x16xbf16>
    tpu.vector_store %arg13[%c0_17, %c5, %c0_18], %7 {strides = array<i32>} : memref<10x10x256xbf16, #tpu.memory_space<vmem>>, vector<10x5x16xbf16>,
    %c0_19 = arith.constant 0 : index
    %c0_20 = arith.constant 0 : index
    %c0_21 = arith.constant 0 : index
    %c1 = arith.constant 1 : index
    %c0_22 = arith.constant 0 : index
    %9 = vector.load %arg1[%c0_19, %c0_20, %c0_21, %c1, %c0_22] : memref<1x11x4x6x32xbf16, #tpu.memory_space<vmem>>, vector<1x10x1x5x16xbf16>
    %10 = vector.shape_cast %9 : vector<1x10x1x5x16xbf16> to vector<10x5x16xbf16>
    %c0_23 = arith.constant 0 : index
    %c5_24 = arith.constant 5 : index
    %c16_25 = arith.constant 16 : index
    %11 = vector.load %arg13[%c0_23, %c5_24, %c16_25] : memref<10x10x256xbf16, #tpu.memory_space<vmem>>, vector<10x5x16xbf16>
    tpu.vector_store %arg13[%c0_23, %c5_24, %c16_25], %10 {strides = array<i32>} : memref<10x10x256xbf16, #tpu.memory_space<vmem>>, vector<10x5x16xbf16>,
    %c0_26 = arith.constant 0 : index
    %c0_27 = arith.constant 0 : index
    %c1_28 = arith.constant 1 : index
    %c0_29 = arith.constant 0 : index
    %c0_30 = arith.constant 0 : index
    %12 = vector.load %arg1[%c0_26, %c0_27, %c1_28, %c0_29, %c0_30] : memref<1x11x4x6x32xbf16, #tpu.memory_space<vmem>>, vector<1x10x1x5x32xbf16>
    %13 = vector.shape_cast %12 : vector<1x10x1x5x32xbf16> to vector<10x5x32xbf16>
    %c0_31 = arith.constant 0 : index
    %c0_32 = arith.constant 0 : index
    %c32 = arith.constant 32 : index
    %14 = vector.load %arg13[%c0_31, %c0_32, %c32] : memref<10x10x256xbf16, #tpu.memory_space<vmem>>, vector<10x5x32xbf16>
    tpu.vector_store %arg13[%c0_31, %c0_32, %c32], %13 {strides = array<i32>} : memref<10x10x256xbf16, #tpu.memory_space<vmem>>, vector<10x5x32xbf16>,
    %c0_33 = arith.constant 0 : index
    %c0_34 = arith.constant 0 : index
    %c1_35 = arith.constant 1 : index
    %c0_36 = arith.constant 0 : index
    %c16_37 = arith.constant 16 : index
    %15 = vector.load %arg1[%c0_33, %c0_34, %c1_35, %c0_36, %c16_37] : memref<1x11x4x6x32xbf16, #tpu.memory_space<vmem>>, vector<1x10x1x5x16xbf16>
    %16 = vector.shape_cast %15 : vector<1x10x1x5x16xbf16> to vector<10x5x16xbf16>
    %c0_38 = arith.constant 0 : index
    %c5_39 = arith.constant 5 : index
    %c32_40 = arith.constant 32 : index
    %17 = vector.load %arg13[%c0_38, %c5_39, %c32_40] : memref<10x10x256xbf16, #tpu.memory_space<vmem>>, vector<10x5x16xbf16>
    tpu.vector_store %arg13[%c0_38, %c5_39, %c32_40], %16 {strides = array<i32>} : memref<10x10x256xbf16, #tpu.memory_space<vmem>>, vector<10x5x16xbf16>,
    %c0_41 = arith.constant 0 : index
    %c0_42 = arith.constant 0 : index
    %c1_43 = arith.constant 1 : index
    %c1_44 = arith.constant 1 : index
    %c0_45 = arith.constant 0 : index
    %18 = vector.load %arg1[%c0_41, %c0_42, %c1_43, %c1_44, %c0_45] : memref<1x11x4x6x32xbf16, #tpu.memory_space<vmem>>, vector<1x10x1x5x16xbf16>
    %19 = vector.shape_cast %18 : vector<1x10x1x5x16xbf16> to vector<10x5x16xbf16>
    %c0_46 = arith.constant 0 : index
    %c5_47 = arith.constant 5 : index
    %c48 = arith.constant 48 : index
    %20 = vector.load %arg13[%c0_46, %c5_47, %c48] : memref<10x10x256xbf16, #tpu.memory_space<vmem>>, vector<10x5x16xbf16>
    tpu.vector_store %arg13[%c0_46, %c5_47, %c48], %19 {strides = array<i32>} : memref<10x10x256xbf16, #tpu.memory_space<vmem>>, vector<10x5x16xbf16>,
    %c0_48 = arith.constant 0 : index
    %c0_49 = arith.constant 0 : index
    %c2 = arith.constant 2 : index
    %c0_50 = arith.constant 0 : index
    %c0_51 = arith.constant 0 : index
    %21 = vector.load %arg1[%c0_48, %c0_49, %c2, %c0_50, %c0_51] : memref<1x11x4x6x32xbf16, #tpu.memory_space<vmem>>, vector<1x10x1x5x32xbf16>
    %22 = vector.shape_cast %21 : vector<1x10x1x5x32xbf16> to vector<10x5x32xbf16>
    %c0_52 = arith.constant 0 : index
    %c0_53 = arith.constant 0 : index
    %c64 = arith.constant 64 : index
    %23 = vector.load %arg13[%c0_52, %c0_53, %c64] : memref<10x10x256xbf16, #tpu.memory_space<vmem>>, vector<10x5x32xbf16>
    tpu.vector_store %arg13[%c0_52, %c0_53, %c64], %22 {strides = array<i32>} : memref<10x10x256xbf16, #tpu.memory_space<vmem>>, vector<10x5x32xbf16>,
    %c0_54 = arith.constant 0 : index
    %c0_55 = arith.constant 0 : index
    %c2_56 = arith.constant 2 : index
    %c0_57 = arith.constant 0 : index
    %c16_58 = arith.constant 16 : index
    %24 = vector.load %arg1[%c0_54, %c0_55, %c2_56, %c0_57, %c16_58] : memref<1x11x4x6x32xbf16, #tpu.memory_space<vmem>>, vector<1x10x1x5x16xbf16>
    %25 = vector.shape_cast %24 : vector<1x10x1x5x16xbf16> to vector<10x5x16xbf16>
    %c0_59 = arith.constant 0 : index
    %c5_60 = arith.constant 5 : index
    %c64_61 = arith.constant 64 : index
    %26 = vector.load %arg13[%c0_59, %c5_60, %c64_61] : memref<10x10x256xbf16, #tpu.memory_space<vmem>>, vector<10x5x16xbf16>
    tpu.vector_store %arg13[%c0_59, %c5_60, %c64_61], %25 {strides = array<i32>} : memref<10x10x256xbf16, #tpu.memory_space<vmem>>, vector<10x5x16xbf16>,
    %c0_62 = arith.constant 0 : index
    %c0_63 = arith.constant 0 : index
    %c2_64 = arith.constant 2 : index
    %c1_65 = arith.constant 1 : index
    %c0_66 = arith.constant 0 : index
    %27 = vector.load %arg1[%c0_62, %c0_63, %c2_64, %c1_65, %c0_66] : memref<1x11x4x6x32xbf16, #tpu.memory_space<vmem>>, vector<1x10x1x5x16xbf16>
    %28 = vector.shape_cast %27 : vector<1x10x1x5x16xbf16> to vector<10x5x16xbf16>
    %c0_67 = arith.constant 0 : index
    %c5_68 = arith.constant 5 : index
    %c80 = arith.constant 80 : index
    %29 = vector.load %arg13[%c0_67, %c5_68, %c80] : memref<10x10x256xbf16, #tpu.memory_space<vmem>>, vector<10x5x16xbf16>
    tpu.vector_store %arg13[%c0_67, %c5_68, %c80], %28 {strides = array<i32>} : memref<10x10x256xbf16, #tpu.memory_space<vmem>>, vector<10x5x16xbf16>,
    %c0_69 = arith.constant 0 : index
    %c0_70 = arith.constant 0 : index
    %c3 = arith.constant 3 : index
    %c0_71 = arith.constant 0 : index
    %c0_72 = arith.constant 0 : index
    %30 = vector.load %arg1[%c0_69, %c0_70, %c3, %c0_71, %c0_72] : memref<1x11x4x6x32xbf16, #tpu.memory_space<vmem>>, vector<1x10x1x5x32xbf16>
    %31 = vector.shape_cast %30 : vector<1x10x1x5x32xbf16> to vector<10x5x32xbf16>
    %c0_73 = arith.constant 0 : index
    %c0_74 = arith.constant 0 : index
    %c96 = arith.constant 96 : index
    %32 = vector.load %arg13[%c0_73, %c0_74, %c96] : memref<10x10x256xbf16, #tpu.memory_space<vmem>>, vector<10x5x32xbf16>
    tpu.vector_store %arg13[%c0_73, %c0_74, %c96], %31 {strides = array<i32>} : memref<10x10x256xbf16, #tpu.memory_space<vmem>>, vector<10x5x32xbf16>,
    %c0_75 = arith.constant 0 : index
    %c0_76 = arith.constant 0 : index
    %c3_77 = arith.constant 3 : index
    %c0_78 = arith.constant 0 : index
    %c16_79 = arith.constant 16 : index
    %33 = vector.load %arg1[%c0_75, %c0_76, %c3_77, %c0_78, %c16_79] : memref<1x11x4x6x32xbf16, #tpu.memory_space<vmem>>, vector<1x10x1x5x16xbf16>
    %34 = vector.shape_cast %33 : vector<1x10x1x5x16xbf16> to vector<10x5x16xbf16>
    %c0_80 = arith.constant 0 : index
    %c5_81 = arith.constant 5 : index
    %c96_82 = arith.constant 96 : index
    %35 = vector.load %arg13[%c0_80, %c5_81, %c96_82] : memref<10x10x256xbf16, #tpu.memory_space<vmem>>, vector<10x5x16xbf16>
    tpu.vector_store %arg13[%c0_80, %c5_81, %c96_82], %34 {strides = array<i32>} : memref<10x10x256xbf16, #tpu.memory_space<vmem>>, vector<10x5x16xbf16>,
    %c0_83 = arith.constant 0 : index
    %c0_84 = arith.constant 0 : index
    %c3_85 = arith.constant 3 : index
    %c1_86 = arith.constant 1 : index
    %c0_87 = arith.constant 0 : index
    %36 = vector.load %arg1[%c0_83, %c0_84, %c3_85, %c1_86, %c0_87] : memref<1x11x4x6x32xbf16, #tpu.memory_space<vmem>>, vector<1x10x1x5x16xbf16>
    %37 = vector.shape_cast %36 : vector<1x10x1x5x16xbf16> to vector<10x5x16xbf16>
    %c0_88 = arith.constant 0 : index
    %c5_89 = arith.constant 5 : index
    %c112 = arith.constant 112 : index
    %38 = vector.load %arg13[%c0_88, %c5_89, %c112] : memref<10x10x256xbf16, #tpu.memory_space<vmem>>, vector<10x5x16xbf16>
    tpu.vector_store %arg13[%c0_88, %c5_89, %c112], %37 {strides = array<i32>} : memref<10x10x256xbf16, #tpu.memory_space<vmem>>, vector<10x5x16xbf16>,
    %c0_90 = arith.constant 0 : index
    %c1_91 = arith.constant 1 : index
    %c0_92 = arith.constant 0 : index
    %c0_93 = arith.constant 0 : index
    %c0_94 = arith.constant 0 : index
    %39 = vector.load %arg1[%c0_90, %c1_91, %c0_92, %c0_93, %c0_94] : memref<1x11x4x6x32xbf16, #tpu.memory_space<vmem>>, vector<1x10x1x5x32xbf16>
    %40 = vector.shape_cast %39 : vector<1x10x1x5x32xbf16> to vector<10x5x32xbf16>
    %c0_95 = arith.constant 0 : index
    %c0_96 = arith.constant 0 : index
    %c128 = arith.constant 128 : index
    %41 = vector.load %arg13[%c0_95, %c0_96, %c128] : memref<10x10x256xbf16, #tpu.memory_space<vmem>>, vector<10x5x32xbf16>
    tpu.vector_store %arg13[%c0_95, %c0_96, %c128], %40 {strides = array<i32>} : memref<10x10x256xbf16, #tpu.memory_space<vmem>>, vector<10x5x32xbf16>,
    %c0_97 = arith.constant 0 : index
    %c1_98 = arith.constant 1 : index
    %c0_99 = arith.constant 0 : index
    %c0_100 = arith.constant 0 : index
    %c16_101 = arith.constant 16 : index
    %42 = vector.load %arg1[%c0_97, %c1_98, %c0_99, %c0_100, %c16_101] : memref<1x11x4x6x32xbf16, #tpu.memory_space<vmem>>, vector<1x10x1x5x16xbf16>
    %43 = vector.shape_cast %42 : vector<1x10x1x5x16xbf16> to vector<10x5x16xbf16>
    %c0_102 = arith.constant 0 : index
    %c5_103 = arith.constant 5 : index
    %c128_104 = arith.constant 128 : index
    %44 = vector.load %arg13[%c0_102, %c5_103, %c128_104] : memref<10x10x256xbf16, #tpu.memory_space<vmem>>, vector<10x5x16xbf16>
    tpu.vector_store %arg13[%c0_102, %c5_103, %c128_104], %43 {strides = array<i32>} : memref<10x10x256xbf16, #tpu.memory_space<vmem>>, vector<10x5x16xbf16>,
    %c0_105 = arith.constant 0 : index
    %c1_106 = arith.constant 1 : index
    %c0_107 = arith.constant 0 : index
    %c1_108 = arith.constant 1 : index
    %c0_109 = arith.constant 0 : index
    %45 = vector.load %arg1[%c0_105, %c1_106, %c0_107, %c1_108, %c0_109] : memref<1x11x4x6x32xbf16, #tpu.memory_space<vmem>>, vector<1x10x1x5x16xbf16>
    %46 = vector.shape_cast %45 : vector<1x10x1x5x16xbf16> to vector<10x5x16xbf16>
    %c0_110 = arith.constant 0 : index
    %c5_111 = arith.constant 5 : index
    %c144 = arith.constant 144 : index
    %47 = vector.load %arg13[%c0_110, %c5_111, %c144] : memref<10x10x256xbf16, #tpu.memory_space<vmem>>, vector<10x5x16xbf16>
    tpu.vector_store %arg13[%c0_110, %c5_111, %c144], %46 {strides = array<i32>} : memref<10x10x256xbf16, #tpu.memory_space<vmem>>, vector<10x5x16xbf16>,
    %c0_112 = arith.constant 0 : index
    %c1_113 = arith.constant 1 : index
    %c1_114 = arith.constant 1 : index
    %c0_115 = arith.constant 0 : index
    %c0_116 = arith.constant 0 : index
    %48 = vector.load %arg1[%c0_112, %c1_113, %c1_114, %c0_115, %c0_116] : memref<1x11x4x6x32xbf16, #tpu.memory_space<vmem>>, vector<1x10x1x5x32xbf16>
    %49 = vector.shape_cast %48 : vector<1x10x1x5x32xbf16> to vector<10x5x32xbf16>
    %c0_117 = arith.constant 0 : index
    %c0_118 = arith.constant 0 : index
    %c160 = arith.constant 160 : index
    %50 = vector.load %arg13[%c0_117, %c0_118, %c160] : memref<10x10x256xbf16, #tpu.memory_space<vmem>>, vector<10x5x32xbf16>
    tpu.vector_store %arg13[%c0_117, %c0_118, %c160], %49 {strides = array<i32>} : memref<10x10x256xbf16, #tpu.memory_space<vmem>>, vector<10x5x32xbf16>,
    %c0_119 = arith.constant 0 : index
    %c1_120 = arith.constant 1 : index
    %c1_121 = arith.constant 1 : index
    %c0_122 = arith.constant 0 : index
    %c16_123 = arith.constant 16 : index
    %51 = vector.load %arg1[%c0_119, %c1_120, %c1_121, %c0_122, %c16_123] : memref<1x11x4x6x32xbf16, #tpu.memory_space<vmem>>, vector<1x10x1x5x16xbf16>
    %52 = vector.shape_cast %51 : vector<1x10x1x5x16xbf16> to vector<10x5x16xbf16>
    %c0_124 = arith.constant 0 : index
    %c5_125 = arith.constant 5 : index
    %c160_126 = arith.constant 160 : index
    %53 = vector.load %arg13[%c0_124, %c5_125, %c160_126] : memref<10x10x256xbf16, #tpu.memory_space<vmem>>, vector<10x5x16xbf16>
    tpu.vector_store %arg13[%c0_124, %c5_125, %c160_126], %52 {strides = array<i32>} : memref<10x10x256xbf16, #tpu.memory_space<vmem>>, vector<10x5x16xbf16>,
    %c0_127 = arith.constant 0 : index
    %c1_128 = arith.constant 1 : index
    %c1_129 = arith.constant 1 : index
    %c1_130 = arith.constant 1 : index
    %c0_131 = arith.constant 0 : index
    %54 = vector.load %arg1[%c0_127, %c1_128, %c1_129, %c1_130, %c0_131] : memref<1x11x4x6x32xbf16, #tpu.memory_space<vmem>>, vector<1x10x1x5x16xbf16>
    %55 = vector.shape_cast %54 : vector<1x10x1x5x16xbf16> to vector<10x5x16xbf16>
    %c0_132 = arith.constant 0 : index
    %c5_133 = arith.constant 5 : index
    %c176 = arith.constant 176 : index
    %56 = vector.load %arg13[%c0_132, %c5_133, %c176] : memref<10x10x256xbf16, #tpu.memory_space<vmem>>, vector<10x5x16xbf16>
    tpu.vector_store %arg13[%c0_132, %c5_133, %c176], %55 {strides = array<i32>} : memref<10x10x256xbf16, #tpu.memory_space<vmem>>, vector<10x5x16xbf16>,
    %c0_134 = arith.constant 0 : index
    %c1_135 = arith.constant 1 : index
    %c2_136 = arith.constant 2 : index
    %c0_137 = arith.constant 0 : index
    %c0_138 = arith.constant 0 : index
    %57 = vector.load %arg1[%c0_134, %c1_135, %c2_136, %c0_137, %c0_138] : memref<1x11x4x6x32xbf16, #tpu.memory_space<vmem>>, vector<1x10x1x5x32xbf16>
    %58 = vector.shape_cast %57 : vector<1x10x1x5x32xbf16> to vector<10x5x32xbf16>
    %c0_139 = arith.constant 0 : index
    %c0_140 = arith.constant 0 : index
    %c192 = arith.constant 192 : index
    %59 = vector.load %arg13[%c0_139, %c0_140, %c192] : memref<10x10x256xbf16, #tpu.memory_space<vmem>>, vector<10x5x32xbf16>
    tpu.vector_store %arg13[%c0_139, %c0_140, %c192], %58 {strides = array<i32>} : memref<10x10x256xbf16, #tpu.memory_space<vmem>>, vector<10x5x32xbf16>,
    %c0_141 = arith.constant 0 : index
    %c1_142 = arith.constant 1 : index
    %c2_143 = arith.constant 2 : index
    %c0_144 = arith.constant 0 : index
    %c16_145 = arith.constant 16 : index
    %60 = vector.load %arg1[%c0_141, %c1_142, %c2_143, %c0_144, %c16_145] : memref<1x11x4x6x32xbf16, #tpu.memory_space<vmem>>, vector<1x10x1x5x16xbf16>
    %61 = vector.shape_cast %60 : vector<1x10x1x5x16xbf16> to vector<10x5x16xbf16>
    %c0_146 = arith.constant 0 : index
    %c5_147 = arith.constant 5 : index
    %c192_148 = arith.constant 192 : index
    %62 = vector.load %arg13[%c0_146, %c5_147, %c192_148] : memref<10x10x256xbf16, #tpu.memory_space<vmem>>, vector<10x5x16xbf16>
    tpu.vector_store %arg13[%c0_146, %c5_147, %c192_148], %61 {strides = array<i32>} : memref<10x10x256xbf16, #tpu.memory_space<vmem>>, vector<10x5x16xbf16>,
    %c0_149 = arith.constant 0 : index
    %c1_150 = arith.constant 1 : index
    %c2_151 = arith.constant 2 : index
    %c1_152 = arith.constant 1 : index
    %c0_153 = arith.constant 0 : index
    %63 = vector.load %arg1[%c0_149, %c1_150, %c2_151, %c1_152, %c0_153] : memref<1x11x4x6x32xbf16, #tpu.memory_space<vmem>>, vector<1x10x1x5x16xbf16>
    %64 = vector.shape_cast %63 : vector<1x10x1x5x16xbf16> to vector<10x5x16xbf16>
    %c0_154 = arith.constant 0 : index
    %c5_155 = arith.constant 5 : index
    %c208 = arith.constant 208 : index
    %65 = vector.load %arg13[%c0_154, %c5_155, %c208] : memref<10x10x256xbf16, #tpu.memory_space<vmem>>, vector<10x5x16xbf16>
    tpu.vector_store %arg13[%c0_154, %c5_155, %c208], %64 {strides = array<i32>} : memref<10x10x256xbf16, #tpu.memory_space<vmem>>, vector<10x5x16xbf16>,
    %c0_156 = arith.constant 0 : index
    %c1_157 = arith.constant 1 : index
    %c3_158 = arith.constant 3 : index
    %c0_159 = arith.constant 0 : index
    %c0_160 = arith.constant 0 : index
    %66 = vector.load %arg1[%c0_156, %c1_157, %c3_158, %c0_159, %c0_160] : memref<1x11x4x6x32xbf16, #tpu.memory_space<vmem>>, vector<1x10x1x5x32xbf16>
    %67 = vector.shape_cast %66 : vector<1x10x1x5x32xbf16> to vector<10x5x32xbf16>
    %c0_161 = arith.constant 0 : index
    %c0_162 = arith.constant 0 : index
    %c224 = arith.constant 224 : index
    %68 = vector.load %arg13[%c0_161, %c0_162, %c224] : memref<10x10x256xbf16, #tpu.memory_space<vmem>>, vector<10x5x32xbf16>
    tpu.vector_store %arg13[%c0_161, %c0_162, %c224], %67 {strides = array<i32>} : memref<10x10x256xbf16, #tpu.memory_space<vmem>>, vector<10x5x32xbf16>,
    %c0_163 = arith.constant 0 : index
    %c1_164 = arith.constant 1 : index
    %c3_165 = arith.constant 3 : index
    %c0_166 = arith.constant 0 : index
    %c16_167 = arith.constant 16 : index
    %69 = vector.load %arg1[%c0_163, %c1_164, %c3_165, %c0_166, %c16_167] : memref<1x11x4x6x32xbf16, #tpu.memory_space<vmem>>, vector<1x10x1x5x16xbf16>
    %70 = vector.shape_cast %69 : vector<1x10x1x5x16xbf16> to vector<10x5x16xbf16>
    %c0_168 = arith.constant 0 : index
    %c5_169 = arith.constant 5 : index
    %c224_170 = arith.constant 224 : index
    %71 = vector.load %arg13[%c0_168, %c5_169, %c224_170] : memref<10x10x256xbf16, #tpu.memory_space<vmem>>, vector<10x5x16xbf16>
    tpu.vector_store %arg13[%c0_168, %c5_169, %c224_170], %70 {strides = array<i32>} : memref<10x10x256xbf16, #tpu.memory_space<vmem>>, vector<10x5x16xbf16>,
    %c0_171 = arith.constant 0 : index
    %c1_172 = arith.constant 1 : index
    %c3_173 = arith.constant 3 : index
    %c1_174 = arith.constant 1 : index
    %c0_175 = arith.constant 0 : index
    %72 = vector.load %arg1[%c0_171, %c1_172, %c3_173, %c1_174, %c0_175] : memref<1x11x4x6x32xbf16, #tpu.memory_space<vmem>>, vector<1x10x1x5x16xbf16>
    %73 = vector.shape_cast %72 : vector<1x10x1x5x16xbf16> to vector<10x5x16xbf16>
    %c0_176 = arith.constant 0 : index
    %c5_177 = arith.constant 5 : index
    %c240 = arith.constant 240 : index
    %74 = vector.load %arg13[%c0_176, %c5_177, %c240] : memref<10x10x256xbf16, #tpu.memory_space<vmem>>, vector<10x5x16xbf16>
    tpu.vector_store %arg13[%c0_176, %c5_177, %c240], %73 {strides = array<i32>} : memref<10x10x256xbf16, #tpu.memory_space<vmem>>, vector<10x5x16xbf16>,
    %c0_178 = arith.constant 0 : index
    %c0_179 = arith.constant 0 : index
    %c0_180 = arith.constant 0 : index
    %75 = vector.load %arg13[%c0_178, %c0_179, %c0_180] : memref<10x10x256xbf16, #tpu.memory_space<vmem>>, vector<1x10x256xbf16>
    %76 = vector.shape_cast %75 : vector<1x10x256xbf16> to vector<10x256xbf16>
    %c0_181 = arith.constant 0 : index
    %c0_182 = arith.constant 0 : index
    %77 = vector.load %arg2[%c0_181, %c0_182] : memref<256x32xbf16, #tpu.memory_space<vmem>>, vector<256x32xbf16>
    %cst = arith.constant dense<0.000000e+00> : vector<10x32xf32>
    %78 = tpu.matmul %76, %77, %cst {dimension_numbers = #tpu.dot_dimension_numbers<[1], [0], [0], [1], [0, 0, 1, 1], [], []>} : vector<10x256xbf16>, vector<256x32xbf16>, vector<10x32xf32> -> vector<10x32xf32>
    %79 = vector.broadcast %0 : vector<1x32xf32> to vector<10x32xf32>
    %80 = arith.addf %78, %79 : vector<10x32xf32>
    %cst_183 = arith.constant 0.000000e+00 : f32
    %81 = vector.broadcast %cst_183 : f32 to vector<10x32xf32>
    %82 = arith.maximumf %80, %81 : vector<10x32xf32>
    %83 = arith.truncf %82 : vector<10x32xf32> to vector<10x32xbf16>
    %84 = vector.extract_strided_slice %83 {offsets = [0, 0], sizes = [5, 32], strides = [1, 1]} : vector<10x32xbf16> to vector<5x32xbf16>
    %c0_184 = arith.constant 0 : index
    %c0_185 = arith.constant 0 : index
    %c0_186 = arith.constant 0 : index
    %c0_187 = arith.constant 0 : index
    %85 = vector.load %arg14[%c0_184, %c0_185, %c0_186, %c0_187] : memref<5x2x5x64xbf16, #tpu.memory_space<vmem>>, vector<1x1x5x32xbf16>
    %86 = vector.shape_cast %85 : vector<1x1x5x32xbf16> to vector<5x32xbf16>
    %87 = vector.shape_cast %84 : vector<5x32xbf16> to vector<1x1x5x32xbf16>
    tpu.vector_store %arg14[%c0_184, %c0_185, %c0_186, %c0_187], %87 {strides = array<i32>} : memref<5x2x5x64xbf16, #tpu.memory_space<vmem>>, vector<1x1x5x32xbf16>,
    %88 = vector.extract_strided_slice %83 {offsets = [5, 0], sizes = [5, 32], strides = [1, 1]} : vector<10x32xbf16> to vector<5x32xbf16>
    %c0_188 = arith.constant 0 : index
    %c0_189 = arith.constant 0 : index
    %c0_190 = arith.constant 0 : index
    %c32_191 = arith.constant 32 : index
    %89 = vector.load %arg14[%c0_188, %c0_189, %c0_190, %c32_191] : memref<5x2x5x64xbf16, #tpu.memory_space<vmem>>, vector<1x1x5x32xbf16>
    %90 = vector.shape_cast %89 : vector<1x1x5x32xbf16> to vector<5x32xbf16>
    %91 = vector.shape_cast %88 : vector<5x32xbf16> to vector<1x1x5x32xbf16>
    tpu.vector_store %arg14[%c0_188, %c0_189, %c0_190, %c32_191], %91 {strides = array<i32>} : memref<5x2x5x64xbf16, #tpu.memory_space<vmem>>, vector<1x1x5x32xbf16>,
    %c1_192 = arith.constant 1 : index
    %c0_193 = arith.constant 0 : index
    %c0_194 = arith.constant 0 : index
    %92 = vector.load %arg13[%c1_192, %c0_193, %c0_194] : memref<10x10x256xbf16, #tpu.memory_space<vmem>>, vector<1x10x256xbf16>
    %93 = vector.shape_cast %92 : vector<1x10x256xbf16> to vector<10x256xbf16>
    %c0_195 = arith.constant 0 : index
    %c0_196 = arith.constant 0 : index
    %94 = vector.load %arg2[%c0_195, %c0_196] : memref<256x32xbf16, #tpu.memory_space<vmem>>, vector<256x32xbf16>
    %cst_197 = arith.constant dense<0.000000e+00> : vector<10x32xf32>
    %95 = tpu.matmul %93, %94, %cst_197 {dimension_numbers = #tpu.dot_dimension_numbers<[1], [0], [0], [1], [0, 0, 1, 1], [], []>} : vector<10x256xbf16>, vector<256x32xbf16>, vector<10x32xf32> -> vector<10x32xf32>
    %96 = vector.broadcast %0 : vector<1x32xf32> to vector<10x32xf32>
    %97 = arith.addf %95, %96 : vector<10x32xf32>
    %cst_198 = arith.constant 0.000000e+00 : f32
    %98 = vector.broadcast %cst_198 : f32 to vector<10x32xf32>
    %99 = arith.maximumf %97, %98 : vector<10x32xf32>
    %100 = arith.truncf %99 : vector<10x32xf32> to vector<10x32xbf16>
    %101 = vector.extract_strided_slice %100 {offsets = [0, 0], sizes = [5, 32], strides = [1, 1]} : vector<10x32xbf16> to vector<5x32xbf16>
    %c0_199 = arith.constant 0 : index
    %c1_200 = arith.constant 1 : index
    %c0_201 = arith.constant 0 : index
    %c0_202 = arith.constant 0 : index
    %102 = vector.load %arg14[%c0_199, %c1_200, %c0_201, %c0_202] : memref<5x2x5x64xbf16, #tpu.memory_space<vmem>>, vector<1x1x5x32xbf16>
    %103 = vector.shape_cast %102 : vector<1x1x5x32xbf16> to vector<5x32xbf16>
    %104 = vector.shape_cast %101 : vector<5x32xbf16> to vector<1x1x5x32xbf16>
    tpu.vector_store %arg14[%c0_199, %c1_200, %c0_201, %c0_202], %104 {strides = array<i32>} : memref<5x2x5x64xbf16, #tpu.memory_space<vmem>>, vector<1x1x5x32xbf16>,
    %105 = vector.extract_strided_slice %100 {offsets = [5, 0], sizes = [5, 32], strides = [1, 1]} : vector<10x32xbf16> to vector<5x32xbf16>
    %c0_203 = arith.constant 0 : index
    %c1_204 = arith.constant 1 : index
    %c0_205 = arith.constant 0 : index
    %c32_206 = arith.constant 32 : index
    %106 = vector.load %arg14[%c0_203, %c1_204, %c0_205, %c32_206] : memref<5x2x5x64xbf16, #tpu.memory_space<vmem>>, vector<1x1x5x32xbf16>
    %107 = vector.shape_cast %106 : vector<1x1x5x32xbf16> to vector<5x32xbf16>
    %108 = vector.shape_cast %105 : vector<5x32xbf16> to vector<1x1x5x32xbf16>
    tpu.vector_store %arg14[%c0_203, %c1_204, %c0_205, %c32_206], %108 {strides = array<i32>} : memref<5x2x5x64xbf16, #tpu.memory_space<vmem>>, vector<1x1x5x32xbf16>,
    %c2_207 = arith.constant 2 : index
    %c0_208 = arith.constant 0 : index
    %c0_209 = arith.constant 0 : index
    %109 = vector.load %arg13[%c2_207, %c0_208, %c0_209] : memref<10x10x256xbf16, #tpu.memory_space<vmem>>, vector<1x10x256xbf16>
    %110 = vector.shape_cast %109 : vector<1x10x256xbf16> to vector<10x256xbf16>
    %c0_210 = arith.constant 0 : index
    %c0_211 = arith.constant 0 : index
    %111 = vector.load %arg2[%c0_210, %c0_211] : memref<256x32xbf16, #tpu.memory_space<vmem>>, vector<256x32xbf16>
    %cst_212 = arith.constant dense<0.000000e+00> : vector<10x32xf32>
    %112 = tpu.matmul %110, %111, %cst_212 {dimension_numbers = #tpu.dot_dimension_numbers<[1], [0], [0], [1], [0, 0, 1, 1], [], []>} : vector<10x256xbf16>, vector<256x32xbf16>, vector<10x32xf32> -> vector<10x32xf32>
    %113 = vector.broadcast %0 : vector<1x32xf32> to vector<10x32xf32>
    %114 = arith.addf %112, %113 : vector<10x32xf32>
    %cst_213 = arith.constant 0.000000e+00 : f32
    %115 = vector.broadcast %cst_213 : f32 to vector<10x32xf32>
    %116 = arith.maximumf %114, %115 : vector<10x32xf32>
    %117 = arith.truncf %116 : vector<10x32xf32> to vector<10x32xbf16>
    %118 = vector.extract_strided_slice %117 {offsets = [0, 0], sizes = [5, 32], strides = [1, 1]} : vector<10x32xbf16> to vector<5x32xbf16>
    %c1_214 = arith.constant 1 : index
    %c0_215 = arith.constant 0 : index
    %c0_216 = arith.constant 0 : index
    %c0_217 = arith.constant 0 : index
    %119 = vector.load %arg14[%c1_214, %c0_215, %c0_216, %c0_217] : memref<5x2x5x64xbf16, #tpu.memory_space<vmem>>, vector<1x1x5x32xbf16>
    %120 = vector.shape_cast %119 : vector<1x1x5x32xbf16> to vector<5x32xbf16>
    %121 = vector.shape_cast %118 : vector<5x32xbf16> to vector<1x1x5x32xbf16>
    tpu.vector_store %arg14[%c1_214, %c0_215, %c0_216, %c0_217], %121 {strides = array<i32>} : memref<5x2x5x64xbf16, #tpu.memory_space<vmem>>, vector<1x1x5x32xbf16>,
    %122 = vector.extract_strided_slice %117 {offsets = [5, 0], sizes = [5, 32], strides = [1, 1]} : vector<10x32xbf16> to vector<5x32xbf16>
    %c1_218 = arith.constant 1 : index
    %c0_219 = arith.constant 0 : index
    %c0_220 = arith.constant 0 : index
    %c32_221 = arith.constant 32 : index
    %123 = vector.load %arg14[%c1_218, %c0_219, %c0_220, %c32_221] : memref<5x2x5x64xbf16, #tpu.memory_space<vmem>>, vector<1x1x5x32xbf16>
    %124 = vector.shape_cast %123 : vector<1x1x5x32xbf16> to vector<5x32xbf16>
    %125 = vector.shape_cast %122 : vector<5x32xbf16> to vector<1x1x5x32xbf16>
    tpu.vector_store %arg14[%c1_218, %c0_219, %c0_220, %c32_221], %125 {strides = array<i32>} : memref<5x2x5x64xbf16, #tpu.memory_space<vmem>>, vector<1x1x5x32xbf16>,
    %c3_222 = arith.constant 3 : index
    %c0_223 = arith.constant 0 : index
    %c0_224 = arith.constant 0 : index
    %126 = vector.load %arg13[%c3_222, %c0_223, %c0_224] : memref<10x10x256xbf16, #tpu.memory_space<vmem>>, vector<1x10x256xbf16>
    %127 = vector.shape_cast %126 : vector<1x10x256xbf16> to vector<10x256xbf16>
    %c0_225 = arith.constant 0 : index
    %c0_226 = arith.constant 0 : index
    %128 = vector.load %arg2[%c0_225, %c0_226] : memref<256x32xbf16, #tpu.memory_space<vmem>>, vector<256x32xbf16>
    %cst_227 = arith.constant dense<0.000000e+00> : vector<10x32xf32>
    %129 = tpu.matmul %127, %128, %cst_227 {dimension_numbers = #tpu.dot_dimension_numbers<[1], [0], [0], [1], [0, 0, 1, 1], [], []>} : vector<10x256xbf16>, vector<256x32xbf16>, vector<10x32xf32> -> vector<10x32xf32>
    %130 = vector.broadcast %0 : vector<1x32xf32> to vector<10x32xf32>
    %131 = arith.addf %129, %130 : vector<10x32xf32>
    %cst_228 = arith.constant 0.000000e+00 : f32
    %132 = vector.broadcast %cst_228 : f32 to vector<10x32xf32>
    %133 = arith.maximumf %131, %132 : vector<10x32xf32>
    %134 = arith.truncf %133 : vector<10x32xf32> to vector<10x32xbf16>
    %135 = vector.extract_strided_slice %134 {offsets = [0, 0], sizes = [5, 32], strides = [1, 1]} : vector<10x32xbf16> to vector<5x32xbf16>
    %c1_229 = arith.constant 1 : index
    %c1_230 = arith.constant 1 : index
    %c0_231 = arith.constant 0 : index
    %c0_232 = arith.constant 0 : index
    %136 = vector.load %arg14[%c1_229, %c1_230, %c0_231, %c0_232] : memref<5x2x5x64xbf16, #tpu.memory_space<vmem>>, vector<1x1x5x32xbf16>
    %137 = vector.shape_cast %136 : vector<1x1x5x32xbf16> to vector<5x32xbf16>
    %138 = vector.shape_cast %135 : vector<5x32xbf16> to vector<1x1x5x32xbf16>
    tpu.vector_store %arg14[%c1_229, %c1_230, %c0_231, %c0_232], %138 {strides = array<i32>} : memref<5x2x5x64xbf16, #tpu.memory_space<vmem>>, vector<1x1x5x32xbf16>,
    %139 = vector.extract_strided_slice %134 {offsets = [5, 0], sizes = [5, 32], strides = [1, 1]} : vector<10x32xbf16> to vector<5x32xbf16>
    %c1_233 = arith.constant 1 : index
    %c1_234 = arith.constant 1 : index
    %c0_235 = arith.constant 0 : index
    %c32_236 = arith.constant 32 : index
    %140 = vector.load %arg14[%c1_233, %c1_234, %c0_235, %c32_236] : memref<5x2x5x64xbf16, #tpu.memory_space<vmem>>, vector<1x1x5x32xbf16>
    %141 = vector.shape_cast %140 : vector<1x1x5x32xbf16> to vector<5x32xbf16>
    %142 = vector.shape_cast %139 : vector<5x32xbf16> to vector<1x1x5x32xbf16>
    tpu.vector_store %arg14[%c1_233, %c1_234, %c0_235, %c32_236], %142 {strides = array<i32>} : memref<5x2x5x64xbf16, #tpu.memory_space<vmem>>, vector<1x1x5x32xbf16>,
    %c4 = arith.constant 4 : index
    %c0_237 = arith.constant 0 : index
    %c0_238 = arith.constant 0 : index
    %143 = vector.load %arg13[%c4, %c0_237, %c0_238] : memref<10x10x256xbf16, #tpu.memory_space<vmem>>, vector<1x10x256xbf16>
    %144 = vector.shape_cast %143 : vector<1x10x256xbf16> to vector<10x256xbf16>
    %c0_239 = arith.constant 0 : index
    %c0_240 = arith.constant 0 : index
    %145 = vector.load %arg2[%c0_239, %c0_240] : memref<256x32xbf16, #tpu.memory_space<vmem>>, vector<256x32xbf16>
    %cst_241 = arith.constant dense<0.000000e+00> : vector<10x32xf32>
    %146 = tpu.matmul %144, %145, %cst_241 {dimension_numbers = #tpu.dot_dimension_numbers<[1], [0], [0], [1], [0, 0, 1, 1], [], []>} : vector<10x256xbf16>, vector<256x32xbf16>, vector<10x32xf32> -> vector<10x32xf32>
    %147 = vector.broadcast %0 : vector<1x32xf32> to vector<10x32xf32>
    %148 = arith.addf %146, %147 : vector<10x32xf32>
    %cst_242 = arith.constant 0.000000e+00 : f32
    %149 = vector.broadcast %cst_242 : f32 to vector<10x32xf32>
    %150 = arith.maximumf %148, %149 : vector<10x32xf32>
    %151 = arith.truncf %150 : vector<10x32xf32> to vector<10x32xbf16>
    %152 = vector.extract_strided_slice %151 {offsets = [0, 0], sizes = [5, 32], strides = [1, 1]} : vector<10x32xbf16> to vector<5x32xbf16>
    %c2_243 = arith.constant 2 : index
    %c0_244 = arith.constant 0 : index
    %c0_245 = arith.constant 0 : index
    %c0_246 = arith.constant 0 : index
    %153 = vector.load %arg14[%c2_243, %c0_244, %c0_245, %c0_246] : memref<5x2x5x64xbf16, #tpu.memory_space<vmem>>, vector<1x1x5x32xbf16>
    %154 = vector.shape_cast %153 : vector<1x1x5x32xbf16> to vector<5x32xbf16>
    %155 = vector.shape_cast %152 : vector<5x32xbf16> to vector<1x1x5x32xbf16>
    tpu.vector_store %arg14[%c2_243, %c0_244, %c0_245, %c0_246], %155 {strides = array<i32>} : memref<5x2x5x64xbf16, #tpu.memory_space<vmem>>, vector<1x1x5x32xbf16>,
    %156 = vector.extract_strided_slice %151 {offsets = [5, 0], sizes = [5, 32], strides = [1, 1]} : vector<10x32xbf16> to vector<5x32xbf16>
    %c2_247 = arith.constant 2 : index
    %c0_248 = arith.constant 0 : index
    %c0_249 = arith.constant 0 : index
    %c32_250 = arith.constant 32 : index
    %157 = vector.load %arg14[%c2_247, %c0_248, %c0_249, %c32_250] : memref<5x2x5x64xbf16, #tpu.memory_space<vmem>>, vector<1x1x5x32xbf16>
    %158 = vector.shape_cast %157 : vector<1x1x5x32xbf16> to vector<5x32xbf16>
    %159 = vector.shape_cast %156 : vector<5x32xbf16> to vector<1x1x5x32xbf16>
    tpu.vector_store %arg14[%c2_247, %c0_248, %c0_249, %c32_250], %159 {strides = array<i32>} : memref<5x2x5x64xbf16, #tpu.memory_space<vmem>>, vector<1x1x5x32xbf16>,
    %c5_251 = arith.constant 5 : index
    %c0_252 = arith.constant 0 : index
    %c0_253 = arith.constant 0 : index
    %160 = vector.load %arg13[%c5_251, %c0_252, %c0_253] : memref<10x10x256xbf16, #tpu.memory_space<vmem>>, vector<1x10x256xbf16>
    %161 = vector.shape_cast %160 : vector<1x10x256xbf16> to vector<10x256xbf16>
    %c0_254 = arith.constant 0 : index
    %c0_255 = arith.constant 0 : index
    %162 = vector.load %arg2[%c0_254, %c0_255] : memref<256x32xbf16, #tpu.memory_space<vmem>>, vector<256x32xbf16>
    %cst_256 = arith.constant dense<0.000000e+00> : vector<10x32xf32>
    %163 = tpu.matmul %161, %162, %cst_256 {dimension_numbers = #tpu.dot_dimension_numbers<[1], [0], [0], [1], [0, 0, 1, 1], [], []>} : vector<10x256xbf16>, vector<256x32xbf16>, vector<10x32xf32> -> vector<10x32xf32>
    %164 = vector.broadcast %0 : vector<1x32xf32> to vector<10x32xf32>
    %165 = arith.addf %163, %164 : vector<10x32xf32>
    %cst_257 = arith.constant 0.000000e+00 : f32
    %166 = vector.broadcast %cst_257 : f32 to vector<10x32xf32>
    %167 = arith.maximumf %165, %166 : vector<10x32xf32>
    %168 = arith.truncf %167 : vector<10x32xf32> to vector<10x32xbf16>
    %169 = vector.extract_strided_slice %168 {offsets = [0, 0], sizes = [5, 32], strides = [1, 1]} : vector<10x32xbf16> to vector<5x32xbf16>
    %c2_258 = arith.constant 2 : index
    %c1_259 = arith.constant 1 : index
    %c0_260 = arith.constant 0 : index
    %c0_261 = arith.constant 0 : index
    %170 = vector.load %arg14[%c2_258, %c1_259, %c0_260, %c0_261] : memref<5x2x5x64xbf16, #tpu.memory_space<vmem>>, vector<1x1x5x32xbf16>
    %171 = vector.shape_cast %170 : vector<1x1x5x32xbf16> to vector<5x32xbf16>
    %172 = vector.shape_cast %169 : vector<5x32xbf16> to vector<1x1x5x32xbf16>
    tpu.vector_store %arg14[%c2_258, %c1_259, %c0_260, %c0_261], %172 {strides = array<i32>} : memref<5x2x5x64xbf16, #tpu.memory_space<vmem>>, vector<1x1x5x32xbf16>,
    %173 = vector.extract_strided_slice %168 {offsets = [5, 0], sizes = [5, 32], strides = [1, 1]} : vector<10x32xbf16> to vector<5x32xbf16>
    %c2_262 = arith.constant 2 : index
    %c1_263 = arith.constant 1 : index
    %c0_264 = arith.constant 0 : index
    %c32_265 = arith.constant 32 : index
    %174 = vector.load %arg14[%c2_262, %c1_263, %c0_264, %c32_265] : memref<5x2x5x64xbf16, #tpu.memory_space<vmem>>, vector<1x1x5x32xbf16>
    %175 = vector.shape_cast %174 : vector<1x1x5x32xbf16> to vector<5x32xbf16>
    %176 = vector.shape_cast %173 : vector<5x32xbf16> to vector<1x1x5x32xbf16>
    tpu.vector_store %arg14[%c2_262, %c1_263, %c0_264, %c32_265], %176 {strides = array<i32>} : memref<5x2x5x64xbf16, #tpu.memory_space<vmem>>, vector<1x1x5x32xbf16>,
    %c6 = arith.constant 6 : index
    %c0_266 = arith.constant 0 : index
    %c0_267 = arith.constant 0 : index
    %177 = vector.load %arg13[%c6, %c0_266, %c0_267] : memref<10x10x256xbf16, #tpu.memory_space<vmem>>, vector<1x10x256xbf16>
    %178 = vector.shape_cast %177 : vector<1x10x256xbf16> to vector<10x256xbf16>
    %c0_268 = arith.constant 0 : index
    %c0_269 = arith.constant 0 : index
    %179 = vector.load %arg2[%c0_268, %c0_269] : memref<256x32xbf16, #tpu.memory_space<vmem>>, vector<256x32xbf16>
    %cst_270 = arith.constant dense<0.000000e+00> : vector<10x32xf32>
    %180 = tpu.matmul %178, %179, %cst_270 {dimension_numbers = #tpu.dot_dimension_numbers<[1], [0], [0], [1], [0, 0, 1, 1], [], []>} : vector<10x256xbf16>, vector<256x32xbf16>, vector<10x32xf32> -> vector<10x32xf32>
    %181 = vector.broadcast %0 : vector<1x32xf32> to vector<10x32xf32>
    %182 = arith.addf %180, %181 : vector<10x32xf32>
    %cst_271 = arith.constant 0.000000e+00 : f32
    %183 = vector.broadcast %cst_271 : f32 to vector<10x32xf32>
    %184 = arith.maximumf %182, %183 : vector<10x32xf32>
    %185 = arith.truncf %184 : vector<10x32xf32> to vector<10x32xbf16>
    %186 = vector.extract_strided_slice %185 {offsets = [0, 0], sizes = [5, 32], strides = [1, 1]} : vector<10x32xbf16> to vector<5x32xbf16>
    %c3_272 = arith.constant 3 : index
    %c0_273 = arith.constant 0 : index
    %c0_274 = arith.constant 0 : index
    %c0_275 = arith.constant 0 : index
    %187 = vector.load %arg14[%c3_272, %c0_273, %c0_274, %c0_275] : memref<5x2x5x64xbf16, #tpu.memory_space<vmem>>, vector<1x1x5x32xbf16>
    %188 = vector.shape_cast %187 : vector<1x1x5x32xbf16> to vector<5x32xbf16>
    %189 = vector.shape_cast %186 : vector<5x32xbf16> to vector<1x1x5x32xbf16>
    tpu.vector_store %arg14[%c3_272, %c0_273, %c0_274, %c0_275], %189 {strides = array<i32>} : memref<5x2x5x64xbf16, #tpu.memory_space<vmem>>, vector<1x1x5x32xbf16>,
    %190 = vector.extract_strided_slice %185 {offsets = [5, 0], sizes = [5, 32], strides = [1, 1]} : vector<10x32xbf16> to vector<5x32xbf16>
    %c3_276 = arith.constant 3 : index
    %c0_277 = arith.constant 0 : index
    %c0_278 = arith.constant 0 : index
    %c32_279 = arith.constant 32 : index
    %191 = vector.load %arg14[%c3_276, %c0_277, %c0_278, %c32_279] : memref<5x2x5x64xbf16, #tpu.memory_space<vmem>>, vector<1x1x5x32xbf16>
    %192 = vector.shape_cast %191 : vector<1x1x5x32xbf16> to vector<5x32xbf16>
    %193 = vector.shape_cast %190 : vector<5x32xbf16> to vector<1x1x5x32xbf16>
    tpu.vector_store %arg14[%c3_276, %c0_277, %c0_278, %c32_279], %193 {strides = array<i32>} : memref<5x2x5x64xbf16, #tpu.memory_space<vmem>>, vector<1x1x5x32xbf16>,
    %c7 = arith.constant 7 : index
    %c0_280 = arith.constant 0 : index
    %c0_281 = arith.constant 0 : index
    %194 = vector.load %arg13[%c7, %c0_280, %c0_281] : memref<10x10x256xbf16, #tpu.memory_space<vmem>>, vector<1x10x256xbf16>
    %195 = vector.shape_cast %194 : vector<1x10x256xbf16> to vector<10x256xbf16>
    %c0_282 = arith.constant 0 : index
    %c0_283 = arith.constant 0 : index
    %196 = vector.load %arg2[%c0_282, %c0_283] : memref<256x32xbf16, #tpu.memory_space<vmem>>, vector<256x32xbf16>
    %cst_284 = arith.constant dense<0.000000e+00> : vector<10x32xf32>
    %197 = tpu.matmul %195, %196, %cst_284 {dimension_numbers = #tpu.dot_dimension_numbers<[1], [0], [0], [1], [0, 0, 1, 1], [], []>} : vector<10x256xbf16>, vector<256x32xbf16>, vector<10x32xf32> -> vector<10x32xf32>
    %198 = vector.broadcast %0 : vector<1x32xf32> to vector<10x32xf32>
    %199 = arith.addf %197, %198 : vector<10x32xf32>
    %cst_285 = arith.constant 0.000000e+00 : f32
    %200 = vector.broadcast %cst_285 : f32 to vector<10x32xf32>
    %201 = arith.maximumf %199, %200 : vector<10x32xf32>
    %202 = arith.truncf %201 : vector<10x32xf32> to vector<10x32xbf16>
    %203 = vector.extract_strided_slice %202 {offsets = [0, 0], sizes = [5, 32], strides = [1, 1]} : vector<10x32xbf16> to vector<5x32xbf16>
    %c3_286 = arith.constant 3 : index
    %c1_287 = arith.constant 1 : index
    %c0_288 = arith.constant 0 : index
    %c0_289 = arith.constant 0 : index
    %204 = vector.load %arg14[%c3_286, %c1_287, %c0_288, %c0_289] : memref<5x2x5x64xbf16, #tpu.memory_space<vmem>>, vector<1x1x5x32xbf16>
    %205 = vector.shape_cast %204 : vector<1x1x5x32xbf16> to vector<5x32xbf16>
    %206 = vector.shape_cast %203 : vector<5x32xbf16> to vector<1x1x5x32xbf16>
    tpu.vector_store %arg14[%c3_286, %c1_287, %c0_288, %c0_289], %206 {strides = array<i32>} : memref<5x2x5x64xbf16, #tpu.memory_space<vmem>>, vector<1x1x5x32xbf16>,
    %207 = vector.extract_strided_slice %202 {offsets = [5, 0], sizes = [5, 32], strides = [1, 1]} : vector<10x32xbf16> to vector<5x32xbf16>
    %c3_290 = arith.constant 3 : index
    %c1_291 = arith.constant 1 : index
    %c0_292 = arith.constant 0 : index
    %c32_293 = arith.constant 32 : index
    %208 = vector.load %arg14[%c3_290, %c1_291, %c0_292, %c32_293] : memref<5x2x5x64xbf16, #tpu.memory_space<vmem>>, vector<1x1x5x32xbf16>
    %209 = vector.shape_cast %208 : vector<1x1x5x32xbf16> to vector<5x32xbf16>
    %210 = vector.shape_cast %207 : vector<5x32xbf16> to vector<1x1x5x32xbf16>
    tpu.vector_store %arg14[%c3_290, %c1_291, %c0_292, %c32_293], %210 {strides = array<i32>} : memref<5x2x5x64xbf16, #tpu.memory_space<vmem>>, vector<1x1x5x32xbf16>,
    %c8 = arith.constant 8 : index
    %c0_294 = arith.constant 0 : index
    %c0_295 = arith.constant 0 : index
    %211 = vector.load %arg13[%c8, %c0_294, %c0_295] : memref<10x10x256xbf16, #tpu.memory_space<vmem>>, vector<1x10x256xbf16>
    %212 = vector.shape_cast %211 : vector<1x10x256xbf16> to vector<10x256xbf16>
    %c0_296 = arith.constant 0 : index
    %c0_297 = arith.constant 0 : index
    %213 = vector.load %arg2[%c0_296, %c0_297] : memref<256x32xbf16, #tpu.memory_space<vmem>>, vector<256x32xbf16>
    %cst_298 = arith.constant dense<0.000000e+00> : vector<10x32xf32>
    %214 = tpu.matmul %212, %213, %cst_298 {dimension_numbers = #tpu.dot_dimension_numbers<[1], [0], [0], [1], [0, 0, 1, 1], [], []>} : vector<10x256xbf16>, vector<256x32xbf16>, vector<10x32xf32> -> vector<10x32xf32>
    %215 = vector.broadcast %0 : vector<1x32xf32> to vector<10x32xf32>
    %216 = arith.addf %214, %215 : vector<10x32xf32>
    %cst_299 = arith.constant 0.000000e+00 : f32
    %217 = vector.broadcast %cst_299 : f32 to vector<10x32xf32>
    %218 = arith.maximumf %216, %217 : vector<10x32xf32>
    %219 = arith.truncf %218 : vector<10x32xf32> to vector<10x32xbf16>
    %220 = vector.extract_strided_slice %219 {offsets = [0, 0], sizes = [5, 32], strides = [1, 1]} : vector<10x32xbf16> to vector<5x32xbf16>
    %c4_300 = arith.constant 4 : index
    %c0_301 = arith.constant 0 : index
    %c0_302 = arith.constant 0 : index
    %c0_303 = arith.constant 0 : index
    %221 = vector.load %arg14[%c4_300, %c0_301, %c0_302, %c0_303] : memref<5x2x5x64xbf16, #tpu.memory_space<vmem>>, vector<1x1x5x32xbf16>
    %222 = vector.shape_cast %221 : vector<1x1x5x32xbf16> to vector<5x32xbf16>
    %223 = vector.shape_cast %220 : vector<5x32xbf16> to vector<1x1x5x32xbf16>
    tpu.vector_store %arg14[%c4_300, %c0_301, %c0_302, %c0_303], %223 {strides = array<i32>} : memref<5x2x5x64xbf16, #tpu.memory_space<vmem>>, vector<1x1x5x32xbf16>,
    %224 = vector.extract_strided_slice %219 {offsets = [5, 0], sizes = [5, 32], strides = [1, 1]} : vector<10x32xbf16> to vector<5x32xbf16>
    %c4_304 = arith.constant 4 : index
    %c0_305 = arith.constant 0 : index
    %c0_306 = arith.constant 0 : index
    %c32_307 = arith.constant 32 : index
    %225 = vector.load %arg14[%c4_304, %c0_305, %c0_306, %c32_307] : memref<5x2x5x64xbf16, #tpu.memory_space<vmem>>, vector<1x1x5x32xbf16>
    %226 = vector.shape_cast %225 : vector<1x1x5x32xbf16> to vector<5x32xbf16>
    %227 = vector.shape_cast %224 : vector<5x32xbf16> to vector<1x1x5x32xbf16>
    tpu.vector_store %arg14[%c4_304, %c0_305, %c0_306, %c32_307], %227 {strides = array<i32>} : memref<5x2x5x64xbf16, #tpu.memory_space<vmem>>, vector<1x1x5x32xbf16>,
    %c9 = arith.constant 9 : index
    %c0_308 = arith.constant 0 : index
    %c0_309 = arith.constant 0 : index
    %228 = vector.load %arg13[%c9, %c0_308, %c0_309] : memref<10x10x256xbf16, #tpu.memory_space<vmem>>, vector<1x10x256xbf16>
    %229 = vector.shape_cast %228 : vector<1x10x256xbf16> to vector<10x256xbf16>
    %c0_310 = arith.constant 0 : index
    %c0_311 = arith.constant 0 : index
    %230 = vector.load %arg2[%c0_310, %c0_311] : memref<256x32xbf16, #tpu.memory_space<vmem>>, vector<256x32xbf16>
    %cst_312 = arith.constant dense<0.000000e+00> : vector<10x32xf32>
    %231 = tpu.matmul %229, %230, %cst_312 {dimension_numbers = #tpu.dot_dimension_numbers<[1], [0], [0], [1], [0, 0, 1, 1], [], []>} : vector<10x256xbf16>, vector<256x32xbf16>, vector<10x32xf32> -> vector<10x32xf32>
    %232 = vector.broadcast %0 : vector<1x32xf32> to vector<10x32xf32>
    %233 = arith.addf %231, %232 : vector<10x32xf32>
    %cst_313 = arith.constant 0.000000e+00 : f32
    %234 = vector.broadcast %cst_313 : f32 to vector<10x32xf32>
    %235 = arith.maximumf %233, %234 : vector<10x32xf32>
    %236 = arith.truncf %235 : vector<10x32xf32> to vector<10x32xbf16>
    %237 = vector.extract_strided_slice %236 {offsets = [0, 0], sizes = [5, 32], strides = [1, 1]} : vector<10x32xbf16> to vector<5x32xbf16>
    %c4_314 = arith.constant 4 : index
    %c1_315 = arith.constant 1 : index
    %c0_316 = arith.constant 0 : index
    %c0_317 = arith.constant 0 : index
    %238 = vector.load %arg14[%c4_314, %c1_315, %c0_316, %c0_317] : memref<5x2x5x64xbf16, #tpu.memory_space<vmem>>, vector<1x1x5x32xbf16>
    %239 = vector.shape_cast %238 : vector<1x1x5x32xbf16> to vector<5x32xbf16>
    %240 = vector.shape_cast %237 : vector<5x32xbf16> to vector<1x1x5x32xbf16>
    tpu.vector_store %arg14[%c4_314, %c1_315, %c0_316, %c0_317], %240 {strides = array<i32>} : memref<5x2x5x64xbf16, #tpu.memory_space<vmem>>, vector<1x1x5x32xbf16>,
    %241 = vector.extract_strided_slice %236 {offsets = [5, 0], sizes = [5, 32], strides = [1, 1]} : vector<10x32xbf16> to vector<5x32xbf16>
    %c4_318 = arith.constant 4 : index
    %c1_319 = arith.constant 1 : index
    %c0_320 = arith.constant 0 : index
    %c32_321 = arith.constant 32 : index
    %242 = vector.load %arg14[%c4_318, %c1_319, %c0_320, %c32_321] : memref<5x2x5x64xbf16, #tpu.memory_space<vmem>>, vector<1x1x5x32xbf16>
    %243 = vector.shape_cast %242 : vector<1x1x5x32xbf16> to vector<5x32xbf16>
    %244 = vector.shape_cast %241 : vector<5x32xbf16> to vector<1x1x5x32xbf16>
    tpu.vector_store %arg14[%c4_318, %c1_319, %c0_320, %c32_321], %244 {strides = array<i32>} : memref<5x2x5x64xbf16, #tpu.memory_space<vmem>>, vector<1x1x5x32xbf16>,
    %c0_322 = arith.constant 0 : index
    %c0_323 = arith.constant 0 : index
    %c0_324 = arith.constant 0 : index
    %c0_325 = arith.constant 0 : index
    %245 = vector.load %arg14[%c0_322, %c0_323, %c0_324, %c0_325] : memref<5x2x5x64xbf16, #tpu.memory_space<vmem>>, vector<4x1x4x64xbf16>
    %246 = vector.shape_cast %245 : vector<4x1x4x64xbf16> to vector<4x4x64xbf16>
    %c0_326 = arith.constant 0 : index
    %c0_327 = arith.constant 0 : index
    %c0_328 = arith.constant 0 : index
    %247 = vector.load %arg15[%c0_326, %c0_327, %c0_328] : memref<4x4x512xbf16, #tpu.memory_space<vmem>>, vector<4x4x64xbf16>
    tpu.vector_store %arg15[%c0_326, %c0_327, %c0_328], %246 {strides = array<i32>} : memref<4x4x512xbf16, #tpu.memory_space<vmem>>, vector<4x4x64xbf16>,
    %c0_329 = arith.constant 0 : index
    %c0_330 = arith.constant 0 : index
    %c1_331 = arith.constant 1 : index
    %c0_332 = arith.constant 0 : index
    %248 = vector.load %arg14[%c0_329, %c0_330, %c1_331, %c0_332] : memref<5x2x5x64xbf16, #tpu.memory_space<vmem>>, vector<4x1x4x64xbf16>
    %249 = vector.shape_cast %248 : vector<4x1x4x64xbf16> to vector<4x4x64xbf16>
    %c0_333 = arith.constant 0 : index
    %c0_334 = arith.constant 0 : index
    %c64_335 = arith.constant 64 : index
    %250 = vector.load %arg15[%c0_333, %c0_334, %c64_335] : memref<4x4x512xbf16, #tpu.memory_space<vmem>>, vector<4x4x64xbf16>
    tpu.vector_store %arg15[%c0_333, %c0_334, %c64_335], %249 {strides = array<i32>} : memref<4x4x512xbf16, #tpu.memory_space<vmem>>, vector<4x4x64xbf16>,
    %c0_336 = arith.constant 0 : index
    %c1_337 = arith.constant 1 : index
    %c0_338 = arith.constant 0 : index
    %c0_339 = arith.constant 0 : index
    %251 = vector.load %arg14[%c0_336, %c1_337, %c0_338, %c0_339] : memref<5x2x5x64xbf16, #tpu.memory_space<vmem>>, vector<4x1x4x64xbf16>
    %252 = vector.shape_cast %251 : vector<4x1x4x64xbf16> to vector<4x4x64xbf16>
    %c0_340 = arith.constant 0 : index
    %c0_341 = arith.constant 0 : index
    %c128_342 = arith.constant 128 : index
    %253 = vector.load %arg15[%c0_340, %c0_341, %c128_342] : memref<4x4x512xbf16, #tpu.memory_space<vmem>>, vector<4x4x64xbf16>
    tpu.vector_store %arg15[%c0_340, %c0_341, %c128_342], %252 {strides = array<i32>} : memref<4x4x512xbf16, #tpu.memory_space<vmem>>, vector<4x4x64xbf16>,
    %c0_343 = arith.constant 0 : index
    %c1_344 = arith.constant 1 : index
    %c1_345 = arith.constant 1 : index
    %c0_346 = arith.constant 0 : index
    %254 = vector.load %arg14[%c0_343, %c1_344, %c1_345, %c0_346] : memref<5x2x5x64xbf16, #tpu.memory_space<vmem>>, vector<4x1x4x64xbf16>
    %255 = vector.shape_cast %254 : vector<4x1x4x64xbf16> to vector<4x4x64xbf16>
    %c0_347 = arith.constant 0 : index
    %c0_348 = arith.constant 0 : index
    %c192_349 = arith.constant 192 : index
    %256 = vector.load %arg15[%c0_347, %c0_348, %c192_349] : memref<4x4x512xbf16, #tpu.memory_space<vmem>>, vector<4x4x64xbf16>
    tpu.vector_store %arg15[%c0_347, %c0_348, %c192_349], %255 {strides = array<i32>} : memref<4x4x512xbf16, #tpu.memory_space<vmem>>, vector<4x4x64xbf16>,
    %c1_350 = arith.constant 1 : index
    %c0_351 = arith.constant 0 : index
    %c0_352 = arith.constant 0 : index
    %c0_353 = arith.constant 0 : index
    %257 = vector.load %arg14[%c1_350, %c0_351, %c0_352, %c0_353] : memref<5x2x5x64xbf16, #tpu.memory_space<vmem>>, vector<4x1x4x64xbf16>
    %258 = vector.shape_cast %257 : vector<4x1x4x64xbf16> to vector<4x4x64xbf16>
    %c0_354 = arith.constant 0 : index
    %c0_355 = arith.constant 0 : index
    %c256 = arith.constant 256 : index
    %259 = vector.load %arg15[%c0_354, %c0_355, %c256] : memref<4x4x512xbf16, #tpu.memory_space<vmem>>, vector<4x4x64xbf16>
    tpu.vector_store %arg15[%c0_354, %c0_355, %c256], %258 {strides = array<i32>} : memref<4x4x512xbf16, #tpu.memory_space<vmem>>, vector<4x4x64xbf16>,
    %c1_356 = arith.constant 1 : index
    %c0_357 = arith.constant 0 : index
    %c1_358 = arith.constant 1 : index
    %c0_359 = arith.constant 0 : index
    %260 = vector.load %arg14[%c1_356, %c0_357, %c1_358, %c0_359] : memref<5x2x5x64xbf16, #tpu.memory_space<vmem>>, vector<4x1x4x64xbf16>
    %261 = vector.shape_cast %260 : vector<4x1x4x64xbf16> to vector<4x4x64xbf16>
    %c0_360 = arith.constant 0 : index
    %c0_361 = arith.constant 0 : index
    %c320 = arith.constant 320 : index
    %262 = vector.load %arg15[%c0_360, %c0_361, %c320] : memref<4x4x512xbf16, #tpu.memory_space<vmem>>, vector<4x4x64xbf16>
    tpu.vector_store %arg15[%c0_360, %c0_361, %c320], %261 {strides = array<i32>} : memref<4x4x512xbf16, #tpu.memory_space<vmem>>, vector<4x4x64xbf16>,
    %c1_362 = arith.constant 1 : index
    %c1_363 = arith.constant 1 : index
    %c0_364 = arith.constant 0 : index
    %c0_365 = arith.constant 0 : index
    %263 = vector.load %arg14[%c1_362, %c1_363, %c0_364, %c0_365] : memref<5x2x5x64xbf16, #tpu.memory_space<vmem>>, vector<4x1x4x64xbf16>
    %264 = vector.shape_cast %263 : vector<4x1x4x64xbf16> to vector<4x4x64xbf16>
    %c0_366 = arith.constant 0 : index
    %c0_367 = arith.constant 0 : index
    %c384 = arith.constant 384 : index
    %265 = vector.load %arg15[%c0_366, %c0_367, %c384] : memref<4x4x512xbf16, #tpu.memory_space<vmem>>, vector<4x4x64xbf16>
    tpu.vector_store %arg15[%c0_366, %c0_367, %c384], %264 {strides = array<i32>} : memref<4x4x512xbf16, #tpu.memory_space<vmem>>, vector<4x4x64xbf16>,
    %c1_368 = arith.constant 1 : index
    %c1_369 = arith.constant 1 : index
    %c1_370 = arith.constant 1 : index
    %c0_371 = arith.constant 0 : index
    %266 = vector.load %arg14[%c1_368, %c1_369, %c1_370, %c0_371] : memref<5x2x5x64xbf16, #tpu.memory_space<vmem>>, vector<4x1x4x64xbf16>
    %267 = vector.shape_cast %266 : vector<4x1x4x64xbf16> to vector<4x4x64xbf16>
    %c0_372 = arith.constant 0 : index
    %c0_373 = arith.constant 0 : index
    %c448 = arith.constant 448 : index
    %268 = vector.load %arg15[%c0_372, %c0_373, %c448] : memref<4x4x512xbf16, #tpu.memory_space<vmem>>, vector<4x4x64xbf16>
    tpu.vector_store %arg15[%c0_372, %c0_373, %c448], %267 {strides = array<i32>} : memref<4x4x512xbf16, #tpu.memory_space<vmem>>, vector<4x4x64xbf16>,
    %c0_374 = arith.constant 0 : index
    %c0_375 = arith.constant 0 : index
    %c0_376 = arith.constant 0 : index
    %269 = vector.load %arg15[%c0_374, %c0_375, %c0_376] : memref<4x4x512xbf16, #tpu.memory_space<vmem>>, vector<1x4x512xbf16>
    %270 = vector.shape_cast %269 : vector<1x4x512xbf16> to vector<4x512xbf16>
    %c0_377 = arith.constant 0 : index
    %c0_378 = arith.constant 0 : index
    %271 = vector.load %arg4[%c0_377, %c0_378] : memref<512x64xbf16, #tpu.memory_space<vmem>>, vector<512x64xbf16>
    %cst_379 = arith.constant dense<0.000000e+00> : vector<4x64xf32>
    %272 = tpu.matmul %270, %271, %cst_379 {dimension_numbers = #tpu.dot_dimension_numbers<[1], [0], [0], [1], [0, 0, 1, 1], [], []>} : vector<4x512xbf16>, vector<512x64xbf16>, vector<4x64xf32> -> vector<4x64xf32>
    %273 = vector.broadcast %1 : vector<1x64xf32> to vector<4x64xf32>
    %274 = arith.addf %272, %273 : vector<4x64xf32>
    %cst_380 = arith.constant 0.000000e+00 : f32
    %275 = vector.broadcast %cst_380 : f32 to vector<4x64xf32>
    %276 = arith.maximumf %274, %275 : vector<4x64xf32>
    %277 = arith.truncf %276 : vector<4x64xf32> to vector<4x64xbf16>
    %c0_381 = arith.constant 0 : index
    %c0_382 = arith.constant 0 : index
    %c0_383 = arith.constant 0 : index
    %278 = vector.load %arg16[%c0_381, %c0_382, %c0_383] : memref<4x4x64xbf16, #tpu.memory_space<vmem>>, vector<1x4x64xbf16>
    %279 = vector.shape_cast %278 : vector<1x4x64xbf16> to vector<4x64xbf16>
    %280 = vector.shape_cast %277 : vector<4x64xbf16> to vector<1x4x64xbf16>
    tpu.vector_store %arg16[%c0_381, %c0_382, %c0_383], %280 {strides = array<i32>} : memref<4x4x64xbf16, #tpu.memory_space<vmem>>, vector<1x4x64xbf16>,
    %c1_384 = arith.constant 1 : index
    %c0_385 = arith.constant 0 : index
    %c0_386 = arith.constant 0 : index
    %281 = vector.load %arg15[%c1_384, %c0_385, %c0_386] : memref<4x4x512xbf16, #tpu.memory_space<vmem>>, vector<1x4x512xbf16>
    %282 = vector.shape_cast %281 : vector<1x4x512xbf16> to vector<4x512xbf16>
    %c0_387 = arith.constant 0 : index
    %c0_388 = arith.constant 0 : index
    %283 = vector.load %arg4[%c0_387, %c0_388] : memref<512x64xbf16, #tpu.memory_space<vmem>>, vector<512x64xbf16>
    %cst_389 = arith.constant dense<0.000000e+00> : vector<4x64xf32>
    %284 = tpu.matmul %282, %283, %cst_389 {dimension_numbers = #tpu.dot_dimension_numbers<[1], [0], [0], [1], [0, 0, 1, 1], [], []>} : vector<4x512xbf16>, vector<512x64xbf16>, vector<4x64xf32> -> vector<4x64xf32>
    %285 = vector.broadcast %1 : vector<1x64xf32> to vector<4x64xf32>
    %286 = arith.addf %284, %285 : vector<4x64xf32>
    %cst_390 = arith.constant 0.000000e+00 : f32
    %287 = vector.broadcast %cst_390 : f32 to vector<4x64xf32>
    %288 = arith.maximumf %286, %287 : vector<4x64xf32>
    %289 = arith.truncf %288 : vector<4x64xf32> to vector<4x64xbf16>
    %c1_391 = arith.constant 1 : index
    %c0_392 = arith.constant 0 : index
    %c0_393 = arith.constant 0 : index
    %290 = vector.load %arg16[%c1_391, %c0_392, %c0_393] : memref<4x4x64xbf16, #tpu.memory_space<vmem>>, vector<1x4x64xbf16>
    %291 = vector.shape_cast %290 : vector<1x4x64xbf16> to vector<4x64xbf16>
    %292 = vector.shape_cast %289 : vector<4x64xbf16> to vector<1x4x64xbf16>
    tpu.vector_store %arg16[%c1_391, %c0_392, %c0_393], %292 {strides = array<i32>} : memref<4x4x64xbf16, #tpu.memory_space<vmem>>, vector<1x4x64xbf16>,
    %c2_394 = arith.constant 2 : index
    %c0_395 = arith.constant 0 : index
    %c0_396 = arith.constant 0 : index
    %293 = vector.load %arg15[%c2_394, %c0_395, %c0_396] : memref<4x4x512xbf16, #tpu.memory_space<vmem>>, vector<1x4x512xbf16>
    %294 = vector.shape_cast %293 : vector<1x4x512xbf16> to vector<4x512xbf16>
    %c0_397 = arith.constant 0 : index
    %c0_398 = arith.constant 0 : index
    %295 = vector.load %arg4[%c0_397, %c0_398] : memref<512x64xbf16, #tpu.memory_space<vmem>>, vector<512x64xbf16>
    %cst_399 = arith.constant dense<0.000000e+00> : vector<4x64xf32>
    %296 = tpu.matmul %294, %295, %cst_399 {dimension_numbers = #tpu.dot_dimension_numbers<[1], [0], [0], [1], [0, 0, 1, 1], [], []>} : vector<4x512xbf16>, vector<512x64xbf16>, vector<4x64xf32> -> vector<4x64xf32>
    %297 = vector.broadcast %1 : vector<1x64xf32> to vector<4x64xf32>
    %298 = arith.addf %296, %297 : vector<4x64xf32>
    %cst_400 = arith.constant 0.000000e+00 : f32
    %299 = vector.broadcast %cst_400 : f32 to vector<4x64xf32>
    %300 = arith.maximumf %298, %299 : vector<4x64xf32>
    %301 = arith.truncf %300 : vector<4x64xf32> to vector<4x64xbf16>
    %c2_401 = arith.constant 2 : index
    %c0_402 = arith.constant 0 : index
    %c0_403 = arith.constant 0 : index
    %302 = vector.load %arg16[%c2_401, %c0_402, %c0_403] : memref<4x4x64xbf16, #tpu.memory_space<vmem>>, vector<1x4x64xbf16>
    %303 = vector.shape_cast %302 : vector<1x4x64xbf16> to vector<4x64xbf16>
    %304 = vector.shape_cast %301 : vector<4x64xbf16> to vector<1x4x64xbf16>
    tpu.vector_store %arg16[%c2_401, %c0_402, %c0_403], %304 {strides = array<i32>} : memref<4x4x64xbf16, #tpu.memory_space<vmem>>, vector<1x4x64xbf16>,
    %c3_404 = arith.constant 3 : index
    %c0_405 = arith.constant 0 : index
    %c0_406 = arith.constant 0 : index
    %305 = vector.load %arg15[%c3_404, %c0_405, %c0_406] : memref<4x4x512xbf16, #tpu.memory_space<vmem>>, vector<1x4x512xbf16>
    %306 = vector.shape_cast %305 : vector<1x4x512xbf16> to vector<4x512xbf16>
    %c0_407 = arith.constant 0 : index
    %c0_408 = arith.constant 0 : index
    %307 = vector.load %arg4[%c0_407, %c0_408] : memref<512x64xbf16, #tpu.memory_space<vmem>>, vector<512x64xbf16>
    %cst_409 = arith.constant dense<0.000000e+00> : vector<4x64xf32>
    %308 = tpu.matmul %306, %307, %cst_409 {dimension_numbers = #tpu.dot_dimension_numbers<[1], [0], [0], [1], [0, 0, 1, 1], [], []>} : vector<4x512xbf16>, vector<512x64xbf16>, vector<4x64xf32> -> vector<4x64xf32>
    %309 = vector.broadcast %1 : vector<1x64xf32> to vector<4x64xf32>
    %310 = arith.addf %308, %309 : vector<4x64xf32>
    %cst_410 = arith.constant 0.000000e+00 : f32
    %311 = vector.broadcast %cst_410 : f32 to vector<4x64xf32>
    %312 = arith.maximumf %310, %311 : vector<4x64xf32>
    %313 = arith.truncf %312 : vector<4x64xf32> to vector<4x64xbf16>
    %c3_411 = arith.constant 3 : index
    %c0_412 = arith.constant 0 : index
    %c0_413 = arith.constant 0 : index
    %314 = vector.load %arg16[%c3_411, %c0_412, %c0_413] : memref<4x4x64xbf16, #tpu.memory_space<vmem>>, vector<1x4x64xbf16>
    %315 = vector.shape_cast %314 : vector<1x4x64xbf16> to vector<4x64xbf16>
    %316 = vector.shape_cast %313 : vector<4x64xbf16> to vector<1x4x64xbf16>
    tpu.vector_store %arg16[%c3_411, %c0_412, %c0_413], %316 {strides = array<i32>} : memref<4x4x64xbf16, #tpu.memory_space<vmem>>, vector<1x4x64xbf16>,
    %c0_414 = arith.constant 0 : index
    %c0_415 = arith.constant 0 : index
    %c0_416 = arith.constant 0 : index
    %317 = vector.load %arg16[%c0_414, %c0_415, %c0_416] : memref<4x4x64xbf16, #tpu.memory_space<vmem>>, vector<2x2x64xbf16>
    %c0_417 = arith.constant 0 : index
    %c0_418 = arith.constant 0 : index
    %c0_419 = arith.constant 0 : index
    %318 = vector.load %arg17[%c0_417, %c0_418, %c0_419] : memref<2x2x576xbf16, #tpu.memory_space<vmem>>, vector<2x2x64xbf16>
    tpu.vector_store %arg17[%c0_417, %c0_418, %c0_419], %317 {strides = array<i32>} : memref<2x2x576xbf16, #tpu.memory_space<vmem>>, vector<2x2x64xbf16>,
    %c0_420 = arith.constant 0 : index
    %c1_421 = arith.constant 1 : index
    %c0_422 = arith.constant 0 : index
    %319 = vector.load %arg16[%c0_420, %c1_421, %c0_422] : memref<4x4x64xbf16, #tpu.memory_space<vmem>>, vector<2x2x64xbf16>
    %c0_423 = arith.constant 0 : index
    %c0_424 = arith.constant 0 : index
    %c64_425 = arith.constant 64 : index
    %320 = vector.load %arg17[%c0_423, %c0_424, %c64_425] : memref<2x2x576xbf16, #tpu.memory_space<vmem>>, vector<2x2x64xbf16>
    tpu.vector_store %arg17[%c0_423, %c0_424, %c64_425], %319 {strides = array<i32>} : memref<2x2x576xbf16, #tpu.memory_space<vmem>>, vector<2x2x64xbf16>,
    %c0_426 = arith.constant 0 : index
    %c2_427 = arith.constant 2 : index
    %c0_428 = arith.constant 0 : index
    %321 = vector.load %arg16[%c0_426, %c2_427, %c0_428] : memref<4x4x64xbf16, #tpu.memory_space<vmem>>, vector<2x2x64xbf16>
    %c0_429 = arith.constant 0 : index
    %c0_430 = arith.constant 0 : index
    %c128_431 = arith.constant 128 : index
    %322 = vector.load %arg17[%c0_429, %c0_430, %c128_431] : memref<2x2x576xbf16, #tpu.memory_space<vmem>>, vector<2x2x64xbf16>
    tpu.vector_store %arg17[%c0_429, %c0_430, %c128_431], %321 {strides = array<i32>} : memref<2x2x576xbf16, #tpu.memory_space<vmem>>, vector<2x2x64xbf16>,
    %c1_432 = arith.constant 1 : index
    %c0_433 = arith.constant 0 : index
    %c0_434 = arith.constant 0 : index
    %323 = vector.load %arg16[%c1_432, %c0_433, %c0_434] : memref<4x4x64xbf16, #tpu.memory_space<vmem>>, vector<2x2x64xbf16>
    %c0_435 = arith.constant 0 : index
    %c0_436 = arith.constant 0 : index
    %c192_437 = arith.constant 192 : index
    %324 = vector.load %arg17[%c0_435, %c0_436, %c192_437] : memref<2x2x576xbf16, #tpu.memory_space<vmem>>, vector<2x2x64xbf16>
    tpu.vector_store %arg17[%c0_435, %c0_436, %c192_437], %323 {strides = array<i32>} : memref<2x2x576xbf16, #tpu.memory_space<vmem>>, vector<2x2x64xbf16>,
    %c1_438 = arith.constant 1 : index
    %c1_439 = arith.constant 1 : index
    %c0_440 = arith.constant 0 : index
    %325 = vector.load %arg16[%c1_438, %c1_439, %c0_440] : memref<4x4x64xbf16, #tpu.memory_space<vmem>>, vector<2x2x64xbf16>
    %c0_441 = arith.constant 0 : index
    %c0_442 = arith.constant 0 : index
    %c256_443 = arith.constant 256 : index
    %326 = vector.load %arg17[%c0_441, %c0_442, %c256_443] : memref<2x2x576xbf16, #tpu.memory_space<vmem>>, vector<2x2x64xbf16>
    tpu.vector_store %arg17[%c0_441, %c0_442, %c256_443], %325 {strides = array<i32>} : memref<2x2x576xbf16, #tpu.memory_space<vmem>>, vector<2x2x64xbf16>,
    %c1_444 = arith.constant 1 : index
    %c2_445 = arith.constant 2 : index
    %c0_446 = arith.constant 0 : index
    %327 = vector.load %arg16[%c1_444, %c2_445, %c0_446] : memref<4x4x64xbf16, #tpu.memory_space<vmem>>, vector<2x2x64xbf16>
    %c0_447 = arith.constant 0 : index
    %c0_448 = arith.constant 0 : index
    %c320_449 = arith.constant 320 : index
    %328 = vector.load %arg17[%c0_447, %c0_448, %c320_449] : memref<2x2x576xbf16, #tpu.memory_space<vmem>>, vector<2x2x64xbf16>
    tpu.vector_store %arg17[%c0_447, %c0_448, %c320_449], %327 {strides = array<i32>} : memref<2x2x576xbf16, #tpu.memory_space<vmem>>, vector<2x2x64xbf16>,
    %c2_450 = arith.constant 2 : index
    %c0_451 = arith.constant 0 : index
    %c0_452 = arith.constant 0 : index
    %329 = vector.load %arg16[%c2_450, %c0_451, %c0_452] : memref<4x4x64xbf16, #tpu.memory_space<vmem>>, vector<2x2x64xbf16>
    %c0_453 = arith.constant 0 : index
    %c0_454 = arith.constant 0 : index
    %c384_455 = arith.constant 384 : index
    %330 = vector.load %arg17[%c0_453, %c0_454, %c384_455] : memref<2x2x576xbf16, #tpu.memory_space<vmem>>, vector<2x2x64xbf16>
    tpu.vector_store %arg17[%c0_453, %c0_454, %c384_455], %329 {strides = array<i32>} : memref<2x2x576xbf16, #tpu.memory_space<vmem>>, vector<2x2x64xbf16>,
    %c2_456 = arith.constant 2 : index
    %c1_457 = arith.constant 1 : index
    %c0_458 = arith.constant 0 : index
    %331 = vector.load %arg16[%c2_456, %c1_457, %c0_458] : memref<4x4x64xbf16, #tpu.memory_space<vmem>>, vector<2x2x64xbf16>
    %c0_459 = arith.constant 0 : index
    %c0_460 = arith.constant 0 : index
    %c448_461 = arith.constant 448 : index
    %332 = vector.load %arg17[%c0_459, %c0_460, %c448_461] : memref<2x2x576xbf16, #tpu.memory_space<vmem>>, vector<2x2x64xbf16>
    tpu.vector_store %arg17[%c0_459, %c0_460, %c448_461], %331 {strides = array<i32>} : memref<2x2x576xbf16, #tpu.memory_space<vmem>>, vector<2x2x64xbf16>,
    %c2_462 = arith.constant 2 : index
    %c2_463 = arith.constant 2 : index
    %c0_464 = arith.constant 0 : index
    %333 = vector.load %arg16[%c2_462, %c2_463, %c0_464] : memref<4x4x64xbf16, #tpu.memory_space<vmem>>, vector<2x2x64xbf16>
    %c0_465 = arith.constant 0 : index
    %c0_466 = arith.constant 0 : index
    %c512 = arith.constant 512 : index
    %334 = vector.load %arg17[%c0_465, %c0_466, %c512] : memref<2x2x576xbf16, #tpu.memory_space<vmem>>, vector<2x2x64xbf16>
    tpu.vector_store %arg17[%c0_465, %c0_466, %c512], %333 {strides = array<i32>} : memref<2x2x576xbf16, #tpu.memory_space<vmem>>, vector<2x2x64xbf16>,
    %c0_467 = arith.constant 0 : index
    %c0_468 = arith.constant 0 : index
    %c0_469 = arith.constant 0 : index
    %335 = vector.load %arg17[%c0_467, %c0_468, %c0_469] : memref<2x2x576xbf16, #tpu.memory_space<vmem>>, vector<1x2x576xbf16>
    %336 = vector.shape_cast %335 : vector<1x2x576xbf16> to vector<2x576xbf16>
    %c0_470 = arith.constant 0 : index
    %c0_471 = arith.constant 0 : index
    %337 = vector.load %arg6[%c0_470, %c0_471] : memref<576x64xbf16, #tpu.memory_space<vmem>>, vector<576x64xbf16>
    %cst_472 = arith.constant dense<0.000000e+00> : vector<2x64xf32>
    %338 = tpu.matmul %336, %337, %cst_472 {dimension_numbers = #tpu.dot_dimension_numbers<[1], [0], [0], [1], [0, 0, 1, 1], [], []>} : vector<2x576xbf16>, vector<576x64xbf16>, vector<2x64xf32> -> vector<2x64xf32>
    %339 = vector.broadcast %2 : vector<1x64xf32> to vector<2x64xf32>
    %340 = arith.addf %338, %339 : vector<2x64xf32>
    %cst_473 = arith.constant 0.000000e+00 : f32
    %341 = vector.broadcast %cst_473 : f32 to vector<2x64xf32>
    %342 = arith.maximumf %340, %341 : vector<2x64xf32>
    %343 = arith.truncf %342 : vector<2x64xf32> to vector<2x64xbf16>
    %344 = vector.extract_strided_slice %343 {offsets = [0, 0], sizes = [1, 64], strides = [1, 1]} : vector<2x64xbf16> to vector<1x64xbf16>
    %c0_474 = arith.constant 0 : index
    %c0_475 = arith.constant 0 : index
    %345 = vector.load %arg18[%c0_474, %c0_475] : memref<1x256xbf16, #tpu.memory_space<vmem>>, vector<1x64xbf16>
    tpu.vector_store %arg18[%c0_474, %c0_475], %344 {strides = array<i32>} : memref<1x256xbf16, #tpu.memory_space<vmem>>, vector<1x64xbf16>,
    %346 = vector.extract_strided_slice %343 {offsets = [1, 0], sizes = [1, 64], strides = [1, 1]} : vector<2x64xbf16> to vector<1x64xbf16>
    %c0_476 = arith.constant 0 : index
    %c64_477 = arith.constant 64 : index
    %347 = vector.load %arg18[%c0_476, %c64_477] : memref<1x256xbf16, #tpu.memory_space<vmem>>, vector<1x64xbf16>
    tpu.vector_store %arg18[%c0_476, %c64_477], %346 {strides = array<i32>} : memref<1x256xbf16, #tpu.memory_space<vmem>>, vector<1x64xbf16>,
    %c1_478 = arith.constant 1 : index
    %c0_479 = arith.constant 0 : index
    %c0_480 = arith.constant 0 : index
    %348 = vector.load %arg17[%c1_478, %c0_479, %c0_480] : memref<2x2x576xbf16, #tpu.memory_space<vmem>>, vector<1x2x576xbf16>
    %349 = vector.shape_cast %348 : vector<1x2x576xbf16> to vector<2x576xbf16>
    %c0_481 = arith.constant 0 : index
    %c0_482 = arith.constant 0 : index
    %350 = vector.load %arg6[%c0_481, %c0_482] : memref<576x64xbf16, #tpu.memory_space<vmem>>, vector<576x64xbf16>
    %cst_483 = arith.constant dense<0.000000e+00> : vector<2x64xf32>
    %351 = tpu.matmul %349, %350, %cst_483 {dimension_numbers = #tpu.dot_dimension_numbers<[1], [0], [0], [1], [0, 0, 1, 1], [], []>} : vector<2x576xbf16>, vector<576x64xbf16>, vector<2x64xf32> -> vector<2x64xf32>
    %352 = vector.broadcast %2 : vector<1x64xf32> to vector<2x64xf32>
    %353 = arith.addf %351, %352 : vector<2x64xf32>
    %cst_484 = arith.constant 0.000000e+00 : f32
    %354 = vector.broadcast %cst_484 : f32 to vector<2x64xf32>
    %355 = arith.maximumf %353, %354 : vector<2x64xf32>
    %356 = arith.truncf %355 : vector<2x64xf32> to vector<2x64xbf16>
    %357 = vector.extract_strided_slice %356 {offsets = [0, 0], sizes = [1, 64], strides = [1, 1]} : vector<2x64xbf16> to vector<1x64xbf16>
    %c0_485 = arith.constant 0 : index
    %c128_486 = arith.constant 128 : index
    %358 = vector.load %arg18[%c0_485, %c128_486] : memref<1x256xbf16, #tpu.memory_space<vmem>>, vector<1x64xbf16>
    tpu.vector_store %arg18[%c0_485, %c128_486], %357 {strides = array<i32>} : memref<1x256xbf16, #tpu.memory_space<vmem>>, vector<1x64xbf16>,
    %359 = vector.extract_strided_slice %356 {offsets = [1, 0], sizes = [1, 64], strides = [1, 1]} : vector<2x64xbf16> to vector<1x64xbf16>
    %c0_487 = arith.constant 0 : index
    %c192_488 = arith.constant 192 : index
    %360 = vector.load %arg18[%c0_487, %c192_488] : memref<1x256xbf16, #tpu.memory_space<vmem>>, vector<1x64xbf16>
    tpu.vector_store %arg18[%c0_487, %c192_488], %359 {strides = array<i32>} : memref<1x256xbf16, #tpu.memory_space<vmem>>, vector<1x64xbf16>,
    %c0_489 = arith.constant 0 : index
    %c0_490 = arith.constant 0 : index
    %361 = vector.load %arg18[%c0_489, %c0_490] : memref<1x256xbf16, #tpu.memory_space<vmem>>, vector<1x256xbf16>
    %c0_491 = arith.constant 0 : index
    %c0_492 = arith.constant 0 : index
    %362 = vector.load %arg8[%c0_491, %c0_492] : memref<256x512xbf16, #tpu.memory_space<vmem>>, vector<256x512xbf16>
    %cst_493 = arith.constant dense<0.000000e+00> : vector<1x512xf32>
    %363 = tpu.matmul %361, %362, %cst_493 {dimension_numbers = #tpu.dot_dimension_numbers<[1], [0], [0], [1], [0, 0, 1, 1], [], []>} : vector<1x256xbf16>, vector<256x512xbf16>, vector<1x512xf32> -> vector<1x512xf32>
    %c0_494 = arith.constant 0 : index
    %c0_495 = arith.constant 0 : index
    %364 = vector.load %arg9[%c0_494, %c0_495] : memref<1x512xf32, #tpu.memory_space<vmem>>, vector<1x512xf32>
    %365 = arith.addf %363, %364 : vector<1x512xf32>
    %cst_496 = arith.constant 0.000000e+00 : f32
    %366 = vector.broadcast %cst_496 : f32 to vector<1x512xf32>
    %367 = arith.maximumf %365, %366 : vector<1x512xf32>
    %368 = arith.truncf %367 : vector<1x512xf32> to vector<1x512xbf16>
    %c0_497 = arith.constant 0 : index
    %c0_498 = arith.constant 0 : index
    %369 = vector.load %arg10[%c0_497, %c0_498] : memref<512x128xbf16, #tpu.memory_space<vmem>>, vector<512x128xbf16>
    %cst_499 = arith.constant dense<0.000000e+00> : vector<1x128xf32>
    %370 = tpu.matmul %368, %369, %cst_499 {dimension_numbers = #tpu.dot_dimension_numbers<[1], [0], [0], [1], [0, 0, 1, 1], [], []>} : vector<1x512xbf16>, vector<512x128xbf16>, vector<1x128xf32> -> vector<1x128xf32>
    %c0_500 = arith.constant 0 : index
    %c0_501 = arith.constant 0 : index
    %371 = vector.load %arg11[%c0_500, %c0_501] : memref<1x128xf32, #tpu.memory_space<vmem>>, vector<1x128xf32>
    %372 = arith.addf %370, %371 : vector<1x128xf32>
    %c0_502 = arith.constant 0 : index
    %c0_503 = arith.constant 0 : index
    %c0_504 = arith.constant 0 : index
    %373 = vector.load %arg12[%c0_502, %c0_503, %c0_504] : memref<1x1x128xf32, #tpu.memory_space<vmem>>, vector<1x1x128xf32>
    %374 = vector.shape_cast %373 : vector<1x1x128xf32> to vector<1x128xf32>
    %375 = vector.shape_cast %372 : vector<1x128xf32> to vector<1x1x128xf32>
    tpu.vector_store %arg12[%c0_502, %c0_503, %c0_504], %375 {strides = array<i32>} : memref<1x1x128xf32, #tpu.memory_space<vmem>>, vector<1x1x128xf32>,
    return
  }
  func.func @transform_0(%arg0: i32) -> (i32, i32, i32, i32, i32) {
    %c0_i32 = arith.constant 0 : i32
    %c0_i32_0 = arith.constant 0 : i32
    %c0_i32_1 = arith.constant 0 : i32
    %c0_i32_2 = arith.constant 0 : i32
    %c0_i32_3 = arith.constant 0 : i32
    return %arg0, %c0_i32, %c0_i32_0, %c0_i32_1, %c0_i32_2 : i32, i32, i32, i32, i32
  }
  func.func @transform_1(%arg0: i32) -> (i32, i32) {
    %c0_i32 = arith.constant 0 : i32
    %c0_i32_0 = arith.constant 0 : i32
    %c0_i32_1 = arith.constant 0 : i32
    return %c0_i32, %c0_i32_0 : i32, i32
  }
  func.func @transform_2(%arg0: i32) -> (i32, i32) {
    %c0_i32 = arith.constant 0 : i32
    %c0_i32_0 = arith.constant 0 : i32
    %c0_i32_1 = arith.constant 0 : i32
    return %c0_i32, %c0_i32_0 : i32, i32
  }
  func.func @transform_3(%arg0: i32) -> (i32, i32) {
    %c0_i32 = arith.constant 0 : i32
    %c0_i32_0 = arith.constant 0 : i32
    %c0_i32_1 = arith.constant 0 : i32
    return %c0_i32, %c0_i32_0 : i32, i32
  }
  func.func @transform_4(%arg0: i32) -> (i32, i32) {
    %c0_i32 = arith.constant 0 : i32
    %c0_i32_0 = arith.constant 0 : i32
    %c0_i32_1 = arith.constant 0 : i32
    return %c0_i32, %c0_i32_0 : i32, i32
  }
  func.func @transform_5(%arg0: i32) -> (i32, i32) {
    %c0_i32 = arith.constant 0 : i32
    %c0_i32_0 = arith.constant 0 : i32
    %c0_i32_1 = arith.constant 0 : i32
    return %c0_i32, %c0_i32_0 : i32, i32
  }
  func.func @transform_6(%arg0: i32) -> (i32, i32) {
    %c0_i32 = arith.constant 0 : i32
    %c0_i32_0 = arith.constant 0 : i32
    %c0_i32_1 = arith.constant 0 : i32
    return %c0_i32, %c0_i32_0 : i32, i32
  }
  func.func @transform_7(%arg0: i32) -> (i32, i32) {
    %c0_i32 = arith.constant 0 : i32
    %c0_i32_0 = arith.constant 0 : i32
    %c0_i32_1 = arith.constant 0 : i32
    return %c0_i32, %c0_i32_0 : i32, i32
  }
  func.func @transform_8(%arg0: i32) -> (i32, i32) {
    %c0_i32 = arith.constant 0 : i32
    %c0_i32_0 = arith.constant 0 : i32
    %c0_i32_1 = arith.constant 0 : i32
    return %c0_i32, %c0_i32_0 : i32, i32
  }
  func.func @transform_9(%arg0: i32) -> (i32, i32) {
    %c0_i32 = arith.constant 0 : i32
    %c0_i32_0 = arith.constant 0 : i32
    %c0_i32_1 = arith.constant 0 : i32
    return %c0_i32, %c0_i32_0 : i32, i32
  }
  func.func @transform_10(%arg0: i32) -> (i32, i32) {
    %c0_i32 = arith.constant 0 : i32
    %c0_i32_0 = arith.constant 0 : i32
    %c0_i32_1 = arith.constant 0 : i32
    return %c0_i32, %c0_i32_0 : i32, i32
  }
  func.func @transform_11(%arg0: i32) -> (i32, i32, i32) {
    %c0_i32 = arith.constant 0 : i32
    %c0_i32_0 = arith.constant 0 : i32
    %c0_i32_1 = arith.constant 0 : i32
    return %arg0, %c0_i32, %c0_i32_0 : i32, i32, i32
  }
}

</mosaic_0001>

<bundles_post_ra>
// kernel: dqn_forward.1
= control target key start
LH: loop header
LB: loop body
LE: loop exit
PB: predicated region body
PF: predicated region fallthrough
CT: control target
= control target key end

     0   :  { %s16135_s0 = inlined_call_operand.vmem [shape: bf16[2,11,4,6,32], index: 0, kind: input, shape index: {}]   ;;  %s16136_s1 = inlined_call_operand.vmem [shape: bf16[256,32], index: 1, kind: input, shape index: {}]   ;;  %s16137_s2 = inlined_call_operand.vmem [shape: f32[1,32], index: 2, kind: input, shape index: {}]   ;;  %s16138_s3 = inlined_call_operand.vmem [shape: bf16[512,64], index: 3, kind: input, shape index: {}]   ;;  %s16139_s4 = inlined_call_operand.vmem [shape: f32[1,64], index: 4, kind: input, shape index: {}]   ;;  %s16140_s5 = inlined_call_operand.vmem [shape: bf16[576,64], index: 5, kind: input, shape index: {}]   ;;  %s16141_s6 = inlined_call_operand.vmem [shape: f32[1,64], index: 6, kind: input, shape index: {}]   ;;  %s16142_s7 = inlined_call_operand.vmem [shape: bf16[256,512], index: 7, kind: input, shape index: {}]   ;;  %s16143_s8 = inlined_call_operand.vmem [shape: f32[1,512], index: 8, kind: input, shape index: {}]   ;;  %s16144_s9 = inlined_call_operand.vmem [shape: bf16[512,128], index: 9, kind: input, shape index: {}]   ;;  %s16145_s10 = inlined_call_operand.vmem [shape: f32[1,128], index: 10, kind: input, shape index: {}]   ;;  %s16146_s11 = inlined_call_operand.hbm [shape: f32[2,1,128], index: 11, kind: output, shape index: {}]  }
   0x1   :  { %16247 = sst [smem:[#allocation39_spill]] %s16135_s0 }
   0x2   :  { %16 = vsyncpa [#allocation9], 0 }
   0x3   :  { %18 = vsyncpa [#allocation9 + $0x1], 0  ;;  %s12071_s17 = smov 0   ;;  %s12073_s18 = smov 0  }
   0x4   :  { %s12075_s19 = smov 0   ;;  %s12077_s20 = smov 0  }
   0x5 LB: > { %16248 = sst [smem:[#allocation11_spill]] %s11985_s17  ;;  %s12092_s21 = sadd.s32 4294967295, %s11997_s20   ;;  %s11997_s20 = sphi %s12077_s20, %s16558_s20   ;;  %s11993_s19 = sphi %s12075_s19, %s16560_s19   ;;  %s11989_s18 = sphi %s12073_s18, %s16562_s18   ;;  %s11985_s17 = sphi %s12071_s17, %s16561_s17  }
   0x6   : > { %16249 = sst [smem:[#allocation12_spill]] %s11993_s19  ;;  %s10018_s22 = sadd.s32 4294967294, %s11997_s20  }
   0x7   : > { %s12096_s23 = sadd.s32 1, %s11997_s20   ;;  %s267_s24 = sadd.s32 1, %s11993_s19 }
   0x8   : > { %16250 = sst [smem:[#allocation13_spill]] %s12096_s23  ;;  %s264_s25 = ssub.s32 %s11997_s20, %s12096_s23 }
   0x9   : > { %p277_p0 = scmp.ne.s32.totalorder %s11993_s19, %s11989_s18  ;;  %p265_p1 = scmp.eq.s32.totalorder %s264_s25, 0 }
   0xa   : > { %p278_p2 = scmp.eq.s32.totalorder %s12092_s21, 1  ;;  %p283_p3 = scmp.ne.s32.totalorder %s11989_s18, %s11985_s17 }
   0xb   : > { %p284_p4 = scmp.eq.s32.totalorder %s10018_s22, 1  ;;  %p10021_p7 = scmp.ge.s32.totalorder %s11997_s20, 1 }
   0xc   : > { %s12107_s26 = scalar_select %p265_p1, %s11993_s19, %s267_s24  }
   0xd   : > { %p12109_p5 = por %p278_p2, %p277_p0  ;;  %p12113_p6 = por %p284_p4, %p283_p3 }
   0xe   : > { %16251 = sst [smem:[#allocation14_spill]] %s12107_s26  ;;  %p340_p8 = scmp.lt.s32.totalorder %s11997_s20, 3 }
   0xf   : > { %s16253_s28 = scalar_select %p12113_p6, 1, 0 }
  0x10   : > { %p341_p9 = pnand %p10021_p7, %p340_p8 }
  0x11   : > { %16254 = sst [smem:[#allocation15_spill]] %s16253_s28 }
  0x12   : > { %344 = sbr.rel (%p341_p9) target bundleno = 2601 (0xa29), region = 64 }
  0x19   : > { %p379_p10 = scmp.lt.s32.totalorder %s12092_s21, 1  ;;  %s16255_s0 = sld [smem:[#allocation39_spill]]  ;;  %vm398_vm0 = vcmask 256000   ;;  %vm399_vm1 = vsmask.f32 2304  ;;  %vm591_vm3 = vcmask 125954  }
  0x1a   : > { %s16192_s15 = smov 16   ;;  %s16194_s16 = smov 112   ;;  %vm12251_vm2 = vmand %vm398_vm0, %vm399_vm1  ;;  %vm592_vm4 = vsmask.f32 7946  ;;  %vm735_vm6 = vcmask 257154   ;;  %vm829_vm8 = vcmask 518400  }
  0x1b   : > { %s380_s29 = scalar_select %p379_p10, %s12092_s21, 1  ;;  %vm12482_vm5 = vmand %vm591_vm3, %vm592_vm4  ;;  %vm1021_vm10 = vcmask 388354   ;;  %vm1164_vm12 = vcmask 519554   ;;  %vm1258_vm14 = vcmask 780800   ;;  %vm1450_vm0 = vcmask 650754  }
  0x1c   : > { %s16184_s22 = smov 32   ;;  %s16190_s24 = smov 48   ;;  %vm12517_vm7 = vmand %vm735_vm6, %vm592_vm4  ;;  %vm1593_vm6 = vcmask 781954  }
  0x1d   : > { %s11358_s30 = smul.u32 176, %s380_s29  ;;  %s16186_s25 = smov 64   ;;  %vm12544_vm9 = vmand %vm829_vm8, %vm399_vm1 }
  0x1e   : > { %s16196_s29 = smov 80   ;;  %vm12575_vm11 = vmand %vm1021_vm10, %vm592_vm4  ;;  %vm1687_vm10 = vcmask 1043200   ;;  %s16310_s26 = smov 48  }
  0x1f   : > { %s12124_s14 = scalar_lea.vmem %s16255_s0, %s11358_s30  ;;  %s16188_s30 = smov 96   ;;  %vm12612_vm13 = vmand %vm1164_vm12, %vm592_vm4 }
  0x20   : > { %v12127_v0 = vld [vmem:[%s12124_s14 + $0x10] sm:$0x7]  ;;  %v12130_v1 = vld [vmem:[%s12124_s14] sm:$0x7]  ;;  %v10034_v32 = vld [vmem:[%s12124_s14 + $0x14] sm:$0x7] }
  0x21   : > { %v12133_v2 = vld [vmem:[%s12124_s14 + $0x20] sm:$0x7]  ;;  %v16166_v3 = vrot.slane %v12127_v0, 6  ;;  %v16165_v4 = vrot.slane %v12130_v1, 6  ;;  %v12138_v5 = vld [vmem:[%s12124_s14 + $0x10] sm:$0x7]  ;;  %vm12654_vm15 = vmand %vm1258_vm14, %vm399_vm1 }
  0x22   : > { %v10123_v6 = vld [vmem:[%s12124_s14 + $0x10] sm:$0x7]  ;;  %v431_v7 = vld [vmem:[%s12124_s14] sm:$0x7]  ;;  %v16164_v8 = vrot.slane %v12133_v2, 6  ;;  %v16163_v9 = vrot.slane %v12138_v5, 6  ;;  %vm12699_vm3 = vmand %vm1450_vm0, %vm592_vm4 }
  0x23   : > { %679 = vrot.lane.b32.xlu1 %v16166_v3, %s16192_s15  ;;  %675 = vrot.lane.b32.xlu0 %v16165_v4, %s16192_s15  ;;  %v2117_v10 = vshrl.u32 %v10123_v6, 16  ;;  %v2120_v11 = vshll.u32 %v10123_v6, 16  ;;  %v10124_v12 = vld [vmem:[%s12124_s14 + $0x20] sm:$0x7]  ;;  %v442_v13 = vshrl.u32 %v431_v7, 16  ;;  %v445_v14 = vshll.u32 %v431_v7, 16  ;;  %vm12740_vm8 = vmand %vm1593_vm6, %vm592_vm4 }
  0x24   : > { %v2126_v15 = vshrl.u32 %v10124_v12, 16  ;;  %v2129_v16 = vshll.u32 %v10124_v12, 16  ;;  %v432_v17 = vld [vmem:[%s12124_s14 + $0x10] sm:$0x7]  ;;  %v10033_v33 = vld [vmem:[%s12124_s14 + $0x4] sm:$0x7]  ;;  %vm12925_vm12 = vmand %vm1687_vm10, %vm399_vm1 }
  0x25   : > { %v2119_v18 = vrot.slane %v2117_v10, 5  ;;  %v2122_v19 = vrot.slane %v2120_v11, 6  ;;  %v451_v20 = vshrl.u32 %v432_v17, 16  ;;  %v454_v21 = vshll.u32 %v432_v17, 16  ;;  %v10154_v34 = vld [vmem:[%s12124_s14 + $0x24] sm:$0x7] }
  0x26   : > { %v444_v22 = vrot.slane %v442_v13, 5  ;;  %v447_v23 = vrot.slane %v445_v14, 6  ;;  %v2128_v24 = vrot.slane %v2126_v15, 5  ;;  %v2131_v26 = vrot.slane %v2129_v16, 6  ;;  %v10153_v35 = vld [vmem:[%s12124_s14 + $0x14] sm:$0x7] }
  0x27   : > { %2350 = vrot.lane.b32.xlu1 %v16164_v8, %s16192_s15  ;;  %2346 = vrot.lane.b32.xlu0 %v16163_v9, %s16192_s15  ;;  %v12158_v25 = vor.u32 %v2122_v19, %v2119_v18  ;;  %v453_v27 = vrot.slane %v451_v20, 5  ;;  %v456_v28 = vrot.slane %v454_v21, 6  ;;  %v881_v36 = vshrl.u32 %v10034_v32, 16  ;;  %v10024_v40 = vld [vmem:[%s12124_s14 + $0x14] sm:$0x7]  ;;  %s16305_s0 = smov 16  }
  0x28   : > { %v12160_v29 = vor.u32 %v447_v23, %v444_v22  ;;  %v12166_v30 = vor.u32 %v2131_v26, %v2128_v24  ;;  %v884_v37 = vshll.u32 %v10034_v32, 16  ;;  %v872_v38 = vshrl.u32 %v10033_v33, 16  ;;  %v10023_v41 = vld [vmem:[%s12124_s14 + $0x4] sm:$0x7]  ;;  %v434_v46 = vld [vmem:[%s12124_s14 + $0x30] sm:$0x7] }
  0x29   : > { %v12168_v31 = vor.u32 %v456_v28, %v453_v27  ;;  %v875_v39 = vshll.u32 %v10033_v33, 16  ;;  %v2547_v42 = vshrl.u32 %v10154_v34, 16  ;;  %v2550_v43 = vshll.u32 %v10154_v34, 16  ;;  %v433_v51 = vld [vmem:[%s12124_s14 + $0x20] sm:$0x7]  ;;  %s377_s23 = sand.u32 1, %s11989_s18  }
  0x2a   : > { %v2538_v44 = vshrl.u32 %v10153_v35, 16  ;;  %v2541_v45 = vshll.u32 %v10153_v35, 16  ;;  %v883_v47 = vrot.slane %v881_v36, 5  ;;  %v886_v48 = vrot.slane %v884_v37, 6  ;;  %v10144_v52 = vld [vmem:[%s12124_s14 + $0x24] sm:$0x7] }
  0x2b   : > { %2206 = vrot.lane.b32.xlu1 %v12158_v25, %s16194_s16  ;;  %531 = vrot.lane.b32.xlu0 %v12160_v29, %s16194_s16  ;;  %v874_v49 = vrot.slane %v872_v38, 5  ;;  %v877_v50 = vrot.slane %v875_v39, 6  ;;  %v10143_v53 = vld [vmem:[%s12124_s14 + $0x14] sm:$0x7]  ;;  %v2549_v54 = vrot.slane %v2547_v42, 5  ;;  %v2552_v55 = vrot.slane %v2550_v43, 6 }
  0x2c   : > { %v2540_v56 = vrot.slane %v2538_v44, 5  ;;  %v2543_v57 = vrot.slane %v2541_v45, 6  ;;  %v469_v58 = vshrl.u32 %v434_v46, 16  ;;  %v472_v59 = vshll.u32 %v434_v46, 16  ;;  %v10126_v6 = vld [vmem:[%s12124_s14 + $0x40] sm:$0x7] }
  0x2d   : > { %v460_v60 = vshrl.u32 %v433_v51, 16  ;;  %v12188_v61 = vor.u32 %v886_v48, %v883_v47  ;;  %v12190_v62 = vor.u32 %v877_v50, %v874_v49  ;;  %v463_v63 = vshll.u32 %v433_v51, 16  ;;  %v10125_v7 = vld [vmem:[%s12124_s14 + $0x30] sm:$0x7]  ;;  %v12219_v32 = vld [vmem:[%s12124_s14 + $0x14] sm:$0x7] }
  0x2e   : > { %v12194_v10 = vor.u32 %v2552_v55, %v2549_v54  ;;  %v12196_v11 = vor.u32 %v2543_v57, %v2540_v56  ;;  %v471_v12 = vrot.slane %v469_v58, 5  ;;  %v474_v13 = vrot.slane %v472_v59, 6  ;;  %v12222_v33 = vld [vmem:[%s12124_s14 + $0x4] sm:$0x7]  ;;  %v12234_v37 = vld [vmem:[%s12124_s14 + $0x14] sm:$0x7] }
  0x2f   : > { %2210 = vrot.lane.b32.xlu1 %v12166_v30, %s16194_s16  ;;  %535 = vrot.lane.b32.xlu0 %v12168_v31, %s16194_s16  ;;  %v462_v14 = vrot.slane %v460_v60, 5  ;;  %v2144_v15 = vshrl.u32 %v10126_v6, 16  ;;  %v465_v16 = vrot.slane %v463_v63, 6  ;;  %v2147_v17 = vshll.u32 %v10126_v6, 16  ;;  %v12231_v36 = vld [vmem:[%s12124_s14 + $0x24] sm:$0x7] }
  0x30   : > { %v2135_v18 = vshrl.u32 %v10125_v7, 16  ;;  %v2138_v19 = vshll.u32 %v10125_v7, 16  ;;  %v12202_v20 = vor.u32 %v474_v13, %v471_v12  ;;  %v16162_v34 = vrot.slane %v12219_v32, 6  ;;  %v2076_v43 = vld [vmem:[#allocation2 + $0x4] sm:$0x7]  ;;  %s10773_s17 = sshll.u32 %s12092_s21, 4 }
  0x31   : > { %v2146_v21 = vrot.slane %v2144_v15, 5  ;;  %v12208_v22 = vor.u32 %v465_v16, %v462_v14  ;;  %v2149_v23 = vrot.slane %v2147_v17, 6  ;;  %v16161_v35 = vrot.slane %v12222_v33, 6  ;;  %v401_v46 = vld [vmem:[#allocation2] sm:$0x7]  ;;  %s16093_s19 = scalar_lea.hbm %s16146_s11, %s10773_s17  ;;  %s12010_s21 = smov [#allocation8]  }
  0x32   : > { %v2137_v24 = vrot.slane %v2135_v18, 5  ;;  %v2140_v26 = vrot.slane %v2138_v19, 6  ;;  %v16160_v38 = vrot.slane %v12231_v36, 6  ;;  %v16159_v39 = vrot.slane %v12234_v37, 6  ;;  %v2079_v47 = vld [vmem:[#allocation2 + $0x14] sm:$0x7] }
  0x33   : > { %801 = vrot.lane.b32.xlu1 %v10024_v40, %s16184_s22  ;;  %799 = vrot.lane.b32.xlu0 %v10023_v41, %s16184_s22  ;;  %v12214_v27 = vor.u32 %v2149_v23, %v2146_v21  ;;  %v12245_v40 = vld [vmem:[%s12124_s14 + $0x30] sm:$0x7]  ;;  %v12248_v41 = vld [vmem:[%s12124_s14 + $0x20] sm:$0x7]  ;;  %vm1879_vm1 = vcmask 913154   ;;  %vm16215_vm0 = vcmask 122880  }
  0x34   : > { %v12216_v28 = vor.u32 %v2140_v26, %v2137_v24  ;;  %v16150_v44 = vrot.slane %v12245_v40, 6  ;;  %v16149_v45 = vrot.slane %v12248_v41, 6  ;;  %v12264_v48 = vld [vmem:[%s12124_s14 + $0x40] sm:$0x7]  ;;  %v12267_v49 = vld [vmem:[%s12124_s14 + $0x30] sm:$0x7]  ;;  %vm13053_vm14 = vmand %vm1879_vm1, %vm592_vm4 }
  0x35   : > { %v10113_v50 = vld [vmem:[%s12124_s14 + $0x10] sm:$0x7]  ;;  %v10114_v55 = vld [vmem:[%s12124_s14 + $0x20] sm:$0x7]  ;;  %v16148_v56 = vrot.slane %v12264_v48, 6  ;;  %v16147_v57 = vrot.slane %v12267_v49, 6 }
  0x36   : > { %v2077_v51 = vsel %vm12251_vm2, %v10113_v50, %v2076_v43  ;;  %v2080_v58 = vsel %vm12251_vm2, %v10114_v55, %v2079_v47  ;;  %v389_v59 = vld [vmem:[%s12124_s14 + $0x10] sm:$0x7]  ;;  %v10054_v63 = vld [vmem:[%s12124_s14 + $0x18] sm:$0x7]  ;;  %v10053_v6 = vld [vmem:[%s12124_s14 + $0x8] sm:$0x7] }
  0x37   : > { %2469 = vrot.lane.b32.xlu1 %v10144_v52, %s16184_s22  ;;  %2467 = vrot.lane.b32.xlu0 %v10143_v53, %s16184_s22  ;;  %v388_v52 = vld [vmem:[%s12124_s14] sm:$0x7]  ;;  %v404_v53 = vld [vmem:[#allocation2 + $0x10] sm:$0x7]  ;;  %2078 = vst [vmem:[#allocation2 + $0x4] sm:$0x7] %v2077_v51 }
  0x38   : > { %v402_v54 = vsel %vm12251_vm2, %v388_v52, %v401_v46  ;;  %2081 = vst [vmem:[#allocation2 + $0x14] sm:$0x7] %v2080_v58  ;;  %v405_v60 = vsel %vm12251_vm2, %v389_v59, %v404_v53  ;;  %v10064_v7 = vld [vmem:[%s12124_s14 + $0x18] sm:$0x7]  ;;  %v10063_v12 = vld [vmem:[%s12124_s14 + $0x8] sm:$0x7] }
  0x39   : > { %403 = vst [vmem:[#allocation2] sm:$0x7] %v402_v54  ;;  %406 = vst [vmem:[#allocation2 + $0x10] sm:$0x7] %v405_v60  ;;  %v410_v13 = vld [vmem:[#allocation2 + $0x30] sm:$0x7] }
  0x3a   : > { %v391_v14 = vld [vmem:[%s12124_s14 + $0x30] sm:$0x7]  ;;  %v10174_v15 = vld [vmem:[%s12124_s14 + $0x28] sm:$0x7]  ;;  %v10173_v16 = vld [vmem:[%s12124_s14 + $0x18] sm:$0x7] }
  0x3b   : > { %965 = vrot.lane.b32.xlu1 %v12188_v61, %s16192_s15  ;;  %961 = vrot.lane.b32.xlu0 %v12190_v62, %s16192_s15  ;;  %v411_v17 = vsel %vm12251_vm2, %v391_v14, %v410_v13  ;;  %v407_v18 = vld [vmem:[#allocation2 + $0x20] sm:$0x7]  ;;  %v1310_v19 = vshrl.u32 %v10064_v7, 16  ;;  %v1313_v21 = vshll.u32 %v10064_v7, 16  ;;  %v1301_v24 = vshrl.u32 %v10063_v12, 16 }
  0x3c   : > { %412 = vst [vmem:[#allocation2 + $0x30] sm:$0x7] %v411_v17  ;;  %v390_v23 = vld [vmem:[%s12124_s14 + $0x20] sm:$0x7]  ;;  %v1304_v26 = vshll.u32 %v10063_v12, 16  ;;  %vm16214_vm6 = vcmask 254080  }
  0x3d   : > { %v10184_v43 = vld [vmem:[%s12124_s14 + $0x28] sm:$0x7]  ;;  %v408_v46 = vsel %vm12251_vm2, %v390_v23, %v407_v18  ;;  %v10116_v47 = vld [vmem:[%s12124_s14 + $0x40] sm:$0x7]  ;;  %v2085_v50 = vld [vmem:[#allocation2 + $0x34] sm:$0x7] }
  0x3e   : > { %409 = vst [vmem:[#allocation2 + $0x20] sm:$0x7] %v408_v46  ;;  %v10115_v51 = vld [vmem:[%s12124_s14 + $0x30] sm:$0x7]  ;;  %v2082_v52 = vld [vmem:[#allocation2 + $0x24] sm:$0x7]  ;;  %v2086_v58 = vsel %vm12251_vm2, %v10116_v47, %v2085_v50 }
  0x3f   : > { %2631 = vrot.lane.b32.xlu1 %v12194_v10, %s16192_s15  ;;  %2627 = vrot.lane.b32.xlu0 %v12196_v11, %s16192_s15  ;;  %v10026_v53 = vld [vmem:[%s12124_s14 + $0x34] sm:$0x7]  ;;  %v10025_v54 = vld [vmem:[%s12124_s14 + $0x24] sm:$0x7]  ;;  %v2083_v59 = vsel %vm12251_vm2, %v10115_v51, %v2082_v52  ;;  %v2968_v60 = vshrl.u32 %v10184_v43, 16  ;;  %v1312_v12 = vrot.slane %v1310_v19, 5 }
  0x40   : > { %v10183_v55 = vld [vmem:[%s12124_s14 + $0x18] sm:$0x7]  ;;  %2087 = vst [vmem:[#allocation2 + $0x34] sm:$0x7] %v2086_v58  ;;  %2084 = vst [vmem:[#allocation2 + $0x24] sm:$0x7] %v2083_v59 }
  0x41   : > { %v10146_v7 = vld [vmem:[%s12124_s14 + $0x44] sm:$0x7]  ;;  %v1315_v13 = vrot.slane %v1313_v21, 6  ;;  %v1303_v14 = vrot.slane %v1301_v24, 5  ;;  %v10145_v17 = vld [vmem:[%s12124_s14 + $0x34] sm:$0x7] }
  0x42   : > { %v2959_v18 = vshrl.u32 %v10183_v55, 16  ;;  %v2962_v23 = vshll.u32 %v10183_v55, 16  ;;  %v10156_v47 = vld [vmem:[%s12124_s14 + $0x44] sm:$0x7]  ;;  %v10155_v50 = vld [vmem:[%s12124_s14 + $0x34] sm:$0x7] }
  0x43   : > { %543 = vrot.lane.b32.xlu1 %v12202_v20, %s16194_s16  ;;  %539 = vrot.lane.b32.xlu0 %v12208_v22, %s16194_s16  ;;  %v2970_v51 = vrot.slane %v2968_v60, 5  ;;  %v12329_v58 = vor.u32 %v1315_v13, %v1312_v12  ;;  %v2568_v55 = vshll.u32 %v10156_v47, 16  ;;  %v2556_v60 = vshrl.u32 %v10155_v50, 16  ;;  %v10093_v8 = vld [vmem:[%s12124_s14 + $0xc] sm:$0x7] }
  0x44   : > { %vm16212_vm10 = vcmask 385280   ;;  %vm16213_vm1 = vcmask 516480  }
  0x47   : > { %2218 = vrot.lane.b32.xlu1 %v12214_v27, %s16194_s16  ;;  %2214 = vrot.lane.b32.xlu0 %v12216_v28, %s16194_s16 }
  0x4b   : > { %1108 = vrot.lane.b32.xlu1 %v16162_v34, %s16190_s24  ;;  %1104 = vrot.lane.b32.xlu0 %v16161_v35, %s16190_s24  ;;  %v2266_v34 = vld [vmem:[#allocation2 + $0x4] sm:$0xc] }
  0x4f   : > { %2771 = vrot.lane.b32.xlu1 %v16160_v38, %s16190_s24  ;;  %2767 = vrot.lane.b32.xlu0 %v16159_v39, %s16190_s24 }
  0x53   : > { %687 = vrot.lane.b32.xlu1 %v16150_v44, %s16192_s15  ;;  %683 = vrot.lane.b32.xlu0 %v16149_v45, %s16192_s15 }
  0x57   : > { %2358 = vrot.lane.b32.xlu1 %v16148_v56, %s16192_s15  ;;  %2354 = vrot.lane.b32.xlu0 %v16147_v57, %s16192_s15  ;;  %v2559_v57 = vshll.u32 %v10155_v50, 16 }
  0x5b   : > { %1230 = vrot.lane.b32.xlu1 %v10054_v63, %s16186_s25  ;;  %1228 = vrot.lane.b32.xlu0 %v10053_v6, %s16186_s25  ;;  %v2971_v63 = vshll.u32 %v10184_v43, 16  ;;  %v10036_v6 = vld [vmem:[%s12124_s14 + $0x34] sm:$0x7] }
  0x5c   : > { %v899_v46 = vshrl.u32 %v10036_v6, 16  ;;  %v902_v43 = vshll.u32 %v10036_v6, 16 }
  0x5d   : > { %v2973_v21 = vrot.slane %v2971_v63, 6 }
  0x5e   : > { %v901_v59 = vrot.slane %v899_v46, 5  ;;  %v904_v6 = vrot.slane %v902_v43, 6  ;;  %v393_v46 = vld [vmem:[%s12124_s14 + $0x50] sm:$0x7]  ;;  %v413_v43 = vld [vmem:[#allocation2 + $0x40] sm:$0x7] }
  0x5f   : > { %2890 = vrot.lane.b32.xlu1 %v10174_v15, %s16186_s25  ;;  %2888 = vrot.lane.b32.xlu0 %v10173_v16, %s16186_s25  ;;  %v1306_v15 = vrot.slane %v1304_v26, 6  ;;  %v10035_v16 = vld [vmem:[%s12124_s14 + $0x24] sm:$0x7]  ;;  %v2961_v26 = vrot.slane %v2959_v18, 5  ;;  %v12340_v63 = vor.u32 %v2973_v21, %v2970_v51  ;;  %v2561_v18 = vrot.slane %v2559_v57, 6 }
  0x60   : > { %v890_v52 = vshrl.u32 %v10035_v16, 16  ;;  %v893_v24 = vshll.u32 %v10035_v16, 16  ;;  %v2570_v16 = vrot.slane %v2568_v55, 6  ;;  %v392_v51 = vld [vmem:[%s12124_s14 + $0x40] sm:$0x7] }
  0x61   : > { %v12331_v19 = vor.u32 %v1306_v15, %v1303_v14  ;;  %v436_v14 = vld [vmem:[%s12124_s14 + $0x50] sm:$0x7]  ;;  %v12368_v55 = vld [vmem:[%s12124_s14 + $0x18] sm:$0x7] }
  0x62   : > { %v892_v12 = vrot.slane %v890_v52, 5  ;;  %v895_v13 = vrot.slane %v893_v24, 6  ;;  %v487_v52 = vshrl.u32 %v436_v14, 16  ;;  %v490_v21 = vshll.u32 %v436_v14, 16 }
  0x63   : > { %805 = vrot.lane.b32.xlu1 %v10026_v53, %s16184_s22  ;;  %803 = vrot.lane.b32.xlu0 %v10025_v54, %s16184_s22  ;;  %v2964_v53 = vrot.slane %v2962_v23, 6  ;;  %v2565_v54 = vshrl.u32 %v10156_v47, 16  ;;  %v416_v23 = vld [vmem:[#allocation2 + $0x50] sm:$0x7]  ;;  %v12345_v47 = vor.u32 %v904_v6, %v901_v59  ;;  %v414_v24 = vsel %vm12251_vm2, %v392_v51, %v413_v43  ;;  %v435_v59 = vld [vmem:[%s12124_s14 + $0x40] sm:$0x7] }
  0x64   : > { %v417_v50 = vsel %vm12251_vm2, %v393_v46, %v416_v23  ;;  %v12354_v57 = vor.u32 %v895_v13, %v892_v12  ;;  %415 = vst [vmem:[#allocation2 + $0x40] sm:$0x7] %v414_v24  ;;  %v10118_v6 = vld [vmem:[%s12124_s14 + $0x60] sm:$0x7]  ;;  %v10117_v12 = vld [vmem:[%s12124_s14 + $0x50] sm:$0x7] }
  0x65   : > { %v2567_v15 = vrot.slane %v2565_v54, 5  ;;  %418 = vst [vmem:[#allocation2 + $0x50] sm:$0x7] %v417_v50  ;;  %v12365_v54 = vld [vmem:[%s12124_s14 + $0x28] sm:$0x7]  ;;  %v489_v56 = vrot.slane %v487_v52, 5 }
  0x66   : > { %16258 = vst [vmem:[#allocation16_spill] sm:$0xff] %v12354_v57  ;;  %v10128_v13 = vld [vmem:[%s12124_s14 + $0x60] sm:$0x7]  ;;  %v2088_v23 = vld [vmem:[#allocation2 + $0x44] sm:$0x7]  ;;  %v492_v45 = vrot.slane %v490_v21, 6 }
  0x67   : > { %2473 = vrot.lane.b32.xlu1 %v10146_v7, %s16184_s22  ;;  %2471 = vrot.lane.b32.xlu0 %v10145_v17, %s16184_s22  ;;  %v12342_v7 = vor.u32 %v2964_v53, %v2961_v26  ;;  %v2558_v17 = vrot.slane %v2556_v60, 5  ;;  %v12359_v26 = vld [vmem:[%s12124_s14 + $0x18] sm:$0x7]  ;;  %v12362_v53 = vld [vmem:[%s12124_s14 + $0x8] sm:$0x7]  ;;  %v12380_v46 = vor.u32 %v2570_v16, %v2567_v15  ;;  %v2089_v50 = vsel %vm12251_vm2, %v10117_v12, %v2088_v23 }
  0x68   : > { %v2091_v60 = vld [vmem:[#allocation2 + $0x54] sm:$0x7]  ;;  %2090 = vst [vmem:[#allocation2 + $0x44] sm:$0x7] %v2089_v50  ;;  %v16156_v51 = vrot.slane %v12359_v26, 6  ;;  %v16151_v24 = vrot.slane %v12362_v53, 6 }
  0x69   : > { %v2092_v14 = vsel %vm12251_vm2, %v10118_v6, %v2091_v60  ;;  %16259 = vst [vmem:[#allocation17_spill] sm:$0xff] %v12380_v46  ;;  %v12382_v43 = vor.u32 %v2561_v18, %v2558_v17  ;;  %v16155_v6 = vrot.slane %v12365_v54, 6  ;;  %v16154_v60 = vrot.slane %v12368_v55, 6  ;;  %v10127_v16 = vld [vmem:[%s12124_s14 + $0x50] sm:$0x7] }
  0x6a   : > { %2093 = vst [vmem:[#allocation2 + $0x54] sm:$0x7] %v2092_v14  ;;  %v478_v44 = vshrl.u32 %v435_v59, 16  ;;  %v481_v15 = vshll.u32 %v435_v59, 16  ;;  %v2162_v17 = vshrl.u32 %v10128_v13, 16  ;;  %v2165_v18 = vshll.u32 %v10128_v13, 16 }
  0x6b   : > { %1394 = vrot.lane.b32.xlu1 %v12329_v58, %s16190_s24  ;;  %1390 = vrot.lane.b32.xlu0 %v12331_v19, %s16190_s24  ;;  %16260 = vst [vmem:[#allocation18_spill] sm:$0xff] %v12382_v43  ;;  %v2153_v52 = vshrl.u32 %v10127_v16, 16  ;;  %v2156_v21 = vshll.u32 %v10127_v16, 16 }
  0x6c   : > { %v480_v12 = vrot.slane %v478_v44, 5  ;;  %v483_v14 = vrot.slane %v481_v15, 6  ;;  %v2164_v59 = vrot.slane %v2162_v17, 5  ;;  %v2167_v23 = vrot.slane %v2165_v18, 6 }
  0x6d   : > { %v12407_v44 = vor.u32 %v492_v45, %v489_v56  ;;  %v2155_v50 = vrot.slane %v2153_v52, 5  ;;  %v2158_v15 = vrot.slane %v2156_v21, 6  ;;  %v12423_v45 = vld [vmem:[%s12124_s14 + $0x24] sm:$0x7] }
  0x6e   : > { %v12409_v13 = vor.u32 %v483_v14, %v480_v12  ;;  %v12418_v16 = vor.u32 %v2167_v23, %v2164_v59  ;;  %16266 = vst [vmem:[#allocation24_spill] sm:$0xff] %v12423_v45  ;;  %v12426_v56 = vld [vmem:[%s12124_s14 + $0x44] sm:$0x7]  ;;  %v16152_v12 = vrot.slane %v12423_v45, 6  ;;  %v12435_v14 = vld [vmem:[%s12124_s14 + $0x34] sm:$0x7] }
  0x6f   : > { %3052 = vrot.lane.b32.xlu1 %v12340_v63, %s16190_s24  ;;  %3048 = vrot.lane.b32.xlu0 %v12342_v7, %s16190_s24  ;;  %16261 = vst [vmem:[#allocation19_spill] sm:$0xff] %v12407_v44  ;;  %v12420_v17 = vor.u32 %v2158_v15, %v2155_v50  ;;  %16267 = vst [vmem:[#allocation25_spill] sm:$0xff] %v12426_v56  ;;  %v16158_v52 = vrot.slane %v12426_v56, 6  ;;  %v16157_v21 = vrot.slane %v12435_v14, 6  ;;  %v10084_v59 = vld [vmem:[%s12124_s14 + $0x1c] sm:$0x7] }
  0x70   : > { %16262 = vst [vmem:[#allocation20_spill] sm:$0xff] %v12409_v13  ;;  %16264 = vst [vmem:[#allocation22_spill] sm:$0xff] %v12418_v16  ;;  %v10083_v23 = vld [vmem:[%s12124_s14 + $0xc] sm:$0x7]  ;;  %v12454_v50 = vld [vmem:[%s12124_s14 + $0x50] sm:$0x7] }
  0x71   : > { %16265 = vst [vmem:[#allocation23_spill] sm:$0xff] %v12420_v17  ;;  %16268 = vst [vmem:[#allocation26_spill] sm:$0xff] %v12435_v14  ;;  %v12457_v15 = vld [vmem:[%s12124_s14 + $0x40] sm:$0x7]  ;;  %v16173_v39 = vrot.slane %v12454_v50, 6 }
  0x72   : > { %16269 = vst [vmem:[#allocation27_spill] sm:$0xff] %v12454_v50  ;;  %16270 = vst [vmem:[#allocation28_spill] sm:$0xff] %v12457_v15  ;;  %v16175_v38 = vrot.slane %v12457_v15, 6  ;;  %v2270_v56 = vld [vmem:[#allocation2 + $0x14] sm:$0xc] }
  0x73   : > { %973 = vrot.lane.b32.xlu1 %v12345_v47, %s16192_s15  ;;  %969 = vrot.lane.b32.xlu0 %v12354_v57, %s16192_s15  ;;  %v10055_v50 = vld [vmem:[%s12124_s14 + $0x28] sm:$0x7]  ;;  %v599_v15 = vld [vmem:[#allocation2 + $0x10] sm:$0xc] }
  0x77   : > { %2639 = vrot.lane.b32.xlu1 %v12380_v46, %s16192_s15  ;;  %2635 = vrot.lane.b32.xlu0 %v12382_v43, %s16192_s15 }
  0x7b   : > { %1537 = vrot.lane.b32.xlu1 %v16156_v51, %s16196_s29  ;;  %1533 = vrot.lane.b32.xlu0 %v16151_v24, %s16196_s29  ;;  %v12412_v24 = vld [vmem:[%s12124_s14 + $0x34] sm:$0x7]  ;;  %v10094_v51 = vld [vmem:[%s12124_s14 + $0x1c] sm:$0x7] }
  0x7c   : > { %16263 = vst [vmem:[#allocation21_spill] sm:$0xff] %v12412_v24  ;;  %v16153_v18 = vrot.slane %v12412_v24, 6  ;;  %v1742_v9 = vshll.u32 %v10094_v51, 16 }
  0x7f   : > { %3192 = vrot.lane.b32.xlu1 %v16155_v6, %s16196_s29  ;;  %3188 = vrot.lane.b32.xlu0 %v16154_v60, %s16196_s29  ;;  %v10204_v60 = vld [vmem:[%s12124_s14 + $0x2c] sm:$0x7]  ;;  %v10203_v6 = vld [vmem:[%s12124_s14 + $0x1c] sm:$0x7] }
  0x83   : > { %551 = vrot.lane.b32.xlu1 %v12407_v44, %s16194_s16  ;;  %547 = vrot.lane.b32.xlu0 %v12409_v13, %s16194_s16  ;;  %v10213_v13 = vld [vmem:[%s12124_s14 + $0x1c] sm:$0x7] }
  0x84   : > { %v3383_v46 = vshll.u32 %v10213_v13, 16 }
  0x87   : > { %2226 = vrot.lane.b32.xlu1 %v12418_v16, %s16194_s16  ;;  %2222 = vrot.lane.b32.xlu0 %v12420_v17, %s16194_s16  ;;  %v1730_v17 = vshrl.u32 %v10093_v8, 16  ;;  %v1733_v16 = vshll.u32 %v10093_v8, 16 }
  0x8b   : > { %1116 = vrot.lane.b32.xlu1 %v16153_v18, %s16190_s24  ;;  %1112 = vrot.lane.b32.xlu0 %v16152_v12, %s16190_s24  ;;  %v12460_v12 = vld [vmem:[%s12124_s14 + $0x60] sm:$0x7]  ;;  %v12463_v18 = vld [vmem:[%s12124_s14 + $0x50] sm:$0x7] }
  0x8c   : > { %16271 = vst [vmem:[#allocation29_spill] sm:$0xff] %v12460_v12  ;;  %16272 = vst [vmem:[#allocation30_spill] sm:$0xff] %v12463_v18  ;;  %v16276_v8 = vrot.slane %v12463_v18, 6 }
  0x8f   : > { %2779 = vrot.lane.b32.xlu1 %v16158_v52, %s16190_s24  ;;  %2775 = vrot.lane.b32.xlu0 %v16157_v21, %s16190_s24 }
  0x93   : > { %1659 = vrot.lane.b32.xlu1 %v10084_v59, %s16188_s30  ;;  %1657 = vrot.lane.b32.xlu0 %v10083_v23, %s16188_s30  ;;  %v1739_v23 = vshrl.u32 %v10094_v51, 16 }
  0x95   : > { %v12470_v21 = vpop.permute.xlu1 %679  ;;  %v12472_v52 = vpop.permute.xlu0 %675  ;;  %v1741_v45 = vrot.slane %v1739_v23, 5 }
  0x97   : > { %3311 = vrot.lane.b32.xlu1 %v10204_v60, %s16188_s30  ;;  %3309 = vrot.lane.b32.xlu0 %v10203_v6, %s16188_s30  ;;  %v594_v6 = vld [vmem:[#allocation2] sm:$0xc]  ;;  %v10214_v60 = vld [vmem:[%s12124_s14 + $0x2c] sm:$0x7] }
  0x98   : > { %v3392_v24 = vshll.u32 %v10214_v60, 16 }
  0x99   : > { %v12487_v4 = vpop.permute.xlu1 %2350  ;;  %v2347_v3 = vpop.permute.xlu0 %2346 }
  0x9a   : > { %v3394_v18 = vrot.slane %v3392_v24, 6 }
  0x9b   : > { %695 = vrot.lane.b32.xlu1 %v16173_v39, %s16192_s15  ;;  %691 = vrot.lane.b32.xlu0 %v16175_v38, %s16192_s15  ;;  %v10056_v39 = vld [vmem:[%s12124_s14 + $0x38] sm:$0x7]  ;;  %v16275_v38 = vrot.slane %v12460_v12, 6 }
  0x9c   : > { %v10175_v12 = vld [vmem:[%s12124_s14 + $0x38] sm:$0x7] }
  0x9d   : > { %v2207_v35 = vpop.permute.xlu1 %2206  ;;  %v532_v51 = vpop.permute.xlu0 %531 }
  0x9e   : > { %v2267_v44 = vsel %vm12482_vm5, %v2207_v35, %v2266_v34  ;;  %v595_v14 = vsel %vm12482_vm5, %v532_v51, %v594_v6  ;;  %v1744_v6 = vrot.slane %v1742_v9, 6  ;;  %v3389_v51 = vshrl.u32 %v10214_v60, 16 }
  0x9f   : > { %2268 = vst [vmem:[#allocation2 + $0x4] sm:$0xc] %v2267_v44  ;;  %596 = vst [vmem:[#allocation2] sm:$0xc] %v595_v14  ;;  %2366 = vrot.lane.b32.xlu1 %v16275_v38, %s16192_s15  ;;  %2362 = vrot.lane.b32.xlu0 %v16276_v8, %s16192_s15  ;;  %v10176_v14 = vld [vmem:[%s12124_s14 + $0x48] sm:$0x7] }
  0xa0   : > { %v3380_v38 = vshrl.u32 %v10213_v13, 16  ;;  %v1732_v9 = vrot.slane %v1730_v17, 5  ;;  %v3391_v60 = vrot.slane %v3389_v51, 5  ;;  %v3385_v17 = vrot.slane %v3383_v46, 6 }
  0xa1   : > { %v2211_v34 = vpop.permute.xlu1 %2210  ;;  %v536_v35 = vpop.permute.xlu0 %535 }
  0xa2   : > { %v2271_v43 = vsel %vm12482_vm5, %v2211_v34, %v2270_v56  ;;  %v600_v44 = vsel %vm12482_vm5, %v536_v35, %v599_v15  ;;  %v1735_v56 = vrot.slane %v1733_v16, 6  ;;  %v12523_v35 = vor.u32 %v1744_v6, %v1741_v45 }
  0xa3   : > { %2272 = vst [vmem:[#allocation2 + $0x14] sm:$0xc] %v2271_v43  ;;  %601 = vst [vmem:[#allocation2 + $0x10] sm:$0xc] %v600_v44  ;;  %1234 = vrot.lane.b32.xlu1 %v10056_v39, %s16186_s25  ;;  %1232 = vrot.lane.b32.xlu0 %v10055_v50, %s16186_s25  ;;  %v3382_v57 = vrot.slane %v3380_v38, 5  ;;  %v12534_v51 = vor.u32 %v3394_v18, %v3391_v60 }
  0xa4   : > { %v12532_v16 = vor.u32 %v1735_v56, %v1732_v9  ;;  %v10027_v38 = vld [vmem:[%s12124_s14 + $0x44] sm:$0x7] }
  0xa5   : > { %v802_v15 = vpop.permute.xlu1 %801  ;;  %v800_v23 = vpop.permute.xlu0 %799  ;;  %v12552_v18 = vor.u32 %v3385_v17, %v3382_v57 }
  0xa6   : > { %v2406_v34 = vld [vmem:[#allocation2 + $0x4] sm:$0xc]  ;;  %v737_v13 = vld [vmem:[#allocation2] sm:$0xc] }
  0xa7   : > { %v2407_v43 = vsel %vm12517_vm7, %v2347_v3, %v2406_v34  ;;  %v738_v39 = vsel %vm12517_vm7, %v12472_v52, %v737_v13  ;;  %2894 = vrot.lane.b32.xlu1 %v10176_v14, %s16186_s25  ;;  %2892 = vrot.lane.b32.xlu0 %v10175_v12, %s16186_s25  ;;  %v607_v34 = vld [vmem:[#allocation2 + $0x30] sm:$0xc]  ;;  %v603_v13 = vld [vmem:[#allocation2 + $0x20] sm:$0xc]  ;;  %s378_s25 = scalar_lea.vmem [#allocation8], %s377_s23 }
  0xa8   : > { %2408 = vst [vmem:[#allocation2 + $0x4] sm:$0xc] %v2407_v43  ;;  %739 = vst [vmem:[#allocation2] sm:$0xc] %v738_v39  ;;  %v10148_v43 = vld [vmem:[%s12124_s14 + $0x64] sm:$0x7] }
  0xa9   : > { %v2470_v45 = vpop.permute.xlu1 %2469  ;;  %v2468_v24 = vpop.permute.xlu0 %2467  ;;  %v10147_v39 = vld [vmem:[%s12124_s14 + $0x54] sm:$0x7] }
  0xaa   : > { %v2410_v50 = vld [vmem:[#allocation2 + $0x14] sm:$0xc]  ;;  %v742_v6 = vld [vmem:[#allocation2 + $0x10] sm:$0xc] }
  0xab   : > { %v2411_v3 = vsel %vm12517_vm7, %v12487_v4, %v2410_v50  ;;  %v743_v12 = vsel %vm12517_vm7, %v12470_v21, %v742_v6  ;;  %1823 = vrot.lane.b32.xlu1 %v12523_v35, %s16196_s29  ;;  %1819 = vrot.lane.b32.xlu0 %v12532_v16, %s16196_s29  ;;  %v10028_v21 = vld [vmem:[%s12124_s14 + $0x54] sm:$0x7] }
  0xac   : > { %2412 = vst [vmem:[#allocation2 + $0x14] sm:$0xc] %v2411_v3  ;;  %744 = vst [vmem:[#allocation2 + $0x10] sm:$0xc] %v743_v12  ;;  %v11533_v12 = vld [vmem:[%s16136_s1 + $0x10] sm:$0xff]  }
  0xad   : > { %v12554_v4 = vpop.permute.xlu1 %965  ;;  %v962_v52 = vpop.permute.xlu0 %961 }
  0xaf   : > { %v831_v44 = vld [vmem:[#allocation2] sm:$0x7]  ;;  %v2497_v14 = vld [vmem:[#allocation2 + $0x4] sm:$0x7]  ;;  %3473 = vrot.lane.b32.xlu1 %v12534_v51, %s16196_s29  ;;  %3469 = vrot.lane.b32.xlu0 %v12552_v18, %s16196_s29 }
  0xb0   : > { %v832_v57 = vsel %vm12544_vm9, %v800_v23, %v831_v44  ;;  %v2498_v9 = vsel %vm12544_vm9, %v2468_v24, %v2497_v14  ;;  %v449_v14 = vrot.slane %v12160_v29, 4 }
  0xb1   : > { %833 = vst [vmem:[#allocation2] sm:$0x7] %v832_v57  ;;  %2499 = vst [vmem:[#allocation2 + $0x4] sm:$0x7] %v2498_v9  ;;  %v2632_v56 = vpop.permute.xlu1 %2631  ;;  %v2628_v60 = vpop.permute.xlu0 %2627 }
  0xb3   : > { %v834_v17 = vld [vmem:[#allocation2 + $0x10] sm:$0x7]  ;;  %v2500_v50 = vld [vmem:[#allocation2 + $0x14] sm:$0x7]  ;;  %809 = vrot.lane.b32.xlu1 %v10028_v21, %s16184_s22  ;;  %807 = vrot.lane.b32.xlu0 %v10027_v38, %s16184_s22  ;;  %v2274_v38 = vld [vmem:[#allocation2 + $0x24] sm:$0xc] }
  0xb4   : > { %v835_v23 = vsel %vm12544_vm9, %v802_v15, %v834_v17  ;;  %v2501_v24 = vsel %vm12544_vm9, %v2470_v45, %v2500_v50  ;;  %v458_v15 = vrot.slane %v12168_v31, 4  ;;  %v2278_v45 = vld [vmem:[#allocation2 + $0x34] sm:$0xc] }
  0xb5   : > { %836 = vst [vmem:[#allocation2 + $0x10] sm:$0x7] %v835_v23  ;;  %2502 = vst [vmem:[#allocation2 + $0x14] sm:$0x7] %v2501_v24  ;;  %v544_v6 = vpop.permute.xlu1 %543  ;;  %v540_v3 = vpop.permute.xlu0 %539 }
  0xb6   : > { %v608_v21 = vsel %vm12482_vm5, %v544_v6, %v607_v34  ;;  %v604_v44 = vsel %vm12482_vm5, %v540_v3, %v603_v13 }
  0xb7   : > { %609 = vst [vmem:[#allocation2 + $0x30] sm:$0xc] %v608_v21  ;;  %605 = vst [vmem:[#allocation2 + $0x20] sm:$0xc] %v604_v44  ;;  %2477 = vrot.lane.b32.xlu1 %v10148_v43, %s16184_s22  ;;  %2475 = vrot.lane.b32.xlu0 %v10147_v39, %s16184_s22  ;;  %v10066_v39 = vld [vmem:[%s12124_s14 + $0x38] sm:$0x7] }
  0xb8   : > { %v1023_v57 = vld [vmem:[#allocation2] sm:$0xc]  ;;  %v2687_v9 = vld [vmem:[#allocation2 + $0x4] sm:$0xc]  ;;  %v16283_v44 = vrot.slane %v12127_v0, 6  ;;  %s16314_s22 = smov 64  }
  0xb9   : > { %v1024_v34 = vsel %vm12575_vm11, %v962_v52, %v1023_v57  ;;  %v2688_v13 = vsel %vm12575_vm11, %v2628_v60, %v2687_v9  ;;  %v2219_v31 = vpop.permute.xlu1 %2218  ;;  %v2215_v17 = vpop.permute.xlu0 %2214  ;;  %v2133_v52 = vrot.slane %v12166_v30, 4  ;;  %v2124_v60 = vrot.slane %v12158_v25, 4  ;;  %v10065_v25 = vld [vmem:[%s12124_s14 + $0x28] sm:$0x7] }
  0xba   : > { %1025 = vst [vmem:[#allocation2] sm:$0xc] %v1024_v34  ;;  %2689 = vst [vmem:[#allocation2 + $0x4] sm:$0xc] %v2688_v13  ;;  %v2279_v29 = vsel %vm12482_vm5, %v2219_v31, %v2278_v45  ;;  %v2275_v43 = vsel %vm12482_vm5, %v2215_v17, %v2274_v38  ;;  %v16284_v30 = vrot.slane %v12130_v1, 6  ;;  %v16287_v34 = vrot.slane %v12133_v2, 6 }
  0xbb   : > { %2280 = vst [vmem:[#allocation2 + $0x34] sm:$0xc] %v2279_v29  ;;  %2276 = vst [vmem:[#allocation2 + $0x24] sm:$0xc] %v2275_v43  ;;  %537 = vrot.lane.b32.xlu1 %v458_v15, %s16194_s16  ;;  %533 = vrot.lane.b32.xlu0 %v449_v14, %s16194_s16  ;;  %v658_v15 = vrot.slane %v16283_v44, 4  ;;  %v16288_v31 = vrot.slane %v12138_v5, 6 }
  0xbc   : > { %v1028_v50 = vld [vmem:[#allocation2 + $0x10] sm:$0xc]  ;;  %v2691_v23 = vld [vmem:[#allocation2 + $0x14] sm:$0xc]  ;;  %v656_v14 = vrot.slane %v16284_v30, 4  ;;  %v2329_v13 = vrot.slane %v16287_v34, 4 }
  0xbd   : > { %v1029_v24 = vsel %vm12575_vm11, %v12554_v4, %v1028_v50  ;;  %v2692_v6 = vsel %vm12575_vm11, %v2632_v56, %v2691_v23  ;;  %v1109_v3 = vpop.permute.xlu1 %1108  ;;  %v1105_v21 = vpop.permute.xlu0 %1104  ;;  %v1328_v4 = vshrl.u32 %v10066_v39, 16  ;;  %v1331_v56 = vshll.u32 %v10066_v39, 16  ;;  %v12619_v0 = vld [vmem:[%s12124_s14 + $0x48] sm:$0x7]  ;;  %v10185_v30 = vld [vmem:[%s12124_s14 + $0x38] sm:$0x7] }
  0xbe   : > { %1030 = vst [vmem:[#allocation2 + $0x10] sm:$0xc] %v1029_v24  ;;  %2693 = vst [vmem:[#allocation2 + $0x14] sm:$0xc] %v2692_v6  ;;  %v2327_v17 = vrot.slane %v16288_v31, 4  ;;  %v1319_v2 = vshrl.u32 %v10065_v25, 16 }
  0xbf   : > { %2212 = vrot.lane.b32.xlu1 %v2133_v52, %s16194_s16  ;;  %2208 = vrot.lane.b32.xlu0 %v2124_v60, %s16194_s16  ;;  %v888_v52 = vrot.slane %v12188_v61, 4  ;;  %v879_v60 = vrot.slane %v12190_v62, 4  ;;  %v1322_v5 = vshll.u32 %v10065_v25, 16  ;;  %v2986_v39 = vshrl.u32 %v12619_v0, 16  ;;  %v750_v50 = vld [vmem:[#allocation2 + $0x30] sm:$0xc] }
  0xc0   : > { %v1330_v23 = vrot.slane %v1328_v4, 5  ;;  %v1333_v24 = vrot.slane %v1331_v56, 6  ;;  %v746_v62 = vld [vmem:[#allocation2 + $0x20] sm:$0xc]  ;;  %v1321_v4 = vrot.slane %v1319_v2, 5  ;;  %s16313_s16 = smov 96  }
  0xc1   : > { %v1166_v38 = vld [vmem:[#allocation2] sm:$0xc]  ;;  %v2772_v1 = vpop.permute.xlu1 %2771  ;;  %v2827_v57 = vld [vmem:[#allocation2 + $0x4] sm:$0xc]  ;;  %v2768_v9 = vpop.permute.xlu0 %2767  ;;  %v1324_v56 = vrot.slane %v1322_v5, 6  ;;  %v2980_v5 = vshll.u32 %v10185_v30, 16 }
  0xc2   : > { %v1167_v29 = vsel %vm12612_vm13, %v1105_v21, %v1166_v38  ;;  %v2828_v43 = vsel %vm12612_vm13, %v2768_v9, %v2827_v57  ;;  %v2414_v9 = vld [vmem:[#allocation2 + $0x24] sm:$0xc]  ;;  %v11550_v45 = vld [vmem:[%s16136_s1 + $0x30] sm:$0xff]  }
  0xc3   : > { %1168 = vst [vmem:[#allocation2] sm:$0xc] %v1167_v29  ;;  %2829 = vst [vmem:[#allocation2 + $0x4] sm:$0xc] %v2828_v43  ;;  %681 = vrot.lane.b32.xlu1 %v658_v15, %s16192_s15  ;;  %677 = vrot.lane.b32.xlu0 %v656_v14, %s16192_s15  ;;  %v2989_v29 = vshll.u32 %v12619_v0, 16  ;;  %v2977_v43 = vshrl.u32 %v10185_v30, 16  ;;  %v12660_v2 = vor.u32 %v1324_v56, %v1321_v4 }
  0xc4   : > { %v2554_v0 = vrot.slane %v12194_v10, 4 }
  0xc5   : > { %v1171_v6 = vld [vmem:[#allocation2 + $0x10] sm:$0xc]  ;;  %v2831_v21 = vld [vmem:[#allocation2 + $0x14] sm:$0xc]  ;;  %v688_v61 = vpop.permute.xlu1 %687  ;;  %v684_v44 = vpop.permute.xlu0 %683 }
  0xc6   : > { %v1172_v38 = vsel %vm12612_vm13, %v1109_v3, %v1171_v6  ;;  %v2832_v15 = vsel %vm12612_vm13, %v2772_v1, %v2831_v21  ;;  %v751_v14 = vsel %vm12517_vm7, %v688_v61, %v750_v50  ;;  %v747_v25 = vsel %vm12517_vm7, %v684_v44, %v746_v62  ;;  %v2418_v3 = vld [vmem:[#allocation2 + $0x34] sm:$0xc] }
  0xc7   : > { %1173 = vst [vmem:[#allocation2 + $0x10] sm:$0xc] %v1172_v38  ;;  %2833 = vst [vmem:[#allocation2 + $0x14] sm:$0xc] %v2832_v15  ;;  %2352 = vrot.lane.b32.xlu1 %v2329_v13, %s16192_s15  ;;  %2348 = vrot.lane.b32.xlu0 %v2327_v17, %s16192_s15  ;;  %v12658_v17 = vor.u32 %v1333_v24, %v1330_v23  ;;  %v2988_v44 = vrot.slane %v2986_v39, 5  ;;  %v2991_v62 = vrot.slane %v2989_v29, 6 }
  0xc8   : > { %752 = vst [vmem:[#allocation2 + $0x30] sm:$0xc] %v751_v14  ;;  %748 = vst [vmem:[#allocation2 + $0x20] sm:$0xc] %v747_v25  ;;  %v2979_v38 = vrot.slane %v2977_v43, 5  ;;  %v16291_v25 = vrot.slane %v12219_v32, 6 }
  0xc9   : > { %v2359_v57 = vpop.permute.xlu1 %2358  ;;  %v2355_v1 = vpop.permute.xlu0 %2354  ;;  %v16292_v29 = vrot.slane %v12222_v33, 6 }
  0xca   : > { %v2419_v34 = vsel %vm12517_vm7, %v2359_v57, %v2418_v3  ;;  %v2415_v31 = vsel %vm12517_vm7, %v2355_v1, %v2414_v9  ;;  %v1260_v50 = vld [vmem:[#allocation2] sm:$0x7]  ;;  %v2918_v24 = vld [vmem:[#allocation2 + $0x4] sm:$0x7]  ;;  %v1087_v4 = vrot.slane %v16291_v25, 4  ;;  %v12680_v57 = vor.u32 %v2991_v62, %v2988_v44 }
  0xcb   : > { %2420 = vst [vmem:[#allocation2 + $0x34] sm:$0xc] %v2419_v34  ;;  %2416 = vst [vmem:[#allocation2 + $0x24] sm:$0xc] %v2415_v31  ;;  %967 = vrot.lane.b32.xlu1 %v888_v52, %s16192_s15  ;;  %963 = vrot.lane.b32.xlu0 %v879_v60, %s16192_s15  ;;  %v2545_v52 = vrot.slane %v12196_v11, 4  ;;  %v2982_v11 = vrot.slane %v2980_v5, 6 }
  0xcc   : > { %v1085_v43 = vrot.slane %v16292_v29, 4  ;;  %v16296_v44 = vrot.slane %v12234_v37, 6  ;;  %v1317_v37 = vrot.slane %v12329_v58, 4 }
  0xcd   : > { %v1231_v6 = vpop.permute.xlu1 %1230  ;;  %v1229_v21 = vpop.permute.xlu0 %1228  ;;  %v12682_v9 = vor.u32 %v2982_v11, %v2979_v38 }
  0xce   : > { %v1263_v61 = vld [vmem:[#allocation2 + $0x10] sm:$0x7]  ;;  %v1261_v60 = vsel %vm12654_vm15, %v1229_v21, %v1260_v50  ;;  %v2921_v10 = vld [vmem:[#allocation2 + $0x14] sm:$0x7]  ;;  %v2748_v62 = vrot.slane %v16296_v44, 4  ;;  %v16302_v44 = vrot.slane %v12368_v55, 6 }
  0xcf   : > { %v1264_v23 = vsel %vm12654_vm15, %v1231_v6, %v1263_v61  ;;  %1262 = vst [vmem:[#allocation2] sm:$0x7] %v1261_v60  ;;  %1402 = vrot.lane.b32.xlu1 %v12658_v17, %s16190_s24  ;;  %1398 = vrot.lane.b32.xlu0 %v12660_v2, %s16190_s24  ;;  %v840_v56 = vld [vmem:[#allocation2 + $0x30] sm:$0x7]  ;;  %v837_v3 = vld [vmem:[#allocation2 + $0x20] sm:$0x7] }
  0xd0   : > { %1265 = vst [vmem:[#allocation2 + $0x10] sm:$0x7] %v1264_v23  ;;  %v16295_v61 = vrot.slane %v12231_v36, 6  ;;  %v11411_v55 = vld [vmem:[%s16136_s1] sm:$0xff]  }
  0xd1   : > { %v2891_v30 = vpop.permute.xlu1 %2890  ;;  %v2889_v15 = vpop.permute.xlu0 %2888 }
  0xd2   : > { %v2922_v39 = vsel %vm12654_vm15, %v2891_v30, %v2921_v10  ;;  %v2919_v14 = vsel %vm12654_vm15, %v2889_v15, %v2918_v24  ;;  %v2506_v5 = vld [vmem:[#allocation2 + $0x34] sm:$0x7]  ;;  %v2503_v50 = vld [vmem:[#allocation2 + $0x24] sm:$0x7]  ;;  %v2750_v60 = vrot.slane %v16295_v61, 4  ;;  %v1308_v30 = vrot.slane %v12331_v19, 4 }
  0xd3   : > { %2923 = vst [vmem:[#allocation2 + $0x14] sm:$0x7] %v2922_v39  ;;  %2920 = vst [vmem:[#allocation2 + $0x4] sm:$0x7] %v2919_v14  ;;  %2633 = vrot.lane.b32.xlu1 %v2554_v0, %s16192_s15  ;;  %2629 = vrot.lane.b32.xlu0 %v2545_v52, %s16192_s15  ;;  %v16301_v61 = vrot.slane %v12365_v54, 6  ;;  %v11410_v54 = vld [vmem:[%s16136_s1 + $0x40] sm:$0xff]  }
  0xd4   : > { %10818 = vmatprep.subr.bf16.mxu1 %v11410_v54  ;;  %s16303_s15 = smov 112  }
  0xd5   : > { %v806_v1 = vpop.permute.xlu1 %805  ;;  %v804_v34 = vpop.permute.xlu0 %803 }
  0xd6   : > { %v841_v31 = vsel %vm12544_vm9, %v806_v1, %v840_v56  ;;  %v838_v32 = vsel %vm12544_vm9, %v804_v34, %v837_v3  ;;  %v1452_v23 = vld [vmem:[#allocation2] sm:$0xc]  ;;  %v2975_v3 = vrot.slane %v12340_v63, 4  ;;  %v2966_v1 = vrot.slane %v12342_v7, 4 }
  0xd7   : > { %842 = vst [vmem:[#allocation2 + $0x30] sm:$0x7] %v841_v31  ;;  %839 = vst [vmem:[#allocation2 + $0x20] sm:$0x7] %v838_v32  ;;  %3060 = vrot.lane.b32.xlu1 %v12680_v57, %s16190_s24  ;;  %3056 = vrot.lane.b32.xlu0 %v12682_v9, %s16190_s24  ;;  %v1457_v38 = vld [vmem:[#allocation2 + $0x10] sm:$0xc] }
  0xd8   : > { %v16297_v32 = vrot.slane %v12359_v26, 6  ;;  %v16298_v7 = vrot.slane %v12362_v53, 6 }
  0xd9   : > { %v2474_v0 = vpop.permute.xlu1 %2473  ;;  %v2472_v6 = vpop.permute.xlu0 %2471 }
  0xda   : > { %v2507_v21 = vsel %vm12544_vm9, %v2474_v0, %v2506_v5  ;;  %v2504_v33 = vsel %vm12544_vm9, %v2472_v6, %v2503_v50  ;;  %v3112_v15 = vld [vmem:[#allocation2 + $0x14] sm:$0xc]  ;;  %v3108_v14 = vld [vmem:[#allocation2 + $0x4] sm:$0xc]  ;;  %v1516_v29 = vrot.slane %v16297_v32, 4  ;;  %v1514_v5 = vrot.slane %v16298_v7, 4 }
  0xdb   : > { %2508 = vst [vmem:[#allocation2 + $0x34] sm:$0x7] %v2507_v21  ;;  %2505 = vst [vmem:[#allocation2 + $0x24] sm:$0x7] %v2504_v33  ;;  %1110 = vrot.lane.b32.xlu1 %v1087_v4, %s16190_s24  ;;  %1106 = vrot.lane.b32.xlu0 %v1085_v43, %s16190_s24  ;;  %v12796_v7 = vld [vmem:[%s12124_s14 + $0x2c] sm:$0x7] }
  0xdd   : > { %v1395_v10 = vpop.permute.xlu1 %1394  ;;  %v1391_v24 = vpop.permute.xlu0 %1390 }
  0xde   : > { %v1458_v11 = vsel %vm12699_vm3, %v1395_v10, %v1457_v38  ;;  %v1453_v36 = vsel %vm12699_vm3, %v1391_v24, %v1452_v23  ;;  %v1036_v58 = vld [vmem:[#allocation2 + $0x30] sm:$0xc]  ;;  %v1032_v31 = vld [vmem:[#allocation2 + $0x20] sm:$0xc] }
  0xdf   : > { %1459 = vst [vmem:[#allocation2 + $0x10] sm:$0xc] %v1458_v11  ;;  %1454 = vst [vmem:[#allocation2] sm:$0xc] %v1453_v36  ;;  %2773 = vrot.lane.b32.xlu1 %v2750_v60, %s16190_s24  ;;  %2769 = vrot.lane.b32.xlu0 %v2748_v62, %s16190_s24  ;;  %v3171_v60 = vrot.slane %v16301_v61, 4  ;;  %v3169_v62 = vrot.slane %v16302_v44, 4 }
  0xe0   : > { %v11409_v23 = vld [vmem:[%s16136_s1 + $0x40] sm:$0xff]   ;;  %v11419_v44 = vld [vmem:[%s16136_s1 + $0x10] sm:$0xff]  }
  0xe1   : > { %v3053_v39 = vpop.permute.xlu1 %3052  ;;  %v3049_v25 = vpop.permute.xlu0 %3048  ;;  %v11412_v10 = vld [vmem:[%s16136_s1] sm:$0xff]   ;;  %10796 = vmatprep.subr.bf16.mxu0 %v11409_v23 }
  0xe2   : > { %v3113_v4 = vsel %vm12699_vm3, %v3053_v39, %v3112_v15  ;;  %v3109_v56 = vsel %vm12699_vm3, %v3049_v25, %v3108_v14  ;;  %v2699_v50 = vld [vmem:[#allocation2 + $0x34] sm:$0xc]  ;;  %v2695_v26 = vld [vmem:[#allocation2 + $0x24] sm:$0xc]  ;;  %v12767_v15 = vld [vmem:[%s12124_s14 + $0x1c] sm:$0x7]  ;;  %10797 = vmatpush3.bf16.msra.mxu0 %v11411_v55  ;;  %10819 = vmatpush3.bf16.msra.mxu1 %v11412_v10 }
  0xe3   : > { %3114 = vst [vmem:[#allocation2 + $0x14] sm:$0xc] %v3113_v4  ;;  %3110 = vst [vmem:[#allocation2 + $0x4] sm:$0xc] %v3109_v56  ;;  %1396 = vrot.lane.b32.xlu1 %v1317_v37, %s16190_s24  ;;  %1392 = vrot.lane.b32.xlu0 %v1308_v30, %s16190_s24  ;;  %v12770_v39 = vld [vmem:[%s12124_s14 + $0xc] sm:$0x7] }
  0xe4   : > { %v1746_v14 = vrot.slane %v12523_v35, 4  ;;  %v1737_v25 = vrot.slane %v12532_v16, 4  ;;  %v11414_v35 = vld [vmem:[%s16136_s1 + $0x48] sm:$0xff]   ;;  %v3396_v16 = vrot.slane %v12534_v51, 4  ;;  %v2286_v10 = vld [vmem:[#allocation2 + $0x54] sm:$0xc] }
  0xe5   : > { %v974_v19 = vpop.permute.xlu1 %973  ;;  %v970_v34 = vpop.permute.xlu0 %969  ;;  %10820 = vmatprep.subr.bf16.mxu1 %v11414_v35  ;;  %v11426_v51 = vld [vmem:[%s16136_s1 + $0x60] sm:$0xff]  }
  0xe6   : > { %v1037_v43 = vsel %vm12575_vm11, %v974_v19, %v1036_v58  ;;  %v1033_v63 = vsel %vm12575_vm11, %v970_v34, %v1032_v31  ;;  %v1600_v38 = vld [vmem:[#allocation2 + $0x10] sm:$0xc]  ;;  %v1595_v36 = vld [vmem:[#allocation2] sm:$0xc]  ;;  %v3387_v58 = vrot.slane %v12552_v18, 4  ;;  %v11415_v19 = vld [vmem:[%s16136_s1 + $0x8] sm:$0xff]  }
  0xe7   : > { %1038 = vst [vmem:[#allocation2 + $0x30] sm:$0xc] %v1037_v43  ;;  %1034 = vst [vmem:[#allocation2 + $0x20] sm:$0xc] %v1033_v63  ;;  %3054 = vrot.lane.b32.xlu1 %v2975_v3, %s16190_s24  ;;  %3050 = vrot.lane.b32.xlu0 %v2966_v1, %s16190_s24  ;;  %v10038_v3 = vld [vmem:[%s12124_s14 + $0x54] sm:$0x7] }
  0xe8   : > { %v11413_v1 = vld [vmem:[%s16136_s1 + $0x48] sm:$0xff]   ;;  %v917_v61 = vshrl.u32 %v10038_v3, 16  ;;  %s16315_s24 = smov 32  }
  0xe9   : > { %v2640_v0 = vpop.permute.xlu1 %2639  ;;  %v2636_v6 = vpop.permute.xlu0 %2635  ;;  %v11416_v34 = vld [vmem:[%s16136_s1 + $0x8] sm:$0xff]   ;;  %10798 = vmatprep.subr.bf16.mxu0 %v11413_v1  ;;  %v11424_v1 = vld [vmem:[%s16136_s1 + $0x18] sm:$0xff]  }
  0xea   : > { %v2700_v21 = vsel %vm12575_vm11, %v2640_v0, %v2699_v50  ;;  %v2696_v33 = vsel %vm12575_vm11, %v2636_v6, %v2695_v26  ;;  %v3252_v4 = vld [vmem:[#allocation2 + $0x14] sm:$0xc]  ;;  %v3248_v56 = vld [vmem:[#allocation2 + $0x4] sm:$0xc]  ;;  %10799 = vmatpush3.bf16.msra.mxu0 %v11415_v19  ;;  %10821 = vmatpush3.bf16.msra.mxu1 %v11416_v34  ;;  %v611_v0 = vld [vmem:[#allocation2 + $0x40] sm:$0xc] }
  0xeb   : > { %2701 = vst [vmem:[#allocation2 + $0x34] sm:$0xc] %v2700_v21  ;;  %2697 = vst [vmem:[#allocation2 + $0x24] sm:$0xc] %v2696_v33  ;;  %1539 = vrot.lane.b32.xlu1 %v1516_v29, %s16196_s29  ;;  %1535 = vrot.lane.b32.xlu0 %v1514_v5, %s16196_s29  ;;  %v615_v29 = vld [vmem:[#allocation2 + $0x50] sm:$0xc] }
  0xec   : > { %v12799_v5 = vld [vmem:[%s12124_s14 + $0x1c] sm:$0x7]  ;;  %v10037_v50 = vld [vmem:[%s12124_s14 + $0x44] sm:$0x7]  ;;  %v1944_v26 = vrot.slane %v12767_v15, 6  ;;  %v1942_v6 = vrot.slane %v12770_v39, 6 }
  0xed   : > { %v1538_v24 = vpop.permute.xlu1 %1537  ;;  %v1534_v11 = vpop.permute.xlu0 %1533  ;;  %v11417_v21 = vld [vmem:[%s16136_s1 + $0x50] sm:$0xff]   ;;  %v12829_v15 = vld [vmem:[%s12124_s14 + $0x64] sm:$0x7] }
  0xee   : > { %v1601_v37 = vsel %vm12740_vm8, %v1538_v24, %v1600_v38  ;;  %v1596_v30 = vsel %vm12740_vm8, %v1534_v11, %v1595_v36  ;;  %v11418_v33 = vld [vmem:[%s16136_s1 + $0x50] sm:$0xff]   ;;  %10800 = vmatprep.subr.bf16.mxu0 %v11417_v21  ;;  %v908_v24 = vshrl.u32 %v10037_v50, 16  ;;  %v911_v11 = vshll.u32 %v10037_v50, 16  ;;  %v2282_v36 = vld [vmem:[#allocation2 + $0x44] sm:$0xc] }
  0xef   : > { %1602 = vst [vmem:[#allocation2 + $0x10] sm:$0xc] %v1601_v37  ;;  %1597 = vst [vmem:[#allocation2] sm:$0xc] %v1596_v30  ;;  %3194 = vrot.lane.b32.xlu1 %v3171_v60, %s16196_s29  ;;  %3190 = vrot.lane.b32.xlu0 %v3169_v62, %s16196_s29  ;;  %v920_v60 = vshll.u32 %v10038_v3, 16  ;;  %v11420_v62 = vld [vmem:[%s16136_s1 + $0x10] sm:$0xff]  }
  0xf0   : > { %10822 = vmatprep.subr.bf16.mxu1 %v11418_v33  ;;  %10801 = vmatpush3.bf16.msra.mxu0 %v11419_v44  ;;  %v3591_v37 = vrot.slane %v12796_v7, 6  ;;  %v3589_v30 = vrot.slane %v12799_v5, 6  ;;  %v11423_v3 = vld [vmem:[%s16136_s1 + $0x18] sm:$0xff]   ;;  %v1175_v50 = vld [vmem:[#allocation2 + $0x20] sm:$0xc]  ;;  %v2586_v18 = vshll.u32 %v12829_v15, 16 }
  0xf1   : > { %v3193_v31 = vpop.permute.xlu1 %3192  ;;  %v3189_v32 = vpop.permute.xlu0 %3188  ;;  %10823 = vmatpush3.bf16.msra.mxu1 %v11420_v62  ;;  %v11425_v21 = vld [vmem:[%s16136_s1 + $0x60] sm:$0xff]   ;;  %v422_v44 = vld [vmem:[#allocation2 + $0x70] sm:$0x7] }
  0xf2   : > { %v3253_v43 = vsel %vm12740_vm8, %v3193_v31, %v3252_v4  ;;  %v3249_v63 = vsel %vm12740_vm8, %v3189_v32, %v3248_v56  ;;  %v919_v4 = vrot.slane %v917_v61, 5  ;;  %v922_v56 = vrot.slane %v920_v60, 6  ;;  %v395_v62 = vld [vmem:[%s12124_s14 + $0x70] sm:$0x7] }
  0xf3   : > { %3254 = vst [vmem:[#allocation2 + $0x14] sm:$0xc] %v3253_v43  ;;  %3250 = vst [vmem:[#allocation2 + $0x4] sm:$0xc] %v3249_v63  ;;  %1825 = vrot.lane.b32.xlu1 %v1746_v14, %s16196_s29  ;;  %1821 = vrot.lane.b32.xlu0 %v1737_v25, %s16196_s29  ;;  %v11421_v14 = vld [vmem:[%s16136_s1 + $0x58] sm:$0xff]   ;;  %v910_v32 = vrot.slane %v908_v24, 5  ;;  %v423_v24 = vsel %vm12251_vm2, %v395_v62, %v422_v44 }
  0xf4   : > { %v11422_v25 = vld [vmem:[%s16136_s1 + $0x58] sm:$0xff]   ;;  %10802 = vmatprep.subr.bf16.mxu0 %v11421_v14  ;;  %v12848_v43 = vld [vmem:[%s12124_s14 + $0x54] sm:$0x7]  ;;  %s16304_s29 = smov 80   ;;  %v1179_v63 = vld [vmem:[#allocation2 + $0x30] sm:$0xc]  ;;  %v12872_v60 = vor.u32 %v922_v56, %v919_v4 }
  0xf5   : > { %v552_v38 = vpop.permute.xlu1 %551  ;;  %v548_v23 = vpop.permute.xlu0 %547  ;;  %10824 = vmatprep.subr.bf16.mxu1 %v11422_v25  ;;  %10803 = vmatpush3.bf16.msra.mxu0 %v11423_v3  ;;  %v2574_v25 = vshrl.u32 %v12848_v43, 16  ;;  %v2577_v4 = vshll.u32 %v12848_v43, 16  ;;  %v11429_v56 = vld [vmem:[%s16136_s1 + $0x68] sm:$0xff]   ;;  %424 = vst [vmem:[#allocation2 + $0x70] sm:$0x7] %v423_v24  ;;  %v11435_v62 = vld [vmem:[%s16136_s1 + $0x30] sm:$0xff]  }
  0xf6   : > { %v616_v54 = vsel %vm12482_vm5, %v552_v38, %v615_v29  ;;  %v612_v55 = vsel %vm12482_vm5, %v548_v23, %v611_v0  ;;  %v913_v29 = vrot.slane %v911_v11, 6  ;;  %10825 = vmatpush3.bf16.msra.mxu1 %v11424_v1  ;;  %v12856_v0 = vrot.slane %v1944_v26, 4  ;;  %10804 = vmatprep.subr.bf16.mxu0 %v11425_v21  ;;  %v419_v38 = vld [vmem:[#allocation2 + $0x60] sm:$0x7]  ;;  %v11430_v3 = vld [vmem:[%s16136_s1 + $0x68] sm:$0xff]  }
  0xf7   : > { %617 = vst [vmem:[#allocation2 + $0x50] sm:$0xc] %v616_v54  ;;  %613 = vst [vmem:[#allocation2 + $0x40] sm:$0xc] %v612_v55  ;;  %1966 = vrot.lane.b32.xlu1 %v1944_v26, %s16303_s15  ;;  %1962 = vrot.lane.b32.xlu0 %v1942_v6, %s16303_s15  ;;  %v11428_v26 = vld [vmem:[%s16136_s1 + $0x20] sm:$0xff]   ;;  %v2576_v21 = vrot.slane %v2574_v25, 5 }
  0xf8   : > { %10826 = vmatprep.subr.bf16.mxu1 %v11426_v51  ;;  %v12880_v55 = vld [vmem:[%s12124_s14 + $0x70] sm:$0x7]  ;;  %v394_v11 = vld [vmem:[%s12124_s14 + $0x60] sm:$0x7]  ;;  %v12894_v14 = vor.u32 %v913_v29, %v910_v32  ;;  %v2579_v51 = vrot.slane %v2577_v4, 6 }
  0xf9   : > { %v2227_v35 = vpop.permute.xlu1 %2226  ;;  %v2223_v19 = vpop.permute.xlu0 %2222  ;;  %v420_v1 = vsel %vm12251_vm2, %v394_v11, %v419_v38  ;;  %v11436_v38 = vld [vmem:[%s16136_s1 + $0x30] sm:$0xff]   ;;  %v1689_v24 = vld [vmem:[#allocation2] sm:$0x7] }
  0xfa   : > { %v2287_v34 = vsel %vm12482_vm5, %v2227_v35, %v2286_v10  ;;  %v2283_v31 = vsel %vm12482_vm5, %v2223_v19, %v2282_v36  ;;  %v12883_v10 = vld [vmem:[%s12124_s14 + $0x60] sm:$0x7]  ;;  %10827 = vmatpush3.bf16.msra.mxu1 %v11428_v26  ;;  %v2839_v36 = vld [vmem:[#allocation2 + $0x34] sm:$0xc]  ;;  %v1943_v35 = vrot.slane %v1942_v6, 4  ;;  %v2588_v6 = vrot.slane %v2586_v18, 6 }
  0xfb   : > { %2288 = vst [vmem:[#allocation2 + $0x54] sm:$0xc] %v2287_v34  ;;  %2284 = vst [vmem:[#allocation2 + $0x44] sm:$0xc] %v2283_v31  ;;  %3475 = vrot.lane.b32.xlu1 %v3396_v16, %s16304_s29  ;;  %3471 = vrot.lane.b32.xlu0 %v3387_v58, %s16304_s29  ;;  %v2583_v16 = vshrl.u32 %v12829_v15, 16  ;;  %v11427_v58 = vld [vmem:[%s16136_s1 + $0x20] sm:$0xff]   ;;  %v12965_v4 = vor.u32 %v2579_v51, %v2576_v21 }
  0xfc   : > { %10805 = vmatpush3.bf16.msra.mxu0 %v11427_v58  ;;  %v2835_v15 = vld [vmem:[#allocation2 + $0x24] sm:$0xc]  ;;  %v11431_v34 = vld [vmem:[%s16136_s1 + $0x28] sm:$0xff]   ;;  %421 = vst [vmem:[#allocation2 + $0x60] sm:$0x7] %v420_v1  ;;  %10828 = vmatprep.subr.bf16.mxu1 %v11430_v3  ;;  %v496_v18 = vshrl.u32 %v12883_v10, 16 }
  0xfd   : > { %v1117_v33 = vpop.permute.xlu1 %1116  ;;  %v1113_v61 = vpop.permute.xlu0 %1112  ;;  %v2585_v19 = vrot.slane %v2583_v16, 5  ;;  %v11432_v31 = vld [vmem:[%s16136_s1 + $0x28] sm:$0xff]   ;;  %10806 = vmatprep.subr.bf16.mxu0 %v11429_v56  ;;  %v508_v16 = vshll.u32 %v12880_v55, 16  ;;  %v12932_v58 = vld [vmem:[%s12124_s14 + $0x38] sm:$0x7]  ;;  %v11433_v26 = vld [vmem:[%s16136_s1 + $0x70] sm:$0xff]  }
  0xfe   : > { %v1180_v23 = vsel %vm12612_vm13, %v1117_v33, %v1179_v63  ;;  %v1176_v54 = vsel %vm12612_vm13, %v1113_v61, %v1175_v50  ;;  %v505_v63 = vshrl.u32 %v12880_v55, 16  ;;  %10829 = vmatpush3.bf16.msra.mxu1 %v11432_v31  ;;  %v11434_v33 = vld [vmem:[%s16136_s1 + $0x70] sm:$0xff]   ;;  %v12942_v61 = vrot.slane %v3591_v37, 4  ;;  %v11437_v56 = vld [vmem:[%s16136_s1 + $0x78] sm:$0xff]  }
  0xff   : > { %1181 = vst [vmem:[#allocation2 + $0x30] sm:$0xc] %v1180_v23  ;;  %1177 = vst [vmem:[#allocation2 + $0x20] sm:$0xc] %v1176_v54  ;;  %3613 = vrot.lane.b32.xlu1 %v3591_v37, %s16303_s15  ;;  %3609 = vrot.lane.b32.xlu0 %v3589_v30, %s16303_s15  ;;  %v499_v44 = vshll.u32 %v12883_v10, 16  ;;  %v3590_v10 = vrot.slane %v3589_v30, 4  ;;  %v12963_v25 = vor.u32 %v2588_v6, %v2585_v19 }
 0x100   : > { %10807 = vmatpush3.bf16.msra.mxu0 %v11431_v34  ;;  %v1692_v54 = vld [vmem:[#allocation2 + $0x10] sm:$0x7]  ;;  %10830 = vmatprep.subr.bf16.mxu1 %v11434_v33  ;;  %v507_v11 = vrot.slane %v505_v63, 5  ;;  %v510_v5 = vrot.slane %v508_v16, 6  ;;  %v498_v30 = vrot.slane %v496_v18, 5  ;;  %v11438_v3 = vld [vmem:[%s16136_s1 + $0x78] sm:$0xff]  }
 0x101   : > { %v2780_v32 = vpop.permute.xlu1 %2779  ;;  %v2776_v29 = vpop.permute.xlu0 %2775  ;;  %10808 = vmatprep.subr.bf16.mxu0 %v11433_v26  ;;  %v501_v1 = vrot.slane %v499_v44, 6  ;;  %v11439_v19 = vld [vmem:[%s16136_s1 + $0x38] sm:$0xff]   ;;  %v10129_v16 = vld [vmem:[%s12124_s14 + $0x70] sm:$0x7]  ;;  %v754_v26 = vld [vmem:[#allocation2 + $0x40] sm:$0xc] }
 0x102   : > { %v2840_v43 = vsel %vm12612_vm13, %v2780_v32, %v2839_v36  ;;  %v2836_v39 = vsel %vm12612_vm13, %v2776_v29, %v2835_v15  ;;  %v12958_v36 = vld [vmem:[%s12124_s14 + $0x80] sm:$0x7]  ;;  %10831 = vmatpush3.bf16.msra.mxu1 %v11436_v38  ;;  %v3342_v15 = vld [vmem:[#allocation2 + $0x14] sm:$0x7]  ;;  %v11440_v34 = vld [vmem:[%s16136_s1 + $0x38] sm:$0xff]  }
 0x103   : > { %2841 = vst [vmem:[#allocation2 + $0x34] sm:$0xc] %v2840_v43  ;;  %2837 = vst [vmem:[#allocation2 + $0x24] sm:$0xc] %v2836_v39  ;;  %981 = vrot.lane.b32.xlu1 %v12872_v60, %s16305_s0  ;;  %977 = vrot.lane.b32.xlu0 %v12894_v14, %s16305_s0  ;;  %v10120_v29 = vld [vmem:[%s12124_s14 + $0x80] sm:$0x7] }
 0x104   : > { %10809 = vmatpush3.bf16.msra.mxu0 %v11435_v62  ;;  %10832 = vmatprep.subr.bf16.mxu1 %v11438_v3  ;;  %v2097_v43 = vld [vmem:[#allocation2 + $0x74] sm:$0x7]  ;;  %v10119_v39 = vld [vmem:[%s12124_s14 + $0x70] sm:$0x7]  ;;  %v2180_v21 = vshrl.u32 %v12958_v36, 16  ;;  %v2183_v51 = vshll.u32 %v12958_v36, 16  ;;  %v13009_v3 = vor.u32 %v501_v1, %v498_v30 }
 0x105   : > { %v1660_v23 = vpop.permute.xlu1 %1659  ;;  %v1658_v55 = vpop.permute.xlu0 %1657  ;;  %10810 = vmatprep.subr.bf16.mxu0 %v11437_v56  ;;  %v758_v18 = vld [vmem:[#allocation2 + $0x50] sm:$0xc]  ;;  %v2098_v33 = vsel %vm12251_vm2, %v10120_v29, %v2097_v43  ;;  %v2094_v44 = vld [vmem:[#allocation2 + $0x64] sm:$0x7]  ;;  %v2426_v36 = vld [vmem:[#allocation2 + $0x54] sm:$0xc]  ;;  %v13007_v56 = vor.u32 %v510_v5, %v507_v11 }
 0x106   : > { %v1693_v7 = vsel %vm12925_vm12, %v1660_v23, %v1692_v54  ;;  %v1690_v37 = vsel %vm12925_vm12, %v1658_v55, %v1689_v24  ;;  %10833 = vmatpush3.bf16.msra.mxu1 %v11440_v34  ;;  %2099 = vst [vmem:[#allocation2 + $0x74] sm:$0x7] %v2098_v33  ;;  %v2095_v62 = vsel %vm12251_vm2, %v10119_v39, %v2094_v44  ;;  %v13002_v24 = vld [vmem:[%s12124_s14 + $0x28] sm:$0x7]  ;;  %v1269_v29 = vld [vmem:[#allocation2 + $0x30] sm:$0x7] }
 0x107   : > { %1694 = vst [vmem:[#allocation2 + $0x10] sm:$0x7] %v1693_v7  ;;  %1691 = vst [vmem:[#allocation2] sm:$0x7] %v1690_v37  ;;  %1968 = vrot.lane.b32.xlu1 %v12856_v0, %s16303_s15  ;;  %1964 = vrot.lane.b32.xlu0 %v1943_v35, %s16303_s15  ;;  %v3339_v0 = vld [vmem:[#allocation2 + $0x4] sm:$0x7] }
 0x108   : > { %v16209_v35 = vrot.slane %v12932_v58, 6  ;;  %10811 = vmatpush3.bf16.msra.mxu0 %v11439_v19  ;;  %2096 = vst [vmem:[#allocation2 + $0x64] sm:$0x7] %v2095_v62  ;;  %v2171_v7 = vshrl.u32 %v10129_v16, 16  ;;  %v2174_v37 = vshll.u32 %v10129_v16, 16  ;;  %v11575_v50 = vld [vmem:[%s16136_s1 + $0x18] sm:$0xff]  }
 0x109   : > { %v3312_v31 = vpop.permute.xlu1 %3311  ;;  %v3310_v32 = vpop.permute.xlu0 %3309  ;;  %v13021_v30 = vld [vmem:[%s12124_s14 + $0x48] sm:$0x7]  ;;  %v1266_v39 = vld [vmem:[#allocation2 + $0x20] sm:$0x7]  ;;  %v13029_v16 = vld [vmem:[%s12124_s14 + $0x38] sm:$0x7] }
 0x10a   : > { %v3343_v6 = vsel %vm12925_vm12, %v3312_v31, %v3342_v15  ;;  %v3340_v63 = vsel %vm12925_vm12, %v3310_v32, %v3339_v0  ;;  %v2422_v15 = vld [vmem:[#allocation2 + $0x44] sm:$0xc]  ;;  %v16208_v32 = vrot.slane %v13002_v24, 6  ;;  %v2173_v11 = vrot.slane %v2171_v7, 5  ;;  %v11585_v7 = vld [vmem:[%s16136_s1 + $0x70] sm:$0xff]  }
 0x10b   : > { %3344 = vst [vmem:[#allocation2 + $0x14] sm:$0x7] %v3343_v6  ;;  %3341 = vst [vmem:[#allocation2 + $0x4] sm:$0x7] %v3340_v63  ;;  %2647 = vrot.lane.b32.xlu1 %v12963_v25, %s16305_s0  ;;  %2643 = vrot.lane.b32.xlu0 %v12965_v4, %s16305_s0  ;;  %v2176_v5 = vrot.slane %v2174_v37, 6  ;;  %v16206_v37 = vrot.slane %v13029_v16, 6 }
 0x10c   : > { %v2924_v44 = vld [vmem:[#allocation2 + $0x24] sm:$0x7] }
 0x10d   : > { %v696_v38 = vpop.permute.xlu1 %695  ;;  %v692_v23 = vpop.permute.xlu0 %691  ;;  %v13042_v33 = vor.u32 %v2176_v5, %v2173_v11 }
 0x10e   : > { %v759_v54 = vsel %vm12517_vm7, %v696_v38, %v758_v18  ;;  %v755_v55 = vsel %vm12517_vm7, %v692_v23, %v754_v26  ;;  %v2927_v18 = vld [vmem:[#allocation2 + $0x34] sm:$0x7]  ;;  %v13045_v23 = vld [vmem:[%s12124_s14 + $0x44] sm:$0x7] }
 0x10f   : > { %760 = vst [vmem:[#allocation2 + $0x50] sm:$0xc] %v759_v54  ;;  %756 = vst [vmem:[#allocation2 + $0x40] sm:$0xc] %v755_v55  ;;  %3615 = vrot.lane.b32.xlu1 %v12942_v61, %s16303_s15  ;;  %3611 = vrot.lane.b32.xlu0 %v3590_v10, %s16303_s15  ;;  %v2182_v61 = vrot.slane %v2180_v21, 5  ;;  %v2185_v10 = vrot.slane %v2183_v51, 6 }
 0x110   : > { %v16207_v21 = vrot.slane %v13021_v30, 6  ;;  %v13032_v51 = vld [vmem:[%s12124_s14 + $0x54] sm:$0x7]  ;;  %v16204_v5 = vrot.slane %v13045_v23, 6 }
 0x111   : > { %v2367_v0 = vpop.permute.xlu1 %2366  ;;  %v2363_v19 = vpop.permute.xlu0 %2362  ;;  %v13040_v26 = vor.u32 %v2185_v10, %v2182_v61 }
 0x112   : > { %v2427_v34 = vsel %vm12517_vm7, %v2367_v0, %v2426_v36  ;;  %v2423_v31 = vsel %vm12517_vm7, %v2363_v19, %v2422_v15  ;;  %v16205_v36 = vrot.slane %v13032_v51, 6  ;;  %v13060_v15 = vld [vmem:[%s12124_s14 + $0x64] sm:$0x7]  ;;  %v1886_v0 = vld [vmem:[#allocation2 + $0x10] sm:$0xc] }
 0x113   : > { %2428 = vst [vmem:[#allocation2 + $0x54] sm:$0xc] %v2427_v34  ;;  %2424 = vst [vmem:[#allocation2 + $0x44] sm:$0xc] %v2423_v31  ;;  %559 = vrot.lane.b32.xlu1 %v13007_v56, %s16303_s15  ;;  %555 = vrot.lane.b32.xlu0 %v13009_v3, %s16303_s15  ;;  %v1881_v19 = vld [vmem:[#allocation2] sm:$0xc] }
 0x114   : > { %v13067_v34 = vld [vmem:[%s12124_s14 + $0x54] sm:$0x7] }
 0x115   : > { %v1235_v1 = vpop.permute.xlu1 %1234  ;;  %v1233_v43 = vpop.permute.xlu0 %1232 }
 0x116   : > { %v1270_v6 = vsel %vm12654_vm15, %v1235_v1, %v1269_v29  ;;  %v1267_v63 = vsel %vm12654_vm15, %v1233_v43, %v1266_v39  ;;  %v16203_v1 = vrot.slane %v13060_v15, 6  ;;  %v3533_v29 = vld [vmem:[#allocation2 + $0x14] sm:$0xc]  ;;  %v3529_v43 = vld [vmem:[#allocation2 + $0x4] sm:$0xc]  ;;  %v16202_v39 = vrot.slane %v13067_v34, 6 }
 0x117   : > { %1271 = vst [vmem:[#allocation2 + $0x30] sm:$0x7] %v1270_v6  ;;  %1268 = vst [vmem:[#allocation2 + $0x20] sm:$0x7] %v1267_v63  ;;  %1545 = vrot.lane.b32.xlu1 %v16209_v35, %s16304_s29  ;;  %1541 = vrot.lane.b32.xlu0 %v16208_v32, %s16304_s29 }
 0x119   : > { %v2895_v62 = vpop.permute.xlu1 %2894  ;;  %v2893_v38 = vpop.permute.xlu0 %2892 }
 0x11a   : > { %v2928_v54 = vsel %vm12654_vm15, %v2895_v62, %v2927_v18  ;;  %v2925_v55 = vsel %vm12654_vm15, %v2893_v38, %v2924_v44  ;;  %v13087_v62 = vld [vmem:[%s12124_s14 + $0x70] sm:$0x7]  ;;  %v13090_v38 = vld [vmem:[%s12124_s14 + $0x60] sm:$0x7] }
 0x11b   : > { %2929 = vst [vmem:[#allocation2 + $0x34] sm:$0x7] %v2928_v54  ;;  %2926 = vst [vmem:[#allocation2 + $0x24] sm:$0x7] %v2925_v55  ;;  %2234 = vrot.lane.b32.xlu1 %v13040_v26, %s16303_s15  ;;  %2230 = vrot.lane.b32.xlu0 %v13042_v33, %s16303_s15  ;;  %v846_v54 = vld [vmem:[#allocation2 + $0x50] sm:$0x7] }
 0x11c   : > { %v843_v55 = vld [vmem:[#allocation2 + $0x40] sm:$0x7] }
 0x11d   : > { %v1824_v31 = vpop.permute.xlu1 %1823  ;;  %v1820_v61 = vpop.permute.xlu0 %1819 }
 0x11e   : > { %v1887_v10 = vsel %vm13053_vm14, %v1824_v31, %v1886_v0  ;;  %v1882_v11 = vsel %vm13053_vm14, %v1820_v61, %v1881_v19 }
 0x11f   : > { %1888 = vst [vmem:[#allocation2 + $0x10] sm:$0xc] %v1887_v10  ;;  %1883 = vst [vmem:[#allocation2] sm:$0xc] %v1882_v11  ;;  %3200 = vrot.lane.b32.xlu1 %v16207_v21, %s16304_s29  ;;  %3196 = vrot.lane.b32.xlu0 %v16206_v37, %s16304_s29  ;;  %v16201_v10 = vrot.slane %v13087_v62, 6  ;;  %v16200_v11 = vrot.slane %v13090_v38, 6 }
 0x121   : > { %v3474_v6 = vpop.permute.xlu1 %3473  ;;  %v3470_v63 = vpop.permute.xlu0 %3469 }
 0x122   : > { %v3534_v18 = vsel %vm13053_vm14, %v3474_v6, %v3533_v29  ;;  %v3530_v44 = vsel %vm13053_vm14, %v3470_v63, %v3529_v43  ;;  %v2512_v29 = vld [vmem:[#allocation2 + $0x54] sm:$0x7]  ;;  %v2509_v43 = vld [vmem:[#allocation2 + $0x44] sm:$0x7] }
 0x123   : > { %3535 = vst [vmem:[#allocation2 + $0x14] sm:$0xc] %v3534_v18  ;;  %3531 = vst [vmem:[#allocation2 + $0x4] sm:$0xc] %v3530_v44  ;;  %1124 = vrot.lane.b32.xlu1 %v16205_v36, %s16310_s26  ;;  %1120 = vrot.lane.b32.xlu0 %v16204_v5, %s16310_s26  ;;  %v10216_v5 = vld [vmem:[%s12124_s14 + $0x4c] sm:$0x7] }
 0x124   : > { %v3407_v32 = vshrl.u32 %v10216_v5, 16 }
 0x125   : > { %v810_v0 = vpop.permute.xlu1 %809  ;;  %v808_v19 = vpop.permute.xlu0 %807 }
 0x126   : > { %v847_v31 = vsel %vm12544_vm9, %v810_v0, %v846_v54  ;;  %v844_v61 = vsel %vm12544_vm9, %v808_v19, %v843_v55  ;;  %v10086_v54 = vld [vmem:[%s12124_s14 + $0x3c] sm:$0x7]  ;;  %v10085_v55 = vld [vmem:[%s12124_s14 + $0x2c] sm:$0x7]  ;;  %v13117_v0 = vld [vmem:[%s12124_s14 + $0x80] sm:$0x7] }
 0x127   : > { %848 = vst [vmem:[#allocation2 + $0x50] sm:$0x7] %v847_v31  ;;  %845 = vst [vmem:[#allocation2 + $0x40] sm:$0x7] %v844_v61  ;;  %2787 = vrot.lane.b32.xlu1 %v16203_v1, %s16310_s26  ;;  %2783 = vrot.lane.b32.xlu0 %v16202_v39, %s16310_s26  ;;  %v13126_v19 = vld [vmem:[%s12124_s14 + $0x70] sm:$0x7] }
 0x128   : > { %16311 = vst [vmem:[#allocation31_spill] sm:$0xff] %v13117_v0  ;;  %16312 = vst [vmem:[#allocation32_spill] sm:$0xff] %v13126_v19 }
 0x129   : > { %v2478_v6 = vpop.permute.xlu1 %2477  ;;  %v2476_v63 = vpop.permute.xlu0 %2475 }
 0x12a   : > { %v2513_v18 = vsel %vm12544_vm9, %v2478_v6, %v2512_v29  ;;  %v2510_v44 = vsel %vm12544_vm9, %v2476_v63, %v2509_v43  ;;  %v16198_v29 = vrot.slane %v13117_v0, 6  ;;  %v16199_v43 = vrot.slane %v13126_v19, 6  ;;  %v10029_v19 = vld [vmem:[%s12124_s14 + $0x64] sm:$0x7] }
 0x12b   : > { %2514 = vst [vmem:[#allocation2 + $0x54] sm:$0x7] %v2513_v18  ;;  %2511 = vst [vmem:[#allocation2 + $0x44] sm:$0x7] %v2510_v44  ;;  %703 = vrot.lane.b32.xlu1 %v16201_v10, %s16305_s0  ;;  %699 = vrot.lane.b32.xlu0 %v16200_v11, %s16305_s0  ;;  %v10206_v18 = vld [vmem:[%s12124_s14 + $0x4c] sm:$0x7] }
 0x12c   : > { %v10205_v44 = vld [vmem:[%s12124_s14 + $0x3c] sm:$0x7] }
 0x12d   : > { %v538_v31 = vpop.permute.xlu1 %537  ;;  %v534_v61 = vpop.permute.xlu0 %533 }
 0x12e   : > { %602 = vst.msk [vmem:[#allocation2 + $0x18] sm:$0x1] %vm16215_vm0, %v538_v31  ;;  %598 = vst.msk [vmem:[#allocation2 + $0x8] sm:$0x1] %vm16215_vm0, %v534_v61  ;;  %v10096_v31 = vld [vmem:[%s12124_s14 + $0x3c] sm:$0x7] }
 0x12f   : > { %1663 = vrot.lane.b32.xlu1 %v10086_v54, %s16313_s16  ;;  %1661 = vrot.lane.b32.xlu0 %v10085_v55, %s16313_s16  ;;  %v10095_v54 = vld [vmem:[%s12124_s14 + $0x2c] sm:$0x7] }
 0x130   : > { %v1748_v11 = vshrl.u32 %v10095_v54, 16  ;;  %v1751_v10 = vshll.u32 %v10095_v54, 16 }
 0x131   : > { %v2213_v6 = vpop.permute.xlu1 %2212  ;;  %v2209_v63 = vpop.permute.xlu0 %2208 }
 0x132   : > { %2273 = vst.msk [vmem:[#allocation2 + $0x1c] sm:$0x1] %vm16215_vm0, %v2213_v6  ;;  %2269 = vst.msk [vmem:[#allocation2 + $0xc] sm:$0x1] %vm16215_vm0, %v2209_v63  ;;  %v10058_v6 = vld [vmem:[%s12124_s14 + $0x58] sm:$0x7] }
 0x133   : > { %2374 = vrot.lane.b32.xlu1 %v16198_v29, %s16305_s0  ;;  %2370 = vrot.lane.b32.xlu0 %v16199_v43, %s16305_s0  ;;  %v10057_v63 = vld [vmem:[%s12124_s14 + $0x48] sm:$0x7]  ;;  %v1757_v29 = vshrl.u32 %v10096_v31, 16  ;;  %v1760_v43 = vshll.u32 %v10096_v31, 16  ;;  %v1750_v54 = vrot.slane %v1748_v11, 5  ;;  %v1753_v36 = vrot.slane %v1751_v10, 6 }
 0x134   : > { %vm2022_vm0 = vcmask 1044354  }
 0x135   : > { %v682_v55 = vpop.permute.xlu1 %681  ;;  %v678_v61 = vpop.permute.xlu0 %677  ;;  %v1762_v31 = vrot.slane %v1760_v43, 6  ;;  %v1461_v43 = vld [vmem:[#allocation2 + $0x20] sm:$0xc] }
 0x136   : > { %745 = vst.msk [vmem:[#allocation2 + $0x18] sm:$0x1] %vm16214_vm6, %v682_v55  ;;  %741 = vst.msk [vmem:[#allocation2 + $0x8] sm:$0x1] %vm16214_vm6, %v678_v61  ;;  %v10178_v55 = vld [vmem:[%s12124_s14 + $0x68] sm:$0x7] }
 0x137   : > { %3315 = vrot.lane.b32.xlu1 %v10206_v18, %s16313_s16  ;;  %3313 = vrot.lane.b32.xlu0 %v10205_v44, %s16313_s16  ;;  %v10177_v61 = vld [vmem:[%s12124_s14 + $0x58] sm:$0x7]  ;;  %v10215_v18 = vld [vmem:[%s12124_s14 + $0x3c] sm:$0x7]  ;;  %v1759_v44 = vrot.slane %v1757_v29, 5 }
 0x138   : > { %v3398_v35 = vshrl.u32 %v10215_v18, 16  ;;  %v3401_v0 = vshll.u32 %v10215_v18, 16  ;;  %v1465_v29 = vld [vmem:[#allocation2 + $0x30] sm:$0xc] }
 0x139   : > { %v2353_v39 = vpop.permute.xlu1 %2352  ;;  %v2349_v1 = vpop.permute.xlu0 %2348 }
 0x13a   : > { %2413 = vst.msk [vmem:[#allocation2 + $0x1c] sm:$0x1] %vm16214_vm6, %v2353_v39  ;;  %2409 = vst.msk [vmem:[#allocation2 + $0xc] sm:$0x1] %vm16214_vm6, %v2349_v1  ;;  %v3410_v39 = vshll.u32 %v10216_v5, 16  ;;  %vm16221_vm6 = vcmask 910080  }
 0x13b   : > { %1238 = vrot.lane.b32.xlu1 %v10058_v6, %s16314_s22  ;;  %1236 = vrot.lane.b32.xlu0 %v10057_v63, %s16314_s22  ;;  %v10030_v1 = vld [vmem:[%s12124_s14 + $0x74] sm:$0x7]  ;;  %v13174_v6 = vor.u32 %v1753_v36, %v1750_v54  ;;  %v3409_v63 = vrot.slane %v3407_v32, 5 }
 0x13c   : > { %v3120_v36 = vld [vmem:[#allocation2 + $0x34] sm:$0xc] }
 0x13d   : > { %v968_v37 = vpop.permute.xlu1 %967  ;;  %v964_v21 = vpop.permute.xlu0 %963 }
 0x13e   : > { %1031 = vst.msk [vmem:[#allocation2 + $0x18] sm:$0x1] %vm16212_vm10, %v968_v37  ;;  %1027 = vst.msk [vmem:[#allocation2 + $0x8] sm:$0x1] %vm16212_vm10, %v964_v21  ;;  %v13172_v21 = vor.u32 %v1762_v31, %v1759_v44 }
 0x13f   : > { %2898 = vrot.lane.b32.xlu1 %v10178_v55, %s16314_s22  ;;  %2896 = vrot.lane.b32.xlu0 %v10177_v61, %s16314_s22  ;;  %v3412_v55 = vrot.slane %v3410_v39, 6 }
 0x141   : > { %v1403_v11 = vpop.permute.xlu1 %1402  ;;  %v1399_v10 = vpop.permute.xlu0 %1398 }
 0x142   : > { %v1466_v5 = vsel %vm12699_vm3, %v1403_v11, %v1465_v29  ;;  %v1462_v37 = vsel %vm12699_vm3, %v1399_v10, %v1461_v43  ;;  %v10150_v29 = vld [vmem:[%s12124_s14 + $0x84] sm:$0x7]  ;;  %v10149_v43 = vld [vmem:[%s12124_s14 + $0x74] sm:$0x7]  ;;  %v3400_v11 = vrot.slane %v3398_v35, 5  ;;  %v3403_v10 = vrot.slane %v3401_v0, 6 }
 0x143   : > { %1467 = vst [vmem:[#allocation2 + $0x30] sm:$0xc] %v1466_v5  ;;  %1463 = vst [vmem:[#allocation2 + $0x20] sm:$0xc] %v1462_v37  ;;  %813 = vrot.lane.b32.xlu1 %v10030_v1, %s16315_s24  ;;  %811 = vrot.lane.b32.xlu0 %v10029_v19, %s16315_s24  ;;  %v3116_v19 = vld [vmem:[#allocation2 + $0x24] sm:$0xc]  ;;  %v13190_v35 = vor.u32 %v3412_v55, %v3409_v63 }
 0x144   : > { %v13192_v0 = vor.u32 %v3403_v10, %v3400_v11  ;;  %v476_v5 = vrot.slane %v12202_v20, 4  ;;  %v467_v37 = vrot.slane %v12208_v22, 4  ;;  %v10067_v20 = vld [vmem:[%s12124_s14 + $0x48] sm:$0x7]  ;;  %v16316_v11 = vrot.slane %v12245_v40, 6 }
 0x145   : > { %v2634_v61 = vpop.permute.xlu1 %2633  ;;  %v2630_v18 = vpop.permute.xlu0 %2629 }
 0x146   : > { %2694 = vst.msk [vmem:[#allocation2 + $0x1c] sm:$0x1] %vm16212_vm10, %v2634_v61  ;;  %2690 = vst.msk [vmem:[#allocation2 + $0xc] sm:$0x1] %vm16212_vm10, %v2630_v18  ;;  %v2151_v61 = vrot.slane %v12214_v27, 4  ;;  %vm16216_vm10 = vcmask 647680  }
 0x147   : > { %1831 = vrot.lane.b32.xlu1 %v13172_v21, %s16304_s29  ;;  %1827 = vrot.lane.b32.xlu0 %v13174_v6, %s16304_s29  ;;  %v10068_v18 = vld [vmem:[%s12124_s14 + $0x58] sm:$0x7]  ;;  %v662_v10 = vrot.slane %v16316_v11, 4  ;;  %v16317_v27 = vrot.slane %v12248_v41, 6  ;;  %v1337_v41 = vshrl.u32 %v10067_v20, 16 }
 0x148   : > { %v1349_v40 = vshll.u32 %v10068_v18, 16 }
 0x149   : > { %v3061_v32 = vpop.permute.xlu1 %3060  ;;  %v3057_v44 = vpop.permute.xlu0 %3056 }
 0x14a   : > { %v3121_v31 = vsel %vm12699_vm3, %v3061_v32, %v3120_v36  ;;  %v3117_v54 = vsel %vm12699_vm3, %v3057_v44, %v3116_v19  ;;  %v660_v36 = vrot.slane %v16317_v27, 4  ;;  %v16318_v19 = vrot.slane %v12264_v48, 6  ;;  %v16320_v48 = vld [vmem:[#allocation16_spill] sm:$0xff] }
 0x14b   : > { %3122 = vst [vmem:[#allocation2 + $0x34] sm:$0xc] %v3121_v31  ;;  %3118 = vst [vmem:[#allocation2 + $0x24] sm:$0xc] %v3117_v54  ;;  %2481 = vrot.lane.b32.xlu1 %v10150_v29, %s16315_s24  ;;  %2479 = vrot.lane.b32.xlu0 %v10149_v43, %s16315_s24  ;;  %v2142_v29 = vrot.slane %v12216_v28, 4  ;;  %v1346_v28 = vshrl.u32 %v10068_v18, 16 }
 0x14c   : > { %v2333_v32 = vrot.slane %v16318_v19, 4  ;;  %v16319_v44 = vrot.slane %v12267_v49, 6  ;;  %v906_v54 = vrot.slane %v12345_v47, 4  ;;  %v1351_v18 = vrot.slane %v1349_v40, 6 }
 0x14d   : > { %v1111_v39 = vpop.permute.xlu1 %1110  ;;  %v1107_v1 = vpop.permute.xlu0 %1106  ;;  %v1348_v47 = vrot.slane %v1346_v28, 5 }
 0x14e   : > { %1174 = vst.msk [vmem:[#allocation2 + $0x18] sm:$0x1] %vm16213_vm1, %v1111_v39  ;;  %1170 = vst.msk [vmem:[#allocation2 + $0x8] sm:$0x1] %vm16213_vm1, %v1107_v1  ;;  %v2331_v31 = vrot.slane %v16319_v44, 4  ;;  %v897_v1 = vrot.slane %v16320_v48, 4 }
 0x14f   : > { %3481 = vrot.lane.b32.xlu1 %v13190_v35, %s16304_s29  ;;  %3477 = vrot.lane.b32.xlu0 %v13192_v0, %s16304_s29  ;;  %v10188_v39 = vld [vmem:[%s12124_s14 + $0x68] sm:$0x7] }
 0x150   : > { %v3007_v11 = vshll.u32 %v10188_v39, 16 }
 0x151   : > { %v2774_v63 = vpop.permute.xlu1 %2773  ;;  %v2770_v55 = vpop.permute.xlu0 %2769 }
 0x152   : > { %2834 = vst.msk [vmem:[#allocation2 + $0x1c] sm:$0x1] %vm16213_vm1, %v2774_v63  ;;  %2830 = vst.msk [vmem:[#allocation2 + $0xc] sm:$0x1] %vm16213_vm1, %v2770_v55  ;;  %v1340_v63 = vshll.u32 %v10067_v20, 16  ;;  %v16321_v55 = vld [vmem:[#allocation17_spill] sm:$0xff] }
 0x153   : > { %545 = vrot.lane.b32.xlu1 %v476_v5, %s16303_s15  ;;  %541 = vrot.lane.b32.xlu0 %v467_v37, %s16303_s15  ;;  %vm16222_vm1 = vcmask 778880   ;;  %v1339_v20 = vrot.slane %v1337_v41, 5  ;;  %v13240_v41 = vor.u32 %v1351_v18, %v1348_v47 }
 0x154   : > { %v1342_v44 = vrot.slane %v1340_v63, 6 }
 0x155   : > { %v1397_v22 = vpop.permute.xlu1 %1396  ;;  %v1393_v43 = vpop.permute.xlu0 %1392 }
 0x156   : > { %1460 = vst.msk [vmem:[#allocation2 + $0x18] sm:$0x1] %vm16216_vm10, %v1397_v22  ;;  %1456 = vst.msk [vmem:[#allocation2 + $0x8] sm:$0x1] %vm16216_vm10, %v1393_v43  ;;  %v2572_v22 = vrot.slane %v16321_v55, 4  ;;  %v16322_v43 = vld [vmem:[#allocation18_spill] sm:$0xff] }
 0x157   : > { %2220 = vrot.lane.b32.xlu1 %v2151_v61, %s16303_s15  ;;  %2216 = vrot.lane.b32.xlu0 %v2142_v29, %s16303_s15  ;;  %v2563_v49 = vrot.slane %v16322_v43, 4  ;;  %v10187_v61 = vld [vmem:[%s12124_s14 + $0x58] sm:$0x7]  ;;  %v3004_v29 = vshrl.u32 %v10188_v39, 16  ;;  %v13242_v39 = vor.u32 %v1342_v44, %v1339_v20  ;;  %v16325_v20 = vld [vmem:[#allocation21_spill] sm:$0xff]  ;;  %v16327_v44 = vld [vmem:[#allocation24_spill] sm:$0xff] }
 0x158   : > { %v2995_v48 = vshrl.u32 %v10187_v61, 16  ;;  %v2998_v28 = vshll.u32 %v10187_v61, 16 }
 0x159   : > { %v3055_v5 = vpop.permute.xlu1 %3054  ;;  %v3051_v37 = vpop.permute.xlu0 %3050 }
 0x15a   : > { %3115 = vst.msk [vmem:[#allocation2 + $0x1c] sm:$0x1] %vm16216_vm10, %v3055_v5  ;;  %3111 = vst.msk [vmem:[#allocation2 + $0xc] sm:$0x1] %vm16216_vm10, %v3051_v37  ;;  %v3000_v37 = vrot.slane %v2998_v28, 6 }
 0x15b   : > { %689 = vrot.lane.b32.xlu1 %v662_v10, %s16305_s0  ;;  %685 = vrot.lane.b32.xlu0 %v660_v36, %s16305_s0  ;;  %v3006_v10 = vrot.slane %v3004_v29, 5  ;;  %v3009_v36 = vrot.slane %v3007_v11, 6  ;;  %vm13246_vm10 = vmand %vm2022_vm0, %vm592_vm4  ;;  %vm16220_vm4 = vcmask 1041280   ;;  %vm16356_vm0 = vcmask 122880  }
 0x15d   : > { %v1540_v27 = vpop.permute.xlu1 %1539  ;;  %v1536_v19 = vpop.permute.xlu0 %1535  ;;  %v13262_v29 = vor.u32 %v3009_v36, %v3006_v10 }
 0x15e   : > { %1603 = vst.msk [vmem:[#allocation2 + $0x18] sm:$0x1] %vm16222_vm1, %v1540_v27  ;;  %1599 = vst.msk [vmem:[#allocation2 + $0x8] sm:$0x1] %vm16222_vm1, %v1536_v19  ;;  %v16326_v27 = vrot.slane %v16325_v20, 6  ;;  %v2993_v20 = vrot.slane %v12680_v57, 4 }
 0x15f   : > { %2360 = vrot.lane.b32.xlu1 %v2333_v32, %s16305_s0  ;;  %2356 = vrot.lane.b32.xlu0 %v2331_v31, %s16305_s0  ;;  %v2997_v31 = vrot.slane %v2995_v48, 5  ;;  %v16328_v48 = vrot.slane %v16327_v44, 6  ;;  %v16333_v57 = vrot.slane %v12932_v58, 6  ;;  %v2707_v58 = vld [vmem:[#allocation2 + $0x54] sm:$0xc] }
 0x160   : > { %v1091_v19 = vrot.slane %v16326_v27, 4  ;;  %v2984_v27 = vrot.slane %v12682_v9, 4 }
 0x161   : > { %v3195_v40 = vpop.permute.xlu1 %3194  ;;  %v3191_v5 = vpop.permute.xlu0 %3190  ;;  %v13264_v11 = vor.u32 %v3000_v37, %v2997_v31  ;;  %v1089_v28 = vrot.slane %v16328_v48, 4  ;;  %v16329_v31 = vld [vmem:[#allocation25_spill] sm:$0xff]  ;;  %v1044_v48 = vld [vmem:[#allocation2 + $0x50] sm:$0xc]  ;;  %v1520_v9 = vrot.slane %v16333_v57, 4 }
 0x162   : > { %3255 = vst.msk [vmem:[#allocation2 + $0x1c] sm:$0x1] %vm16222_vm1, %v3195_v40  ;;  %3251 = vst.msk [vmem:[#allocation2 + $0xc] sm:$0x1] %vm16222_vm1, %v3191_v5  ;;  %v16330_v37 = vrot.slane %v16329_v31, 6  ;;  %v16335_v31 = vrot.slane %v13021_v30, 6 }
 0x163   : > { %975 = vrot.lane.b32.xlu1 %v906_v54, %s16305_s0  ;;  %971 = vrot.lane.b32.xlu0 %v897_v1, %s16305_s0  ;;  %v2029_v54 = vld [vmem:[#allocation2 + $0x10] sm:$0xc]  ;;  %v2024_v1 = vld [vmem:[#allocation2] sm:$0xc]  ;;  %vm16360_vm1 = vmmov %vm16356_vm0 }
 0x165   : > { %v1826_v63 = vpop.permute.xlu1 %1825  ;;  %v1822_v55 = vpop.permute.xlu0 %1821 }
 0x166   : > { %1889 = vst.msk [vmem:[#allocation2 + $0x18] sm:$0x1] %vm16221_vm6, %v1826_v63  ;;  %1885 = vst.msk [vmem:[#allocation2 + $0x8] sm:$0x1] %vm16221_vm6, %v1822_v55  ;;  %v2754_v63 = vrot.slane %v16330_v37, 4  ;;  %v16331_v55 = vld [vmem:[#allocation26_spill] sm:$0xff] }
 0x167   : > { %1410 = vrot.lane.b32.xlu1 %v13240_v41, %s16310_s26  ;;  %1406 = vrot.lane.b32.xlu0 %v13242_v39, %s16310_s26  ;;  %v3175_v37 = vrot.slane %v16335_v31, 4  ;;  %v1764_v31 = vrot.slane %v13172_v21, 4 }
 0x169   : > { %v1967_v43 = vpop.permute.xlu1 %1966  ;;  %v1963_v47 = vpop.permute.xlu0 %1962 }
 0x16a   : > { %v2030_v61 = vsel %vm13246_vm10, %v1967_v43, %v2029_v54  ;;  %v2025_v18 = vsel %vm13246_vm10, %v1963_v47, %v2024_v1  ;;  %v16332_v54 = vrot.slane %v16331_v55, 6 }
 0x16b   : > { %2031 = vst [vmem:[#allocation2 + $0x10] sm:$0xc] %v2030_v61  ;;  %2026 = vst [vmem:[#allocation2] sm:$0xc] %v2025_v18  ;;  %2641 = vrot.lane.b32.xlu1 %v2572_v22, %s16305_s0  ;;  %2637 = vrot.lane.b32.xlu0 %v2563_v49, %s16305_s0  ;;  %v3673_v22 = vld [vmem:[#allocation2 + $0x14] sm:$0xc] }
 0x16c   : > { %v3669_v49 = vld [vmem:[#allocation2 + $0x4] sm:$0xc]  ;;  %v2752_v1 = vrot.slane %v16332_v54, 4  ;;  %v1335_v61 = vrot.slane %v12658_v17, 4  ;;  %v1326_v18 = vrot.slane %v12660_v2, 4 }
 0x16d   : > { %v3476_v40 = vpop.permute.xlu1 %3475  ;;  %v3472_v5 = vpop.permute.xlu0 %3471 }
 0x16e   : > { %3536 = vst.msk [vmem:[#allocation2 + $0x1c] sm:$0x1] %vm16221_vm6, %v3476_v40  ;;  %3532 = vst.msk [vmem:[#allocation2 + $0xc] sm:$0x1] %vm16221_vm6, %v3472_v5  ;;  %v1040_v5 = vld [vmem:[#allocation2 + $0x40] sm:$0xc] }
 0x16f   : > { %3068 = vrot.lane.b32.xlu1 %v13262_v29, %s16310_s26  ;;  %3064 = vrot.lane.b32.xlu0 %v13264_v11, %s16310_s26  ;;  %vm16359_vm6 = vmmov %vm16356_vm0 }
 0x171   : > { %v3614_v10 = vpop.permute.xlu1 %3613  ;;  %v3610_v36 = vpop.permute.xlu0 %3609 }
 0x172   : > { %v3674_v43 = vsel %vm13246_vm10, %v3614_v10, %v3673_v22  ;;  %v3670_v47 = vsel %vm13246_vm10, %v3610_v36, %v3669_v49  ;;  %v10040_v22 = vld [vmem:[%s12124_s14 + $0x74] sm:$0x7]  ;;  %v10039_v49 = vld [vmem:[%s12124_s14 + $0x64] sm:$0x7]  ;;  %v16334_v10 = vrot.slane %v13002_v24, 6 }
 0x173   : > { %3675 = vst [vmem:[#allocation2 + $0x14] sm:$0xc] %v3674_v43  ;;  %3671 = vst [vmem:[#allocation2 + $0x4] sm:$0xc] %v3670_v47  ;;  %1118 = vrot.lane.b32.xlu1 %v1091_v19, %s16310_s26  ;;  %1114 = vrot.lane.b32.xlu0 %v1089_v28, %s16310_s26  ;;  %v935_v54 = vshrl.u32 %v10040_v22, 16  ;;  %v938_v30 = vshll.u32 %v10040_v22, 16 }
 0x174   : > { %v1518_v36 = vrot.slane %v16334_v10, 4 }
 0x175   : > { %v982_v44 = vpop.permute.xlu1 %981  ;;  %v978_v40 = vpop.permute.xlu0 %977  ;;  %v940_v22 = vrot.slane %v938_v30, 6  ;;  %v13344_v30 = vld [vmem:[%s12124_s14 + $0x2c] sm:$0x7] }
 0x176   : > { %v1045_v17 = vsel %vm12575_vm11, %v982_v44, %v1044_v48  ;;  %v1041_v2 = vsel %vm12575_vm11, %v978_v40, %v1040_v5  ;;  %v926_v48 = vshrl.u32 %v10039_v49, 16  ;;  %v623_v5 = vld [vmem:[#allocation2 + $0x70] sm:$0xc] }
 0x177   : > { %1046 = vst [vmem:[#allocation2 + $0x50] sm:$0xc] %v1045_v17  ;;  %1042 = vst [vmem:[#allocation2 + $0x40] sm:$0xc] %v1041_v2  ;;  %2781 = vrot.lane.b32.xlu1 %v2754_v63, %s16310_s26  ;;  %2777 = vrot.lane.b32.xlu0 %v2752_v1, %s16310_s26  ;;  %v16336_v63 = vrot.slane %v13029_v16, 6  ;;  %v937_v16 = vrot.slane %v935_v54, 5 }
 0x178   : > { %v2703_v1 = vld [vmem:[#allocation2 + $0x44] sm:$0xc]  ;;  %v619_v17 = vld [vmem:[#allocation2 + $0x60] sm:$0xc] }
 0x179   : > { %v1969_v19 = vpop.permute.xlu1 %1968  ;;  %v1965_v28 = vpop.permute.xlu0 %1964  ;;  %v3173_v55 = vrot.slane %v16336_v63, 4  ;;  %v10160_v2 = vld [vmem:[%s12124_s14 + $0x84] sm:$0x7]  ;;  %v1755_v63 = vrot.slane %v13174_v6, 4 }
 0x17a   : > { %2032 = vst.msk [vmem:[#allocation2 + $0x18] sm:$0x1] %vm16220_vm4, %v1969_v19  ;;  %2028 = vst.msk [vmem:[#allocation2 + $0x8] sm:$0x1] %vm16220_vm4, %v1965_v28  ;;  %v10159_v19 = vld [vmem:[%s12124_s14 + $0x74] sm:$0x7] }
 0x17b   : > { %1404 = vrot.lane.b32.xlu1 %v1335_v61, %s16310_s26  ;;  %1400 = vrot.lane.b32.xlu0 %v1326_v18, %s16310_s26  ;;  %v929_v61 = vshll.u32 %v10039_v49, 16  ;;  %v11448_v28 = vld [vmem:[%s16136_s1 + $0x40] sm:$0xff]   ;;  %v2601_v54 = vshrl.u32 %v10160_v2, 16 }
 0x17c   : > { %10862 = vmatprep.subr.bf16.mxu1 %v11448_v28 }
 0x17d   : > { %v2648_v43 = vpop.permute.xlu1 %2647  ;;  %v2644_v47 = vpop.permute.xlu0 %2643  ;;  %v931_v57 = vrot.slane %v929_v61, 6 }
 0x17e   : > { %v2708_v44 = vsel %vm12575_vm11, %v2648_v43, %v2707_v58  ;;  %v2704_v24 = vsel %vm12575_vm11, %v2644_v47, %v2703_v1  ;;  %v13336_v58 = vor.u32 %v940_v22, %v937_v16  ;;  %v13341_v1 = vld [vmem:[%s12124_s14 + $0x3c] sm:$0x7]  ;;  %v2604_v43 = vshll.u32 %v10160_v2, 16 }
 0x17f   : > { %2709 = vst [vmem:[#allocation2 + $0x54] sm:$0xc] %v2708_v44  ;;  %2705 = vst [vmem:[#allocation2 + $0x44] sm:$0xc] %v2704_v24  ;;  %3062 = vrot.lane.b32.xlu1 %v2993_v20, %s16310_s26  ;;  %3058 = vrot.lane.b32.xlu0 %v2984_v27, %s16310_s26  ;;  %v928_v20 = vrot.slane %v926_v48, 5  ;;  %v11447_v27 = vld [vmem:[%s16136_s1 + $0x40] sm:$0xff]  }
 0x180   : > { %10840 = vmatprep.subr.bf16.mxu0 %v11447_v27  ;;  %v2592_v47 = vshrl.u32 %v10159_v19, 16  ;;  %v1608_v44 = vld [vmem:[#allocation2 + $0x30] sm:$0xc]  ;;  %v1604_v24 = vld [vmem:[#allocation2 + $0x20] sm:$0xc] }
 0x181   : > { %v3616_v18 = vpop.permute.xlu1 %3615  ;;  %v3612_v40 = vpop.permute.xlu0 %3611  ;;  %v13338_v21 = vor.u32 %v931_v57, %v928_v20  ;;  %v11441_v61 = vld [vmem:[#allocation2] ss:$8 sps:$4 sm:$0x1f]   ;;  %v11444_v2 = vld [vmem:[#allocation2 + $0x10] ss:$8 sps:$4 sm:$0x1f]  }
 0x182   : > { %3676 = vst.msk [vmem:[#allocation2 + $0x1c] sm:$0x1] %vm16220_vm4, %v3616_v18  ;;  %3672 = vst.msk [vmem:[#allocation2 + $0xc] sm:$0x1] %vm16220_vm4, %v3612_v40  ;;  %v2294_v18 = vld [vmem:[#allocation2 + $0x74] sm:$0xc] }
 0x183   : > { %1547 = vrot.lane.b32.xlu1 %v1520_v9, %s16304_s29  ;;  %1543 = vrot.lane.b32.xlu0 %v1518_v36, %s16304_s29  ;;  %v2290_v40 = vld [vmem:[#allocation2 + $0x64] sm:$0xc]  ;;  %v1948_v20 = vrot.slane %v13341_v1, 6  ;;  %vm16357_vm4 = vmmov %vm16356_vm0 }
 0x184   : > { %v11450_v57 = vld [vmem:[%s16136_s1] sm:$0xff]  }
 0x185   : > { %v560_v49 = vpop.permute.xlu1 %559  ;;  %v556_v10 = vpop.permute.xlu0 %555 }
 0x186   : > { %v624_v9 = vsel %vm12482_vm5, %v560_v49, %v623_v5  ;;  %v620_v36 = vsel %vm12482_vm5, %v556_v10, %v619_v17  ;;  %v11449_v17 = vld [vmem:[%s16136_s1] sm:$0xff]   ;;  %v1946_v49 = vrot.slane %v13344_v30, 6  ;;  %v2603_v10 = vrot.slane %v2601_v54, 5  ;;  %v3260_v54 = vld [vmem:[#allocation2 + $0x34] sm:$0xc] }
 0x187   : > { %625 = vst [vmem:[#allocation2 + $0x70] sm:$0xc] %v624_v9  ;;  %621 = vst [vmem:[#allocation2 + $0x60] sm:$0xc] %v620_v36  ;;  %3202 = vrot.lane.b32.xlu1 %v3175_v37, %s16304_s29  ;;  %3198 = vrot.lane.b32.xlu0 %v3173_v55, %s16304_s29  ;;  %v2595_v37 = vshll.u32 %v10159_v19, 16  ;;  %v11451_v19 = vld [vmem:[%s16136_s1 + $0x48] sm:$0xff]  }
 0x188   : > { %v2606_v9 = vrot.slane %v2604_v43, 6  ;;  %v11452_v36 = vld [vmem:[%s16136_s1 + $0x48] sm:$0xff]   ;;  %v1947_v1 = vrot.slane %v1946_v49, 4 }
 0x189   : > { %v1546_v6 = vpop.permute.xlu1 %1545  ;;  %v1542_v48 = vpop.permute.xlu0 %1541  ;;  %v11443_v5 = vld [vmem:[#allocation2 + $0x4] ss:$8 sps:$4 sm:$0x1f]   ;;  %v11446_v22 = vld [vmem:[#allocation2 + $0x14] ss:$8 sps:$4 sm:$0x1f]  }
 0x18a   : > { %v1609_v55 = vsel %vm12740_vm8, %v1546_v6, %v1608_v44  ;;  %v1605_v16 = vsel %vm12740_vm8, %v1542_v48, %v1604_v24  ;;  %3887 = vmatprep.mubr.bf16.mxu0 %v11443_v5  ;;  %4107 = vmatprep.mubr.bf16.mxu1 %v11446_v22  ;;  %v2594_v6 = vrot.slane %v2592_v47, 5  ;;  %v2597_v48 = vrot.slane %v2595_v37, 6  ;;  %v11454_v43 = vld [vmem:[%s16136_s1 + $0x8] sm:$0xff]   ;;  %v11455_v47 = vld [vmem:[%s16136_s1 + $0x50] sm:$0xff]  }
 0x18b   : > { %1610 = vst [vmem:[#allocation2 + $0x30] sm:$0xc] %v1609_v55  ;;  %1606 = vst [vmem:[#allocation2 + $0x20] sm:$0xc] %v1605_v16  ;;  %989 = vrot.lane.b32.xlu1 %v13336_v58, %s16305_s0  ;;  %985 = vrot.lane.b32.xlu0 %v13338_v21, %s16305_s0  ;;  %v11457_v16 = vld [vmem:[%s16136_s1 + $0x10] sm:$0xff]  }
 0x18c   : > { %3888 = vmatmul.mubr.bf16.vlgmr.msra.gmra.mrb[0].mxu0 %v11441_v61  ;;  %4108 = vmatmul.mubr.bf16.vlgmr.msra.gmra.mrb[0].mxu1 %v11444_v2  ;;  %v11453_v61 = vld [vmem:[%s16136_s1 + $0x8] sm:$0xff]   ;;  %v1187_v5 = vld [vmem:[#allocation2 + $0x50] sm:$0xc]  ;;  %v13401_v2 = vor.u32 %v2597_v48, %v2594_v6  ;;  %v3405_v6 = vrot.slane %v13192_v0, 4  ;;  %v10225_v48 = vld [vmem:[%s12124_s14 + $0x3c] sm:$0x7] }
 0x18d   : > { %v2235_v27 = vpop.permute.xlu1 %2234  ;;  %v2231_v28 = vpop.permute.xlu0 %2230  ;;  %10841 = vmatpush3.bf16.msra.mxu0 %v11449_v17  ;;  %10863 = vmatpush3.bf16.msra.mxu1 %v11450_v57  ;;  %v13399_v17 = vor.u32 %v2606_v9, %v2603_v10  ;;  %v13404_v22 = vld [vmem:[%s12124_s14 + $0x4c] sm:$0x7]  ;;  %v11458_v57 = vld [vmem:[%s16136_s1 + $0x10] sm:$0xff]   ;;  %v11460_v10 = vld [vmem:[%s16136_s1 + $0x58] sm:$0xff]  }
 0x18e   : > { %v2295_v44 = vsel %vm12482_vm5, %v2235_v27, %v2294_v18  ;;  %v2291_v24 = vsel %vm12482_vm5, %v2231_v28, %v2290_v40  ;;  %10842 = vmatprep.subr.bf16.mxu0 %v11451_v19  ;;  %v3256_v40 = vld [vmem:[#allocation2 + $0x24] sm:$0xc]  ;;  %10864 = vmatprep.subr.bf16.mxu1 %v11452_v36  ;;  %16337 = vst [vmem:[#allocation16_spill] sm:$0xff] %v13401_v2  ;;  %v11459_v19 = vld [vmem:[%s16136_s1 + $0x58] sm:$0xff]   ;;  %v1183_v36 = vld [vmem:[#allocation2 + $0x40] sm:$0xc] }
 0x18f   : > { %2296 = vst [vmem:[#allocation2 + $0x74] sm:$0xc] %v2295_v44  ;;  %2292 = vst [vmem:[#allocation2 + $0x64] sm:$0xc] %v2291_v24  ;;  %1833 = vrot.lane.b32.xlu1 %v1764_v31, %s16304_s29  ;;  %1829 = vrot.lane.b32.xlu0 %v1755_v63, %s16304_s29  ;;  %v11456_v31 = vld [vmem:[%s16136_s1 + $0x50] sm:$0xff]   ;;  %v3414_v24 = vrot.slane %v13190_v35, 4 }
 0x190   : > { %v11462_v35 = vld [vmem:[%s16136_s1 + $0x18] sm:$0xff]   ;;  %v11463_v0 = vld [vmem:[%s16136_s1 + $0x60] sm:$0xff]  }
 0x191   : > { %v3201_v18 = vpop.permute.xlu1 %3200  ;;  %v3197_v37 = vpop.permute.xlu0 %3196  ;;  %10843 = vmatpush3.bf16.msra.mxu0 %v11453_v61  ;;  %10865 = vmatpush3.bf16.msra.mxu1 %v11454_v43  ;;  %v11461_v61 = vld [vmem:[%s16136_s1 + $0x18] sm:$0xff]  }
 0x192   : > { %v3261_v63 = vsel %vm12740_vm8, %v3201_v18, %v3260_v54  ;;  %v3257_v55 = vsel %vm12740_vm8, %v3197_v37, %v3256_v40  ;;  %10844 = vmatprep.subr.bf16.mxu0 %v11455_v47  ;;  %10866 = vmatprep.subr.bf16.mxu1 %v11456_v31  ;;  %v2847_v54 = vld [vmem:[#allocation2 + $0x54] sm:$0xc]  ;;  %v2843_v47 = vld [vmem:[#allocation2 + $0x44] sm:$0xc]  ;;  %v3595_v40 = vrot.slane %v13404_v22, 6 }
 0x193   : > { %3262 = vst [vmem:[#allocation2 + $0x34] sm:$0xc] %v3261_v63  ;;  %3258 = vst [vmem:[#allocation2 + $0x24] sm:$0xc] %v3257_v55  ;;  %1974 = vrot.lane.b32.xlu1 %v1948_v20, %s16303_s15  ;;  %1970 = vrot.lane.b32.xlu0 %v1946_v49, %s16303_s15  ;;  %v11464_v37 = vld [vmem:[%s16136_s1 + $0x60] sm:$0xff]   ;;  %v3593_v55 = vrot.slane %v10225_v48, 6 }
 0x194   : > { %v11465_v22 = vld [vmem:[%s16136_s1 + $0x20] sm:$0xff]   ;;  %v11468_v48 = vld [vmem:[%s16136_s1 + $0x68] sm:$0xff]  }
 0x195   : > { %v1125_v27 = vpop.permute.xlu1 %1124  ;;  %v1121_v28 = vpop.permute.xlu0 %1120  ;;  %10845 = vmatpush3.bf16.msra.mxu0 %v11457_v16  ;;  %10867 = vmatpush3.bf16.msra.mxu1 %v11458_v57  ;;  %v1949_v16 = vrot.slane %v1948_v20, 4  ;;  %v766_v57 = vld [vmem:[#allocation2 + $0x70] sm:$0xc]  ;;  %v13461_v20 = vrot.slane %v3595_v40, 4  ;;  %v762_v49 = vld [vmem:[#allocation2 + $0x60] sm:$0xc] }
 0x196   : > { %v1188_v9 = vsel %vm12612_vm13, %v1125_v27, %v1187_v5  ;;  %v1184_v44 = vsel %vm12612_vm13, %v1121_v28, %v1183_v36  ;;  %10846 = vmatprep.subr.bf16.mxu0 %v11459_v19  ;;  %10868 = vmatprep.subr.bf16.mxu1 %v11460_v10  ;;  %v13446_v5 = vld [vmem:[%s12124_s14 + $0x58] sm:$0x7]  ;;  %v13454_v19 = vld [vmem:[%s12124_s14 + $0x48] sm:$0x7]  ;;  %v13467_v36 = vld [vmem:[%s12124_s14 + $0x74] sm:$0x7] }
 0x197   : > { %1189 = vst [vmem:[#allocation2 + $0x50] sm:$0xc] %v1188_v9  ;;  %1185 = vst [vmem:[#allocation2 + $0x40] sm:$0xc] %v1184_v44  ;;  %2655 = vrot.lane.b32.xlu1 %v13399_v17, %s16305_s0  ;;  %2651 = vrot.lane.b32.xlu0 %v13401_v2, %s16305_s0  ;;  %v13457_v27 = vld [vmem:[%s12124_s14 + $0x68] sm:$0x7] }
 0x198   : > { %v13464_v28 = vld [vmem:[%s12124_s14 + $0x58] sm:$0x7]  ;;  %16338 = vst [vmem:[#allocation17_spill] sm:$0xff] %v13467_v36  ;;  %v11466_v10 = vld [vmem:[%s16136_s1 + $0x20] sm:$0xff]   ;;  %v11467_v9 = vld [vmem:[%s16136_s1 + $0x68] sm:$0xff]  }
 0x199   : > { %v2788_v43 = vpop.permute.xlu1 %2787  ;;  %v2784_v18 = vpop.permute.xlu0 %2783  ;;  %10847 = vmatpush3.bf16.msra.mxu0 %v11461_v61  ;;  %10869 = vmatpush3.bf16.msra.mxu1 %v11462_v35  ;;  %v16223_v35 = vrot.slane %v13446_v5, 6 }
 0x19a   : > { %v2848_v31 = vsel %vm12612_vm13, %v2788_v43, %v2847_v54  ;;  %v2844_v63 = vsel %vm12612_vm13, %v2784_v18, %v2843_v47  ;;  %10848 = vmatprep.subr.bf16.mxu0 %v11463_v0  ;;  %10870 = vmatprep.subr.bf16.mxu1 %v11464_v37  ;;  %v13487_v0 = vld [vmem:[%s12124_s14 + $0x84] sm:$0x7]  ;;  %v11469_v43 = vld [vmem:[%s16136_s1 + $0x28] sm:$0xff]   ;;  %v1698_v47 = vld [vmem:[#allocation2 + $0x30] sm:$0x7] }
 0x19b   : > { %2849 = vst [vmem:[#allocation2 + $0x54] sm:$0xc] %v2848_v31  ;;  %2845 = vst [vmem:[#allocation2 + $0x44] sm:$0xc] %v2844_v63  ;;  %3483 = vrot.lane.b32.xlu1 %v3414_v24, %s16304_s29  ;;  %3479 = vrot.lane.b32.xlu0 %v3405_v6, %s16304_s29  ;;  %v3594_v24 = vrot.slane %v3593_v55, 4  ;;  %v11470_v63 = vld [vmem:[%s16136_s1 + $0x28] sm:$0xff]  }
 0x19c   : > { %v13476_v6 = vld [vmem:[%s12124_s14 + $0x64] sm:$0x7]  ;;  %16340 = vst [vmem:[#allocation21_spill] sm:$0xff] %v13487_v0  ;;  %v1695_v18 = vld [vmem:[#allocation2 + $0x20] sm:$0x7]  ;;  %v11475_v37 = vld [vmem:[%s16136_s1 + $0x78] sm:$0xff]  }
 0x19d   : > { %v704_v44 = vpop.permute.xlu1 %703  ;;  %v700_v30 = vpop.permute.xlu0 %699  ;;  %16339 = vst [vmem:[#allocation18_spill] sm:$0xff] %v13476_v6  ;;  %10849 = vmatpush3.bf16.msra.mxu0 %v11465_v22  ;;  %10871 = vmatpush3.bf16.msra.mxu1 %v11466_v10  ;;  %v11471_v22 = vld [vmem:[%s16136_s1 + $0x70] sm:$0xff]   ;;  %v13523_v31 = vld [vmem:[%s12124_s14 + $0x80] sm:$0x7] }
 0x19e   : > { %v767_v61 = vsel %vm12517_vm7, %v704_v44, %v766_v57  ;;  %v763_v54 = vsel %vm12517_vm7, %v700_v30, %v762_v49  ;;  %10850 = vmatprep.subr.bf16.mxu0 %v11467_v9  ;;  %v13505_v30 = vld [vmem:[%s12124_s14 + $0x74] sm:$0x7]  ;;  %v13508_v49 = vld [vmem:[%s12124_s14 + $0x90] sm:$0x7]  ;;  %10872 = vmatprep.subr.bf16.mxu1 %v11468_v48 }
 0x19f   : > { %768 = vst [vmem:[#allocation2 + $0x70] sm:$0xc] %v767_v61  ;;  %764 = vst [vmem:[#allocation2 + $0x60] sm:$0xc] %v763_v54  ;;  %3621 = vrot.lane.b32.xlu1 %v3595_v40, %s16303_s15  ;;  %3617 = vrot.lane.b32.xlu0 %v3593_v55, %s16303_s15  ;;  %v11472_v10 = vld [vmem:[%s16136_s1 + $0x70] sm:$0xff]  }
 0x1a0   : > { %16341 = vst [vmem:[#allocation24_spill] sm:$0xff] %v13505_v30  ;;  %v11473_v9 = vld [vmem:[%s16136_s1 + $0x30] sm:$0xff]  }
 0x1a1   : > { %v1664_v40 = vpop.permute.xlu1 %1663  ;;  %v1662_v57 = vpop.permute.xlu0 %1661  ;;  %10851 = vmatpush3.bf16.msra.mxu0 %v11469_v43  ;;  %v11474_v48 = vld [vmem:[%s16136_s1 + $0x30] sm:$0xff]   ;;  %v11476_v43 = vld [vmem:[%s16136_s1 + $0x78] sm:$0xff]   ;;  %10873 = vmatpush3.bf16.msra.mxu1 %v11470_v63 }
 0x1a2   : > { %v1699_v61 = vsel %vm12925_vm12, %v1664_v40, %v1698_v47  ;;  %v1696_v54 = vsel %vm12925_vm12, %v1662_v57, %v1695_v18  ;;  %v2434_v47 = vld [vmem:[#allocation2 + $0x74] sm:$0xc]  ;;  %v2430_v18 = vld [vmem:[#allocation2 + $0x64] sm:$0xc]  ;;  %10852 = vmatprep.subr.bf16.mxu0 %v11471_v22  ;;  %10874 = vmatprep.subr.bf16.mxu1 %v11472_v10  ;;  %v11477_v63 = vld [vmem:[%s16136_s1 + $0x38] sm:$0xff]  }
 0x1a3   : > { %1700 = vst [vmem:[#allocation2 + $0x30] sm:$0x7] %v1699_v61  ;;  %1697 = vst [vmem:[#allocation2 + $0x20] sm:$0x7] %v1696_v54  ;;  %1976 = vrot.lane.b32.xlu1 %v1949_v16, %s16303_s15  ;;  %1972 = vrot.lane.b32.xlu0 %v1947_v1, %s16303_s15  ;;  %v523_v1 = vshrl.u32 %v13508_v49, 16  ;;  %v526_v54 = vshll.u32 %v13508_v49, 16 }
 0x1a4   : > { %v3348_v22 = vld [vmem:[#allocation2 + $0x34] sm:$0x7]  ;;  %v3345_v10 = vld [vmem:[#allocation2 + $0x24] sm:$0x7] }
 0x1a5   : > { %v2375_v40 = vpop.permute.xlu1 %2374  ;;  %v2371_v57 = vpop.permute.xlu0 %2370  ;;  %10853 = vmatpush3.bf16.msra.mxu0 %v11473_v9  ;;  %v11478_v9 = vld [vmem:[%s16136_s1 + $0x38] sm:$0xff]   ;;  %10875 = vmatpush3.bf16.msra.mxu1 %v11474_v48  ;;  %v10132_v48 = vld [vmem:[%s12124_s14 + $0xa0] sm:$0x7] }
 0x1a6   : > { %v2435_v55 = vsel %vm12517_vm7, %v2375_v40, %v2434_v47  ;;  %v2431_v61 = vsel %vm12517_vm7, %v2371_v57, %v2430_v18  ;;  %v514_v47 = vshrl.u32 %v13523_v31, 16  ;;  %v428_v18 = vld [vmem:[#allocation2 + $0x90] sm:$0x7]  ;;  %10854 = vmatprep.subr.bf16.mxu0 %v11475_v37  ;;  %10876 = vmatprep.subr.bf16.mxu1 %v11476_v43  ;;  %v10122_v43 = vld [vmem:[%s12124_s14 + $0xa0] sm:$0x7] }
 0x1a7   : > { %2436 = vst [vmem:[#allocation2 + $0x74] sm:$0xc] %v2435_v55  ;;  %2432 = vst [vmem:[#allocation2 + $0x64] sm:$0xc] %v2431_v61  ;;  %3623 = vrot.lane.b32.xlu1 %v13461_v20, %s16303_s15  ;;  %3619 = vrot.lane.b32.xlu0 %v3594_v24, %s16303_s15  ;;  %v517_v55 = vshll.u32 %v13523_v31, 16  ;;  %v13562_v31 = vrot.slane %v523_v1, 5 }
 0x1a8   : > { %v397_v20 = vld [vmem:[%s12124_s14 + $0x90] sm:$0x7]  ;;  %v425_v24 = vld [vmem:[#allocation2 + $0x80] sm:$0x7] }
 0x1a9   : > { %v3316_v40 = vpop.permute.xlu1 %3315  ;;  %v3314_v57 = vpop.permute.xlu0 %3313  ;;  %v429_v49 = vsel %vm12251_vm2, %v397_v20, %v428_v18  ;;  %v396_v61 = vld [vmem:[%s12124_s14 + $0x80] sm:$0x7]  ;;  %10855 = vmatpush3.bf16.msra.mxu0 %v11477_v63  ;;  %v2103_v63 = vld [vmem:[#allocation2 + $0x94] sm:$0x7]  ;;  %v10121_v18 = vld [vmem:[%s12124_s14 + $0x90] sm:$0x7]  ;;  %10877 = vmatpush3.bf16.msra.mxu1 %v11478_v9 }
 0x1aa   : > { %v3349_v16 = vsel %vm12925_vm12, %v3316_v40, %v3348_v22  ;;  %v3346_v44 = vsel %vm12925_vm12, %v3314_v57, %v3345_v10  ;;  %430 = vst [vmem:[#allocation2 + $0x90] sm:$0x7] %v429_v49  ;;  %v426_v37 = vsel %vm12251_vm2, %v396_v61, %v425_v24  ;;  %v16342_v22 = vrot.slane %v13454_v19, 6  ;;  %v1275_v10 = vld [vmem:[#allocation2 + $0x50] sm:$0x7] }
 0x1ab   : > { %3350 = vst [vmem:[#allocation2 + $0x34] sm:$0x7] %v3349_v16  ;;  %3347 = vst [vmem:[#allocation2 + $0x24] sm:$0x7] %v3346_v44  ;;  %1553 = vrot.lane.b32.xlu1 %v16223_v35, %s16304_s29  ;;  %v1272_v1 = vld [vmem:[#allocation2 + $0x40] sm:$0x7]  ;;  %v2104_v20 = vsel %vm12251_vm2, %v10122_v43, %v2103_v63 }
 0x1ac   : > { %1549 = vrot.lane.b32.xlu0 %v16342_v22, %s16304_s29  ;;  %427 = vst [vmem:[#allocation2 + $0x80] sm:$0x7] %v426_v37  ;;  %v2100_v16 = vld [vmem:[#allocation2 + $0x84] sm:$0x7]  ;;  %2105 = vst [vmem:[#allocation2 + $0x94] sm:$0x7] %v2104_v20 }
 0x1ad   : > { %v1239_v44 = vpop.permute.xlu1 %1238  ;;  %v1237_v24 = vpop.permute.xlu0 %1236  ;;  %v2101_v40 = vsel %vm12251_vm2, %v10121_v18, %v2100_v16  ;;  %v528_v61 = vrot.slane %v526_v54, 6  ;;  %v516_v37 = vrot.slane %v514_v47, 5  ;;  %v10131_v22 = vld [vmem:[%s12124_s14 + $0x90] sm:$0x7]  ;;  %v16343_v9 = vrot.slane %v13457_v27, 6 }
 0x1ae   : > { %v1276_v57 = vsel %vm12654_vm15, %v1239_v44, %v1275_v10  ;;  %v1273_v49 = vsel %vm12654_vm15, %v1237_v24, %v1272_v1  ;;  %2102 = vst [vmem:[#allocation2 + $0x84] sm:$0x7] %v2101_v40  ;;  %v16344_v43 = vrot.slane %v13464_v28, 6  ;;  %v2933_v63 = vld [vmem:[#allocation2 + $0x54] sm:$0x7]  ;;  %v2198_v18 = vshrl.u32 %v10132_v48, 16 }
 0x1af   : > { %1277 = vst [vmem:[#allocation2 + $0x50] sm:$0x7] %v1276_v57  ;;  %1274 = vst [vmem:[#allocation2 + $0x40] sm:$0x7] %v1273_v49  ;;  %3208 = vrot.lane.b32.xlu1 %v16343_v9, %s16304_s29  ;;  %v2201_v10 = vshll.u32 %v10132_v48, 16  ;;  %v519_v20 = vrot.slane %v517_v55, 6 }
 0x1b0   : > { %3204 = vrot.lane.b32.xlu0 %v16344_v43, %s16304_s29  ;;  %v2930_v1 = vld [vmem:[#allocation2 + $0x44] sm:$0x7]  ;;  %v2189_v24 = vshrl.u32 %v10131_v22, 16  ;;  %v2192_v40 = vshll.u32 %v10131_v22, 16  ;;  %v16345_v57 = vrot.slane %v13467_v36, 6  ;;  %v16346_v55 = vrot.slane %v13476_v6, 6 }
 0x1b1   : > { %v2899_v16 = vpop.permute.xlu1 %2898  ;;  %v2897_v54 = vpop.permute.xlu0 %2896  ;;  %v2200_v48 = vrot.slane %v2198_v18, 5  ;;  %v2203_v49 = vrot.slane %v2201_v10, 6  ;;  %v852_v9 = vld [vmem:[#allocation2 + $0x70] sm:$0x7]  ;;  %v16348_v18 = vrot.slane %v13505_v30, 6 }
 0x1b2   : > { %v2934_v47 = vsel %vm12654_vm15, %v2899_v16, %v2933_v63  ;;  %v2931_v44 = vsel %vm12654_vm15, %v2897_v54, %v2930_v1  ;;  %v849_v16 = vld [vmem:[#allocation2 + $0x60] sm:$0x7]  ;;  %v2191_v54 = vrot.slane %v2189_v24, 5  ;;  %v1894_v10 = vld [vmem:[#allocation2 + $0x30] sm:$0xc] }
 0x1b3   : > { %2935 = vst [vmem:[#allocation2 + $0x54] sm:$0x7] %v2934_v47  ;;  %2932 = vst [vmem:[#allocation2 + $0x44] sm:$0x7] %v2931_v44  ;;  %1132 = vrot.lane.b32.xlu1 %v16345_v57, %s16310_s26  ;;  %v2194_v47 = vrot.slane %v2192_v40, 6  ;;  %v16347_v44 = vrot.slane %v13487_v0, 6 }
 0x1b4   : > { %1128 = vrot.lane.b32.xlu0 %v16346_v55, %s16310_s26  ;;  %v1890_v57 = vld [vmem:[#allocation2 + $0x20] sm:$0xc]  ;;  %v13611_v55 = vor.u32 %v528_v61, %v13562_v31  ;;  %v2518_v31 = vld [vmem:[#allocation2 + $0x74] sm:$0x7]  ;;  %v2515_v61 = vld [vmem:[#allocation2 + $0x64] sm:$0x7] }
 0x1b5   : > { %v814_v43 = vpop.permute.xlu1 %813  ;;  %v812_v63 = vpop.permute.xlu0 %811  ;;  %v16379_v0 = vld [vmem:[#allocation28_spill] sm:$0xff] }
 0x1b6   : > { %v853_v1 = vsel %vm12544_vm9, %v814_v43, %v852_v9  ;;  %v850_v22 = vsel %vm12544_vm9, %v812_v63, %v849_v16  ;;  %16349 = vst [vmem:[#allocation25_spill] sm:$0xff] %v13611_v55  ;;  %v13613_v9 = vor.u32 %v519_v20, %v516_v37  ;;  %v13623_v37 = vor.u32 %v2203_v49, %v2200_v48  ;;  %v10088_v48 = vld [vmem:[%s12124_s14 + $0x5c] sm:$0x7]  ;;  %v3541_v49 = vld [vmem:[#allocation2 + $0x34] sm:$0xc] }
 0x1b7   : > { %854 = vst [vmem:[#allocation2 + $0x70] sm:$0x7] %v853_v1  ;;  %851 = vst [vmem:[#allocation2 + $0x60] sm:$0x7] %v850_v22  ;;  %2795 = vrot.lane.b32.xlu1 %v16347_v44, %s16310_s26  ;;  %v13625_v20 = vor.u32 %v2194_v47, %v2191_v54  ;;  %v10087_v54 = vld [vmem:[%s12124_s14 + $0x4c] sm:$0x7] }
 0x1b8   : > { %2791 = vrot.lane.b32.xlu0 %v16348_v18, %s16310_s26  ;;  %16350 = vst [vmem:[#allocation26_spill] sm:$0xff] %v13613_v9  ;;  %16351 = vst [vmem:[#allocation33_spill] sm:$0xff] %v13623_v37  ;;  %v3537_v18 = vld [vmem:[#allocation2 + $0x24] sm:$0xc] }
 0x1b9   : > { %v1832_v43 = vpop.permute.xlu1 %1831  ;;  %v1828_v24 = vpop.permute.xlu0 %1827  ;;  %16352 = vst [vmem:[#allocation34_spill] sm:$0xff] %v13625_v20 }
 0x1ba   : > { %v1895_v40 = vsel %vm13053_vm14, %v1832_v43, %v1894_v10  ;;  %v1891_v63 = vsel %vm13053_vm14, %v1828_v24, %v1890_v57  ;;  %v10208_v24 = vld [vmem:[%s12124_s14 + $0x6c] sm:$0x7] }
 0x1bb   : > { %1896 = vst [vmem:[#allocation2 + $0x30] sm:$0xc] %v1895_v40  ;;  %1892 = vst [vmem:[#allocation2 + $0x20] sm:$0xc] %v1891_v63  ;;  %567 = vrot.lane.b32.xlu1 %v13611_v55, %s16303_s15  ;;  %v10207_v40 = vld [vmem:[%s12124_s14 + $0x5c] sm:$0x7] }
 0x1bc   : > { %563 = vrot.lane.b32.xlu0 %v13613_v9, %s16303_s15 }
 0x1bd   : > { %v2482_v16 = vpop.permute.xlu1 %2481  ;;  %v2480_v1 = vpop.permute.xlu0 %2479 }
 0x1be   : > { %v2519_v22 = vsel %vm12544_vm9, %v2482_v16, %v2518_v31  ;;  %v2516_v44 = vsel %vm12544_vm9, %v2480_v1, %v2515_v61  ;;  %v13646_v61 = vld [vmem:[%s12124_s14 + $0x90] sm:$0x7]  ;;  %v13649_v16 = vld [vmem:[%s12124_s14 + $0x80] sm:$0x7] }
 0x1bf   : > { %2520 = vst [vmem:[#allocation2 + $0x74] sm:$0x7] %v2519_v22  ;;  %2517 = vst [vmem:[#allocation2 + $0x64] sm:$0x7] %v2516_v44  ;;  %2242 = vrot.lane.b32.xlu1 %v13623_v37, %s16303_s15  ;;  %v13652_v1 = vld [vmem:[%s12124_s14 + $0xa0] sm:$0x7] }
 0x1c0   : > { %2238 = vrot.lane.b32.xlu0 %v13625_v20, %s16303_s15  ;;  %16353 = vst [vmem:[#allocation35_spill] sm:$0xff] %v13646_v61  ;;  %16354 = vst [vmem:[#allocation36_spill] sm:$0xff] %v13649_v16  ;;  %v10060_v22 = vld [vmem:[%s12124_s14 + $0x78] sm:$0x7]  ;;  %v10059_v44 = vld [vmem:[%s12124_s14 + $0x68] sm:$0x7] }
 0x1c1   : > { %v3482_v47 = vpop.permute.xlu1 %3481  ;;  %v3478_v10 = vpop.permute.xlu0 %3477  ;;  %16355 = vst [vmem:[#allocation37_spill] sm:$0xff] %v13652_v1 }
 0x1c2   : > { %v3542_v57 = vsel %vm13053_vm14, %v3482_v47, %v3541_v49  ;;  %v3538_v43 = vsel %vm13053_vm14, %v3478_v10, %v3537_v18  ;;  %v10098_v49 = vld [vmem:[%s12124_s14 + $0x5c] sm:$0x7]  ;;  %v10180_v10 = vld [vmem:[%s12124_s14 + $0x88] sm:$0x7] }
 0x1c3   : > { %3543 = vst [vmem:[#allocation2 + $0x34] sm:$0xc] %v3542_v57  ;;  %3539 = vst [vmem:[#allocation2 + $0x24] sm:$0xc] %v3538_v43  ;;  %1667 = vrot.lane.b32.xlu1 %v10088_v48, %s16313_s16  ;;  %v13659_v48 = vld [vmem:[%s12124_s14 + $0x90] sm:$0x7] }
 0x1c4   : > { %1665 = vrot.lane.b32.xlu0 %v10087_v54, %s16313_s16  ;;  %16358 = vst [vmem:[#allocation38_spill] sm:$0xff] %v13659_v48  ;;  %v10097_v54 = vld [vmem:[%s12124_s14 + $0x4c] sm:$0x7]  ;;  %v10217_v43 = vld [vmem:[%s12124_s14 + $0x5c] sm:$0x7] }
 0x1c5   : > { %v546_v63 = vpop.permute.xlu1 %545  ;;  %v542_v31 = vpop.permute.xlu0 %541  ;;  %v1766_v35 = vshrl.u32 %v10097_v54, 16 }
 0x1c6   : > { %610 = vst.msk [vmem:[#allocation2 + $0x38] sm:$0x1] %vm16356_vm0, %v546_v63  ;;  %v10218_v63 = vld [vmem:[%s12124_s14 + $0x6c] sm:$0x7] }
 0x1c7   : > { %606 = vst.msk [vmem:[#allocation2 + $0x28] sm:$0x1] %vm16357_vm4, %v542_v31  ;;  %3319 = vrot.lane.b32.xlu1 %v10208_v24, %s16313_s16  ;;  %v10179_v24 = vld [vmem:[%s12124_s14 + $0x78] sm:$0x7]  ;;  %v3425_v9 = vshrl.u32 %v10218_v63, 16 }
 0x1c8   : > { %3317 = vrot.lane.b32.xlu0 %v10207_v40, %s16313_s16  ;;  %v1775_v40 = vshrl.u32 %v10098_v49, 16 }
 0x1c9   : > { %v2221_v47 = vpop.permute.xlu1 %2220  ;;  %v2217_v18 = vpop.permute.xlu0 %2216 }
 0x1ca   : > { %2281 = vst.msk [vmem:[#allocation2 + $0x3c] sm:$0x1] %vm16359_vm6, %v2221_v47  ;;  %v1778_v47 = vshll.u32 %v10098_v49, 16  ;;  %vm16361_vm6 = vcmask 254080   ;;  %v1777_v31 = vrot.slane %v1775_v40, 5  ;;  %v1768_v49 = vrot.slane %v1766_v35, 5 }
 0x1cb   : > { %2277 = vst.msk [vmem:[#allocation2 + $0x2c] sm:$0x1] %vm16360_vm1, %v2217_v18  ;;  %1242 = vrot.lane.b32.xlu1 %v10060_v22, %s16314_s22  ;;  %v1769_v18 = vshll.u32 %v10097_v54, 16  ;;  %vm16362_vm1 = vmmov %vm16361_vm6  ;;  %v3419_v40 = vshll.u32 %v10217_v43, 16 }
 0x1cc   : > { %1240 = vrot.lane.b32.xlu0 %v10059_v44, %s16314_s22  ;;  %v1780_v22 = vrot.slane %v1778_v47, 6  ;;  %vm16363_vm4 = vmmov %vm16362_vm1 }
 0x1cd   : > { %v690_v20 = vpop.permute.xlu1 %689  ;;  %v686_v37 = vpop.permute.xlu0 %685  ;;  %vm16364_vm0 = vmmov %vm16362_vm1  ;;  %v1771_v54 = vrot.slane %v1769_v18, 6  ;;  %v16370_v18 = vrot.slane %v13659_v48, 6 }
 0x1ce   : > { %753 = vst.msk [vmem:[#allocation2 + $0x38] sm:$0x1] %vm16361_vm6, %v690_v20  ;;  %v3428_v20 = vshll.u32 %v10218_v63, 16  ;;  %vm16367_vm6 = vcmask 385280   ;;  %v13691_v35 = vor.u32 %v1780_v22, %v1777_v31  ;;  %v16369_v63 = vrot.slane %v13652_v1, 6  ;;  %v16377_v1 = vld [vmem:[#allocation27_spill] sm:$0xff] }
 0x1cf   : > { %749 = vst.msk [vmem:[#allocation2 + $0x28] sm:$0x1] %vm16362_vm1, %v686_v37  ;;  %2902 = vrot.lane.b32.xlu1 %v10180_v10, %s16314_s22  ;;  %v16365_v37 = vrot.slane %v13646_v61, 6  ;;  %v16366_v10 = vrot.slane %v13649_v16, 6  ;;  %vm16368_vm1 = vmmov %vm16367_vm6 }
 0x1d0   : > { %2900 = vrot.lane.b32.xlu0 %v10179_v24, %s16314_s22  ;;  %v3416_v24 = vshrl.u32 %v10217_v43, 16  ;;  %v3427_v43 = vrot.slane %v3425_v9, 5 }
 0x1d1   : > { %v2361_v44 = vpop.permute.xlu1 %2360  ;;  %v2357_v57 = vpop.permute.xlu0 %2356 }
 0x1d2   : > { %2421 = vst.msk [vmem:[#allocation2 + $0x3c] sm:$0x1] %vm16363_vm4, %v2361_v44  ;;  %v3430_v44 = vrot.slane %v3428_v20, 6  ;;  %v16371_v20 = vld [vmem:[#allocation19_spill] sm:$0xff]  ;;  %vm16373_vm4 = vmmov %vm16368_vm1 }
 0x1d3   : > { %2417 = vst.msk [vmem:[#allocation2 + $0x2c] sm:$0x1] %vm16364_vm0, %v2357_v57  ;;  %711 = vrot.lane.b32.xlu1 %v16365_v37, %s16305_s0  ;;  %v13693_v57 = vor.u32 %v1771_v54, %v1768_v49  ;;  %v3418_v37 = vrot.slane %v3416_v24, 5  ;;  %v10070_v49 = vld [vmem:[%s12124_s14 + $0x78] sm:$0x7]  ;;  %v494_v24 = vrot.slane %v16371_v20, 4  ;;  %vm16374_vm0 = vmmov %vm16368_vm1 }
 0x1d4   : > { %707 = vrot.lane.b32.xlu0 %v16366_v10, %s16305_s0  ;;  %v3421_v10 = vrot.slane %v3419_v40, 6  ;;  %v13710_v9 = vor.u32 %v3430_v44, %v3427_v43  ;;  %v3128_v43 = vld [vmem:[#allocation2 + $0x54] sm:$0xc]  ;;  %v3124_v44 = vld [vmem:[#allocation2 + $0x44] sm:$0xc] }
 0x1d5   : > { %v976_v47 = vpop.permute.xlu1 %975  ;;  %v972_v55 = vpop.permute.xlu0 %971  ;;  %v16376_v20 = vld [vmem:[#allocation23_spill] sm:$0xff] }
 0x1d6   : > { %1039 = vst.msk [vmem:[#allocation2 + $0x38] sm:$0x1] %vm16367_vm6, %v976_v47  ;;  %v1473_v47 = vld [vmem:[#allocation2 + $0x50] sm:$0xc]  ;;  %v13712_v54 = vor.u32 %v3421_v10, %v3418_v37  ;;  %vm16381_vm6 = vcmask 516480  }
 0x1d7   : > { %1035 = vst.msk [vmem:[#allocation2 + $0x28] sm:$0x1] %vm16368_vm1, %v972_v55  ;;  %2382 = vrot.lane.b32.xlu1 %v16369_v63, %s16305_s0  ;;  %v1469_v55 = vld [vmem:[#allocation2 + $0x40] sm:$0xc]  ;;  %vm16382_vm1 = vmmov %vm16381_vm6 }
 0x1d8   : > { %2378 = vrot.lane.b32.xlu0 %v16370_v18, %s16305_s0  ;;  %v1364_v18 = vshrl.u32 %v10070_v49, 16 }
 0x1d9   : > { %v1411_v16 = vpop.permute.xlu1 %1410  ;;  %v1407_v61 = vpop.permute.xlu0 %1406 }
 0x1da   : > { %v1474_v31 = vsel %vm12699_vm3, %v1411_v16, %v1473_v47  ;;  %v1470_v22 = vsel %vm12699_vm3, %v1407_v61, %v1469_v55  ;;  %v16372_v16 = vld [vmem:[#allocation20_spill] sm:$0xff]  ;;  %v1367_v47 = vshll.u32 %v10070_v49, 16  ;;  %v10069_v55 = vld [vmem:[%s12124_s14 + $0x68] sm:$0x7] }
 0x1db   : > { %1475 = vst [vmem:[#allocation2 + $0x50] sm:$0xc] %v1474_v31  ;;  %1471 = vst [vmem:[#allocation2 + $0x40] sm:$0xc] %v1470_v22  ;;  %1839 = vrot.lane.b32.xlu1 %v13691_v35, %s16304_s29  ;;  %v485_v40 = vrot.slane %v16372_v16, 4  ;;  %v16375_v31 = vld [vmem:[#allocation22_spill] sm:$0xff] }
 0x1dc   : > { %1835 = vrot.lane.b32.xlu0 %v13693_v57, %s16304_s29  ;;  %v2169_v22 = vrot.slane %v16375_v31, 4  ;;  %v2160_v16 = vrot.slane %v16376_v20, 4  ;;  %v1358_v48 = vshll.u32 %v10069_v55, 16  ;;  %v16378_v31 = vrot.slane %v16377_v1, 6 }
 0x1dd   : > { %v2642_v63 = vpop.permute.xlu1 %2641  ;;  %v2638_v61 = vpop.permute.xlu0 %2637  ;;  %v16380_v20 = vrot.slane %v16379_v0, 6  ;;  %v1369_v2 = vrot.slane %v1367_v47, 6 }
 0x1de   : > { %2702 = vst.msk [vmem:[#allocation2 + $0x3c] sm:$0x1] %vm16373_vm4, %v2642_v63  ;;  %v666_v30 = vrot.slane %v16378_v31, 4  ;;  %v1360_v1 = vrot.slane %v1358_v48, 6  ;;  %vm16383_vm4 = vmmov %vm16382_vm1 }
 0x1df   : > { %2698 = vst.msk [vmem:[#allocation2 + $0x2c] sm:$0x1] %vm16374_vm0, %v2638_v61  ;;  %3489 = vrot.lane.b32.xlu1 %v13710_v9, %s16304_s29  ;;  %v1355_v61 = vshrl.u32 %v10069_v55, 16  ;;  %v664_v6 = vrot.slane %v16380_v20, 4  ;;  %vm16384_vm0 = vmmov %vm16382_vm1 }
 0x1e0   : > { %3485 = vrot.lane.b32.xlu0 %v13712_v54, %s16304_s29 }
 0x1e1   : > { %v3069_v37 = vpop.permute.xlu1 %3068  ;;  %v3065_v10 = vpop.permute.xlu0 %3064 }
 0x1e2   : > { %v3129_v63 = vsel %vm12699_vm3, %v3069_v37, %v3128_v43  ;;  %v3125_v49 = vsel %vm12699_vm3, %v3065_v10, %v3124_v44  ;;  %v1366_v37 = vrot.slane %v1364_v18, 5  ;;  %v10190_v44 = vld [vmem:[%s12124_s14 + $0x88] sm:$0x7] }
 0x1e3   : > { %3130 = vst [vmem:[#allocation2 + $0x54] sm:$0xc] %v3129_v63  ;;  %3126 = vst [vmem:[#allocation2 + $0x44] sm:$0xc] %v3125_v49  ;;  %553 = vrot.lane.b32.xlu1 %v494_v24, %s16303_s15  ;;  %v10189_v24 = vld [vmem:[%s12124_s14 + $0x78] sm:$0x7] }
 0x1e4   : > { %549 = vrot.lane.b32.xlu0 %v485_v40, %s16303_s15  ;;  %v1357_v40 = vrot.slane %v1355_v61, 5  ;;  %v3022_v0 = vshrl.u32 %v10190_v44, 16  ;;  %v3025_v18 = vshll.u32 %v10190_v44, 16  ;;  %v16385_v63 = vld [vmem:[#allocation29_spill] sm:$0xff]  ;;  %v16387_v61 = vld [vmem:[#allocation30_spill] sm:$0xff] }
 0x1e5   : > { %v1119_v36 = vpop.permute.xlu1 %1118  ;;  %v1115_v43 = vpop.permute.xlu0 %1114  ;;  %v16386_v48 = vrot.slane %v16385_v63, 6  ;;  %v16388_v31 = vrot.slane %v16387_v61, 6  ;;  %v915_v63 = vrot.slane %v12894_v14, 4  ;;  %v1052_v61 = vld [vmem:[#allocation2 + $0x70] sm:$0xc] }
 0x1e6   : > { %1182 = vst.msk [vmem:[#allocation2 + $0x38] sm:$0x1] %vm16381_vm6, %v1119_v36  ;;  %v13745_v36 = vor.u32 %v1369_v2, %v1366_v37  ;;  %v13747_v47 = vor.u32 %v1360_v1, %v1357_v40  ;;  %vm16389_vm6 = vcmask 647680   ;;  %v10152_v14 = vld [vmem:[%s12124_s14 + $0xa4] sm:$0x7] }
 0x1e7   : > { %1178 = vst.msk [vmem:[#allocation2 + $0x28] sm:$0x1] %vm16382_vm1, %v1115_v43  ;;  %2228 = vrot.lane.b32.xlu1 %v2169_v22, %s16303_s15  ;;  %v3013_v22 = vshrl.u32 %v10189_v24, 16  ;;  %v2337_v49 = vrot.slane %v16386_v48, 4  ;;  %v2335_v20 = vrot.slane %v16388_v31, 4  ;;  %vm16390_vm1 = vmmov %vm16389_vm6 }
 0x1e8   : > { %2224 = vrot.lane.b32.xlu0 %v2160_v16, %s16303_s15  ;;  %v3016_v16 = vshll.u32 %v10189_v24, 16  ;;  %v1048_v31 = vld [vmem:[#allocation2 + $0x60] sm:$0xc] }
 0x1e9   : > { %v2782_v55 = vpop.permute.xlu1 %2781  ;;  %v2778_v10 = vpop.permute.xlu0 %2777  ;;  %v3015_v2 = vrot.slane %v3013_v22, 5  ;;  %v10031_v22 = vld [vmem:[%s12124_s14 + $0x84] sm:$0x7] }
 0x1ea   : > { %2842 = vst.msk [vmem:[#allocation2 + $0x3c] sm:$0x1] %vm16383_vm4, %v2782_v55  ;;  %v3018_v37 = vrot.slane %v3016_v16, 6  ;;  %vm16391_vm4 = vmmov %vm16390_vm1  ;;  %v924_v16 = vrot.slane %v12872_v60, 4 }
 0x1eb   : > { %2838 = vst.msk [vmem:[#allocation2 + $0x2c] sm:$0x1] %vm16384_vm0, %v2778_v10  ;;  %697 = vrot.lane.b32.xlu1 %v666_v30, %s16305_s0  ;;  %v3024_v30 = vrot.slane %v3022_v0, 5  ;;  %vm16392_vm0 = vmmov %vm16390_vm1 }
 0x1ec   : > { %693 = vrot.lane.b32.xlu0 %v664_v6, %s16305_s0  ;;  %v3027_v6 = vrot.slane %v3025_v18, 6  ;;  %v13765_v1 = vor.u32 %v3018_v37, %v3015_v2  ;;  %v10032_v18 = vld [vmem:[%s12124_s14 + $0x94] sm:$0x7]  ;;  %v2581_v2 = vrot.slane %v12965_v4, 4  ;;  %v16399_v4 = vrot.slane %v13032_v51, 6 }
 0x1ed   : > { %v1405_v43 = vpop.permute.xlu1 %1404  ;;  %v1401_v55 = vpop.permute.xlu0 %1400 }
 0x1ee   : > { %1468 = vst.msk [vmem:[#allocation2 + $0x38] sm:$0x1] %vm16389_vm6, %v1405_v43  ;;  %v13763_v40 = vor.u32 %v3027_v6, %v3024_v30  ;;  %vm16393_vm6 = vcmask 778880   ;;  %v10151_v30 = vld [vmem:[%s12124_s14 + $0x94] sm:$0x7]  ;;  %v2590_v6 = vrot.slane %v12963_v25, 4 }
 0x1ef   : > { %1464 = vst.msk [vmem:[#allocation2 + $0x28] sm:$0x1] %vm16390_vm1, %v1401_v55  ;;  %1418 = vrot.lane.b32.xlu1 %v13745_v36, %s16310_s26  ;;  %vm16394_vm1 = vmmov %vm16393_vm6 }
 0x1f0   : > { %1414 = vrot.lane.b32.xlu0 %v13747_v47, %s16310_s26 }
 0x1f1   : > { %v3063_v44 = vpop.permute.xlu1 %3062  ;;  %v3059_v24 = vpop.permute.xlu0 %3058 }
 0x1f2   : > { %3123 = vst.msk [vmem:[#allocation2 + $0x3c] sm:$0x1] %vm16391_vm4, %v3063_v44  ;;  %vm16395_vm4 = vmmov %vm16394_vm1 }
 0x1f3   : > { %3119 = vst.msk [vmem:[#allocation2 + $0x2c] sm:$0x1] %vm16392_vm0, %v3059_v24  ;;  %2368 = vrot.lane.b32.xlu1 %v2337_v49, %s16305_s0  ;;  %vm16396_vm0 = vmmov %vm16394_vm1  ;;  %v2037_v24 = vld [vmem:[#allocation2 + $0x30] sm:$0xc] }
 0x1f4   : > { %2364 = vrot.lane.b32.xlu0 %v2335_v20, %s16305_s0 }
 0x1f5   : > { %v1548_v10 = vpop.permute.xlu1 %1547  ;;  %v1544_v0 = vpop.permute.xlu0 %1543 }
 0x1f6   : > { %1611 = vst.msk [vmem:[#allocation2 + $0x38] sm:$0x1] %vm16393_vm6, %v1548_v10  ;;  %vm16397_vm6 = vcmask 910080   ;;  %v2033_v10 = vld [vmem:[#allocation2 + $0x20] sm:$0xc] }
 0x1f7   : > { %1607 = vst.msk [vmem:[#allocation2 + $0x28] sm:$0x1] %vm16394_vm1, %v1544_v0  ;;  %3076 = vrot.lane.b32.xlu1 %v13763_v40, %s16310_s26  ;;  %vm16398_vm1 = vmmov %vm16397_vm6 }
 0x1f8   : > { %3072 = vrot.lane.b32.xlu0 %v13765_v1, %s16310_s26 }
 0x1f9   : > { %v3203_v48 = vpop.permute.xlu1 %3202  ;;  %v3199_v49 = vpop.permute.xlu0 %3198 }
 0x1fa   : > { %3263 = vst.msk [vmem:[#allocation2 + $0x3c] sm:$0x1] %vm16395_vm4, %v3203_v48  ;;  %vm16403_vm4 = vmmov %vm16398_vm1 }
 0x1fb   : > { %3259 = vst.msk [vmem:[#allocation2 + $0x2c] sm:$0x1] %vm16396_vm0, %v3199_v49  ;;  %817 = vrot.lane.b32.xlu1 %v10032_v18, %s16315_s24  ;;  %v2715_v49 = vld [vmem:[#allocation2 + $0x74] sm:$0xc]  ;;  %vm16404_vm0 = vmmov %vm16398_vm1 }
 0x1fc   : > { %815 = vrot.lane.b32.xlu0 %v10031_v22, %s16315_s24 }
 0x1fd   : > { %v990_v20 = vpop.permute.xlu1 %989  ;;  %v986_v43 = vpop.permute.xlu0 %985 }
 0x1fe   : > { %v1053_v55 = vsel %vm12575_vm11, %v990_v20, %v1052_v61  ;;  %v1049_v60 = vsel %vm12575_vm11, %v986_v43, %v1048_v31  ;;  %v2711_v61 = vld [vmem:[#allocation2 + $0x64] sm:$0xc] }
 0x1ff   : > { %1054 = vst [vmem:[#allocation2 + $0x70] sm:$0xc] %v1053_v55  ;;  %1050 = vst [vmem:[#allocation2 + $0x60] sm:$0xc] %v1049_v60  ;;  %983 = vrot.lane.b32.xlu1 %v924_v16, %s16305_s0  ;;  %v1095_v16 = vrot.slane %v16399_v4, 4  ;;  %v16402_v60 = vrot.slane %v13067_v34, 6 }
 0x200   : > { %979 = vrot.lane.b32.xlu0 %v915_v63, %s16305_s0  ;;  %v16400_v63 = vrot.slane %v13045_v23, 6  ;;  %v16401_v23 = vrot.slane %v13060_v15, 6  ;;  %v1344_v15 = vrot.slane %v13242_v39, 4 }
 0x201   : > { %v1834_v37 = vpop.permute.xlu1 %1833  ;;  %v1830_v44 = vpop.permute.xlu0 %1829 }
 0x202   : > { %1897 = vst.msk [vmem:[#allocation2 + $0x38] sm:$0x1] %vm16397_vm6, %v1834_v37  ;;  %v1093_v48 = vrot.slane %v16400_v63, 4  ;;  %v2758_v55 = vrot.slane %v16401_v23, 4  ;;  %v3677_v37 = vld [vmem:[#allocation2 + $0x24] sm:$0xc] }
 0x203   : > { %1893 = vst.msk [vmem:[#allocation2 + $0x28] sm:$0x1] %vm16398_vm1, %v1830_v44  ;;  %2485 = vrot.lane.b32.xlu1 %v10152_v14, %s16315_s24  ;;  %v2756_v14 = vrot.slane %v16402_v60, 4  ;;  %v1353_v44 = vrot.slane %v13240_v41, 4  ;;  %v3002_v41 = vrot.slane %v13264_v11, 4  ;;  %vm16405_vm6 = vcmask 1041280  }
 0x204   : > { %2483 = vrot.lane.b32.xlu0 %v10151_v30, %s16315_s24  ;;  %vm16406_vm1 = vmmov %vm16405_vm6  ;;  %v11486_v11 = vld [vmem:[%s16136_s1 + $0x40] sm:$0xff]   ;;  %v13855_v23 = vld [vmem:[%s12124_s14 + $0x4c] sm:$0x7] }
 0x205   : > { %v1975_v0 = vpop.permute.xlu1 %1974  ;;  %v1971_v18 = vpop.permute.xlu0 %1970  ;;  %10906 = vmatprep.subr.bf16.mxu1 %v11486_v11 }
 0x206   : > { %v2038_v22 = vsel %vm13246_vm10, %v1975_v0, %v2037_v24  ;;  %v2034_v25 = vsel %vm13246_vm10, %v1971_v18, %v2033_v10  ;;  %v3011_v18 = vrot.slane %v13262_v29, 4  ;;  %v11485_v29 = vld [vmem:[%s16136_s1 + $0x40] sm:$0xff]  }
 0x207   : > { %2039 = vst [vmem:[#allocation2 + $0x30] sm:$0xc] %v2038_v22  ;;  %2035 = vst [vmem:[#allocation2 + $0x20] sm:$0xc] %v2034_v25  ;;  %2649 = vrot.lane.b32.xlu1 %v2590_v6, %s16305_s0  ;;  %v16407_v25 = vrot.slane %v13446_v5, 6  ;;  %10884 = vmatprep.subr.bf16.mxu0 %v11485_v29  ;;  %v16411_v5 = vrot.slane %v13457_v27, 6 }
 0x208   : > { %2645 = vrot.lane.b32.xlu0 %v2581_v2, %s16305_s0  ;;  %v3681_v2 = vld [vmem:[#allocation2 + $0x34] sm:$0xc]  ;;  %v1782_v27 = vrot.slane %v13691_v35, 4  ;;  %v11487_v35 = vld [vmem:[%s16136_s1] sm:$0xff]   ;;  %v11490_v29 = vld [vmem:[%s16136_s1 + $0x48] sm:$0xff]  }
 0x209   : > { %v2656_v31 = vpop.permute.xlu1 %2655  ;;  %v2652_v20 = vpop.permute.xlu0 %2651  ;;  %v1524_v4 = vrot.slane %v16407_v25, 4  ;;  %v11489_v25 = vld [vmem:[%s16136_s1 + $0x48] sm:$0xff]  }
 0x20a   : > { %v2716_v43 = vsel %vm12575_vm11, %v2656_v31, %v2715_v49  ;;  %v2712_v51 = vsel %vm12575_vm11, %v2652_v20, %v2711_v61  ;;  %v16412_v61 = vrot.slane %v13464_v28, 6  ;;  %v13852_v20 = vld [vmem:[%s12124_s14 + $0x5c] sm:$0x7]  ;;  %v1773_v28 = vrot.slane %v13693_v57, 4 }
 0x20b   : > { %2717 = vst [vmem:[#allocation2 + $0x74] sm:$0xc] %v2716_v43  ;;  %2713 = vst [vmem:[#allocation2 + $0x64] sm:$0xc] %v2712_v51  ;;  %1126 = vrot.lane.b32.xlu1 %v1095_v16, %s16310_s26  ;;  %v16408_v16 = vrot.slane %v13454_v19, 6  ;;  %v3179_v19 = vrot.slane %v16411_v5, 4 }
 0x20c   : > { %1122 = vrot.lane.b32.xlu0 %v1093_v48, %s16310_s26  ;;  %v3177_v31 = vrot.slane %v16412_v61, 4  ;;  %v1616_v43 = vld [vmem:[#allocation2 + $0x50] sm:$0xc]  ;;  %v1612_v51 = vld [vmem:[#allocation2 + $0x40] sm:$0xc]  ;;  %v3432_v5 = vrot.slane %v13710_v9, 4 }
 0x20d   : > { %v3484_v30 = vpop.permute.xlu1 %3483  ;;  %v3480_v6 = vpop.permute.xlu0 %3479  ;;  %v1522_v63 = vrot.slane %v16408_v16, 4  ;;  %v10228_v61 = vld [vmem:[%s12124_s14 + $0x6c] sm:$0x7]  ;;  %v11494_v9 = vld [vmem:[%s16136_s1 + $0x50] sm:$0xff]  }
 0x20e   : > { %3544 = vst.msk [vmem:[#allocation2 + $0x3c] sm:$0x1] %vm16403_vm4, %v3484_v30  ;;  %vm16409_vm4 = vmmov %vm16406_vm1 }
 0x20f   : > { %3540 = vst.msk [vmem:[#allocation2 + $0x2c] sm:$0x1] %vm16404_vm0, %v3480_v6  ;;  %2789 = vrot.lane.b32.xlu1 %v2758_v55, %s16310_s26  ;;  %vm16410_vm0 = vmmov %vm16406_vm1  ;;  %v3268_v6 = vld [vmem:[#allocation2 + $0x54] sm:$0xc] }
 0x210   : > { %2785 = vrot.lane.b32.xlu0 %v2756_v14, %s16310_s26 }
 0x211   : > { %v3622_v24 = vpop.permute.xlu1 %3621  ;;  %v3618_v10 = vpop.permute.xlu0 %3617 }
 0x212   : > { %v3682_v34 = vsel %vm13246_vm10, %v3622_v24, %v3681_v2  ;;  %v3678_v0 = vsel %vm13246_vm10, %v3618_v10, %v3677_v37  ;;  %v3264_v2 = vld [vmem:[#allocation2 + $0x44] sm:$0xc]  ;;  %v1952_v37 = vrot.slane %v13852_v20, 6  ;;  %v1950_v10 = vrot.slane %v13855_v23, 6  ;;  %v11499_v20 = vld [vmem:[%s16136_s1 + $0x18] sm:$0xff]  }
 0x213   : > { %3683 = vst [vmem:[#allocation2 + $0x34] sm:$0xc] %v3682_v34  ;;  %3679 = vst [vmem:[#allocation2 + $0x24] sm:$0xc] %v3678_v0  ;;  %1412 = vrot.lane.b32.xlu1 %v1353_v44, %s16310_s26 }
 0x214   : > { %1408 = vrot.lane.b32.xlu0 %v1344_v15, %s16310_s26 }
 0x215   : > { %v1977_v22 = vpop.permute.xlu1 %1976  ;;  %v1973_v39 = vpop.permute.xlu0 %1972 }
 0x216   : > { %2040 = vst.msk [vmem:[#allocation2 + $0x38] sm:$0x1] %vm16405_vm6, %v1977_v22  ;;  %v1195_v22 = vld [vmem:[#allocation2 + $0x70] sm:$0xc] }
 0x217   : > { %2036 = vst.msk [vmem:[#allocation2 + $0x28] sm:$0x1] %vm16406_vm1, %v1973_v39  ;;  %3070 = vrot.lane.b32.xlu1 %v3011_v18, %s16310_s26  ;;  %v11488_v39 = vld [vmem:[%s16136_s1] sm:$0xff]  }
 0x218   : > { %3066 = vrot.lane.b32.xlu0 %v3002_v41, %s16310_s26 }
 0x219   : > { %v3624_v48 = vpop.permute.xlu1 %3623  ;;  %v3620_v49 = vpop.permute.xlu0 %3619 }
 0x21a   : > { %3684 = vst.msk [vmem:[#allocation2 + $0x3c] sm:$0x1] %vm16409_vm4, %v3624_v48  ;;  %vm16417_vm4 = vcmask 254080  }
 0x21b   : > { %3680 = vst.msk [vmem:[#allocation2 + $0x2c] sm:$0x1] %vm16410_vm0, %v3620_v49  ;;  %1555 = vrot.lane.b32.xlu1 %v1524_v4, %s16304_s29  ;;  %v11491_v49 = vld [vmem:[%s16136_s1 + $0x8] sm:$0xff]   ;;  %vm16418_vm0 = vmmov %vm16417_vm4 }
 0x21c   : > { %1551 = vrot.lane.b32.xlu0 %v1522_v63, %s16304_s29  ;;  %v1191_v63 = vld [vmem:[#allocation2 + $0x60] sm:$0xc] }
 0x21d   : > { %v1554_v55 = vpop.permute.xlu1 %1553  ;;  %v11482_v57 = vld [vmem:[#allocation2 + $0x30] ss:$8 sps:$4 sm:$0x1f]  }
 0x21e   : > { %v1550_v60 = vpop.permute.xlu0 %1549  ;;  %v1617_v14 = vsel %vm12740_vm8, %v1554_v55, %v1616_v43  ;;  %v11479_v24 = vld [vmem:[#allocation2 + $0x20] ss:$8 sps:$4 sm:$0x1f]   ;;  %v2855_v55 = vld [vmem:[#allocation2 + $0x74] sm:$0xc] }
 0x21f   : > { %v1613_v30 = vsel %vm12740_vm8, %v1550_v60, %v1612_v51  ;;  %1618 = vst [vmem:[#allocation2 + $0x50] sm:$0xc] %v1617_v14  ;;  %3210 = vrot.lane.b32.xlu1 %v3179_v19, %s16304_s29  ;;  %v3423_v19 = vrot.slane %v13712_v54, 4  ;;  %v11492_v43 = vld [vmem:[%s16136_s1 + $0x8] sm:$0xff]   ;;  %v11493_v51 = vld [vmem:[%s16136_s1 + $0x50] sm:$0xff]  }
 0x220   : > { %1614 = vst [vmem:[#allocation2 + $0x40] sm:$0xc] %v1613_v30  ;;  %3206 = vrot.lane.b32.xlu0 %v3177_v31, %s16304_s29  ;;  %v10227_v31 = vld [vmem:[%s12124_s14 + $0x5c] sm:$0x7]  ;;  %v2851_v14 = vld [vmem:[#allocation2 + $0x64] sm:$0xc] }
 0x221   : > { %v3209_v44 = vpop.permute.xlu1 %3208  ;;  %v11484_v41 = vld [vmem:[#allocation2 + $0x34] ss:$8 sps:$4 sm:$0x1f]  }
 0x222   : > { %v3205_v15 = vpop.permute.xlu0 %3204  ;;  %v3269_v34 = vsel %vm12740_vm8, %v3209_v44, %v3268_v6  ;;  %v11481_v18 = vld [vmem:[#allocation2 + $0x24] ss:$8 sps:$4 sm:$0x1f]   ;;  %4543 = vmatprep.mubr.bf16.mxu1 %v11484_v41  ;;  %v631_v6 = vld [vmem:[#allocation2 + $0x90] sm:$0xc]  ;;  %v3599_v44 = vrot.slane %v10228_v61, 6 }
 0x223   : > { %v3265_v0 = vsel %vm12740_vm8, %v3205_v15, %v3264_v2  ;;  %3270 = vst [vmem:[#allocation2 + $0x54] sm:$0xc] %v3269_v34  ;;  %1841 = vrot.lane.b32.xlu1 %v1782_v27, %s16304_s29  ;;  %4325 = vmatprep.mubr.bf16.mxu0 %v11481_v18  ;;  %v627_v2 = vld [vmem:[#allocation2 + $0x80] sm:$0xc]  ;;  %v3597_v15 = vrot.slane %v10227_v31, 6  ;;  %v11497_v18 = vld [vmem:[%s16136_s1 + $0x58] sm:$0xff]  }
 0x224   : > { %3266 = vst [vmem:[#allocation2 + $0x44] sm:$0xc] %v3265_v0  ;;  %1837 = vrot.lane.b32.xlu0 %v1773_v28, %s16304_s29  ;;  %4326 = vmatmul.mubr.bf16.vlgmr.msra.gmra.mrb[4].mxu0 %v11479_v24  ;;  %v11495_v28 = vld [vmem:[%s16136_s1 + $0x10] sm:$0xff]   ;;  %v13921_v24 = vld [vmem:[%s12124_s14 + $0x78] sm:$0x7]  ;;  %v11501_v61 = vld [vmem:[%s16136_s1 + $0x60] sm:$0xff]  }
 0x225   : > { %v1133_v4 = vpop.permute.xlu1 %1132  ;;  %4544 = vmatmul.mubr.bf16.vlgmr.msra.gmra.mrb[4].mxu1 %v11482_v57  ;;  %10885 = vmatpush3.bf16.msra.mxu0 %v11487_v35  ;;  %v13924_v34 = vld [vmem:[%s12124_s14 + $0x68] sm:$0x7]  ;;  %v11496_v0 = vld [vmem:[%s16136_s1 + $0x10] sm:$0xff]  }
 0x226   : > { %v1129_v16 = vpop.permute.xlu0 %1128  ;;  %v1196_v11 = vsel %vm12612_vm13, %v1133_v4, %v1195_v22  ;;  %10907 = vmatpush3.bf16.msra.mxu1 %v11488_v39  ;;  %10886 = vmatprep.subr.bf16.mxu0 %v11489_v25  ;;  %v2302_v41 = vld [vmem:[#allocation2 + $0x94] sm:$0xc]  ;;  %v2298_v22 = vld [vmem:[#allocation2 + $0x84] sm:$0xc]  ;;  %v1953_v39 = vrot.slane %v1952_v37, 4  ;;  %v11498_v4 = vld [vmem:[%s16136_s1 + $0x58] sm:$0xff]  }
 0x227   : > { %v1192_v48 = vsel %vm12612_vm13, %v1129_v16, %v1191_v63  ;;  %1197 = vst [vmem:[#allocation2 + $0x70] sm:$0xc] %v1196_v11  ;;  %1982 = vrot.lane.b32.xlu1 %v1952_v37, %s16303_s15  ;;  %10908 = vmatprep.subr.bf16.mxu1 %v11490_v29  ;;  %v10042_v25 = vld [vmem:[%s12124_s14 + $0x94] sm:$0x7]  ;;  %v1951_v29 = vrot.slane %v1950_v10, 4  ;;  %v3600_v37 = vrot.slane %v3599_v44, 4 }
 0x228   : > { %1193 = vst [vmem:[#allocation2 + $0x60] sm:$0xc] %v1192_v48  ;;  %1978 = vrot.lane.b32.xlu0 %v1950_v10, %s16303_s15  ;;  %v10041_v11 = vld [vmem:[%s12124_s14 + $0x84] sm:$0x7]  ;;  %v3598_v48 = vrot.slane %v3597_v15, 4  ;;  %v953_v23 = vshrl.u32 %v10042_v25, 16 }
 0x229   : > { %v2796_v60 = vpop.permute.xlu1 %2795  ;;  %10887 = vmatpush3.bf16.msra.mxu0 %v11491_v49  ;;  %v13951_v49 = vld [vmem:[%s12124_s14 + $0x88] sm:$0x7]  ;;  %v956_v10 = vshll.u32 %v10042_v25, 16  ;;  %v1701_v59 = vld [vmem:[#allocation2 + $0x40] sm:$0x7] }
 0x22a   : > { %v2792_v30 = vpop.permute.xlu0 %2791  ;;  %v2856_v54 = vsel %vm12612_vm13, %v2796_v60, %v2855_v55  ;;  %10909 = vmatpush3.bf16.msra.mxu1 %v11492_v43  ;;  %10888 = vmatprep.subr.bf16.mxu0 %v11493_v51  ;;  %v1527_v51 = vrot.slane %v13921_v24, 6  ;;  %v16244_v55 = vrot.slane %v13924_v34, 6  ;;  %v944_v60 = vshrl.u32 %v10041_v11, 16  ;;  %v10161_v25 = vld [vmem:[%s12124_s14 + $0x94] sm:$0x7] }
 0x22b   : > { %v2852_v27 = vsel %vm12612_vm13, %v2792_v30, %v2851_v14  ;;  %2857 = vst [vmem:[#allocation2 + $0x74] sm:$0xc] %v2856_v54  ;;  %3491 = vrot.lane.b32.xlu1 %v3432_v5, %s16304_s29  ;;  %10910 = vmatprep.subr.bf16.mxu1 %v11494_v9  ;;  %v13954_v5 = vld [vmem:[%s12124_s14 + $0x78] sm:$0x7]  ;;  %v11502_v14 = vld [vmem:[%s16136_s1 + $0x60] sm:$0xff]   ;;  %v16243_v54 = vrot.slane %v13951_v49, 6 }
 0x22c   : > { %2853 = vst [vmem:[#allocation2 + $0x64] sm:$0xc] %v2852_v27  ;;  %3487 = vrot.lane.b32.xlu0 %v3423_v19, %s16304_s29  ;;  %v11500_v19 = vld [vmem:[%s16136_s1 + $0x18] sm:$0xff]   ;;  %v947_v27 = vshll.u32 %v10041_v11, 16  ;;  %v16456_v24 = vrot.slane %v13954_v5, 6 }
 0x22d   : > { %v568_v35 = vpop.permute.xlu1 %567  ;;  %10889 = vmatpush3.bf16.msra.mxu0 %v11495_v28  ;;  %v13973_v28 = vld [vmem:[%s12124_s14 + $0xa4] sm:$0x7] }
 0x22e   : > { %v564_v57 = vpop.permute.xlu0 %563  ;;  %v632_v16 = vsel %vm12482_vm5, %v568_v35, %v631_v6  ;;  %10911 = vmatpush3.bf16.msra.mxu1 %v11496_v0  ;;  %10890 = vmatprep.subr.bf16.mxu0 %v11497_v18  ;;  %v11503_v6 = vld [vmem:[%s16136_s1 + $0x20] sm:$0xff]   ;;  %v955_v0 = vrot.slane %v953_v23, 5  ;;  %v958_v18 = vrot.slane %v956_v10, 6  ;;  %v11505_v35 = vld [vmem:[%s16136_s1 + $0x68] sm:$0xff]   ;;  %v2619_v11 = vshrl.u32 %v13973_v28, 16  ;;  %v11509_v23 = vld [vmem:[%s16136_s1 + $0x70] sm:$0xff]  }
 0x22f   : > { %v628_v63 = vsel %vm12482_vm5, %v564_v57, %v627_v2  ;;  %633 = vst [vmem:[#allocation2 + $0x90] sm:$0xc] %v632_v16  ;;  %3629 = vrot.lane.b32.xlu1 %v3599_v44, %s16303_s15  ;;  %10912 = vmatprep.subr.bf16.mxu1 %v11498_v4  ;;  %v1704_v2 = vld [vmem:[#allocation2 + $0x50] sm:$0x7]  ;;  %v16242_v44 = vrot.slane %v13954_v5, 6  ;;  %v11506_v57 = vld [vmem:[%s16136_s1 + $0x68] sm:$0xff]  }
 0x230   : > { %629 = vst [vmem:[#allocation2 + $0x80] sm:$0xc] %v628_v63  ;;  %3625 = vrot.lane.b32.xlu0 %v3597_v15, %s16303_s15  ;;  %v11504_v15 = vld [vmem:[%s16136_s1 + $0x20] sm:$0xff]   ;;  %v11507_v4 = vld [vmem:[%s16136_s1 + $0x28] sm:$0xff]   ;;  %v3354_v10 = vld [vmem:[#allocation2 + $0x54] sm:$0x7] }
 0x231   : > { %v2243_v31 = vpop.permute.xlu1 %2242  ;;  %10891 = vmatpush3.bf16.msra.mxu0 %v11499_v20  ;;  %v11508_v20 = vld [vmem:[%s16136_s1 + $0x28] sm:$0xff]   ;;  %v11524_v5 = vld [vmem:[%s16136_s1 + $0x40] sm:$0xff]  }
 0x232   : > { %v2239_v43 = vpop.permute.xlu0 %2238  ;;  %v2303_v30 = vsel %vm12482_vm5, %v2243_v31, %v2302_v41  ;;  %10913 = vmatpush3.bf16.msra.mxu1 %v11500_v19  ;;  %10892 = vmatprep.subr.bf16.mxu0 %v11501_v61  ;;  %v3351_v19 = vld [vmem:[#allocation2 + $0x44] sm:$0x7]  ;;  %v2622_v61 = vshll.u32 %v13973_v28, 16  ;;  %v11510_v31 = vld [vmem:[%s16136_s1 + $0x70] sm:$0xff]   ;;  %v1278_v28 = vld [vmem:[#allocation2 + $0x60] sm:$0x7] }
 0x233   : > { %v2299_v9 = vsel %vm12482_vm5, %v2239_v43, %v2298_v22  ;;  %2304 = vst [vmem:[#allocation2 + $0x94] sm:$0xc] %v2303_v30  ;;  %1984 = vrot.lane.b32.xlu1 %v1953_v39, %s16303_s15  ;;  %v946_v39 = vrot.slane %v944_v60, 5  ;;  %10914 = vmatprep.subr.bf16.mxu1 %v11502_v14  ;;  %v2613_v30 = vshll.u32 %v10161_v25, 16  ;;  %vm16413_vm5 = vcmask 122880  }
 0x234   : > { %2300 = vst [vmem:[#allocation2 + $0x84] sm:$0xc] %v2299_v9  ;;  %1980 = vrot.lane.b32.xlu0 %v1951_v29, %s16303_s15  ;;  %v949_v29 = vrot.slane %v947_v27, 6  ;;  %v11511_v9 = vld [vmem:[%s16136_s1 + $0x30] sm:$0xff]   ;;  %vm16415_vm6 = vmmov %vm16413_vm5 }
 0x235   : > { %v1668_v41 = vpop.permute.xlu1 %1667  ;;  %10893 = vmatpush3.bf16.msra.mxu0 %v11503_v6  ;;  %v1281_v27 = vld [vmem:[#allocation2 + $0x70] sm:$0x7]  ;;  %vm16416_vm1 = vmmov %vm16413_vm5 }
 0x236   : > { %v1666_v22 = vpop.permute.xlu0 %1665  ;;  %v1705_v16 = vsel %vm12925_vm12, %v1668_v41, %v1704_v2  ;;  %10915 = vmatpush3.bf16.msra.mxu1 %v11504_v15  ;;  %10894 = vmatprep.subr.bf16.mxu0 %v11505_v35  ;;  %v11512_v6 = vld [vmem:[%s16136_s1 + $0x30] sm:$0xff]   ;;  %v11513_v2 = vld [vmem:[%s16136_s1 + $0x78] sm:$0xff]  }
 0x237   : > { %v1702_v63 = vsel %vm12925_vm12, %v1666_v22, %v1701_v59  ;;  %1706 = vst [vmem:[#allocation2 + $0x50] sm:$0x7] %v1705_v16  ;;  %3631 = vrot.lane.b32.xlu1 %v3600_v37, %s16303_s15  ;;  %10916 = vmatprep.subr.bf16.mxu1 %v11506_v57  ;;  %v11514_v35 = vld [vmem:[%s16136_s1 + $0x78] sm:$0xff]   ;;  %v2621_v22 = vrot.slane %v2619_v11, 5  ;;  %v14046_v16 = vor.u32 %v958_v18, %v955_v0 }
 0x238   : > { %1703 = vst [vmem:[#allocation2 + $0x40] sm:$0x7] %v1702_v63  ;;  %3627 = vrot.lane.b32.xlu0 %v3598_v48, %s16303_s15  ;;  %v2610_v48 = vshrl.u32 %v10161_v25, 16  ;;  %v2624_v25 = vrot.slane %v2622_v61, 6  ;;  %v14048_v63 = vor.u32 %v949_v29, %v946_v39  ;;  %v2936_v61 = vld [vmem:[#allocation2 + $0x64] sm:$0x7] }
 0x239   : > { %v3320_v43 = vpop.permute.xlu1 %3319  ;;  %10895 = vmatpush3.bf16.msra.mxu0 %v11507_v4  ;;  %v11515_v4 = vld [vmem:[%s16136_s1 + $0x38] sm:$0xff]   ;;  %v774_v29 = vld [vmem:[#allocation2 + $0x90] sm:$0xc]  ;;  %v960_v13 = vrot.slane %v14046_v16, 4 }
 0x23a   : > { %v3318_v60 = vpop.permute.xlu0 %3317  ;;  %v3355_v14 = vsel %vm12925_vm12, %v3320_v43, %v3354_v10  ;;  %10917 = vmatpush3.bf16.msra.mxu1 %v11508_v20  ;;  %10896 = vmatprep.subr.bf16.mxu0 %v11509_v23  ;;  %v2612_v11 = vrot.slane %v2610_v48, 5  ;;  %v2615_v20 = vrot.slane %v2613_v30, 6  ;;  %v2939_v23 = vld [vmem:[#allocation2 + $0x74] sm:$0x7]  ;;  %v11516_v10 = vld [vmem:[%s16136_s1 + $0x38] sm:$0xff]   ;;  %v14061_v18 = vor.u32 %v2624_v25, %v2621_v22 }
 0x23b   : > { %v3352_v37 = vsel %vm12925_vm12, %v3318_v60, %v3351_v19  ;;  %3356 = vst [vmem:[#allocation2 + $0x54] sm:$0x7] %v3355_v14  ;;  %1561 = vrot.lane.b32.xlu1 %v1527_v51, %s16304_s29  ;;  %10918 = vmatprep.subr.bf16.mxu1 %v11510_v31  ;;  %v770_v60 = vld [vmem:[#allocation2 + $0x80] sm:$0xc]  ;;  %v10100_v22 = vld [vmem:[%s12124_s14 + $0x7c] sm:$0x7] }
 0x23c   : > { %3353 = vst [vmem:[#allocation2 + $0x44] sm:$0x7] %v3352_v37  ;;  %1557 = vrot.lane.b32.xlu0 %v16244_v55, %s16304_s29  ;;  %v14063_v39 = vor.u32 %v2615_v20, %v2612_v11  ;;  %v14085_v25 = vld [vmem:[%s12124_s14 + $0x94] sm:$0x7]  ;;  %v14089_v11 = vld [vmem:[%s12124_s14 + $0x84] sm:$0x7] }
 0x23d   : > { %v1243_v59 = vpop.permute.xlu1 %1242  ;;  %10897 = vmatpush3.bf16.msra.mxu0 %v11511_v9  ;;  %v10090_v9 = vld [vmem:[%s12124_s14 + $0x7c] sm:$0x7]  ;;  %v14092_v20 = vld [vmem:[%s12124_s14 + $0xa4] sm:$0x7] }
 0x23e   : > { %v1241_v15 = vpop.permute.xlu0 %1240  ;;  %v1282_v57 = vsel %vm12654_vm15, %v1243_v59, %v1281_v27  ;;  %10919 = vmatpush3.bf16.msra.mxu1 %v11512_v6  ;;  %10898 = vmatprep.subr.bf16.mxu0 %v11513_v2  ;;  %v10089_v27 = vld [vmem:[%s12124_s14 + $0x6c] sm:$0x7]  ;;  %v2438_v2 = vld [vmem:[#allocation2 + $0x84] sm:$0xc] }
 0x23f   : > { %v1279_v41 = vsel %vm12654_vm15, %v1241_v15, %v1278_v28  ;;  %1283 = vst [vmem:[#allocation2 + $0x70] sm:$0x7] %v1282_v57  ;;  %3216 = vrot.lane.b32.xlu1 %v16243_v54, %s16304_s29  ;;  %10920 = vmatprep.subr.bf16.mxu1 %v11514_v35  ;;  %v2442_v28 = vld [vmem:[#allocation2 + $0x94] sm:$0xc]  ;;  %v10210_v57 = vld [vmem:[%s12124_s14 + $0x8c] sm:$0x7] }
 0x240   : > { %1280 = vst [vmem:[#allocation2 + $0x60] sm:$0x7] %v1279_v41  ;;  %3212 = vrot.lane.b32.xlu0 %v16242_v44, %s16304_s29  ;;  %v10209_v41 = vld [vmem:[%s12124_s14 + $0x7c] sm:$0x7] }
 0x241   : > { %v2903_v19 = vpop.permute.xlu1 %2902  ;;  %10899 = vmatpush3.bf16.msra.mxu0 %v11515_v4  ;;  %v10099_v4 = vld [vmem:[%s12124_s14 + $0x6c] sm:$0x7] }
 0x242   : > { %v2901_v31 = vpop.permute.xlu0 %2900  ;;  %v2940_v43 = vsel %vm12654_vm15, %v2903_v19, %v2939_v23  ;;  %10921 = vmatpush3.bf16.msra.mxu1 %v11516_v10  ;;  %v14095_v23 = vld [vmem:[%s12124_s14 + $0x94] sm:$0x7]  ;;  %v1902_v10 = vld [vmem:[#allocation2 + $0x50] sm:$0xc] }
 0x243   : > { %v2937_v0 = vsel %vm12654_vm15, %v2901_v31, %v2936_v61  ;;  %2941 = vst [vmem:[#allocation2 + $0x74] sm:$0x7] %v2940_v43  ;;  %997 = vrot.lane.b32.xlu1 %v14046_v16, %s16305_s0  ;;  %v1898_v61 = vld [vmem:[#allocation2 + $0x40] sm:$0xc]  ;;  %v1793_v31 = vshrl.u32 %v10100_v22, 16  ;;  %v1796_v43 = vshll.u32 %v10100_v22, 16  ;;  %10950 = vmatprep.subr.bf16.mxu1 %v11524_v5 }
 0x244   : > { %2938 = vst [vmem:[#allocation2 + $0x64] sm:$0x7] %v2937_v0  ;;  %993 = vrot.lane.b32.xlu0 %v14048_v63, %s16305_s0 }
 0x245   : > { %v712_v14 = vpop.permute.xlu1 %711  ;;  %v1798_v22 = vrot.slane %v1796_v43, 6 }
 0x246   : > { %v708_v37 = vpop.permute.xlu0 %707  ;;  %v775_v48 = vsel %vm12517_vm7, %v712_v14, %v774_v29  ;;  %v1787_v14 = vshll.u32 %v10099_v4, 16 }
 0x247   : > { %v771_v30 = vsel %vm12517_vm7, %v708_v37, %v770_v60  ;;  %776 = vst [vmem:[#allocation2 + $0x90] sm:$0xc] %v775_v48  ;;  %2663 = vrot.lane.b32.xlu1 %v14061_v18, %s16305_s0  ;;  %v1784_v60 = vshrl.u32 %v10099_v4, 16  ;;  %v16241_v37 = vrot.slane %v14085_v25, 6  ;;  %v16240_v48 = vrot.slane %v14089_v11, 6 }
 0x248   : > { %772 = vst [vmem:[#allocation2 + $0x80] sm:$0xc] %v771_v30  ;;  %2659 = vrot.lane.b32.xlu0 %v14063_v39, %s16305_s0  ;;  %v16239_v30 = vrot.slane %v14092_v20, 6 }
 0x249   : > { %v2383_v6 = vpop.permute.xlu1 %2382  ;;  %v1786_v4 = vrot.slane %v1784_v60, 5 }
 0x24a   : > { %v2379_v59 = vpop.permute.xlu0 %2378  ;;  %v2443_v15 = vsel %vm12517_vm7, %v2383_v6, %v2442_v28  ;;  %v10219_v28 = vld [vmem:[%s12124_s14 + $0x7c] sm:$0x7]  ;;  %v3549_v6 = vld [vmem:[#allocation2 + $0x54] sm:$0xc] }
 0x24b   : > { %v2439_v35 = vsel %vm12517_vm7, %v2379_v59, %v2438_v2  ;;  %2444 = vst [vmem:[#allocation2 + $0x94] sm:$0xc] %v2443_v15  ;;  %1671 = vrot.lane.b32.xlu1 %v10090_v9, %s16313_s16  ;;  %v16238_v9 = vrot.slane %v14095_v23, 6  ;;  %v3545_v59 = vld [vmem:[#allocation2 + $0x44] sm:$0xc]  ;;  %vm16414_vm7 = vmmov %vm16413_vm5 }
 0x24c   : > { %2440 = vst [vmem:[#allocation2 + $0x84] sm:$0xc] %v2439_v35  ;;  %1669 = vrot.lane.b32.xlu0 %v10089_v27, %s16313_s16  ;;  %v10220_v27 = vld [vmem:[%s12124_s14 + $0x8c] sm:$0x7]  ;;  %v1795_v35 = vrot.slane %v1793_v31, 5  ;;  %v3437_v31 = vshll.u32 %v10219_v28, 16 }
 0x24d   : > { %v1840_v8 = vpop.permute.xlu1 %1839 }
 0x24e   : > { %v1836_v19 = vpop.permute.xlu0 %1835  ;;  %v1903_v0 = vsel %vm13053_vm14, %v1840_v8, %v1902_v10  ;;  %v1789_v8 = vrot.slane %v1787_v14, 6  ;;  %v3443_v10 = vshrl.u32 %v10220_v27, 16 }
 0x24f   : > { %v1899_v29 = vsel %vm13053_vm14, %v1836_v19, %v1898_v61  ;;  %1904 = vst [vmem:[#allocation2 + $0x50] sm:$0xc] %v1903_v0  ;;  %3323 = vrot.lane.b32.xlu1 %v10210_v57, %s16313_s16  ;;  %v3446_v19 = vshll.u32 %v10220_v27, 16  ;;  %v3434_v61 = vshrl.u32 %v10219_v28, 16 }
 0x250   : > { %1900 = vst [vmem:[#allocation2 + $0x40] sm:$0xc] %v1899_v29  ;;  %3321 = vrot.lane.b32.xlu0 %v10209_v41, %s16313_s16  ;;  %v14121_v29 = vor.u32 %v1798_v22, %v1795_v35  ;;  %v14123_v60 = vor.u32 %v1789_v8, %v1786_v4  ;;  %v3445_v14 = vrot.slane %v3443_v10, 5  ;;  %v10062_v4 = vld [vmem:[%s12124_s14 + $0x98] sm:$0x7] }
 0x251   : > { %v3490_v2 = vpop.permute.xlu1 %3489  ;;  %v3448_v27 = vrot.slane %v3446_v19, 6  ;;  %v3436_v28 = vrot.slane %v3434_v61, 5  ;;  %v10061_v8 = vld [vmem:[%s12124_s14 + $0x88] sm:$0x7]  ;;  %v1481_v61 = vld [vmem:[#allocation2 + $0x70] sm:$0xc] }
 0x252   : > { %v3486_v15 = vpop.permute.xlu0 %3485  ;;  %v3550_v57 = vsel %vm13053_vm14, %v3490_v2, %v3549_v6  ;;  %v3439_v6 = vrot.slane %v3437_v31, 6 }
 0x253   : > { %v3546_v41 = vsel %vm13053_vm14, %v3486_v15, %v3545_v59  ;;  %3551 = vst [vmem:[#allocation2 + $0x54] sm:$0xc] %v3550_v57  ;;  %1140 = vrot.lane.b32.xlu1 %v16241_v37, %s16310_s26  ;;  %v14137_v15 = vor.u32 %v3448_v27, %v3445_v14  ;;  %v10233_v14 = vld [vmem:[%s16137_s2] ss:$0 sm:$0xff] }
 0x254   : > { %3547 = vst [vmem:[#allocation2 + $0x44] sm:$0xc] %v3546_v41  ;;  %1136 = vrot.lane.b32.xlu0 %v16240_v48, %s16310_s26  ;;  %v14139_v35 = vor.u32 %v3439_v6, %v3436_v28 }
 0x255   : > { %v554_v43 = vpop.permute.xlu1 %553 }
 0x256   : > { %v550_v0 = vpop.permute.xlu0 %549  ;;  %618 = vst.msk [vmem:[#allocation2 + $0x58] sm:$0x1] %vm16413_vm5, %v554_v43  ;;  %vm16419_vm5 = vmmov %vm16418_vm0 }
 0x257   : > { %614 = vst.msk [vmem:[#allocation2 + $0x48] sm:$0x1] %vm16414_vm7, %v550_v0  ;;  %2803 = vrot.lane.b32.xlu1 %v16239_v30, %s16310_s26  ;;  %v1477_v0 = vld [vmem:[#allocation2 + $0x60] sm:$0xc]  ;;  %vm16420_vm7 = vmmov %vm16418_vm0 }
 0x258   : > { %2799 = vrot.lane.b32.xlu0 %v16238_v9, %s16310_s26  ;;  %v10181_v9 = vld [vmem:[%s12124_s14 + $0x98] sm:$0x7] }
 0x259   : > { %v2229_v2 = vpop.permute.xlu1 %2228 }
 0x25a   : > { %v2225_v59 = vpop.permute.xlu0 %2224  ;;  %2289 = vst.msk [vmem:[#allocation2 + $0x5c] sm:$0x1] %vm16415_vm6, %v2229_v2  ;;  %vm3907_vm6 = vsmask.f32 1280 }
 0x25b   : > { %2285 = vst.msk [vmem:[#allocation2 + $0x4c] sm:$0x1] %vm16416_vm1, %v2225_v59  ;;  %1847 = vrot.lane.b32.xlu1 %v14121_v29, %s16304_s29  ;;  %vm16245_vm1 = vsmask.f32 5392 }
 0x25c   : > { %1843 = vrot.lane.b32.xlu0 %v14123_v60, %s16304_s29 }
 0x25d   : > { %v698_v22 = vpop.permute.xlu1 %697 }
 0x25e   : > { %v694_v57 = vpop.permute.xlu0 %693  ;;  %761 = vst.msk [vmem:[#allocation2 + $0x58] sm:$0x1] %vm16417_vm4, %v698_v22  ;;  %vm16423_vm4 = vcmask 385280  }
 0x25f   : > { %757 = vst.msk [vmem:[#allocation2 + $0x48] sm:$0x1] %vm16418_vm0, %v694_v57  ;;  %3497 = vrot.lane.b32.xlu1 %v14137_v15, %s16304_s29  ;;  %v10812_v41 = vpop.f32.mrb[0].mxu0  ;;  %v10834_v10 = vpop.f32.mrb[0].mxu1  ;;  %vm16424_vm0 = vmmov %vm16423_vm4 }
 0x260   : > { %3493 = vrot.lane.b32.xlu0 %v14139_v35, %s16304_s29  ;;  %v10813_v27 = vpop.f32.mrb[1].mxu0  ;;  %v10835_v2 = vpop.f32.mrb[1].mxu1 }
 0x261   : > { %v1419_v19 = vpop.permute.xlu1 %1418  ;;  %v10814_v6 = vadd.f32 %v10813_v27, %v10812_v41  ;;  %v10815_v59 = vpop.f32.mrb[2].mxu0  ;;  %v10836_v22 = vadd.f32 %v10835_v2, %v10834_v10 }
 0x262   : > { %v1482_v31 = vsel %vm12699_vm3, %v1419_v19, %v1481_v61  ;;  %v1415_v43 = vpop.permute.xlu0 %1414  ;;  %v10837_v57 = vpop.f32.mrb[2].mxu1  ;;  %v10182_v61 = vld [vmem:[%s12124_s14 + $0xa8] sm:$0x7] }
 0x263   : > { %1483 = vst [vmem:[#allocation2 + $0x70] sm:$0xc] %v1482_v31  ;;  %v1478_v28 = vsel %vm12699_vm3, %v1415_v43, %v1477_v0  ;;  %1246 = vrot.lane.b32.xlu1 %v10062_v4, %s16314_s22  ;;  %v10816_v19 = vpop.f32.mrb[3].mxu0  ;;  %v3890_v30 = vadd.f32 %v10814_v6, %v10233_v14  ;;  %v10838_v37 = vpop.f32.mrb[3].mxu1  ;;  %v4110_v44 = vadd.f32 %v10836_v22, %v10233_v14  ;;  %v512_v4 = vrot.slane %v13007_v56, 4 }
 0x264   : > { %1244 = vrot.lane.b32.xlu0 %v10061_v8, %s16314_s22  ;;  %1479 = vst [vmem:[#allocation2 + $0x60] sm:$0xc] %v1478_v28  ;;  %v10817_v48 = vadd.f32 %v10816_v19, %v10815_v59  ;;  %v10839_v54 = vadd.f32 %v10838_v37, %v10837_v57  ;;  %v503_v8 = vrot.slane %v13009_v3, 4  ;;  %v2187_v28 = vrot.slane %v13040_v26, 4  ;;  %v3899_v56 = vld [vmem:[#allocation3] sm:$0x7] }
 0x265   : > { %v2369_v31 = vpop.permute.xlu1 %2368  ;;  %v3896_v43 = vmax.f32 %v3890_v30, 0.0  ;;  %v4116_v10 = vmax.f32 %v4110_v44, 0.0  ;;  %v2178_v37 = vrot.slane %v13042_v33, 4  ;;  %v3136_v30 = vld [vmem:[#allocation2 + $0x74] sm:$0xc]  ;;  %v16421_v59 = vrot.slane %v13087_v62, 6 }
 0x266   : > { %2429 = vst.msk [vmem:[#allocation2 + $0x5c] sm:$0x1] %vm16419_vm5, %v2369_v31  ;;  %v2365_v41 = vpop.permute.xlu0 %2364  ;;  %v3893_v0 = vadd.f32 %v10817_v48, %v10233_v14  ;;  %v4113_v27 = vadd.f32 %v10839_v54, %v10233_v14  ;;  %v16422_v57 = vrot.slane %v13090_v38, 6  ;;  %v4120_v31 = vld [vmem:[#allocation3 + $0x4] sm:$0x7]  ;;  %vm14198_vm5 = vmor %vm3907_vm6, %vm16245_vm1 }
 0x267   : > { %2425 = vst.msk [vmem:[#allocation2 + $0x4c] sm:$0x1] %vm16420_vm7, %v2365_v41  ;;  %2906 = vrot.lane.b32.xlu1 %v10182_v61, %s16314_s22  ;;  %v10776_v6 = vpack.c.bf16 %v3896_v43, %v3896_v43  ;;  %v670_v22 = vrot.slane %v16421_v59, 4  ;;  %v10778_v19 = vpack.c.bf16 %v4116_v10, %v4116_v10  ;;  %vm16431_vm7 = vmmov %vm16424_vm0 }
 0x268   : > { %2904 = vrot.lane.b32.xlu0 %v10181_v9, %s16314_s22  ;;  %v3897_v2 = vmax.f32 %v3893_v0, 0.0  ;;  %v668_v9 = vrot.slane %v16422_v57, 4  ;;  %v4117_v61 = vmax.f32 %v4113_v27, 0.0  ;;  %v3132_v57 = vld [vmem:[#allocation2 + $0x64] sm:$0xc] }
 0x269   : > { %v3077_v48 = vpop.permute.xlu1 %3076  ;;  %v3911_v26 = vshrl.u32 %v10776_v6, 16  ;;  %v3914_v33 = vshll.u32 %v10776_v6, 16  ;;  %v4129_v62 = vshrl.u32 %v10778_v19, 16  ;;  %v4132_v38 = vshll.u32 %v10778_v19, 16 }
 0x26a   : > { %v3137_v3 = vsel %vm12699_vm3, %v3077_v48, %v3136_v30  ;;  %v3073_v54 = vpop.permute.xlu0 %3072  ;;  %v3898_v44 = vpack.c.bf16 %v3897_v2, %v3896_v43  ;;  %v10777_v14 = vpack.c.bf16 %v3897_v2, %v3897_v2  ;;  %v4118_v41 = vpack.c.bf16 %v4117_v61, %v4116_v10 }
 0x26b   : > { %3138 = vst [vmem:[#allocation2 + $0x74] sm:$0xc] %v3137_v3  ;;  %561 = vrot.lane.b32.xlu1 %v512_v4, %s16303_s15  ;;  %v10779_v0 = vpack.c.bf16 %v4117_v61, %v4117_v61  ;;  %v3913_v27 = vrot.slane %v3911_v26, 6  ;;  %v3916_v59 = vrot.slane %v3914_v33, 7  ;;  %v4131_v43 = vrot.slane %v4129_v62, 6 }
 0x26c   : > { %557 = vrot.lane.b32.xlu0 %v503_v8, %s16303_s15  ;;  %v3900_v30 = vsel %vm12251_vm2, %v3898_v44, %v3899_v56  ;;  %v3920_v48 = vshrl.u32 %v10777_v14, 16  ;;  %v4134_v2 = vrot.slane %v4132_v38, 7  ;;  %v3923_v55 = vshll.u32 %v10777_v14, 16  ;;  %v858_v8 = vld [vmem:[#allocation2 + $0x90] sm:$0x7] }
 0x26d   : > { %v818_v6 = vpop.permute.xlu1 %817  ;;  %3901 = vst [vmem:[#allocation3] sm:$0x7] %v3900_v30  ;;  %v4121_v4 = vsel %vm12251_vm2, %v4118_v41, %v4120_v31  ;;  %v4138_v10 = vshrl.u32 %v10779_v0, 16  ;;  %v4141_v61 = vshll.u32 %v10779_v0, 16  ;;  %v3133_v26 = vsel %vm12699_vm3, %v3073_v54, %v3132_v57  ;;  %v855_v56 = vld [vmem:[#allocation2 + $0x80] sm:$0x7] }
 0x26e   : > { %v816_v3 = vpop.permute.xlu0 %815  ;;  %v3922_v19 = vrot.slane %v3920_v48, 6  ;;  %4122 = vst [vmem:[#allocation3 + $0x4] sm:$0x7] %v4121_v4  ;;  %v3925_v33 = vrot.slane %v3923_v55, 7  ;;  %3134 = vst [vmem:[#allocation2 + $0x64] sm:$0xc] %v3133_v26  ;;  %v859_v44 = vsel %vm12544_vm9, %v818_v6, %v858_v8  ;;  %v3917_v41 = vor.u32 %v3916_v59, %v3913_v27 }
 0x26f   : > { %2236 = vrot.lane.b32.xlu1 %v2187_v28, %s16303_s15  ;;  %v856_v14 = vsel %vm12544_vm9, %v816_v3, %v855_v56  ;;  %v4140_v31 = vrot.slane %v4138_v10, 6  ;;  %v4143_v62 = vrot.slane %v4141_v61, 7  ;;  %860 = vst [vmem:[#allocation2 + $0x90] sm:$0x7] %v859_v44  ;;  %v4135_v28 = vor.u32 %v4134_v2, %v4131_v43  ;;  %v16425_v55 = vld [vmem:[#allocation31_spill] sm:$0xff]  ;;  %v16427_v48 = vld [vmem:[#allocation32_spill] sm:$0xff] }
 0x270   : > { %2232 = vrot.lane.b32.xlu0 %v2178_v37, %s16303_s15  ;;  %857 = vst [vmem:[#allocation2 + $0x80] sm:$0x7] %v856_v14  ;;  %v3926_v37 = vor.u32 %v3925_v33, %v3922_v19  ;;  %v16426_v0 = vrot.slane %v16425_v55, 6  ;;  %v16428_v57 = vrot.slane %v16427_v48, 6  ;;  %v3918_v43 = vrot.slane %v3917_v41, 4  ;;  %v16438_v41 = vld [vmem:[#allocation18_spill] sm:$0xff] }
 0x271   : > { %v984_v38 = vpop.permute.xlu1 %983  ;;  %v4144_v27 = vor.u32 %v4143_v62, %v4140_v31  ;;  %v4136_v59 = vrot.slane %v4135_v28, 4  ;;  %v2524_v2 = vld [vmem:[#allocation2 + $0x94] sm:$0x7]  ;;  %v942_v26 = vrot.slane %v13336_v58, 4  ;;  %v933_v56 = vrot.slane %v13338_v21, 4  ;;  %v16433_v31 = vld [vmem:[#allocation16_spill] sm:$0xff] }
 0x272   : > { %1047 = vst.msk [vmem:[#allocation2 + $0x58] sm:$0x1] %vm16423_vm4, %v984_v38  ;;  %v980_v54 = vpop.permute.xlu0 %979  ;;  %v2341_v30 = vrot.slane %v16426_v0, 4  ;;  %v2339_v6 = vrot.slane %v16428_v57, 4  ;;  %v14210_v10 = vsel %vm14198_vm5, %v3918_v43, %v3926_v37  ;;  %vm16432_vm4 = vmmov %vm16424_vm0  ;;  %v2608_v14 = vrot.slane %v13399_v17, 4  ;;  %v16436_v21 = vld [vmem:[#allocation17_spill] sm:$0xff] }
 0x273   : > { %1043 = vst.msk [vmem:[#allocation2 + $0x48] sm:$0x1] %vm16424_vm0, %v980_v54  ;;  %705 = vrot.lane.b32.xlu1 %v670_v22, %s16305_s0  ;;  %v14206_v19 = vsel %vm14198_vm5, %v4136_v59, %v4144_v27  ;;  %v2599_v62 = vrot.slane %v16433_v31, 4  ;;  %vm16434_vm0 = vcmask 516480   ;;  %v16437_v54 = vrot.slane %v16436_v21, 6 }
 0x274   : > { %701 = vrot.lane.b32.xlu0 %v668_v9, %s16305_s0  ;;  %v2521_v9 = vld [vmem:[#allocation2 + $0x84] sm:$0x7]  ;;  %vm16435_vm1 = vmmov %vm16434_vm0  ;;  %v16439_v37 = vrot.slane %v16438_v41, 6  ;;  %v14281_v21 = vld [vmem:[%s12124_s14 + $0x7c] sm:$0x7] }
 0x275   : > { %v2486_v8 = vpop.permute.xlu1 %2485  ;;  %v1099_v28 = vrot.slane %v16437_v54, 4  ;;  %v14284_v54 = vld [vmem:[%s12124_s14 + $0x6c] sm:$0x7]  ;;  %v2045_v41 = vld [vmem:[#allocation2 + $0x50] sm:$0xc] }
 0x276   : > { %v2525_v22 = vsel %vm12544_vm9, %v2486_v8, %v2524_v2  ;;  %v2484_v3 = vpop.permute.xlu0 %2483  ;;  %v1097_v55 = vrot.slane %v16439_v37, 4  ;;  %v1371_v8 = vrot.slane %v13745_v36, 4  ;;  %v2041_v37 = vld [vmem:[#allocation2 + $0x40] sm:$0xc] }
 0x277   : > { %2526 = vst [vmem:[#allocation2 + $0x94] sm:$0x7] %v2525_v22  ;;  %v2522_v61 = vsel %vm12544_vm9, %v2484_v3, %v2521_v9  ;;  %2376 = vrot.lane.b32.xlu1 %v2341_v30, %s16305_s0  ;;  %v16442_v30 = vld [vmem:[#allocation21_spill] sm:$0xff]  ;;  %v1362_v22 = vrot.slane %v13747_v47, 4  ;;  %v1528_v47 = vrot.slane %v1527_v51, 4  ;;  %v3181_v51 = vrot.slane %v16456_v24, 4 }
 0x278   : > { %2372 = vrot.lane.b32.xlu0 %v2339_v6, %s16305_s0  ;;  %2523 = vst [vmem:[#allocation2 + $0x84] sm:$0x7] %v2522_v61  ;;  %v16443_v48 = vrot.slane %v16442_v30, 6  ;;  %v16444_v6 = vld [vmem:[#allocation24_spill] sm:$0xff]  ;;  %v3029_v61 = vrot.slane %v13763_v40, 4  ;;  %v1954_v30 = vrot.slane %v14284_v54, 6 }
 0x279   : > { %v2650_v33 = vpop.permute.xlu1 %2649  ;;  %v16445_v27 = vrot.slane %v16444_v6, 6  ;;  %v10191_v24 = vld [vmem:[%s12124_s14 + $0x98] sm:$0x7] }
 0x27a   : > { %2710 = vst.msk [vmem:[#allocation2 + $0x5c] sm:$0x1] %vm16431_vm7, %v2650_v33  ;;  %v2646_v44 = vpop.permute.xlu0 %2645  ;;  %vm16440_vm7 = vmmov %vm16434_vm0  ;;  %v2762_v57 = vrot.slane %v16443_v48, 4  ;;  %v16452_v33 = vrot.slane %v13924_v34, 6  ;;  %v10071_v48 = vld [vmem:[%s12124_s14 + $0x88] sm:$0x7] }
 0x27b   : > { %2706 = vst.msk [vmem:[#allocation2 + $0x4c] sm:$0x1] %vm16432_vm4, %v2646_v44  ;;  %991 = vrot.lane.b32.xlu1 %v942_v26, %s16305_s0  ;;  %vm16441_vm4 = vmmov %vm16434_vm0  ;;  %v2760_v59 = vrot.slane %v16445_v27, 4  ;;  %v3020_v26 = vrot.slane %v13765_v1, 4  ;;  %v16455_v1 = vrot.slane %v13951_v49, 6  ;;  %v11523_v49 = vld [vmem:[%s16136_s1 + $0x40] sm:$0xff]  }
 0x27c   : > { %987 = vrot.lane.b32.xlu0 %v933_v56, %s16305_s0  ;;  %v1526_v44 = vrot.slane %v16452_v33, 4  ;;  %10928 = vmatprep.subr.bf16.mxu0 %v11523_v49  ;;  %v3031_v5 = vshrl.u32 %v10191_v24, 16 }
 0x27d   : > { %v1127_v38 = vpop.permute.xlu1 %1126  ;;  %v3183_v31 = vrot.slane %v16455_v1, 4 }
 0x27e   : > { %1190 = vst.msk [vmem:[#allocation2 + $0x58] sm:$0x1] %vm16434_vm0, %v1127_v38  ;;  %v1123_v58 = vpop.permute.xlu0 %1122  ;;  %v1800_v38 = vrot.slane %v14121_v29, 4 }
 0x27f   : > { %1186 = vst.msk [vmem:[#allocation2 + $0x48] sm:$0x1] %vm16435_vm1, %v1123_v58  ;;  %2657 = vrot.lane.b32.xlu1 %v2608_v14, %s16305_s0  ;;  %vm16446_vm1 = vcmask 647680   ;;  %v1791_v58 = vrot.slane %v14123_v60, 4 }
 0x280   : > { %2653 = vrot.lane.b32.xlu0 %v2599_v62, %s16305_s0  ;;  %vm16447_vm0 = vmmov %vm16446_vm1 }
 0x281   : > { %v2790_v0 = vpop.permute.xlu1 %2789 }
 0x282   : > { %2850 = vst.msk [vmem:[#allocation2 + $0x5c] sm:$0x1] %vm16440_vm7, %v2790_v0  ;;  %v2786_v17 = vpop.permute.xlu0 %2785  ;;  %vm16448_vm7 = vmmov %vm16447_vm0 }
 0x283   : > { %2846 = vst.msk [vmem:[#allocation2 + $0x4c] sm:$0x1] %vm16441_vm4, %v2786_v17  ;;  %1134 = vrot.lane.b32.xlu1 %v1099_v28, %s16310_s26  ;;  %vm16449_vm4 = vmmov %vm16447_vm0  ;;  %v1956_v17 = vrot.slane %v14281_v21, 6  ;;  %v3034_v21 = vshll.u32 %v10191_v24, 16  ;;  %v11527_v24 = vld [vmem:[%s16136_s1 + $0x48] sm:$0xff]  }
 0x284   : > { %1130 = vrot.lane.b32.xlu0 %v1097_v55, %s16310_s26  ;;  %v10072_v55 = vld [vmem:[%s12124_s14 + $0x98] sm:$0x7] }
 0x285   : > { %v1413_v43 = vpop.permute.xlu1 %1412  ;;  %v1382_v6 = vshrl.u32 %v10072_v55, 16 }
 0x286   : > { %1476 = vst.msk [vmem:[#allocation2 + $0x58] sm:$0x1] %vm16446_vm1, %v1413_v43  ;;  %v1409_v2 = vpop.permute.xlu0 %1408  ;;  %vm16450_vm1 = vcmask 778880   ;;  %v1373_v43 = vshrl.u32 %v10071_v48, 16 }
 0x287   : > { %1472 = vst.msk [vmem:[#allocation2 + $0x48] sm:$0x1] %vm16447_vm0, %v1409_v2  ;;  %2797 = vrot.lane.b32.xlu1 %v2762_v57, %s16310_s26  ;;  %vm16451_vm0 = vmmov %vm16450_vm1  ;;  %v1376_v2 = vshll.u32 %v10071_v48, 16 }
 0x288   : > { %2793 = vrot.lane.b32.xlu0 %v2760_v59, %s16310_s26  ;;  %v1385_v59 = vshll.u32 %v10072_v55, 16  ;;  %v3033_v55 = vrot.slane %v3031_v5, 5 }
 0x289   : > { %v3071_v9 = vpop.permute.xlu1 %3070 }
 0x28a   : > { %3131 = vst.msk [vmem:[#allocation2 + $0x5c] sm:$0x1] %vm16448_vm7, %v3071_v9  ;;  %v3067_v3 = vpop.permute.xlu0 %3066  ;;  %vm16453_vm7 = vmmov %vm16451_vm0  ;;  %v10230_v9 = vld [vmem:[%s12124_s14 + $0x8c] sm:$0x7] }
 0x28b   : > { %3127 = vst.msk [vmem:[#allocation2 + $0x4c] sm:$0x1] %vm16449_vm4, %v3067_v3  ;;  %1420 = vrot.lane.b32.xlu1 %v1371_v8, %s16310_s26  ;;  %vm16454_vm4 = vmmov %vm16451_vm0  ;;  %v3450_v8 = vrot.slane %v14137_v15, 4  ;;  %v14304_v3 = vld [vmem:[%s12124_s14 + $0x7c] sm:$0x7] }
 0x28c   : > { %1416 = vrot.lane.b32.xlu0 %v1362_v22, %s16310_s26  ;;  %v3441_v22 = vrot.slane %v14139_v35, 4  ;;  %v3603_v35 = vrot.slane %v10230_v9, 6  ;;  %v3601_v1 = vrot.slane %v14304_v3, 6 }
 0x28d   : > { %v1556_v56 = vpop.permute.xlu1 %1555 }
 0x28e   : > { %1619 = vst.msk [vmem:[#allocation2 + $0x58] sm:$0x1] %vm16450_vm1, %v1556_v56  ;;  %v1552_v36 = vpop.permute.xlu0 %1551  ;;  %vm16457_vm1 = vcmask 910080   ;;  %v1384_v56 = vrot.slane %v1382_v6, 5  ;;  %v3604_v3 = vrot.slane %v3603_v35, 4 }
 0x28f   : > { %1615 = vst.msk [vmem:[#allocation2 + $0x48] sm:$0x1] %vm16451_vm0, %v1552_v36  ;;  %3078 = vrot.lane.b32.xlu1 %v3029_v61, %s16310_s26  ;;  %vm16458_vm0 = vmmov %vm16457_vm1  ;;  %v3689_v61 = vld [vmem:[#allocation2 + $0x54] sm:$0xc] }
 0x290   : > { %3074 = vrot.lane.b32.xlu0 %v3020_v26, %s16310_s26 }
 0x291   : > { %v3211_v14 = vpop.permute.xlu1 %3210 }
 0x292   : > { %3271 = vst.msk [vmem:[#allocation2 + $0x5c] sm:$0x1] %vm16453_vm7, %v3211_v14  ;;  %v3207_v40 = vpop.permute.xlu0 %3206  ;;  %vm16459_vm7 = vmmov %vm16458_vm0  ;;  %v1375_v14 = vrot.slane %v1373_v43, 5 }
 0x293   : > { %3267 = vst.msk [vmem:[#allocation2 + $0x4c] sm:$0x1] %vm16454_vm4, %v3207_v40  ;;  %1563 = vrot.lane.b32.xlu1 %v1528_v47, %s16304_s29  ;;  %vm16460_vm4 = vmmov %vm16458_vm0  ;;  %v3685_v47 = vld [vmem:[#allocation2 + $0x44] sm:$0xc]  ;;  %v1378_v40 = vrot.slane %v1376_v2, 6 }
 0x294   : > { %1559 = vrot.lane.b32.xlu0 %v1526_v44, %s16304_s29  ;;  %v1387_v44 = vrot.slane %v1385_v59, 6  ;;  %v3276_v2 = vld [vmem:[#allocation2 + $0x74] sm:$0xc] }
 0x295   : > { %v1842_v34 = vpop.permute.xlu1 %1841 }
 0x296   : > { %1905 = vst.msk [vmem:[#allocation2 + $0x58] sm:$0x1] %vm16457_vm1, %v1842_v34  ;;  %v1838_v62 = vpop.permute.xlu0 %1837  ;;  %vm16461_vm1 = vcmask 1041280  }
 0x297   : > { %1901 = vst.msk [vmem:[#allocation2 + $0x48] sm:$0x1] %vm16458_vm0, %v1838_v62  ;;  %3218 = vrot.lane.b32.xlu1 %v3183_v31, %s16304_s29  ;;  %v10192_v31 = vld [vmem:[%s12124_s14 + $0xa8] sm:$0x7]  ;;  %v14316_v62 = vor.u32 %v1387_v44, %v1384_v56  ;;  %vm16462_vm0 = vmmov %vm16461_vm1 }
 0x298   : > { %3214 = vrot.lane.b32.xlu0 %v3181_v51, %s16304_s29  ;;  %v3043_v49 = vshll.u32 %v10192_v31, 16 }
 0x299   : > { %v1983_v28 = vpop.permute.xlu1 %1982 }
 0x29a   : > { %v2046_v29 = vsel %vm13246_vm10, %v1983_v28, %v2045_v41  ;;  %v1979_v60 = vpop.permute.xlu0 %1978  ;;  %v1957_v41 = vrot.slane %v1956_v17, 4 }
 0x29b   : > { %2047 = vst [vmem:[#allocation2 + $0x50] sm:$0xc] %v2046_v29  ;;  %v2042_v0 = vsel %vm13246_vm10, %v1979_v60, %v2041_v37  ;;  %1849 = vrot.lane.b32.xlu1 %v1800_v38, %s16304_s29  ;;  %v14318_v38 = vor.u32 %v1378_v40, %v1375_v14  ;;  %v1955_v29 = vrot.slane %v1954_v30, 4  ;;  %v3045_v37 = vrot.slane %v3043_v49, 6  ;;  %v14351_v40 = vld [vmem:[%s12124_s14 + $0x88] sm:$0x7] }
 0x29c   : > { %1845 = vrot.lane.b32.xlu0 %v1791_v58, %s16304_s29  ;;  %2043 = vst [vmem:[#allocation2 + $0x40] sm:$0xc] %v2042_v0  ;;  %v3040_v58 = vshrl.u32 %v10192_v31, 16  ;;  %v3036_v0 = vrot.slane %v3034_v21, 6  ;;  %v1060_v31 = vld [vmem:[#allocation2 + $0x90] sm:$0xc] }
 0x29d   : > { %v3492_v57 = vpop.permute.xlu1 %3491  ;;  %v1056_v49 = vld [vmem:[#allocation2 + $0x80] sm:$0xc] }
 0x29e   : > { %3552 = vst.msk [vmem:[#allocation2 + $0x5c] sm:$0x1] %vm16459_vm7, %v3492_v57  ;;  %v3488_v27 = vpop.permute.xlu0 %3487  ;;  %vm16463_vm7 = vmmov %vm16462_vm0  ;;  %v3042_v60 = vrot.slane %v3040_v58, 5  ;;  %v1624_v57 = vld [vmem:[#allocation2 + $0x70] sm:$0xc]  ;;  %v14337_v43 = vor.u32 %v3036_v0, %v3033_v55 }
 0x29f   : > { %3548 = vst.msk [vmem:[#allocation2 + $0x4c] sm:$0x1] %vm16460_vm4, %v3488_v27  ;;  %1990 = vrot.lane.b32.xlu1 %v1956_v17, %s16303_s15  ;;  %vm16464_vm4 = vmmov %vm16462_vm0  ;;  %v1620_v17 = vld [vmem:[#allocation2 + $0x60] sm:$0xc]  ;;  %v11531_v0 = vld [vmem:[%s16136_s1 + $0x50] sm:$0xff]  }
 0x2a0   : > { %1986 = vrot.lane.b32.xlu0 %v1954_v30, %s16303_s15  ;;  %v14335_v59 = vor.u32 %v3045_v37, %v3042_v60  ;;  %v11530_v60 = vld [vmem:[%s16136_s1 + $0x8] sm:$0xff]   ;;  %v2723_v37 = vld [vmem:[#allocation2 + $0x94] sm:$0xc] }
 0x2a1   : > { %v3630_v26 = vpop.permute.xlu1 %3629 }
 0x2a2   : > { %v3690_v36 = vsel %vm13246_vm10, %v3630_v26, %v3689_v61  ;;  %v3626_v33 = vpop.permute.xlu0 %3625 }
 0x2a3   : > { %3691 = vst [vmem:[#allocation2 + $0x54] sm:$0xc] %v3690_v36  ;;  %v3686_v15 = vsel %vm13246_vm10, %v3626_v33, %v3685_v47  ;;  %3499 = vrot.lane.b32.xlu1 %v3450_v8, %s16304_s29  ;;  %v3272_v8 = vld [vmem:[#allocation2 + $0x64] sm:$0xc]  ;;  %v3602_v36 = vrot.slane %v3601_v1, 4 }
 0x2a4   : > { %3495 = vrot.lane.b32.xlu0 %v3441_v22, %s16304_s29  ;;  %3687 = vst [vmem:[#allocation2 + $0x44] sm:$0xc] %v3686_v15  ;;  %v14342_v47 = vld [vmem:[%s12124_s14 + $0x98] sm:$0x7]  ;;  %v11525_v15 = vld [vmem:[%s16136_s1] sm:$0xff]  }
 0x2a5   : > { %v1985_v51 = vpop.permute.xlu1 %1984  ;;  %v1531_v21 = vrot.slane %v14342_v47, 6 }
 0x2a6   : > { %2048 = vst.msk [vmem:[#allocation2 + $0x58] sm:$0x1] %vm16461_vm1, %v1985_v51  ;;  %v1981_v34 = vpop.permute.xlu0 %1980  ;;  %v11528_v51 = vld [vmem:[%s16136_s1 + $0x48] sm:$0xff]  }
 0x2a7   : > { %2044 = vst.msk [vmem:[#allocation2 + $0x48] sm:$0x1] %vm16462_vm0, %v1981_v34  ;;  %3637 = vrot.lane.b32.xlu1 %v3603_v35, %s16303_s15  ;;  %v11526_v35 = vld [vmem:[%s16136_s1] sm:$0xff]   ;;  %vm16481_vm0 = vcmask 254080  }
 0x2a8   : > { %3633 = vrot.lane.b32.xlu0 %v3601_v1, %s16303_s15 }
 0x2a9   : > { %v3632_v54 = vpop.permute.xlu1 %3631 }
 0x2aa   : > { %3692 = vst.msk [vmem:[#allocation2 + $0x5c] sm:$0x1] %vm16463_vm7, %v3632_v54  ;;  %v3628_v28 = vpop.permute.xlu0 %3627  ;;  %v1529_v54 = vrot.slane %v14351_v40, 6  ;;  %vm16482_vm7 = vmmov %vm16481_vm0 }
 0x2ab   : > { %3688 = vst.msk [vmem:[#allocation2 + $0x4c] sm:$0x1] %vm16464_vm4, %v3628_v28  ;;  %1426 = vrot.lane.b32.xlu1 %v14316_v62, %s16310_s26  ;;  %v14374_v28 = vld [vmem:[%s12124_s14 + $0xa8] sm:$0x7]  ;;  %vm16485_vm4 = vmmov %vm16481_vm0 }
 0x2ac   : > { %1422 = vrot.lane.b32.xlu0 %v14318_v38, %s16310_s26 }
 0x2ad   : > { %v1562_v48 = vpop.permute.xlu1 %1561  ;;  %v11520_v9 = vld [vmem:[#allocation2 + $0x50] ss:$8 sps:$4 sm:$0x1f]  }
 0x2ae   : > { %v1625_v6 = vsel %vm12740_vm8, %v1562_v48, %v1624_v57  ;;  %v1558_v27 = vpop.permute.xlu0 %1557  ;;  %v11517_v56 = vld [vmem:[#allocation2 + $0x40] ss:$8 sps:$4 sm:$0x1f]   ;;  %v11532_v48 = vld [vmem:[%s16136_s1 + $0x50] sm:$0xff]  }
 0x2af   : > { %1626 = vst [vmem:[#allocation2 + $0x70] sm:$0xc] %v1625_v6  ;;  %v1621_v30 = vsel %vm12740_vm8, %v1558_v27, %v1620_v17  ;;  %1992 = vrot.lane.b32.xlu1 %v1957_v41, %s16303_s15  ;;  %v14377_v41 = vld [vmem:[%s12124_s14 + $0x98] sm:$0x7]  ;;  %v2719_v6 = vld [vmem:[#allocation2 + $0x84] sm:$0xc] }
 0x2b0   : > { %1988 = vrot.lane.b32.xlu0 %v1955_v29, %s16303_s15  ;;  %1622 = vst [vmem:[#allocation2 + $0x60] sm:$0xc] %v1621_v30  ;;  %v11529_v29 = vld [vmem:[%s16136_s1 + $0x8] sm:$0xff]   ;;  %v10102_v17 = vld [vmem:[%s12124_s14 + $0x9c] sm:$0x7] }
 0x2b1   : > { %v3217_v22 = vpop.permute.xlu1 %3216  ;;  %v11522_v14 = vld [vmem:[#allocation2 + $0x54] ss:$8 sps:$4 sm:$0x1f]  }
 0x2b2   : > { %v3277_v61 = vsel %vm12740_vm8, %v3217_v22, %v3276_v2  ;;  %v3213_v26 = vpop.permute.xlu0 %3212  ;;  %v11519_v44 = vld [vmem:[#allocation2 + $0x44] ss:$8 sps:$4 sm:$0x1f]   ;;  %4979 = vmatprep.mubr.bf16.mxu1 %v11522_v14  ;;  %v3186_v2 = vrot.slane %v14374_v28, 6 }
 0x2b3   : > { %3278 = vst [vmem:[#allocation2 + $0x74] sm:$0xc] %v3277_v61  ;;  %v3273_v33 = vsel %vm12740_vm8, %v3213_v26, %v3272_v8  ;;  %3084 = vrot.lane.b32.xlu1 %v14335_v59, %s16310_s26  ;;  %4761 = vmatprep.mubr.bf16.mxu0 %v11519_v44  ;;  %v3184_v8 = vrot.slane %v14377_v41, 6  ;;  %v10101_v22 = vld [vmem:[%s12124_s14 + $0x8c] sm:$0x7]  ;;  %v1811_v26 = vshrl.u32 %v10102_v17, 16 }
 0x2b4   : > { %3080 = vrot.lane.b32.xlu0 %v14337_v43, %s16310_s26  ;;  %3274 = vst [vmem:[#allocation2 + $0x64] sm:$0xc] %v3273_v33  ;;  %4762 = vmatmul.mubr.bf16.vlgmr.msra.gmra.mrb[8].mxu0 %v11517_v56  ;;  %v1814_v56 = vshll.u32 %v10102_v17, 16  ;;  %v11536_v33 = vld [vmem:[%s16136_s1 + $0x58] sm:$0xff]  }
 0x2b5   : > { %v998_v1 = vpop.permute.xlu1 %997  ;;  %4980 = vmatmul.mubr.bf16.vlgmr.msra.gmra.mrb[8].mxu1 %v11520_v9  ;;  %10929 = vmatpush3.bf16.msra.mxu0 %v11525_v15  ;;  %v11534_v9 = vld [vmem:[%s16136_s1 + $0x10] sm:$0xff]  }
 0x2b6   : > { %v1061_v34 = vsel %vm12575_vm11, %v998_v1, %v1060_v31  ;;  %v994_v58 = vpop.permute.xlu0 %993  ;;  %10951 = vmatpush3.bf16.msra.mxu1 %v11526_v35  ;;  %10930 = vmatprep.subr.bf16.mxu0 %v11527_v24  ;;  %v1710_v61 = vld [vmem:[#allocation2 + $0x70] sm:$0x7]  ;;  %v10092_v35 = vld [vmem:[%s12124_s14 + $0x9c] sm:$0x7]  ;;  %v1802_v1 = vshrl.u32 %v10101_v22, 16  ;;  %v1805_v31 = vshll.u32 %v10101_v22, 16 }
 0x2b7   : > { %1062 = vst [vmem:[#allocation2 + $0x90] sm:$0xc] %v1061_v34  ;;  %v1057_v5 = vsel %vm12575_vm11, %v994_v58, %v1056_v49  ;;  %3639 = vrot.lane.b32.xlu1 %v3604_v3, %s16303_s15  ;;  %10952 = vmatprep.subr.bf16.mxu1 %v11528_v51  ;;  %v1707_v15 = vld [vmem:[#allocation2 + $0x60] sm:$0x7]  ;;  %v10091_v51 = vld [vmem:[%s12124_s14 + $0x8c] sm:$0x7] }
 0x2b8   : > { %3635 = vrot.lane.b32.xlu0 %v3602_v36, %s16303_s15  ;;  %1058 = vst [vmem:[#allocation2 + $0x80] sm:$0xc] %v1057_v5  ;;  %v11535_v36 = vld [vmem:[%s16136_s1 + $0x58] sm:$0xff]   ;;  %v10222_v34 = vld [vmem:[%s12124_s14 + $0xac] sm:$0x7]  ;;  %v1804_v17 = vrot.slane %v1802_v1, 5 }
 0x2b9   : > { %v2664_v55 = vpop.permute.xlu1 %2663  ;;  %10931 = vmatpush3.bf16.msra.mxu0 %v11529_v29  ;;  %v10221_v58 = vld [vmem:[%s12124_s14 + $0x9c] sm:$0x7]  ;;  %v3461_v22 = vshrl.u32 %v10222_v34, 16 }
 0x2ba   : > { %v2724_v57 = vsel %vm12575_vm11, %v2664_v55, %v2723_v37  ;;  %v2660_v27 = vpop.permute.xlu0 %2659  ;;  %10953 = vmatpush3.bf16.msra.mxu1 %v11530_v60  ;;  %10932 = vmatprep.subr.bf16.mxu0 %v11531_v0  ;;  %v11537_v49 = vld [vmem:[%s16136_s1 + $0x18] sm:$0xff]   ;;  %v3360_v29 = vld [vmem:[#allocation2 + $0x74] sm:$0x7]  ;;  %v1813_v37 = vrot.slane %v1811_v26, 5  ;;  %v1816_v55 = vrot.slane %v1814_v56, 6  ;;  %v11539_v0 = vld [vmem:[%s16136_s1 + $0x60] sm:$0xff]  }
 0x2bb   : > { %2725 = vst [vmem:[#allocation2 + $0x94] sm:$0xc] %v2724_v57  ;;  %v2720_v30 = vsel %vm12575_vm11, %v2660_v27, %v2719_v6  ;;  %1569 = vrot.lane.b32.xlu1 %v1531_v21, %s16304_s29  ;;  %10954 = vmatprep.subr.bf16.mxu1 %v11532_v48  ;;  %v11538_v5 = vld [vmem:[%s16136_s1 + $0x18] sm:$0xff]   ;;  %v11540_v48 = vld [vmem:[%s16136_s1 + $0x60] sm:$0xff]   ;;  %v3455_v26 = vshll.u32 %v10221_v58, 16  ;;  %vm16477_vm11 = vcmask 122880  }
 0x2bc   : > { %1565 = vrot.lane.b32.xlu0 %v1529_v54, %s16304_s29  ;;  %2721 = vst [vmem:[#allocation2 + $0x84] sm:$0xc] %v2720_v30  ;;  %v3357_v6 = vld [vmem:[#allocation2 + $0x64] sm:$0x7]  ;;  %v1807_v30 = vrot.slane %v1805_v31, 6  ;;  %vm16480_vm1 = vmmov %vm16477_vm11 }
 0x2bd   : > { %v1672_v3 = vpop.permute.xlu1 %1671  ;;  %10933 = vmatpush3.bf16.msra.mxu0 %v11533_v12  ;;  %v10211_v56 = vld [vmem:[%s12124_s14 + $0x9c] sm:$0x7] }
 0x2be   : > { %v1711_v44 = vsel %vm12925_vm12, %v1672_v3, %v1710_v61  ;;  %v1670_v14 = vpop.permute.xlu0 %1669  ;;  %10955 = vmatpush3.bf16.msra.mxu1 %v11534_v9  ;;  %10934 = vmatprep.subr.bf16.mxu0 %v11535_v36  ;;  %v10212_v9 = vld [vmem:[%s12124_s14 + $0xac] sm:$0x7]  ;;  %v3464_v3 = vshll.u32 %v10222_v34, 16  ;;  %v3452_v61 = vshrl.u32 %v10221_v58, 16  ;;  %v11541_v36 = vld [vmem:[%s16136_s1 + $0x20] sm:$0xff]   ;;  %v14467_v34 = vor.u32 %v1807_v30, %v1804_v17 }
 0x2bf   : > { %1712 = vst [vmem:[#allocation2 + $0x70] sm:$0x7] %v1711_v44  ;;  %v1708_v24 = vsel %vm12925_vm12, %v1670_v14, %v1707_v15  ;;  %3224 = vrot.lane.b32.xlu1 %v3186_v2, %s16304_s29  ;;  %10956 = vmatprep.subr.bf16.mxu1 %v11536_v33  ;;  %v11542_v33 = vld [vmem:[%s16136_s1 + $0x20] sm:$0xff]   ;;  %v1203_v14 = vld [vmem:[#allocation2 + $0x90] sm:$0xc]  ;;  %v11543_v15 = vld [vmem:[%s16136_s1 + $0x68] sm:$0xff]  }
 0x2c0   : > { %3220 = vrot.lane.b32.xlu0 %v3184_v8, %s16304_s29  ;;  %1709 = vst [vmem:[#allocation2 + $0x60] sm:$0x7] %v1708_v24  ;;  %v1199_v24 = vld [vmem:[#allocation2 + $0x80] sm:$0xc]  ;;  %v3463_v58 = vrot.slane %v3461_v22, 5 }
 0x2c1   : > { %v3324_v60 = vpop.permute.xlu1 %3323  ;;  %10935 = vmatpush3.bf16.msra.mxu0 %v11537_v49 }
 0x2c2   : > { %v3361_v57 = vsel %vm12925_vm12, %v3324_v60, %v3360_v29  ;;  %v3322_v27 = vpop.permute.xlu0 %3321  ;;  %10957 = vmatpush3.bf16.msra.mxu1 %v11538_v5  ;;  %10936 = vmatprep.subr.bf16.mxu0 %v11539_v0  ;;  %v3466_v5 = vrot.slane %v3464_v3, 6  ;;  %v3454_v29 = vrot.slane %v3452_v61, 5  ;;  %v3457_v60 = vrot.slane %v3455_v26, 6  ;;  %v2863_v0 = vld [vmem:[#allocation2 + $0x94] sm:$0xc] }
 0x2c3   : > { %3362 = vst [vmem:[#allocation2 + $0x74] sm:$0x7] %v3361_v57  ;;  %v3358_v12 = vsel %vm12925_vm12, %v3322_v27, %v3357_v6  ;;  %1675 = vrot.lane.b32.xlu1 %v10092_v35, %s16313_s16  ;;  %10958 = vmatprep.subr.bf16.mxu1 %v11540_v48  ;;  %v11544_v35 = vld [vmem:[%s16136_s1 + $0x68] sm:$0xff]   ;;  %v11547_v57 = vld [vmem:[%s16136_s1 + $0x70] sm:$0xff]   ;;  %v2859_v17 = vld [vmem:[#allocation2 + $0x84] sm:$0xc] }
 0x2c4   : > { %1673 = vrot.lane.b32.xlu0 %v10091_v51, %s16313_s16  ;;  %3359 = vst [vmem:[#allocation2 + $0x64] sm:$0x7] %v3358_v12  ;;  %v14465_v51 = vor.u32 %v1816_v55, %v1813_v37  ;;  %v11545_v37 = vld [vmem:[%s16136_s1 + $0x28] sm:$0xff]   ;;  %v11548_v6 = vld [vmem:[%s16136_s1 + $0x70] sm:$0xff]   ;;  %v14493_v12 = vor.u32 %v3466_v5, %v3463_v58  ;;  %v11553_v58 = vld [vmem:[%s16136_s1 + $0x38] sm:$0xff]  }
 0x2c5   : > { %v1141_v44 = vpop.permute.xlu1 %1140  ;;  %10937 = vmatpush3.bf16.msra.mxu0 %v11541_v36  ;;  %v11546_v55 = vld [vmem:[%s16136_s1 + $0x28] sm:$0xff]   ;;  %v11549_v3 = vld [vmem:[%s16136_s1 + $0x30] sm:$0xff]   ;;  %v11552_v36 = vld [vmem:[%s16136_s1 + $0x78] sm:$0xff]  }
 0x2c6   : > { %v1204_v1 = vsel %vm12612_vm13, %v1141_v44, %v1203_v14  ;;  %v1137_v31 = vpop.permute.xlu0 %1136  ;;  %10959 = vmatpush3.bf16.msra.mxu1 %v11542_v33  ;;  %10938 = vmatprep.subr.bf16.mxu0 %v11543_v15  ;;  %v1910_v26 = vld [vmem:[#allocation2 + $0x70] sm:$0xc] }
 0x2c7   : > { %1205 = vst [vmem:[#allocation2 + $0x90] sm:$0xc] %v1204_v1  ;;  %v1200_v49 = vsel %vm12612_vm13, %v1137_v31, %v1199_v24  ;;  %3327 = vrot.lane.b32.xlu1 %v10212_v9, %s16313_s16  ;;  %10960 = vmatprep.subr.bf16.mxu1 %v11544_v35  ;;  %v14495_v9 = vor.u32 %v3457_v60, %v3454_v29  ;;  %v1906_v14 = vld [vmem:[#allocation2 + $0x60] sm:$0xc]  ;;  %v16465_v35 = vld [vmem:[#allocation25_spill] sm:$0xff]  ;;  %v16466_v31 = vld [vmem:[#allocation26_spill] sm:$0xff] }
 0x2c8   : > { %3325 = vrot.lane.b32.xlu0 %v10211_v56, %s16313_s16  ;;  %1201 = vst [vmem:[#allocation2 + $0x80] sm:$0xc] %v1200_v49  ;;  %v11551_v56 = vld [vmem:[%s16136_s1 + $0x78] sm:$0xff]   ;;  %v530_v1 = vrot.slane %v16465_v35, 4  ;;  %v521_v24 = vrot.slane %v16466_v31, 4 }
 0x2c9   : > { %v2804_v48 = vpop.permute.xlu1 %2803  ;;  %10939 = vmatpush3.bf16.msra.mxu0 %v11545_v37  ;;  %v11554_v49 = vld [vmem:[%s16136_s1 + $0x38] sm:$0xff]  }
 0x2ca   : > { %v2864_v27 = vsel %vm12612_vm13, %v2804_v48, %v2863_v0  ;;  %v2800_v30 = vpop.permute.xlu0 %2799  ;;  %10961 = vmatpush3.bf16.msra.mxu1 %v11546_v55  ;;  %10940 = vmatprep.subr.bf16.mxu0 %v11547_v57  ;;  %v3557_v5 = vld [vmem:[#allocation2 + $0x74] sm:$0xc]  ;;  %v16467_v48 = vld [vmem:[#allocation33_spill] sm:$0xff] }
 0x2cb   : > { %2865 = vst [vmem:[#allocation2 + $0x94] sm:$0xc] %v2864_v27  ;;  %v2860_v22 = vsel %vm12612_vm13, %v2800_v30, %v2859_v17  ;;  %1855 = vrot.lane.b32.xlu1 %v14465_v51, %s16304_s29  ;;  %10962 = vmatprep.subr.bf16.mxu1 %v11548_v6  ;;  %v3553_v37 = vld [vmem:[#allocation2 + $0x64] sm:$0xc]  ;;  %v2205_v57 = vrot.slane %v16467_v48, 4  ;;  %v16468_v6 = vld [vmem:[#allocation34_spill] sm:$0xff]  ;;  %vm16478_vm13 = vmmov %vm16477_vm11 }
 0x2cc   : > { %1851 = vrot.lane.b32.xlu0 %v14467_v34, %s16304_s29  ;;  %2861 = vst [vmem:[#allocation2 + $0x84] sm:$0xc] %v2860_v22  ;;  %v2196_v27 = vrot.slane %v16468_v6, 4 }
 0x2cd   : > { %v1848_v61 = vpop.permute.xlu1 %1847  ;;  %10941 = vmatpush3.bf16.msra.mxu0 %v11549_v3 }
 0x2ce   : > { %v1911_v33 = vsel %vm13053_vm14, %v1848_v61, %v1910_v26  ;;  %v1844_v44 = vpop.permute.xlu0 %1843  ;;  %10963 = vmatpush3.bf16.msra.mxu1 %v11550_v45  ;;  %10942 = vmatprep.subr.bf16.mxu0 %v11551_v56  ;;  %v1287_v30 = vld [vmem:[#allocation2 + $0x90] sm:$0x7]  ;;  %v16469_v26 = vld [vmem:[#allocation35_spill] sm:$0xff] }
 0x2cf   : > { %1912 = vst [vmem:[#allocation2 + $0x70] sm:$0xc] %v1911_v33  ;;  %v1907_v15 = vsel %vm13053_vm14, %v1844_v44, %v1906_v14  ;;  %3505 = vrot.lane.b32.xlu1 %v14493_v12, %s16304_s29  ;;  %10964 = vmatprep.subr.bf16.mxu1 %v11552_v36  ;;  %v1284_v45 = vld [vmem:[#allocation2 + $0x80] sm:$0x7]  ;;  %v16470_v56 = vrot.slane %v16469_v26, 6 }
 0x2d0   : > { %3501 = vrot.lane.b32.xlu0 %v14495_v9, %s16304_s29  ;;  %1908 = vst [vmem:[#allocation2 + $0x60] sm:$0xc] %v1907_v15  ;;  %v16471_v33 = vld [vmem:[#allocation36_spill] sm:$0xff] }
 0x2d1   : > { %v3498_v29 = vpop.permute.xlu1 %3497  ;;  %10943 = vmatpush3.bf16.msra.mxu0 %v11553_v58  ;;  %v674_v36 = vrot.slane %v16470_v56, 4  ;;  %v16472_v44 = vrot.slane %v16471_v33, 6 }
 0x2d2   : > { %v3558_v60 = vsel %vm13053_vm14, %v3498_v29, %v3557_v5  ;;  %v3494_v55 = vpop.permute.xlu0 %3493  ;;  %10965 = vmatpush3.bf16.msra.mxu1 %v11554_v49  ;;  %v2945_v15 = vld [vmem:[#allocation2 + $0x94] sm:$0x7]  ;;  %v16473_v49 = vld [vmem:[#allocation37_spill] sm:$0xff] }
 0x2d3   : > { %3559 = vst [vmem:[#allocation2 + $0x74] sm:$0xc] %v3558_v60  ;;  %v3554_v0 = vsel %vm13053_vm14, %v3494_v55, %v3553_v37  ;;  %569 = vrot.lane.b32.xlu1 %v530_v1, %s16303_s15  ;;  %v672_v14 = vrot.slane %v16472_v44, 4  ;;  %v2942_v31 = vld [vmem:[#allocation2 + $0x84] sm:$0x7]  ;;  %v16474_v5 = vrot.slane %v16473_v49, 6 }
 0x2d4   : > { %565 = vrot.lane.b32.xlu0 %v521_v24, %s16303_s15  ;;  %3555 = vst [vmem:[#allocation2 + $0x64] sm:$0xc] %v3554_v0  ;;  %v16475_v60 = vld [vmem:[#allocation38_spill] sm:$0xff]  ;;  %v1389_v44 = vrot.slane %v14316_v62, 4 }
 0x2d5   : > { %v1247_v17 = vpop.permute.xlu1 %1246  ;;  %v2345_v29 = vrot.slane %v16474_v5, 4  ;;  %v16476_v37 = vrot.slane %v16475_v60, 6  ;;  %v3185_v60 = vrot.slane %v3184_v8, 4  ;;  %v14627_v8 = vld [vmem:[%s12124_s14 + $0x8c] sm:$0x7] }
 0x2d6   : > { %v1288_v22 = vsel %vm12654_vm15, %v1247_v17, %v1287_v30  ;;  %v1245_v3 = vpop.permute.xlu0 %1244  ;;  %v2626_v17 = vrot.slane %v14061_v18, 4  ;;  %v2617_v30 = vrot.slane %v14063_v39, 4  ;;  %v16487_v39 = vrot.slane %v14092_v20, 6 }
 0x2d7   : > { %1289 = vst [vmem:[#allocation2 + $0x90] sm:$0x7] %v1288_v22  ;;  %v1285_v61 = vsel %vm12654_vm15, %v1245_v3, %v1284_v45  ;;  %2244 = vrot.lane.b32.xlu1 %v2205_v57, %s16303_s15  ;;  %v2343_v55 = vrot.slane %v16476_v37, 4  ;;  %v951_v57 = vrot.slane %v14048_v63, 4  ;;  %v16483_v63 = vrot.slane %v14085_v25, 6 }
 0x2d8   : > { %2240 = vrot.lane.b32.xlu0 %v2196_v27, %s16303_s15  ;;  %1286 = vst [vmem:[#allocation2 + $0x80] sm:$0x7] %v1285_v61  ;;  %v16484_v45 = vrot.slane %v14089_v11, 6  ;;  %v2766_v56 = vrot.slane %v16487_v39, 4 }
 0x2d9   : > { %v2907_v35 = vpop.permute.xlu1 %2906  ;;  %v1103_v3 = vrot.slane %v16483_v63, 4  ;;  %v1809_v63 = vrot.slane %v14467_v34, 4  ;;  %v3459_v34 = vrot.slane %v14495_v9, 4 }
 0x2da   : > { %v2946_v1 = vsel %vm12654_vm15, %v2907_v35, %v2945_v15  ;;  %v2905_v24 = vpop.permute.xlu0 %2904  ;;  %v1101_v61 = vrot.slane %v16484_v45, 4  ;;  %v3038_v35 = vrot.slane %v14337_v43, 4  ;;  %v11562_v43 = vld [vmem:[%s16136_s1 + $0x40] sm:$0xff]  }
 0x2db   : > { %2947 = vst [vmem:[#allocation2 + $0x94] sm:$0x7] %v2946_v1  ;;  %v2943_v58 = vsel %vm12654_vm15, %v2905_v24, %v2942_v31  ;;  %713 = vrot.lane.b32.xlu1 %v674_v36, %s16305_s0  ;;  %vm16479_vm15 = vmmov %vm16477_vm11  ;;  %v16488_v36 = vrot.slane %v14095_v23, 6  ;;  %v3047_v23 = vrot.slane %v14335_v59, 4  ;;  %v1530_v31 = vrot.slane %v1529_v54, 4  ;;  %v11561_v59 = vld [vmem:[%s16136_s1 + $0x40] sm:$0xff]   ;;  %10994 = vmatprep.subr.bf16.mxu1 %v11562_v43 }
 0x2dc   : > { %709 = vrot.lane.b32.xlu0 %v672_v14, %s16305_s0  ;;  %2944 = vst [vmem:[#allocation2 + $0x84] sm:$0x7] %v2943_v58  ;;  %v1380_v14 = vrot.slane %v14318_v38, 4  ;;  %v1532_v38 = vrot.slane %v1531_v21, 4  ;;  %10972 = vmatprep.subr.bf16.mxu0 %v11561_v59 }
 0x2dd   : > { %v562_v0 = vpop.permute.xlu1 %561  ;;  %v2764_v25 = vrot.slane %v16488_v36, 4 }
 0x2de   : > { %626 = vst.msk [vmem:[#allocation2 + $0x78] sm:$0x1] %vm16477_vm11, %v562_v0  ;;  %v558_v48 = vpop.permute.xlu0 %557  ;;  %vm16486_vm11 = vmmov %vm16481_vm0 }
 0x2df   : > { %622 = vst.msk [vmem:[#allocation2 + $0x68] sm:$0x1] %vm16478_vm13, %v558_v48  ;;  %2384 = vrot.lane.b32.xlu1 %v2345_v29, %s16305_s0  ;;  %vm16489_vm13 = vcmask 385280   ;;  %v3187_v29 = vrot.slane %v3186_v2, 4  ;;  %v14618_v48 = vld [vmem:[%s16137_s2] ss:$0 sm:$0xff] }
 0x2e0   : > { %2380 = vrot.lane.b32.xlu0 %v2343_v55, %s16305_s0  ;;  %v14624_v2 = vld [vmem:[%s12124_s14 + $0x9c] sm:$0x7] }
 0x2e1   : > { %v2237_v6 = vpop.permute.xlu1 %2236  ;;  %v1960_v39 = vrot.slane %v14624_v2, 6 }
 0x2e2   : > { %2297 = vst.msk [vmem:[#allocation2 + $0x7c] sm:$0x1] %vm16479_vm15, %v2237_v6  ;;  %v2233_v27 = vpop.permute.xlu0 %2232  ;;  %vm16490_vm15 = vmmov %vm16489_vm13 }
 0x2e3   : > { %2293 = vst.msk [vmem:[#allocation2 + $0x6c] sm:$0x1] %vm16480_vm1, %v2233_v27  ;;  %999 = vrot.lane.b32.xlu1 %v960_v13, %s16305_s0  ;;  %vm16491_vm1 = vmmov %vm16489_vm13 }
 0x2e4   : > { %995 = vrot.lane.b32.xlu0 %v951_v57, %s16305_s0 }
 0x2e5   : > { %v706_v22 = vpop.permute.xlu1 %705 }
 0x2e6   : > { %769 = vst.msk [vmem:[#allocation2 + $0x78] sm:$0x1] %vm16481_vm0, %v706_v22  ;;  %v702_v16 = vpop.permute.xlu0 %701  ;;  %vm16492_vm0 = vmmov %vm16491_vm1 }
 0x2e7   : > { %765 = vst.msk [vmem:[#allocation2 + $0x68] sm:$0x1] %vm16482_vm7, %v702_v16  ;;  %2665 = vrot.lane.b32.xlu1 %v2626_v17, %s16305_s0  ;;  %vm16493_vm7 = vcmask 516480   ;;  %v1818_v16 = vrot.slane %v14465_v51, 4  ;;  %v3468_v51 = vrot.slane %v14493_v12, 4 }
 0x2e8   : > { %2661 = vrot.lane.b32.xlu0 %v2617_v30, %s16305_s0  ;;  %s9963_s0 = sshll.u32 %s378_s25, 4  ;;  %s16095_s0 = int_to_ptr.vmem [resolvable:$true] %s9963_s0 }
 0x2e9   : > { %v2377_v26 = vpop.permute.xlu1 %2376  ;;  %s11935_s16 = scalar_lea.vmem %s16095_s0, 16 }
 0x2ea   : > { %2437 = vst.msk [vmem:[#allocation2 + $0x7c] sm:$0x1] %vm16485_vm4, %v2377_v26  ;;  %v2373_v18 = vpop.permute.xlu0 %2372  ;;  %vm16494_vm4 = vmmov %vm16493_vm7  ;;  %p11936_p11 = scmp.ne.s32.totalorder %s16095_s0, %s11935_s16 }
 0x2eb   : > { %2433 = vst.msk [vmem:[#allocation2 + $0x6c] sm:$0x1] %vm16486_vm11, %v2373_v18  ;;  %1142 = vrot.lane.b32.xlu1 %v1103_v3, %s16310_s26  ;;  %vm16495_vm11 = vmmov %vm16494_vm4 }
 0x2ec   : > { %1138 = vrot.lane.b32.xlu0 %v1101_v61, %s16310_s26  ;;  %p11937_p12 = pnand %p11936_p11, %p12109_p5 }
 0x2ed   : > { %v992_v33 = vpop.permute.xlu1 %991 }
 0x2ee   : > { %1055 = vst.msk [vmem:[#allocation2 + $0x78] sm:$0x1] %vm16489_vm13, %v992_v33  ;;  %v988_v11 = vpop.permute.xlu0 %987  ;;  %vm16496_vm13 = vmmov %vm16494_vm4  ;;  %p11938_p13 = pneg %p11937_p12 }
 0x2ef   : > { %1051 = vst.msk [vmem:[#allocation2 + $0x68] sm:$0x1] %vm16490_vm15, %v988_v11  ;;  %2805 = vrot.lane.b32.xlu1 %v2766_v56, %s16310_s26  ;;  %vm16497_vm15 = vcmask 647680   ;;  %v1958_v56 = vrot.slane %v14627_v8, 6 }
 0x2f0   : > { %2801 = vrot.lane.b32.xlu0 %v2764_v25, %s16310_s26  ;;  %v4338_v25 = vld [vmem:[#allocation3 + $0x8] sm:$0x7] }
 0x2f1   : > { %v2658_v15 = vpop.permute.xlu1 %2657 }
 0x2f2   : > { %2718 = vst.msk [vmem:[#allocation2 + $0x7c] sm:$0x1] %vm16491_vm1, %v2658_v15  ;;  %v2654_v20 = vpop.permute.xlu0 %2653  ;;  %vm16498_vm1 = vmmov %vm16497_vm15 }
 0x2f3   : > { %2714 = vst.msk [vmem:[#allocation2 + $0x6c] sm:$0x1] %vm16492_vm0, %v2654_v20  ;;  %1428 = vrot.lane.b32.xlu1 %v1389_v44, %s16310_s26  ;;  %vm16499_vm0 = vmmov %vm16498_vm1 }
 0x2f4   : > { %1424 = vrot.lane.b32.xlu0 %v1380_v14, %s16310_s26 }
 0x2f5   : > { %v1135_v1 = vpop.permute.xlu1 %1134 }
 0x2f6   : > { %1198 = vst.msk [vmem:[#allocation2 + $0x78] sm:$0x1] %vm16493_vm7, %v1135_v1  ;;  %v1131_v62 = vpop.permute.xlu0 %1130  ;;  %vm16500_vm7 = vmmov %vm16499_vm0 }
 0x2f7   : > { %1194 = vst.msk [vmem:[#allocation2 + $0x68] sm:$0x1] %vm16494_vm4, %v1131_v62  ;;  %3086 = vrot.lane.b32.xlu1 %v3047_v23, %s16310_s26  ;;  %v10856_v24 = vpop.f32.mrb[4].mxu0  ;;  %v4556_v23 = vld [vmem:[#allocation3 + $0xc] sm:$0x7]  ;;  %vm16501_vm4 = vcmask 778880  }
 0x2f8   : > { %3082 = vrot.lane.b32.xlu0 %v3038_v35, %s16310_s26  ;;  %v10878_v58 = vpop.f32.mrb[4].mxu1  ;;  %v10857_v21 = vpop.f32.mrb[5].mxu0  ;;  %s9951_s26 = scalar_lea.sflag [#allocation9], %s377_s23 }
 0x2f9   : > { %v2798_v49 = vpop.permute.xlu1 %2797  ;;  %v10858_v40 = vadd.f32 %v10857_v21, %v10856_v24  ;;  %v10879_v54 = vpop.f32.mrb[5].mxu1 }
 0x2fa   : > { %2858 = vst.msk [vmem:[#allocation2 + $0x7c] sm:$0x1] %vm16495_vm11, %v2798_v49  ;;  %v2794_v47 = vpop.permute.xlu0 %2793  ;;  %v10859_v5 = vpop.f32.mrb[6].mxu0  ;;  %v10880_v37 = vadd.f32 %v10879_v54, %v10878_v58  ;;  %vm16502_vm11 = vmmov %vm16501_vm4 }
 0x2fb   : > { %2854 = vst.msk [vmem:[#allocation2 + $0x6c] sm:$0x1] %vm16496_vm13, %v2794_v47  ;;  %1571 = vrot.lane.b32.xlu1 %v1532_v38, %s16304_s29  ;;  %v10881_v55 = vpop.f32.mrb[6].mxu1  ;;  %v10860_v0 = vpop.f32.mrb[7].mxu0  ;;  %v4328_v13 = vadd.f32 %v14618_v48, %v10858_v40  ;;  %vm16503_vm13 = vmmov %vm16501_vm4 }
 0x2fc   : > { %1567 = vrot.lane.b32.xlu0 %v1530_v31, %s16304_s29  ;;  %v10861_v57 = vadd.f32 %v10860_v0, %v10859_v5  ;;  %v10882_v6 = vpop.f32.mrb[7].mxu1  ;;  %v4546_v28 = vadd.f32 %v14618_v48, %v10880_v37  ;;  %v10232_v37 = vld [vmem:[%s12124_s14 + $0xac] sm:$0x7] }
 0x2fd   : > { %v1421_v27 = vpop.permute.xlu1 %1420  ;;  %v10883_v17 = vadd.f32 %v10882_v6, %v10881_v55  ;;  %v4334_v30 = vmax.f32 %v4328_v13, 0.0  ;;  %v10231_v55 = vld [vmem:[%s12124_s14 + $0x9c] sm:$0x7]  ;;  %s11939_s14 = sshll.u32 %s12010_s21, 4  ;;  %s11940_s14 = int_to_ptr.vmem [resolvable:$false] %s11939_s14 }
 0x2fe   : > { %1484 = vst.msk [vmem:[#allocation2 + $0x78] sm:$0x1] %vm16497_vm15, %v1421_v27  ;;  %v1417_v41 = vpop.permute.xlu0 %1416  ;;  %v4331_v22 = vadd.f32 %v14618_v48, %v10861_v57  ;;  %v4552_v3 = vmax.f32 %v4546_v28, 0.0  ;;  %vm16504_vm15 = vmmov %vm16501_vm4  ;;  %p11942_p0 = scmp.lt.s32.totalorder %s16095_s0, %s11940_s14 }
 0x2ff   : > { %1480 = vst.msk [vmem:[#allocation2 + $0x68] sm:$0x1] %vm16498_vm1, %v1417_v41  ;;  %3226 = vrot.lane.b32.xlu1 %v3187_v29, %s16304_s29  ;;  %v4549_v45 = vadd.f32 %v14618_v48, %v10883_v17  ;;  %v10780_v61 = vpack.c.bf16 %v4334_v30, %v4334_v30  ;;  %vm16505_vm1 = vcmask 910080  }
 0x300   : > { %3222 = vrot.lane.b32.xlu0 %v3185_v60, %s16304_s29  ;;  %v4335_v26 = vmax.f32 %v4331_v22, 0.0  ;;  %v10782_v36 = vpack.c.bf16 %v4552_v3, %v4552_v3  ;;  %v3605_v22 = vrot.slane %v10231_v55, 6 }
 0x301   : > { %v3079_v18 = vpop.permute.xlu1 %3078  ;;  %v4553_v33 = vmax.f32 %v4549_v45, 0.0  ;;  %v4347_v44 = vshrl.u32 %v10780_v61, 16  ;;  %v4350_v14 = vshll.u32 %v10780_v61, 16 }
 0x302   : > { %3139 = vst.msk [vmem:[#allocation2 + $0x7c] sm:$0x1] %vm16499_vm0, %v3079_v18  ;;  %v3075_v11 = vpop.permute.xlu0 %3074  ;;  %v4336_v15 = vpack.c.bf16 %v4335_v26, %v4334_v30  ;;  %v10781_v20 = vpack.c.bf16 %v4335_v26, %v4335_v26  ;;  %v4565_v35 = vshrl.u32 %v10782_v36, 16  ;;  %v4568_v1 = vshll.u32 %v10782_v36, 16  ;;  %vm16506_vm0 = vmmov %vm16505_vm1 }
 0x303   : > { %3135 = vst.msk [vmem:[#allocation2 + $0x6c] sm:$0x1] %vm16500_vm7, %v3075_v11  ;;  %1857 = vrot.lane.b32.xlu1 %v1818_v16, %s16304_s29  ;;  %v4554_v62 = vpack.c.bf16 %v4553_v33, %v4552_v3  ;;  %v10783_v38 = vpack.c.bf16 %v4553_v33, %v4553_v33  ;;  %v4349_v31 = vrot.slane %v4347_v44, 6  ;;  %v4352_v59 = vrot.slane %v4350_v14, 7  ;;  %vm16507_vm7 = vmmov %vm16506_vm0  ;;  %v3697_v44 = vld [vmem:[#allocation2 + $0x74] sm:$0xc] }
 0x304   : > { %1853 = vrot.lane.b32.xlu0 %v1809_v63, %s16304_s29  ;;  %v4339_v12 = vsel %vm12251_vm2, %v4336_v15, %v4338_v25  ;;  %v4356_v9 = vshrl.u32 %v10781_v20, 16  ;;  %v4567_v24 = vrot.slane %v4565_v35, 6  ;;  %v4570_v58 = vrot.slane %v4568_v1, 7  ;;  %v2053_v25 = vld [vmem:[#allocation2 + $0x70] sm:$0xc] }
 0x305   : > { %v1564_v43 = vpop.permute.xlu1 %1563  ;;  %v4359_v49 = vshll.u32 %v10781_v20, 16  ;;  %4340 = vst [vmem:[#allocation3 + $0x8] sm:$0x7] %v4339_v12  ;;  %v4557_v47 = vsel %vm12251_vm2, %v4554_v62, %v4556_v23  ;;  %v4574_v54 = vshrl.u32 %v10783_v38, 16  ;;  %v4577_v5 = vshll.u32 %v10783_v38, 16 }
 0x306   : > { %1627 = vst.msk [vmem:[#allocation2 + $0x78] sm:$0x1] %vm16501_vm4, %v1564_v43  ;;  %v1560_v21 = vpop.permute.xlu0 %1559  ;;  %v4358_v40 = vrot.slane %v4356_v9, 6  ;;  %4558 = vst [vmem:[#allocation3 + $0xc] sm:$0x7] %v4557_v47  ;;  %v4353_v29 = vor.u32 %v4352_v59, %v4349_v31  ;;  %v4571_v0 = vor.u32 %v4570_v58, %v4567_v24  ;;  %v3607_v30 = vrot.slane %v10232_v37, 6 }
 0x307   : > { %1623 = vst.msk [vmem:[#allocation2 + $0x68] sm:$0x1] %vm16502_vm11, %v1560_v21  ;;  %1998 = vrot.lane.b32.xlu1 %v1960_v39, %s16303_s15  ;;  %v4361_v60 = vrot.slane %v4359_v49, 7  ;;  %v4576_v13 = vrot.slane %v4574_v54, 6  ;;  %v4579_v57 = vrot.slane %v4577_v5, 7  ;;  %v1961_v26 = vrot.slane %v1960_v39, 4  ;;  %vm16508_vm4 = vmmov %vm16506_vm0 }
 0x308   : > { %1994 = vrot.lane.b32.xlu0 %v1958_v56, %s16303_s15  ;;  %v4354_v27 = vrot.slane %v4353_v29, 4  ;;  %v4572_v17 = vrot.slane %v4571_v0, 4  ;;  %v1959_v18 = vrot.slane %v1958_v56, 4  ;;  %v3608_v2 = vrot.slane %v3607_v30, 4  ;;  %v3693_v20 = vld [vmem:[#allocation2 + $0x64] sm:$0xc] }
 0x309   : > { %v3219_v6 = vpop.permute.xlu1 %3218  ;;  %v4362_v41 = vor.u32 %v4361_v60, %v4358_v40  ;;  %v4580_v16 = vor.u32 %v4579_v57, %v4576_v13  ;;  %v3606_v39 = vrot.slane %v3605_v22, 4  ;;  %v1489_v62 = vld [vmem:[#allocation2 + $0x90] sm:$0xc]  ;;  %v1485_v59 = vld [vmem:[#allocation2 + $0x80] sm:$0xc]  ;;  %vm16509_vm11 = vcmask 1041280  }
 0x30a   : > { %3279 = vst.msk [vmem:[#allocation2 + $0x7c] sm:$0x1] %vm16503_vm13, %v3219_v6  ;;  %v3215_v28 = vpop.permute.xlu0 %3214  ;;  %vm16510_vm13 = vmmov %vm16509_vm11  ;;  %v3144_v9 = vld [vmem:[#allocation2 + $0x94] sm:$0xc]  ;;  %v3140_v58 = vld [vmem:[#allocation2 + $0x84] sm:$0xc] }
 0x30b   : > { %3275 = vst.msk [vmem:[#allocation2 + $0x6c] sm:$0x1] %vm16504_vm15, %v3215_v28  ;;  %3507 = vrot.lane.b32.xlu1 %v3468_v51, %s16304_s29  ;;  %v4363_v63 = vsel %vm14198_vm5, %v4354_v27, %v4362_v41  ;;  %v4581_v45 = vsel %vm14198_vm5, %v4572_v17, %v4580_v16  ;;  %v2049_v51 = vld [vmem:[#allocation2 + $0x60] sm:$0xc]  ;;  %vm16511_vm15 = vmmov %vm16509_vm11 }
 0x30c   : > { %3503 = vrot.lane.b32.xlu0 %v3459_v34, %s16304_s29  ;;  %v11563_v6 = vld [vmem:[%s16136_s1] sm:$0xff]  }
 0x30d   : > { %v1850_v3 = vpop.permute.xlu1 %1849  ;;  %v11564_v41 = vld [vmem:[%s16136_s1] sm:$0xff]  }
 0x30e   : > { %1913 = vst.msk [vmem:[#allocation2 + $0x78] sm:$0x1] %vm16505_vm1, %v1850_v3  ;;  %v1846_v61 = vpop.permute.xlu0 %1845  ;;  %vm16512_vm1 = vmmov %vm16509_vm11  ;;  %v11566_v3 = vld [vmem:[%s16136_s1 + $0x48] sm:$0xff]  }
 0x30f   : > { %1909 = vst.msk [vmem:[#allocation2 + $0x68] sm:$0x1] %vm16506_vm0, %v1846_v61  ;;  %3645 = vrot.lane.b32.xlu1 %v3607_v30, %s16303_s15  ;;  %vm16517_vm0 = vcmask 254080  }
 0x310   : > { %3641 = vrot.lane.b32.xlu0 %v3605_v22, %s16303_s15 }
 0x311   : > { %v1991_v36 = vpop.permute.xlu1 %1990 }
 0x312   : > { %v2054_v33 = vsel %vm13246_vm10, %v1991_v36, %v2053_v25  ;;  %v1987_v11 = vpop.permute.xlu0 %1986  ;;  %v11567_v36 = vld [vmem:[%s16136_s1 + $0x8] sm:$0xff]  }
 0x313   : > { %2055 = vst [vmem:[#allocation2 + $0x70] sm:$0xc] %v2054_v33  ;;  %v2050_v34 = vsel %vm13246_vm10, %v1987_v11, %v2049_v51  ;;  %2000 = vrot.lane.b32.xlu1 %v1961_v26, %s16303_s15  ;;  %v11568_v25 = vld [vmem:[%s16136_s1 + $0x8] sm:$0xff]   ;;  %v11569_v11 = vld [vmem:[%s16136_s1 + $0x50] sm:$0xff]  }
 0x314   : > { %1996 = vrot.lane.b32.xlu0 %v1959_v18, %s16303_s15  ;;  %2051 = vst [vmem:[#allocation2 + $0x60] sm:$0xc] %v2050_v34  ;;  %v11570_v51 = vld [vmem:[%s16136_s1 + $0x50] sm:$0xff]  }
 0x315   : > { %v3500_v8 = vpop.permute.xlu1 %3499 }
 0x316   : > { %3560 = vst.msk [vmem:[#allocation2 + $0x7c] sm:$0x1] %vm16507_vm7, %v3500_v8  ;;  %v3496_v56 = vpop.permute.xlu0 %3495  ;;  %vm16518_vm7 = vmmov %vm16517_vm0 }
 0x317   : > { %3556 = vst.msk [vmem:[#allocation2 + $0x6c] sm:$0x1] %vm16508_vm4, %v3496_v56  ;;  %3647 = vrot.lane.b32.xlu1 %v3608_v2, %s16303_s15  ;;  %vm16519_vm4 = vmmov %vm16517_vm0 }
 0x318   : > { %3643 = vrot.lane.b32.xlu0 %v3606_v39, %s16303_s15  ;;  %s11941_s15 = scalar_lea.vmem %s11940_s14, 32 }
 0x319   : > { %v3638_v14 = vpop.permute.xlu1 %3637  ;;  %p11943_p1 = scmp.lt.s32.totalorder %s11941_s15, %s11935_s16 }
 0x31a   : > { %v3698_v15 = vsel %vm13246_vm10, %v3638_v14, %v3697_v44  ;;  %v3634_v23 = vpop.permute.xlu0 %3633  ;;  %v11571_v44 = vld [vmem:[%s16136_s1 + $0x10] sm:$0xff]  }
 0x31b   : > { %3699 = vst [vmem:[#allocation2 + $0x74] sm:$0xc] %v3698_v15  ;;  %v3694_v35 = vsel %vm13246_vm10, %v3634_v23, %v3693_v20  ;;  %4146 = vrot.lane.b32.xlu1 %v14206_v19, %s16315_s24  ;;  %v11572_v14 = vld [vmem:[%s16136_s1 + $0x10] sm:$0xff]   ;;  %v11573_v20 = vld [vmem:[%s16136_s1 + $0x58] sm:$0xff]   ;;  %p11944_p2 = por %p11943_p1, %p11942_p0 }
 0x31c   : > { %3928 = vrot.lane.b32.xlu0 %v14210_v10, %s16315_s24  ;;  %3695 = vst [vmem:[#allocation2 + $0x64] sm:$0xc] %v3694_v35  ;;  %v11574_v23 = vld [vmem:[%s16136_s1 + $0x58] sm:$0xff]  }
 0x31d   : > { %v1427_v1 = vpop.permute.xlu1 %1426  ;;  %p11945_p3 = pnand %p11944_p2, %p11938_p13 }
 0x31e   : > { %v1490_v38 = vsel %vm12699_vm3, %v1427_v1, %v1489_v62  ;;  %v1423_v31 = vpop.permute.xlu0 %1422 }
 0x31f   : > { %1491 = vst [vmem:[#allocation2 + $0x90] sm:$0xc] %v1490_v38  ;;  %v1486_v12 = vsel %vm12699_vm3, %v1423_v31, %v1485_v59  ;;  %4582 = vrot.lane.b32.xlu1 %v4581_v45, %s16315_s24  ;;  %v11576_v38 = vld [vmem:[%s16136_s1 + $0x18] sm:$0xff]  }
 0x320   : > { %4364 = vrot.lane.b32.xlu0 %v4363_v63, %s16315_s24  ;;  %1487 = vst [vmem:[#allocation2 + $0x80] sm:$0xc] %v1486_v12  ;;  %v11565_v63 = vld [vmem:[%s16136_s1 + $0x48] sm:$0xff]   ;;  %v11577_v12 = vld [vmem:[%s16136_s1 + $0x60] sm:$0xff]  }
 0x321   : > { %v1993_v19 = vpop.permute.xlu1 %1992 }
 0x322   : > { %2056 = vst.msk [vmem:[#allocation2 + $0x78] sm:$0x1] %vm16509_vm11, %v1993_v19  ;;  %v1989_v10 = vpop.permute.xlu0 %1988  ;;  %v11578_v19 = vld [vmem:[%s16136_s1 + $0x60] sm:$0xff]   ;;  %vm16520_vm11 = vmmov %vm16517_vm0 }
 0x323   : > { %2052 = vst.msk [vmem:[#allocation2 + $0x68] sm:$0x1] %vm16510_vm13, %v1989_v10  ;;  %vm16521_vm13 = vcmask 385280  }
 0x325   : > { %v3085_v43 = vpop.permute.xlu1 %3084 }
 0x326   : > { %v3145_v24 = vsel %vm12699_vm3, %v3085_v43, %v3144_v9  ;;  %v3081_v49 = vpop.permute.xlu0 %3080  ;;  %v1632_v5 = vld [vmem:[#allocation2 + $0x90] sm:$0xc] }
 0x327   : > { %3146 = vst [vmem:[#allocation2 + $0x94] sm:$0xc] %v3145_v24  ;;  %v3141_v47 = vsel %vm12699_vm3, %v3081_v49, %v3140_v58  ;;  %v1628_v37 = vld [vmem:[#allocation2 + $0x80] sm:$0xc]  ;;  %vm16513_vm3 = vcmask 122880  }
 0x328   : > { %3142 = vst [vmem:[#allocation2 + $0x84] sm:$0xc] %v3141_v47  ;;  %v11579_v58 = vld [vmem:[%s16136_s1 + $0x20] sm:$0xff]  }
 0x329   : > { %v3640_v21 = vpop.permute.xlu1 %3639  ;;  %v11558_v57 = vld [vmem:[#allocation2 + $0x70] ss:$8 sps:$4 sm:$0x1f]   ;;  %v11580_v49 = vld [vmem:[%s16136_s1 + $0x20] sm:$0xff]  }
 0x32a   : > { %3700 = vst.msk [vmem:[#allocation2 + $0x7c] sm:$0x1] %vm16511_vm15, %v3640_v21  ;;  %v3636_v40 = vpop.permute.xlu0 %3635  ;;  %v11555_v17 = vld [vmem:[#allocation2 + $0x60] ss:$8 sps:$4 sm:$0x1f]   ;;  %vm16522_vm15 = vmmov %vm16521_vm13 }
 0x32b   : > { %3696 = vst.msk [vmem:[#allocation2 + $0x6c] sm:$0x1] %vm16512_vm1, %v3636_v40  ;;  %v11581_v40 = vld [vmem:[%s16136_s1 + $0x68] sm:$0xff]   ;;  %vm16523_vm1 = vmmov %vm16521_vm13 }
 0x32d   : > { %v1570_v54 = vpop.permute.xlu1 %1569 }
 0x32e   : > { %v1633_v29 = vsel %vm12740_vm8, %v1570_v54, %v1632_v5  ;;  %v1566_v60 = vpop.permute.xlu0 %1565  ;;  %v3284_v52 = vld [vmem:[#allocation2 + $0x94] sm:$0xc]  ;;  %v11582_v54 = vld [vmem:[%s16136_s1 + $0x68] sm:$0xff]  }
 0x32f   : > { %1634 = vst [vmem:[#allocation2 + $0x90] sm:$0xc] %v1633_v29  ;;  %v1629_v55 = vsel %vm12740_vm8, %v1566_v60, %v1628_v37  ;;  %v3280_v0 = vld [vmem:[#allocation2 + $0x84] sm:$0xc]  ;;  %v11583_v37 = vld [vmem:[%s16136_s1 + $0x28] sm:$0xff]  }
 0x330   : > { %1630 = vst [vmem:[#allocation2 + $0x80] sm:$0xc] %v1629_v55  ;;  %v11584_v55 = vld [vmem:[%s16136_s1 + $0x28] sm:$0xff]  }
 0x331   : > { %v3225_v13 = vpop.permute.xlu1 %3224  ;;  %v11560_v16 = vld [vmem:[#allocation2 + $0x74] ss:$8 sps:$4 sm:$0x1f]  }
 0x332   : > { %v3285_v27 = vsel %vm12740_vm8, %v3225_v13, %v3284_v52  ;;  %v3221_v28 = vpop.permute.xlu0 %3220  ;;  %v11557_v22 = vld [vmem:[#allocation2 + $0x64] ss:$8 sps:$4 sm:$0x1f]   ;;  %5415 = vmatprep.mubr.bf16.mxu1 %v11560_v16  ;;  %v11586_v52 = vld [vmem:[%s16136_s1 + $0x70] sm:$0xff]  }
 0x333   : > { %3286 = vst [vmem:[#allocation2 + $0x94] sm:$0xc] %v3285_v27  ;;  %v3281_v30 = vsel %vm12740_vm8, %v3221_v28, %v3280_v0  ;;  %5197 = vmatprep.mubr.bf16.mxu0 %v11557_v22  ;;  %5416 = vmatmul.mubr.bf16.vlgmr.msra.gmra.mrb[12].mxu1 %v11558_v57  ;;  %vm16514_vm8 = vmmov %vm16513_vm3  ;;  %v11587_v57 = vld [vmem:[%s16136_s1 + $0x30] sm:$0xff]   ;;  %v11589_v27 = vld [vmem:[%s16136_s1 + $0x78] sm:$0xff]  }
 0x334   : > { %3282 = vst [vmem:[#allocation2 + $0x84] sm:$0xc] %v3281_v30  ;;  %5198 = vmatmul.mubr.bf16.vlgmr.msra.gmra.mrb[12].mxu0 %v11555_v17  ;;  %10995 = vmatpush3.bf16.msra.mxu1 %v11564_v41  ;;  %v11590_v28 = vld [vmem:[%s16136_s1 + $0x78] sm:$0xff]  }
 0x335   : > { %v1676_v45 = vpop.permute.xlu1 %1675  ;;  %10973 = vmatpush3.bf16.msra.mxu0 %v11563_v6  ;;  %10996 = vmatprep.subr.bf16.mxu1 %v11566_v3  ;;  %v11588_v6 = vld [vmem:[%s16136_s1 + $0x30] sm:$0xff]   ;;  %v11591_v30 = vld [vmem:[%s16136_s1 + $0x38] sm:$0xff]  }
 0x336   : > { %v1716_v61 = vld [vmem:[#allocation2 + $0x90] sm:$0x7]  ;;  %v1674_v26 = vpop.permute.xlu0 %1673  ;;  %10974 = vmatprep.subr.bf16.mxu0 %v11565_v63  ;;  %v11592_v22 = vld [vmem:[%s16136_s1 + $0x38] sm:$0xff]  }
 0x337   : > { %v1717_v53 = vsel %vm12925_vm12, %v1676_v45, %v1716_v61  ;;  %v1713_v18 = vld [vmem:[#allocation2 + $0x80] sm:$0x7] }
 0x338   : > { %1718 = vst [vmem:[#allocation2 + $0x90] sm:$0x7] %v1717_v53  ;;  %v1714_v33 = vsel %vm12925_vm12, %v1674_v26, %v1713_v18  ;;  %10997 = vmatpush3.bf16.msra.mxu1 %v11568_v25 }
 0x339   : > { %1715 = vst [vmem:[#allocation2 + $0x80] sm:$0x7] %v1714_v33  ;;  %v3328_v34 = vpop.permute.xlu1 %3327  ;;  %10975 = vmatpush3.bf16.msra.mxu0 %v11567_v36  ;;  %10998 = vmatprep.subr.bf16.mxu1 %v11570_v51 }
 0x33a   : > { %v3366_v2 = vld [vmem:[#allocation2 + $0x94] sm:$0x7]  ;;  %v3326_v39 = vpop.permute.xlu0 %3325  ;;  %10976 = vmatprep.subr.bf16.mxu0 %v11569_v11 }
 0x33b   : > { %v3367_v8 = vsel %vm12925_vm12, %v3328_v34, %v3366_v2  ;;  %v3363_v56 = vld [vmem:[#allocation2 + $0x84] sm:$0x7] }
 0x33c   : > { %3368 = vst [vmem:[#allocation2 + $0x94] sm:$0x7] %v3367_v8  ;;  %v3364_v15 = vsel %vm12925_vm12, %v3326_v39, %v3363_v56  ;;  %10999 = vmatpush3.bf16.msra.mxu1 %v11572_v14  ;;  %vm16515_vm12 = vmmov %vm16513_vm3 }
 0x33d   : > { %3365 = vst [vmem:[#allocation2 + $0x84] sm:$0x7] %v3364_v15  ;;  %v1856_v35 = vpop.permute.xlu1 %1855  ;;  %10977 = vmatpush3.bf16.msra.mxu0 %v11571_v44  ;;  %11000 = vmatprep.subr.bf16.mxu1 %v11574_v23 }
 0x33e   : > { %v1852_v1 = vpop.permute.xlu0 %1851  ;;  %10978 = vmatprep.subr.bf16.mxu0 %v11573_v20 }
 0x33f   : > { %v1918_v62 = vld [vmem:[#allocation2 + $0x90] sm:$0xc] }
 0x340   : > { %v1919_v31 = vsel %vm13053_vm14, %v1856_v35, %v1918_v62  ;;  %v1914_v59 = vld [vmem:[#allocation2 + $0x80] sm:$0xc]  ;;  %11001 = vmatpush3.bf16.msra.mxu1 %v11576_v38 }
 0x341   : > { %1920 = vst [vmem:[#allocation2 + $0x90] sm:$0xc] %v1919_v31  ;;  %v1915_v10 = vsel %vm13053_vm14, %v1852_v1, %v1914_v59  ;;  %v3506_v9 = vpop.permute.xlu1 %3505  ;;  %10979 = vmatpush3.bf16.msra.mxu0 %v11575_v50  ;;  %11002 = vmatprep.subr.bf16.mxu1 %v11578_v19 }
 0x342   : > { %1916 = vst [vmem:[#allocation2 + $0x80] sm:$0xc] %v1915_v10  ;;  %v3502_v43 = vpop.permute.xlu0 %3501  ;;  %10980 = vmatprep.subr.bf16.mxu0 %v11577_v12 }
 0x343   : > { %v3565_v24 = vld [vmem:[#allocation2 + $0x94] sm:$0xc] }
 0x344   : > { %v3566_v47 = vsel %vm13053_vm14, %v3506_v9, %v3565_v24  ;;  %v3561_v21 = vld [vmem:[#allocation2 + $0x84] sm:$0xc]  ;;  %11003 = vmatpush3.bf16.msra.mxu1 %v11580_v49 }
 0x345   : > { %3567 = vst [vmem:[#allocation2 + $0x94] sm:$0xc] %v3566_v47  ;;  %v3562_v5 = vsel %vm13053_vm14, %v3502_v43, %v3561_v21  ;;  %v570_v29 = vpop.permute.xlu1 %569  ;;  %10981 = vmatpush3.bf16.msra.mxu0 %v11579_v58  ;;  %11004 = vmatprep.subr.bf16.mxu1 %v11582_v54  ;;  %vm16516_vm14 = vmmov %vm16513_vm3 }
 0x346   : > { %3563 = vst [vmem:[#allocation2 + $0x84] sm:$0xc] %v3562_v5  ;;  %634 = vst.msk [vmem:[#allocation2 + $0x98] sm:$0x1] %vm16513_vm3, %v570_v29  ;;  %v566_v60 = vpop.permute.xlu0 %565  ;;  %10982 = vmatprep.subr.bf16.mxu0 %v11581_v40 }
 0x347   : > { %630 = vst.msk [vmem:[#allocation2 + $0x88] sm:$0x1] %vm16514_vm8, %v566_v60  ;;  %vm16524_vm3 = vmmov %vm16523_vm1  ;;  %vm16525_vm8 = vcmask 516480  }
 0x348   : > { %11005 = vmatpush3.bf16.msra.mxu1 %v11584_v55  ;;  %v2061_v20 = vld [vmem:[#allocation2 + $0x90] sm:$0xc] }
 0x349   : > { %v2245_v0 = vpop.permute.xlu1 %2244  ;;  %10983 = vmatpush3.bf16.msra.mxu0 %v11583_v37  ;;  %11006 = vmatprep.subr.bf16.mxu1 %v11585_v7  ;;  %v2057_v1 = vld [vmem:[#allocation2 + $0x80] sm:$0xc] }
 0x34a   : > { %2305 = vst.msk [vmem:[#allocation2 + $0x9c] sm:$0x1] %vm16515_vm12, %v2245_v0  ;;  %v2241_v13 = vpop.permute.xlu0 %2240  ;;  %10984 = vmatprep.subr.bf16.mxu0 %v11586_v52  ;;  %vm16526_vm12 = vmmov %vm16525_vm8 }
 0x34b   : > { %2301 = vst.msk [vmem:[#allocation2 + $0x8c] sm:$0x1] %vm16516_vm14, %v2241_v13  ;;  %vm16527_vm14 = vmmov %vm16525_vm8 }
 0x34c   : > { %11007 = vmatpush3.bf16.msra.mxu1 %v11588_v6  ;;  %v3705_v31 = vld [vmem:[#allocation2 + $0x94] sm:$0xc]  ;;  %v4149_v6 = vld [vmem:[#allocation3 + $0x4] sm:$0x7] }
 0x34d   : > { %v714_v17 = vpop.permute.xlu1 %713  ;;  %10985 = vmatpush3.bf16.msra.mxu0 %v11587_v57  ;;  %11008 = vmatprep.subr.bf16.mxu1 %v11589_v27  ;;  %v3701_v19 = vld [vmem:[#allocation2 + $0x84] sm:$0xc] }
 0x34e   : > { %777 = vst.msk [vmem:[#allocation2 + $0x98] sm:$0x1] %vm16517_vm0, %v714_v17  ;;  %v710_v41 = vpop.permute.xlu0 %709  ;;  %10986 = vmatprep.subr.bf16.mxu0 %v11590_v28  ;;  %vm16528_vm0 = vmmov %vm16525_vm8  ;;  %v3931_v28 = vld [vmem:[#allocation3] sm:$0x7] }
 0x34f   : > { %773 = vst.msk [vmem:[#allocation2 + $0x88] sm:$0x1] %vm16518_vm7, %v710_v41  ;;  %vm16529_vm7 = vcmask 647680  }
 0x350   : > { %11009 = vmatpush3.bf16.msra.mxu1 %v11592_v22 }
 0x351   : > { %v2385_v16 = vpop.permute.xlu1 %2384  ;;  %10987 = vmatpush3.bf16.msra.mxu0 %v11591_v30 }
 0x352   : > { %2445 = vst.msk [vmem:[#allocation2 + $0x9c] sm:$0x1] %vm16519_vm4, %v2385_v16  ;;  %v2381_v63 = vpop.permute.xlu0 %2380  ;;  %vm16530_vm4 = vmmov %vm16529_vm7 }
 0x353   : > { %2441 = vst.msk [vmem:[#allocation2 + $0x8c] sm:$0x1] %vm16520_vm11, %v2381_v63  ;;  %vm16531_vm11 = vmmov %vm16530_vm4 }
 0x355   : > { %v1000_v3 = vpop.permute.xlu1 %999 }
 0x356   : > { %1063 = vst.msk [vmem:[#allocation2 + $0x98] sm:$0x1] %vm16521_vm13, %v1000_v3  ;;  %v996_v45 = vpop.permute.xlu0 %995  ;;  %vm16532_vm13 = vmmov %vm16530_vm4  ;;  %v4585_v3 = vld [vmem:[#allocation3 + $0xc] sm:$0x7] }
 0x357   : > { %1059 = vst.msk [vmem:[#allocation2 + $0x88] sm:$0x1] %vm16522_vm15, %v996_v45  ;;  %vm16533_vm15 = vcmask 778880   ;;  %v4367_v45 = vld [vmem:[#allocation3 + $0x8] sm:$0x7] }
 0x359   : > { %v2666_v61 = vpop.permute.xlu1 %2665 }
 0x35a   : > { %2726 = vst.msk [vmem:[#allocation2 + $0x9c] sm:$0x1] %vm16523_vm1, %v2666_v61  ;;  %v2662_v26 = vpop.permute.xlu0 %2661  ;;  %vm16534_vm1 = vmmov %vm16533_vm15 }
 0x35b   : > { %2722 = vst.msk [vmem:[#allocation2 + $0x8c] sm:$0x1] %vm16524_vm3, %v2662_v26  ;;  %vm16535_vm3 = vmmov %vm16534_vm1 }
 0x35d   : > { %v1143_v53 = vpop.permute.xlu1 %1142 }
 0x35e   : > { %1206 = vst.msk [vmem:[#allocation2 + $0x98] sm:$0x1] %vm16525_vm8, %v1143_v53  ;;  %v1139_v18 = vpop.permute.xlu0 %1138  ;;  %vm16536_vm8 = vmmov %vm16534_vm1 }
 0x35f   : > { %1202 = vst.msk [vmem:[#allocation2 + $0x88] sm:$0x1] %vm16526_vm12, %v1139_v18  ;;  %vm16537_vm12 = vcmask 910080   ;;  %v4774_v18 = vld [vmem:[#allocation3 + $0x10] sm:$0x7] }
 0x361   : > { %v2806_v36 = vpop.permute.xlu1 %2805 }
 0x362   : > { %2866 = vst.msk [vmem:[#allocation2 + $0x9c] sm:$0x1] %vm16527_vm14, %v2806_v36  ;;  %v2802_v25 = vpop.permute.xlu0 %2801  ;;  %vm16538_vm14 = vmmov %vm16537_vm12 }
 0x363   : > { %2862 = vst.msk [vmem:[#allocation2 + $0x8c] sm:$0x1] %vm16528_vm0, %v2802_v25  ;;  %vm16539_vm0 = vmmov %vm16537_vm12 }
 0x365   : > { %v1429_v33 = vpop.permute.xlu1 %1428 }
 0x366   : > { %1492 = vst.msk [vmem:[#allocation2 + $0x98] sm:$0x1] %vm16529_vm7, %v1429_v33  ;;  %v1425_v11 = vpop.permute.xlu0 %1424  ;;  %vm16540_vm7 = vmmov %vm16539_vm0 }
 0x367   : > { %1488 = vst.msk [vmem:[#allocation2 + $0x88] sm:$0x1] %vm16530_vm4, %v1425_v11  ;;  %vm16541_vm4 = vcmask 1041280  }
 0x369   : > { %v3087_v51 = vpop.permute.xlu1 %3086 }
 0x36a   : > { %3147 = vst.msk [vmem:[#allocation2 + $0x9c] sm:$0x1] %vm16531_vm11, %v3087_v51  ;;  %v3083_v34 = vpop.permute.xlu0 %3082  ;;  %vm16542_vm11 = vmmov %vm16541_vm4 }
 0x36b   : > { %3143 = vst.msk [vmem:[#allocation2 + $0x8c] sm:$0x1] %vm16532_vm13, %v3083_v34  ;;  %vm16543_vm13 = vmmov %vm16541_vm4 }
 0x36d   : > { %v1572_v2 = vpop.permute.xlu1 %1571 }
 0x36e   : > { %1635 = vst.msk [vmem:[#allocation2 + $0x98] sm:$0x1] %vm16533_vm15, %v1572_v2  ;;  %v1568_v39 = vpop.permute.xlu0 %1567  ;;  %vm16544_vm15 = vmmov %vm16541_vm4 }
 0x36f   : > { %1631 = vst.msk [vmem:[#allocation2 + $0x88] sm:$0x1] %vm16534_vm1, %v1568_v39  ;;  %vm5945_vm1 = vsmask.f32 3336 }
 0x371   : > { %v3227_v8 = vpop.permute.xlu1 %3226 }
 0x372   : > { %3287 = vst.msk [vmem:[#allocation2 + $0x9c] sm:$0x1] %vm16535_vm3, %v3227_v8  ;;  %v3223_v56 = vpop.permute.xlu0 %3222  ;;  %vm14995_vm3 = vmor %vm3907_vm6, %vm5945_vm1  ;;  %vm16547_vm6 = vsmask.f32 5392 }
 0x373   : > { %3283 = vst.msk [vmem:[#allocation2 + $0x8c] sm:$0x1] %vm16536_vm8, %v3223_v56  ;;  %vm15008_vm8 = vmor %vm14995_vm3, %vm16547_vm6  ;;  %vm7877_vm3 = vsmask.f32 5396 }
 0x375   : > { %v1858_v44 = vpop.permute.xlu1 %1857 }
 0x376   : > { %1921 = vst.msk [vmem:[#allocation2 + $0x98] sm:$0x1] %vm16537_vm12, %v1858_v44  ;;  %v1854_v14 = vpop.permute.xlu0 %1853  ;;  %vm5948_vm12 = vsmask.f32 7448 }
 0x377   : > { %1917 = vst.msk [vmem:[#allocation2 + $0x88] sm:$0x1] %vm16538_vm14, %v1854_v14  ;;  %v4992_v14 = vld [vmem:[#allocation3 + $0x14] sm:$0x7]  ;;  %vm15042_vm14 = vmor %vm15008_vm8, %vm5948_vm12  ;;  %vm7879_vm8 = vsmask.f32 6424 }
 0x379   : > { %v1999_v15 = vpop.permute.xlu1 %1998 }
 0x37a   : > { %v2062_v23 = vsel %vm13246_vm10, %v1999_v15, %v2061_v20  ;;  %v1995_v35 = vpop.permute.xlu0 %1994 }
 0x37b   : > { %2063 = vst [vmem:[#allocation2 + $0x90] sm:$0xc] %v2062_v23  ;;  %v2058_v62 = vsel %vm13246_vm10, %v1995_v35, %v2057_v1 }
 0x37c   : > { %2059 = vst [vmem:[#allocation2 + $0x80] sm:$0xc] %v2058_v62 }
 0x37d   : > { %v3508_v50 = vpop.permute.xlu1 %3507 }
 0x37e   : > { %3568 = vst.msk [vmem:[#allocation2 + $0x9c] sm:$0x1] %vm16539_vm0, %v3508_v50  ;;  %v3504_v38 = vpop.permute.xlu0 %3503 }
 0x37f   : > { %3564 = vst.msk [vmem:[#allocation2 + $0x8c] sm:$0x1] %vm16540_vm7, %v3504_v38  ;;  %vm7871_vm7 = vsmask.f32 2312 }
 0x381   : > { %v3646_v59 = vpop.permute.xlu1 %3645 }
 0x382   : > { %v3706_v12 = vsel %vm13246_vm10, %v3646_v59, %v3705_v31  ;;  %v3642_v10 = vpop.permute.xlu0 %3641 }
 0x383   : > { %3707 = vst [vmem:[#allocation2 + $0x94] sm:$0xc] %v3706_v12  ;;  %v3702_v9 = vsel %vm13246_vm10, %v3642_v10, %v3701_v19  ;;  %vm5900_vm10 = vcmask 517120  }
 0x384   : > { %3703 = vst [vmem:[#allocation2 + $0x84] sm:$0xc] %v3702_v9 }
 0x385   : > { %v2001_v43 = vpop.permute.xlu1 %2000 }
 0x386   : > { %2064 = vst.msk [vmem:[#allocation2 + $0x98] sm:$0x1] %vm16541_vm4, %v2001_v43  ;;  %v1997_v24 = vpop.permute.xlu0 %1996 }
 0x387   : > { %2060 = vst.msk [vmem:[#allocation2 + $0x88] sm:$0x1] %vm16542_vm11, %v1997_v24  ;;  %v10900_v58 = vpop.f32.mrb[8].mxu0  ;;  %vm7873_vm11 = vsmask.f32 3340 }
 0x388   : > { %v10922_v49 = vpop.f32.mrb[8].mxu1  ;;  %v10901_v40 = vpop.f32.mrb[9].mxu0 }
 0x389   : > { %v3648_v47 = vpop.permute.xlu1 %3647  ;;  %v10923_v54 = vpop.f32.mrb[9].mxu1  ;;  %v10902_v5 = vadd.f32 %v10901_v40, %v10900_v58 }
 0x38a   : > { %v3644_v21 = vpop.permute.xlu0 %3643  ;;  %3708 = vst.msk [vmem:[#allocation2 + $0x9c] sm:$0x1] %vm16543_vm13, %v3648_v47  ;;  %v10924_v32 = vadd.f32 %v10923_v54, %v10922_v49  ;;  %v10903_v29 = vpop.f32.mrb[10].mxu0 }
 0x38b   : > { %3704 = vst.msk [vmem:[#allocation2 + $0x8c] sm:$0x1] %vm16544_vm15, %v3644_v21  ;;  %v10925_v60 = vpop.f32.mrb[10].mxu1  ;;  %v10904_v37 = vpop.f32.mrb[11].mxu0  ;;  %v4764_v7 = vadd.f32 %v14618_v48, %v10902_v5  ;;  %vm7875_vm15 = vsmask.f32 4368 }
 0x38c   : > { %v10926_v55 = vpop.f32.mrb[11].mxu1  ;;  %v4982_v52 = vadd.f32 %v14618_v48, %v10924_v32  ;;  %v10905_v0 = vadd.f32 %v10904_v37, %v10903_v29 }
 0x38d   : > { %v10927_v13 = vadd.f32 %v10926_v55, %v10925_v60  ;;  %v4147_v57 = vpop.permute.xlu1 %4146  ;;  %v4770_v30 = vmax.f32 %v4764_v7, 0.0  ;;  %v11596_v1 = vld [vmem:[#allocation2 + $0x90] ss:$8 sps:$4 sm:$0x1f]  }
 0x38e   : > { %v3929_v27 = vpop.permute.xlu0 %3928  ;;  %v4150_v17 = vsel %vm12544_vm9, %v4147_v57, %v4149_v6  ;;  %v4988_v22 = vmax.f32 %v4982_v52, 0.0  ;;  %v4767_v16 = vadd.f32 %v14618_v48, %v10905_v0  ;;  %v11593_v34 = vld [vmem:[#allocation2 + $0x80] ss:$8 sps:$4 sm:$0x1f]  }
 0x38f   : > { %v3932_v41 = vsel %vm12544_vm9, %v3929_v27, %v3931_v28  ;;  %v4985_v63 = vadd.f32 %v14618_v48, %v10927_v13  ;;  %4151 = vst [vmem:[#allocation3 + $0x4] sm:$0x7] %v4150_v17  ;;  %v10784_v61 = vpack.c.bf16 %v4770_v30, %v4770_v30 }
 0x390   : > { %3933 = vst [vmem:[#allocation3] sm:$0x7] %v3932_v41  ;;  %v10786_v26 = vpack.c.bf16 %v4988_v22, %v4988_v22  ;;  %v4771_v53 = vmax.f32 %v4767_v16, 0.0  ;;  %v11599_v16 = vld [vmem:[%s16138_s3 + $0x40] sm:$0xff]  }
 0x391   : > { %v4989_v36 = vmax.f32 %v4985_v63, 0.0  ;;  %v4583_v25 = vpop.permute.xlu1 %4582  ;;  %v4783_v39 = vshrl.u32 %v10784_v61, 16  ;;  %v4786_v8 = vshll.u32 %v10784_v61, 16  ;;  %v11598_v62 = vld [vmem:[#allocation2 + $0x94] ss:$8 sps:$4 sm:$0x1f]   ;;  %11016 = vmatprep.subr.bf16.mxu0 %v11599_v16 }
 0x392   : > { %v4365_v33 = vpop.permute.xlu0 %4364  ;;  %v4586_v11 = vsel %vm12544_vm9, %v4583_v25, %v4585_v3  ;;  %v11595_v2 = vld [vmem:[#allocation2 + $0x84] ss:$8 sps:$4 sm:$0x1f]   ;;  %v5001_v56 = vshrl.u32 %v10786_v26, 16  ;;  %v5004_v44 = vshll.u32 %v10786_v26, 16  ;;  %v4772_v15 = vpack.c.bf16 %v4771_v53, %v4770_v30  ;;  %5851 = vmatprep.mubr.bf16.mxu1 %v11598_v62  ;;  %v11611_v16 = vld [vmem:[%s16138_s3 + $0x58] sm:$0xff]  }
 0x393   : > { %v4368_v51 = vsel %vm12544_vm9, %v4365_v33, %v4367_v45  ;;  %4587 = vst [vmem:[#allocation3 + $0xc] sm:$0x7] %v4586_v11  ;;  %v10785_v20 = vpack.c.bf16 %v4771_v53, %v4771_v53  ;;  %v4990_v23 = vpack.c.bf16 %v4989_v36, %v4988_v22  ;;  %v10787_v35 = vpack.c.bf16 %v4989_v36, %v4989_v36  ;;  %v11600_v3 = vld [vmem:[%s16138_s3] sm:$0xff]  }
 0x394   : > { %4369 = vst [vmem:[#allocation3 + $0x8] sm:$0x7] %v4368_v51  ;;  %5633 = vmatprep.mubr.bf16.mxu0 %v11595_v2  ;;  %v4785_v50 = vrot.slane %v4783_v39, 6  ;;  %v4788_v38 = vrot.slane %v4786_v8, 7  ;;  %v5003_v31 = vrot.slane %v5001_v56, 6  ;;  %v5006_v59 = vrot.slane %v5004_v44, 7  ;;  %5852 = vmatmul.mubr.bf16.vlgmr.msra.gmra.mrb[16].mxu1 %v11596_v1 }
 0x395   : > { %5634 = vmatmul.mubr.bf16.vlgmr.msra.gmra.mrb[16].mxu0 %v11593_v34  ;;  %v4775_v12 = vsel %vm12251_vm2, %v4772_v15, %v4774_v18  ;;  %v4792_v19 = vshrl.u32 %v10785_v20, 16  ;;  %v4795_v10 = vshll.u32 %v10785_v20, 16  ;;  %v4993_v9 = vsel %vm12251_vm2, %v4990_v23, %v4992_v14  ;;  %v11601_v45 = vld [vmem:[%s16138_s3 + $0xc0] sm:$0xff]   ;;  %v11603_v56 = vld [vmem:[%s16138_s3 + $0x48] sm:$0xff]  }
 0x396   : > { %v6023_v43 = vld [vmem:[#allocation3 + $0x4] sm:$0x3]  ;;  %4776 = vst [vmem:[#allocation3 + $0x10] sm:$0x7] %v4775_v12  ;;  %v5010_v24 = vshrl.u32 %v10787_v35, 16  ;;  %v5013_v58 = vshll.u32 %v10787_v35, 16  ;;  %v5007_v49 = vor.u32 %v5006_v59, %v5003_v31  ;;  %v4789_v47 = vor.u32 %v4788_v38, %v4785_v50  ;;  %11017 = vmatpush3.bf16.msra.mxu0 %v11600_v3  ;;  %11038 = vmatprep.subr.bf16.mxu1 %v11601_v45 }
 0x397   : > { %4994 = vst [vmem:[#allocation3 + $0x14] sm:$0x7] %v4993_v9  ;;  %6027 = vst.msk [vmem:[#allocation4 + $0x2] sm:$0x3] %vm5900_vm10, %v6023_v43  ;;  %v4794_v21 = vrot.slane %v4792_v19, 6  ;;  %v4797_v40 = vrot.slane %v4795_v10, 7  ;;  %11018 = vmatprep.subr.bf16.mxu0 %v11603_v56 }
 0x398   : > { %v5896_v54 = vld [vmem:[#allocation3] sm:$0x3]  ;;  %v5012_v5 = vrot.slane %v5010_v24, 6  ;;  %v5015_v32 = vrot.slane %v5013_v58, 7  ;;  %v5008_v29 = vrot.slane %v5007_v49, 4  ;;  %v4790_v60 = vrot.slane %v4789_v47, 4 }
 0x399   : > { %5901 = vst.msk [vmem:[#allocation4] sm:$0x3] %vm5900_vm10, %v5896_v54  ;;  %v4798_v37 = vor.u32 %v4797_v40, %v4794_v21  ;;  %v14888_v27 = vld.sshfl [vmem:[#allocation3 + $0x4] sm:$0x13 pattern:$0x76325410] }
 0x39a   : > { %v6263_v55 = vld [vmem:[#allocation3 + $0xc] sm:$0x3]  ;;  %v5016_v7 = vor.u32 %v5015_v32, %v5012_v5  ;;  %v14890_v28 = vld.sshfl [vmem:[#allocation3] sm:$0x13 pattern:$0x76325410]  ;;  %v6046_v19 = vcombine.high %v14888_v27, %v14888_v27 }
 0x39b   : > { %6267 = vst.msk [vmem:[#allocation4 + $0x6] sm:$0x3] %vm5900_vm10, %v6263_v55  ;;  %v6143_v52 = vld [vmem:[#allocation3 + $0x8] sm:$0x3]  ;;  %v4799_v0 = vsel %vm14198_vm5, %v4790_v60, %v4798_v37  ;;  %v6024_v57 = vld [vmem:[#allocation3 + $0xc] sm:$0x3]  ;;  %v5920_v10 = vcombine.high %v14890_v28, %v14890_v28 }
 0x39c   : > { %6147 = vst.msk [vmem:[#allocation4 + $0x4] sm:$0x3] %vm5900_vm10, %v6143_v52  ;;  %v5017_v13 = vsel %vm14198_vm5, %v5008_v29, %v5016_v7  ;;  %4800 = vrot.lane.b32.xlu0 %v4799_v0, %s16315_s24  ;;  %6028 = vst.msk [vmem:[#allocation4 + $0xa] sm:$0x3] %vm5900_vm10, %v6024_v57  ;;  %v5897_v6 = vld [vmem:[#allocation3 + $0x8] sm:$0x3] }
 0x39d   : > { %5018 = vrot.lane.b32.xlu1 %v5017_v13, %s16315_s24  ;;  %5902 = vst.msk [vmem:[#allocation4 + $0x8] sm:$0x3] %vm5900_vm10, %v5897_v6  ;;  %v6072_v17 = vshrl.u32 %v14888_v27, 16  ;;  %v6075_v41 = vshll.u32 %v14888_v27, 16  ;;  %v5951_v30 = vshrl.u32 %v14890_v28, 16  ;;  %v5954_v63 = vshll.u32 %v14890_v28, 16 }
 0x39e   : > { %v14895_v22 = vld.sshfl [vmem:[#allocation3 + $0xc] sm:$0x13 pattern:$0x76325410]  ;;  %v11602_v61 = vld [vmem:[%s16138_s3 + $0x80] sm:$0xff]   ;;  %v11607_v59 = vld [vmem:[%s16138_s3 + $0x50] sm:$0xff]  }
 0x39f   : > { %v14910_v25 = vrot.slane %v6072_v17, 6  ;;  %v14912_v33 = vrot.slane %v6075_v41, 7  ;;  %v14914_v39 = vrot.slane %v5951_v30, 6  ;;  %v6312_v8 = vshrl.u32 %v14895_v22, 16  ;;  %11039 = vmatpush3.bf16.msra.mxu1 %v11602_v61  ;;  %v11604_v20 = vld [vmem:[%s16138_s3 + $0x8] sm:$0xff]   ;;  %v11609_v12 = vld [vmem:[%s16138_s3 + $0xd0] sm:$0xff]  }
 0x3a0   : > { %v14920_v15 = vrot.slane %v5954_v63, 7  ;;  %v11605_v23 = vld [vmem:[%s16138_s3 + $0xc8] sm:$0xff]   ;;  %v6315_v9 = vshll.u32 %v14895_v22, 16  ;;  %11019 = vmatpush3.bf16.msra.mxu0 %v11604_v20  ;;  %v11608_v43 = vld [vmem:[%s16138_s3 + $0x10] sm:$0xff]   ;;  %v5210_v55 = vld [vmem:[#allocation3 + $0x18] sm:$0x7]  ;;  %v6286_v28 = vcombine.high %v14895_v22, %v14895_v22 }
 0x3a1   : > { %v11606_v35 = vld [vmem:[%s16138_s3 + $0x88] sm:$0xff]   ;;  %11040 = vmatprep.subr.bf16.mxu1 %v11605_v23  ;;  %11020 = vmatprep.subr.bf16.mxu0 %v11607_v59  ;;  %v6078_v40 = vor.u32 %v14912_v33, %v14910_v25  ;;  %v14955_v5 = vrot.slane %v6312_v8, 6  ;;  %v5021_v52 = vld [vmem:[#allocation3 + $0x14] sm:$0x7]  ;;  %v4803_v13 = vld [vmem:[#allocation3 + $0x10] sm:$0x7] }
 0x3a2   : > { %v14933_v31 = vld.sshfl [vmem:[#allocation3 + $0x8] sm:$0x13 pattern:$0x76325410]  ;;  %v5957_v54 = vor.u32 %v14920_v15, %v14914_v39  ;;  %v14962_v17 = vrot.slane %v6315_v9, 7  ;;  %v11610_v30 = vld [vmem:[%s16138_s3 + $0x90] sm:$0xff]  }
 0x3a3   : > { %11041 = vmatpush3.bf16.msra.mxu1 %v11606_v35  ;;  %v6192_v32 = vshrl.u32 %v14933_v31, 16  ;;  %v6195_v41 = vshll.u32 %v14933_v31, 16  ;;  %v11612_v63 = vld [vmem:[%s16138_s3 + $0x18] sm:$0xff]   ;;  %v11623_v27 = vld [vmem:[%s16138_s3 + $0x70] sm:$0xff]   ;;  %v6079_v15 = vrot.slane %v6078_v40, 2  ;;  %v6321_v25 = vshll.u32 %v6286_v28, 16 }
 0x3a4   : > { %11042 = vmatprep.subr.bf16.mxu1 %v11609_v12  ;;  %11021 = vmatpush3.bf16.msra.mxu0 %v11608_v43  ;;  %v11627_v33 = vld [vmem:[%s16138_s3 + $0x78] sm:$0xff]   ;;  %v11668_v22 = vld [vmem:[%s16138_s3 + $0x80] sm:$0xff]  }
 0x3a5   : > { %11022 = vmatprep.subr.bf16.mxu0 %v11611_v16  ;;  %v11622_v16 = vld [vmem:[%s16138_s3 + $0xa8] sm:$0xff]  }
 0x3a7   : > { %11043 = vmatpush3.bf16.msra.mxu1 %v11610_v30 }
 0x3a8   : > { %11023 = vmatpush3.bf16.msra.mxu0 %v11612_v63 }
 0x406   : > { %v10966_v53 = vpop.f32.mrb[12].mxu1 }
 0x407   : > { %v10944_v26 = vpop.f32.mrb[12].mxu0  ;;  %v10967_v36 = vpop.f32.mrb[13].mxu1 }
 0x408   : > { %v10945_v18 = vpop.f32.mrb[13].mxu0  ;;  %v10968_v51 = vadd.f32 %v10967_v36, %v10966_v53  ;;  %v10969_v2 = vpop.f32.mrb[14].mxu1  ;;  %v11613_v53 = vld [vmem:[%s16138_s3 + $0xd8] sm:$0xff]  }
 0x409   : > { %v10946_v11 = vadd.f32 %v10945_v18, %v10944_v26  ;;  %v10947_v34 = vpop.f32.mrb[14].mxu0  ;;  %v10970_v14 = vpop.f32.mrb[15].mxu1  ;;  %11044 = vmatprep.subr.bf16.mxu1 %v11613_v53 }
 0x40a   : > { %v10948_v44 = vpop.f32.mrb[15].mxu0  ;;  %v5418_v62 = vadd.f32 %v14618_v48, %v10968_v51  ;;  %v10971_v38 = vadd.f32 %v10970_v14, %v10969_v2  ;;  %v11615_v14 = vld [vmem:[%s16138_s3 + $0x60] sm:$0xff]  }
 0x40b   : > { %v5200_v1 = vadd.f32 %v14618_v48, %v10946_v11  ;;  %v10949_v50 = vadd.f32 %v10948_v44, %v10947_v34  ;;  %v11614_v44 = vld [vmem:[%s16138_s3 + $0x98] sm:$0xff]   ;;  %11024 = vmatprep.subr.bf16.mxu0 %v11615_v14 }
 0x40c   : > { %v5424_v58 = vmax.f32 %v5418_v62, 0.0  ;;  %v5421_v47 = vadd.f32 %v14618_v48, %v10971_v38  ;;  %v11616_v62 = vld [vmem:[%s16138_s3 + $0x20] sm:$0xff]   ;;  %11045 = vmatpush3.bf16.msra.mxu1 %v11614_v44 }
 0x40d   : > { %v5206_v24 = vmax.f32 %v5200_v1, 0.0  ;;  %v5203_v49 = vadd.f32 %v14618_v48, %v10949_v50  ;;  %v5428_v48 = vld [vmem:[#allocation3 + $0x1c] sm:$0x7]  ;;  %v11617_v50 = vld [vmem:[%s16138_s3 + $0xe0] sm:$0xff]   ;;  %11025 = vmatpush3.bf16.msra.mxu0 %v11616_v62 }
 0x40e   : > { %v4801_v21 = vpop.permute.xlu0 %4800  ;;  %v10790_v60 = vpack.c.bf16 %v5424_v58, %v5424_v58  ;;  %v5425_v7 = vmax.f32 %v5421_v47, 0.0  ;;  %v6197_v47 = vrot.slane %v6195_v41, 7  ;;  %11046 = vmatprep.subr.bf16.mxu1 %v11617_v50  ;;  %v6081_v41 = vshll.u32 %v6046_v19, 16 }
 0x40f   : > { %v10788_v29 = vpack.c.bf16 %v5206_v24, %v5206_v24  ;;  %v5207_v37 = vmax.f32 %v5203_v49, 0.0  ;;  %v5019_v0 = vpop.permute.xlu1 %5018  ;;  %v4804_v6 = vsel %vm12544_vm9, %v4801_v21, %v4803_v13  ;;  %v6194_v49 = vrot.slane %v6192_v32, 6  ;;  %v11620_v13 = vld [vmem:[%s16138_s3 + $0x28] sm:$0xff]  }
 0x410   : > { %v5022_v57 = vsel %vm12544_vm9, %v5019_v0, %v5021_v52  ;;  %v5437_v61 = vshrl.u32 %v10790_v60, 16  ;;  %v5440_v26 = vshll.u32 %v10790_v60, 16  ;;  %4805 = vst [vmem:[#allocation3 + $0x10] sm:$0x7] %v4804_v6  ;;  %v5426_v11 = vpack.c.bf16 %v5425_v7, %v5424_v58 }
 0x411   : > { %v5219_v3 = vshrl.u32 %v10788_v29, 16  ;;  %v5222_v45 = vshll.u32 %v10788_v29, 16  ;;  %5023 = vst [vmem:[#allocation3 + $0x14] sm:$0x7] %v5022_v57  ;;  %v5208_v18 = vpack.c.bf16 %v5207_v37, %v5206_v24  ;;  %v10789_v36 = vpack.c.bf16 %v5207_v37, %v5207_v37  ;;  %v11621_v57 = vld [vmem:[%s16138_s3 + $0xe8] sm:$0xff]  }
 0x412   : > { %v10791_v51 = vpack.c.bf16 %v5425_v7, %v5425_v7  ;;  %v5439_v8 = vrot.slane %v5437_v61, 6  ;;  %v5442_v56 = vrot.slane %v5440_v26, 7  ;;  %v5429_v1 = vsel %vm12251_vm2, %v5426_v11, %v5428_v48  ;;  %v11619_v7 = vld [vmem:[%s16138_s3 + $0x68] sm:$0xff]  }
 0x413   : > { %v5221_v34 = vrot.slane %v5219_v3, 6  ;;  %v5224_v2 = vrot.slane %v5222_v45, 7  ;;  %v5211_v20 = vsel %vm12251_vm2, %v5208_v18, %v5210_v55  ;;  %v5228_v23 = vshrl.u32 %v10789_v36, 16  ;;  %5430 = vst [vmem:[#allocation3 + $0x1c] sm:$0x7] %v5429_v1  ;;  %v11618_v55 = vld [vmem:[%s16138_s3 + $0xa0] sm:$0xff]   ;;  %11026 = vmatprep.subr.bf16.mxu0 %v11619_v7 }
 0x414   : > { %v5231_v35 = vshll.u32 %v10789_v36, 16  ;;  %5212 = vst [vmem:[#allocation3 + $0x18] sm:$0x7] %v5211_v20  ;;  %v5446_v59 = vshrl.u32 %v10791_v51, 16  ;;  %v5449_v12 = vshll.u32 %v10791_v51, 16  ;;  %v5443_v9 = vor.u32 %v5442_v56, %v5439_v8  ;;  %11047 = vmatpush3.bf16.msra.mxu1 %v11618_v55  ;;  %11027 = vmatpush3.bf16.msra.mxu0 %v11620_v13  ;;  %v11624_v45 = vld [vmem:[%s16138_s3 + $0x30] sm:$0xff]  }
 0x415   : > { %v5225_v43 = vor.u32 %v5224_v2, %v5221_v34  ;;  %v5230_v24 = vrot.slane %v5228_v23, 6  ;;  %v5960_v52 = vshll.u32 %v5920_v10, 16  ;;  %v6166_v0 = vcombine.high %v14933_v31, %v14933_v31  ;;  %11048 = vmatprep.subr.bf16.mxu1 %v11621_v57  ;;  %11028 = vmatprep.subr.bf16.mxu0 %v11623_v27  ;;  %v11628_v8 = vld [vmem:[%s16138_s3 + $0x38] sm:$0xff]   ;;  %v11632_v23 = vld [vmem:[%s16138_s3 + $0x40] sm:$0xff]  }
 0x416   : > { %v5233_v58 = vrot.slane %v5231_v35, 7  ;;  %v5448_v21 = vrot.slane %v5446_v59, 6  ;;  %v5451_v29 = vrot.slane %v5449_v12, 7  ;;  %v5444_v60 = vrot.slane %v5443_v9, 4  ;;  %v11629_v56 = vld [vmem:[%s16138_s3 + $0xf8] sm:$0xff]   ;;  %v11634_v35 = vld [vmem:[%s16138_s3 + $0xc0] sm:$0xff]  }
 0x417   : > { %v5226_v37 = vrot.slane %v5225_v43, 4  ;;  %v5958_v10 = vrot.slane %v5957_v54, 2  ;;  %v6198_v30 = vor.u32 %v6197_v47, %v6194_v49  ;;  %v6318_v19 = vor.u32 %v14962_v17, %v14955_v5  ;;  %v11625_v54 = vld [vmem:[%s16138_s3 + $0xf0] sm:$0xff]   ;;  %v11630_v20 = vld [vmem:[%s16138_s3 + $0xb8] sm:$0xff]   ;;  %v11934_v43 = vld [vmem:[%s16137_s2] ss:$0 sm:$0xff] }
 0x418   : > { %v5234_v48 = vor.u32 %v5233_v58, %v5230_v24  ;;  %v5452_v6 = vor.u32 %v5451_v29, %v5448_v21  ;;  %v5962_v63 = vrot.slane %v5960_v52, 7  ;;  %v6201_v3 = vshll.u32 %v6166_v0, 16  ;;  %11049 = vmatpush3.bf16.msra.mxu1 %v11622_v16  ;;  %v11626_v17 = vld [vmem:[%s16138_s3 + $0xb0] sm:$0xff]   ;;  %11029 = vmatpush3.bf16.msra.mxu0 %v11624_v45  ;;  %v5646_v16 = vld [vmem:[#allocation3 + $0x20] sm:$0x7] }
 0x419   : > { %v6083_v61 = vrot.slane %v6081_v41, 7  ;;  %v6199_v5 = vrot.slane %v6198_v30, 2  ;;  %v6264_v26 = vld [vmem:[#allocation3 + $0x14] sm:$0x3]  ;;  %v6144_v53 = vld [vmem:[#allocation3 + $0x10] sm:$0x3]  ;;  %11050 = vmatprep.subr.bf16.mxu1 %v11625_v54  ;;  %11030 = vmatprep.subr.bf16.mxu0 %v11627_v33 }
 0x41a   : > { %v5235_v31 = vsel %vm14198_vm5, %v5226_v37, %v5234_v48  ;;  %v5453_v39 = vsel %vm14198_vm5, %v5444_v60, %v5452_v6  ;;  %v5963_v40 = vsel %vm15042_vm14, %v5958_v10, %v5962_v63  ;;  %v6319_v36 = vrot.slane %v6318_v19, 2  ;;  %6268 = vst.msk [vmem:[#allocation4 + $0xe] sm:$0x3] %vm5900_vm10, %v6264_v26  ;;  %6148 = vst.msk [vmem:[#allocation4 + $0xc] sm:$0x3] %vm5900_vm10, %v6144_v53 }
 0x41b   : > { %5236 = vrot.lane.b32.xlu0 %v5235_v31, %s16315_s24  ;;  %5454 = vrot.lane.b32.xlu1 %v5453_v39, %s16315_s24  ;;  %v6084_v18 = vsel %vm15042_vm14, %v6079_v15, %v6083_v61  ;;  %v6025_v11 = vld [vmem:[#allocation3 + $0x14] sm:$0x3]  ;;  %v5898_v51 = vld [vmem:[#allocation3 + $0x10] sm:$0x3]  ;;  %v6203_v34 = vrot.slane %v6201_v3, 7  ;;  %v6323_v2 = vrot.slane %v6321_v25, 7 }
 0x41c   : > { %6029 = vst.msk [vmem:[#allocation4 + $0x12] sm:$0x3] %vm5900_vm10, %v6025_v11  ;;  %5903 = vst.msk [vmem:[#allocation4 + $0x10] sm:$0x3] %vm5900_vm10, %v5898_v51  ;;  %11051 = vmatpush3.bf16.msra.mxu1 %v11626_v17  ;;  %11031 = vmatpush3.bf16.msra.mxu0 %v11628_v8  ;;  %v5864_v61 = vld [vmem:[#allocation3 + $0x24] sm:$0x7] }
 0x41d   : > { %v15085_v44 = vsel %vm15042_vm14, %v6199_v5, %v6203_v34  ;;  %v15089_v14 = vsel %vm15042_vm14, %v6319_v36, %v6323_v2  ;;  %11052 = vmatprep.subr.bf16.mxu1 %v11629_v56  ;;  %11060 = vmatprep.subr.bf16.mxu0 %v11632_v23  ;;  %v10443_v21 = vld.sshfl [vmem:[#allocation3 + $0x10] sm:$0x13 pattern:$0x76325410] }
 0x41e   : > { %v10447_v32 = vld.sshfl [vmem:[#allocation3 + $0x14] sm:$0x13 pattern:$0x76325410]  ;;  %v6206_v48 = vshrl.u32 %v10443_v21, 16  ;;  %v6209_v19 = vshll.u32 %v10443_v21, 16 }
 0x41f   : > { %6006 = vrot.lane.b32.xlu0 %v5963_v40, %s16314_s22  ;;  %6127 = vrot.lane.b32.xlu1 %v6084_v18, %s16314_s22  ;;  %v6326_v6 = vshrl.u32 %v10447_v32, 16  ;;  %v6329_v41 = vshll.u32 %v10447_v32, 16  ;;  %v6294_v42 = vcombine.high %v10447_v32, %v10447_v32  ;;  %v5457_v32 = vld [vmem:[#allocation3 + $0x1c] sm:$0x7] }
 0x420   : > { %11053 = vmatpush3.bf16.msra.mxu1 %v11630_v20  ;;  %v6208_v15 = vrot.slane %v6206_v48, 6  ;;  %v6211_v34 = vrot.slane %v6209_v19, 7 }
 0x421   : > { %11082 = vmatprep.subr.bf16.mxu1 %v11634_v35  ;;  %v6328_v35 = vrot.slane %v6326_v6, 6  ;;  %v12006_v6 = vmov 1983009808  }
 0x423   : > { %6247 = vrot.lane.b32.xlu0 %v15085_v44, %s16314_s22  ;;  %6367 = vrot.lane.b32.xlu1 %v15089_v14, %s16314_s22 }
 0x467   : > { %v11010_v50 = vpop.f32.mrb[16].mxu1 }
 0x468   : > { %v10988_v1 = vpop.f32.mrb[16].mxu0  ;;  %v11011_v12 = vpop.f32.mrb[17].mxu1 }
 0x469   : > { %v10989_v62 = vpop.f32.mrb[17].mxu0  ;;  %v11012_v58 = vadd.f32 %v11011_v12, %v11010_v50  ;;  %v11013_v49 = vpop.f32.mrb[18].mxu1 }
 0x46a   : > { %v10990_v38 = vadd.f32 %v10989_v62, %v10988_v1  ;;  %v10991_v59 = vpop.f32.mrb[18].mxu0  ;;  %v11014_v29 = vpop.f32.mrb[19].mxu1  ;;  %v6174_v1 = vcombine.high %v10443_v21, %v10443_v21  ;;  %v6335_v21 = vshll.u32 %v6294_v42, 16  ;;  %v11638_v42 = vld [vmem:[%s16138_s3 + $0xc8] sm:$0xff]  }
 0x46b   : > { %v10992_v9 = vpop.f32.mrb[19].mxu0  ;;  %v5854_v37 = vadd.f32 %v11934_v43, %v11012_v58  ;;  %v11015_v7 = vadd.f32 %v11014_v29, %v11013_v49 }
 0x46c   : > { %v5636_v24 = vadd.f32 %v11934_v43, %v10990_v38  ;;  %v10993_v47 = vadd.f32 %v10992_v9, %v10991_v59  ;;  %v6331_v59 = vrot.slane %v6329_v41, 7  ;;  %v6212_v9 = vor.u32 %v6211_v34, %v6208_v15 }
 0x46d   : > { %v5860_v0 = vmax.f32 %v5854_v37, 0.0  ;;  %v5857_v57 = vadd.f32 %v11934_v43, %v11015_v7  ;;  %v6457_v41 = vunpack.c.l.s4 %v12006_v6  ;;  %v11658_v6 = vld [vmem:[%s16138_s3 + $0xf0] sm:$0xff]  }
 0x46e   : > { %v5642_v60 = vmax.f32 %v5636_v24, 0.0  ;;  %v5639_v55 = vadd.f32 %v11934_v43, %v10993_v47  ;;  %v6215_v24 = vshll.u32 %v6174_v1, 16  ;;  %v6332_v49 = vor.u32 %v6331_v59, %v6328_v35  ;;  %v11633_v59 = vld [vmem:[%s16138_s3] sm:$0xff]  }
 0x46f   : > { %v10794_v10 = vpack.c.bf16 %v5860_v0, %v5860_v0  ;;  %v5861_v39 = vmax.f32 %v5857_v57, 0.0  ;;  %v6213_v47 = vrot.slane %v6212_v9, 2  ;;  %v11635_v9 = vld [vmem:[%s16138_s3 + $0x80] sm:$0xff]  }
 0x470   : > { %v10792_v52 = vpack.c.bf16 %v5642_v60, %v5642_v60  ;;  %v5643_v13 = vmax.f32 %v5639_v55, 0.0  ;;  %v6217_v29 = vrot.slane %v6215_v24, 7  ;;  %v6337_v55 = vrot.slane %v6335_v21, 7  ;;  %v11637_v24 = vld [vmem:[%s16138_s3 + $0x8] sm:$0xff]   ;;  %v11641_v21 = vld [vmem:[%s16138_s3 + $0x10] sm:$0xff]  }
 0x471   : > { %v5873_v3 = vshrl.u32 %v10794_v10, 16  ;;  %v5876_v45 = vshll.u32 %v10794_v10, 16  ;;  %v5862_v5 = vpack.c.bf16 %v5861_v39, %v5860_v0  ;;  %v10795_v53 = vpack.c.bf16 %v5861_v39, %v5861_v39 }
 0x472   : > { %v5655_v28 = vshrl.u32 %v10792_v52, 16  ;;  %v5658_v31 = vshll.u32 %v10792_v52, 16  ;;  %v5644_v30 = vpack.c.bf16 %v5643_v13, %v5642_v60  ;;  %v10793_v27 = vpack.c.bf16 %v5643_v13, %v5643_v13 }
 0x473   : > { %v5875_v17 = vrot.slane %v5873_v3, 6  ;;  %v5878_v26 = vrot.slane %v5876_v45, 7  ;;  %v5865_v51 = vsel %vm12251_vm2, %v5862_v5, %v5864_v61  ;;  %v5882_v2 = vshrl.u32 %v10795_v53, 16 }
 0x474   : > { %v5657_v54 = vrot.slane %v5655_v28, 6  ;;  %v5660_v63 = vrot.slane %v5658_v31, 7  ;;  %v5647_v25 = vsel %vm12251_vm2, %v5644_v30, %v5646_v16  ;;  %v5664_v33 = vshrl.u32 %v10793_v27, 16  ;;  %5866 = vst [vmem:[#allocation3 + $0x24] sm:$0x7] %v5865_v51 }
 0x475   : > { %v5667_v40 = vshll.u32 %v10793_v27, 16  ;;  %5648 = vst [vmem:[#allocation3 + $0x20] sm:$0x7] %v5647_v25  ;;  %v5885_v8 = vshll.u32 %v10795_v53, 16  ;;  %v5879_v56 = vor.u32 %v5878_v26, %v5875_v17  ;;  %v5884_v62 = vrot.slane %v5882_v2, 6 }
 0x476   : > { %v5661_v18 = vor.u32 %v5660_v63, %v5657_v54  ;;  %v5666_v36 = vrot.slane %v5664_v33, 6  ;;  %v6333_v60 = vrot.slane %v6332_v49, 2  ;;  %v6218_v37 = vsel %vm15042_vm14, %v6213_v47, %v6217_v29  ;;  %v11640_v49 = vld [vmem:[%s16138_s3 + $0x50] sm:$0xff]  }
 0x477   : > { %v5669_v11 = vrot.slane %v5667_v40, 7  ;;  %v5887_v50 = vrot.slane %v5885_v8, 7  ;;  %v5880_v38 = vrot.slane %v5879_v56, 4  ;;  %vm6018_vm2 = vcmask 1041920   ;;  %v11642_v47 = vld [vmem:[%s16138_s3 + $0xd0] sm:$0xff]  }
 0x478   : > { %v5662_v20 = vrot.slane %v5661_v18, 4  ;;  %v6338_v4 = vsel %vm15042_vm14, %v6333_v60, %v6337_v55  ;;  %v6459_v13 = vlaneseq  ;;  %v6458_v54 = vunpack.c.0.s8 %v6457_v41  ;;  %v11643_v29 = vld [vmem:[%s16138_s3 + $0x90] sm:$0xff]   ;;  %v11644_v60 = vld [vmem:[%s16138_s3 + $0x58] sm:$0xff]  }
 0x479   : > { %v5670_v23 = vor.u32 %v5669_v11, %v5666_v36  ;;  %v5888_v43 = vor.u32 %v5887_v50, %v5884_v62  ;;  %v11645_v55 = vld [vmem:[%s16138_s3 + $0x18] sm:$0xff]   ;;  %v11657_v41 = vld [vmem:[%s16138_s3 + $0x30] sm:$0xff]  }
 0x47a   : > { %v15135_v31 = vshrl.u32 %v6459_v13, 7  ;;  %v11655_v13 = vld [vmem:[%s16138_s3 + $0xa8] sm:$0xff]  }
 0x47b   : > { %v5671_v12 = vsel %vm14198_vm5, %v5662_v20, %v5670_v23  ;;  %v5889_v58 = vsel %vm14198_vm5, %v5880_v38, %v5888_v43  ;;  %v11636_v43 = vld [vmem:[%s16138_s3 + $0x48] sm:$0xff]   ;;  %vm7869_vm5 = vsmask.f32 1284 }
 0x47c   : > { %5672 = vrot.lane.b32.xlu0 %v5671_v12, %s16315_s24  ;;  %5890 = vrot.lane.b32.xlu1 %v5889_v58, %s16315_s24  ;;  %v15143_v11 = vsub.s32 %v6458_v54, %v15135_v31  ;;  %v11639_v58 = vld [vmem:[%s16138_s3 + $0x88] sm:$0xff]  }
 0x480   : > { %6008 = vrot.lane.b32.xlu0 %v15085_v44, %s16314_s22  ;;  %6129 = vrot.lane.b32.xlu1 %v15089_v14, %s16314_s22  ;;  %v5239_v44 = vld [vmem:[#allocation3 + $0x18] sm:$0x7] }
 0x484   : > { %6249 = vrot.lane.b32.xlu0 %v6218_v37, %s16314_s22  ;;  %6369 = vrot.lane.b32.xlu1 %v6338_v4, %s16314_s22 }
 0x488   : > { %6010 = vrot.lane.b32.xlu0 %v6218_v37, %s16314_s22  ;;  %6131 = vrot.lane.b32.xlu1 %v6338_v4, %s16314_s22  ;;  %v11646_v37 = vld [vmem:[%s16138_s3 + $0xd8] sm:$0xff]  }
 0x489   : > { %v11647_v4 = vld [vmem:[%s16138_s3 + $0x98] sm:$0xff]  }
 0x48d   : > { %v5237_v7 = vpop.permute.xlu0 %5236  ;;  %v5455_v48 = vpop.permute.xlu1 %5454 }
 0x48e   : > { %v5240_v14 = vsel %vm12544_vm9, %v5237_v7, %v5239_v44  ;;  %v5458_v52 = vsel %vm12544_vm9, %v5455_v48, %v5457_v32  ;;  %v11648_v44 = vld [vmem:[%s16138_s3 + $0x60] sm:$0xff]  }
 0x48f   : > { %5241 = vst [vmem:[#allocation3 + $0x18] sm:$0x7] %v5240_v14  ;;  %5459 = vst [vmem:[#allocation3 + $0x1c] sm:$0x7] %v5458_v52  ;;  %v11650_v7 = vld [vmem:[%s16138_s3 + $0xe0] sm:$0xff]   ;;  %v11652_v14 = vld [vmem:[%s16138_s3 + $0x68] sm:$0xff]  }
 0x490   : > { %v11649_v32 = vld [vmem:[%s16138_s3 + $0x20] sm:$0xff]   ;;  %v11654_v52 = vld [vmem:[%s16138_s3 + $0xe8] sm:$0xff]  }
 0x491   : > { %v6007_v0 = vpop.permute.xlu0 %6006  ;;  %v6128_v57 = vpop.permute.xlu1 %6127  ;;  %v11651_v48 = vld [vmem:[%s16138_s3 + $0xa0] sm:$0xff]  }
 0x492   : > { %6019 = vst.msk [vmem:[#allocation4] sm:$0x3] %vm6018_vm2, %v6007_v0  ;;  %6139 = vst.msk [vmem:[#allocation4 + $0x2] sm:$0x3] %vm6018_vm2, %v6128_v57  ;;  %v11653_v0 = vld [vmem:[%s16138_s3 + $0x28] sm:$0xff]   ;;  %v11656_v57 = vld [vmem:[%s16138_s3 + $0x70] sm:$0xff]  }
 0x495   : > { %v6248_v28 = vpop.permute.xlu0 %6247  ;;  %v6368_v10 = vpop.permute.xlu1 %6367 }
 0x496   : > { %6259 = vst.msk [vmem:[#allocation4 + $0x4] sm:$0x3] %vm6018_vm2, %v6248_v28  ;;  %v10444_v30 = vld.sshfl [vmem:[#allocation3 + $0x18] sm:$0x13 pattern:$0x76325410] }
 0x497   : > { %v6145_v16 = vld [vmem:[#allocation3 + $0x18] sm:$0x3]  ;;  %6379 = vst.msk [vmem:[#allocation4 + $0x6] sm:$0x3] %vm6018_vm2, %v6368_v10  ;;  %v6182_v39 = vcombine.high %v10444_v30, %v10444_v30  ;;  %v6220_v15 = vshrl.u32 %v10444_v30, 16  ;;  %v6223_v19 = vshll.u32 %v10444_v30, 16 }
 0x498   : > { %v10448_v27 = vld.sshfl [vmem:[#allocation3 + $0x1c] sm:$0x13 pattern:$0x76325410]  ;;  %6149 = vst.msk [vmem:[#allocation4 + $0x14] sm:$0x3] %vm5900_vm10, %v6145_v16 }
 0x499   : > { %v6302_v63 = vcombine.high %v10448_v27, %v10448_v27  ;;  %v6340_v3 = vshrl.u32 %v10448_v27, 16  ;;  %v6343_v45 = vshll.u32 %v10448_v27, 16  ;;  %v6265_v61 = vld [vmem:[#allocation3 + $0x1c] sm:$0x3]  ;;  %v6222_v25 = vrot.slane %v6220_v15, 6  ;;  %v11659_v28 = vld [vmem:[%s16138_s3 + $0xb0] sm:$0xff]  }
 0x49a   : > { %v6225_v33 = vrot.slane %v6223_v19, 7  ;;  %v6229_v40 = vshll.u32 %v6182_v39, 16  ;;  %6269 = vst.msk [vmem:[#allocation4 + $0x16] sm:$0x3] %vm5900_vm10, %v6265_v61  ;;  %v6026_v5 = vld [vmem:[#allocation3 + $0x1c] sm:$0x3] }
 0x49b   : > { %v6342_v17 = vrot.slane %v6340_v3, 6  ;;  %v6345_v26 = vrot.slane %v6343_v45, 7  ;;  %v6349_v53 = vshll.u32 %v6302_v63, 16  ;;  %6030 = vst.msk [vmem:[#allocation4 + $0x1a] sm:$0x3] %vm5900_vm10, %v6026_v5  ;;  %v11660_v10 = vld [vmem:[%s16138_s3 + $0x78] sm:$0xff]  }
 0x49c   : > { %v5899_v18 = vld [vmem:[#allocation3 + $0x18] sm:$0x3]  ;;  %v6226_v36 = vor.u32 %v6225_v33, %v6222_v25  ;;  %v6231_v2 = vrot.slane %v6229_v40, 7  ;;  %v11664_v39 = vld [vmem:[%s16138_s3 + $0x40] sm:$0xff]  }
 0x49d   : > { %5904 = vst.msk [vmem:[#allocation4 + $0x18] sm:$0x3] %vm5900_vm10, %v5899_v18  ;;  %v6346_v51 = vor.u32 %v6345_v26, %v6342_v17  ;;  %v6351_v56 = vrot.slane %v6349_v53, 7  ;;  %v11662_v30 = vld [vmem:[%s16138_s3 + $0xf8] sm:$0xff]   ;;  %v11667_v15 = vld [vmem:[%s16138_s3 + $0xc0] sm:$0xff]  }
 0x49e   : > { %v6227_v34 = vrot.slane %v6226_v36, 2  ;;  %v6383_v20 = vld [vmem:[#allocation4] sm:$0xff]  ;;  %v11661_v16 = vld [vmem:[%s16138_s3 + $0x38] sm:$0xff]   ;;  %v5675_v19 = vld [vmem:[#allocation3 + $0x20] sm:$0x7] }
 0x49f   : > { %v6347_v8 = vrot.slane %v6346_v51, 2  ;;  %v6462_v35 = vrot.slane %v6383_v20, %v15143_v11  ;;  %v6455_v1 = vcombine.high %v6383_v20, %v6383_v20  ;;  %v11663_v27 = vld [vmem:[%s16138_s3 + $0xb8] sm:$0xff]   ;;  %v5893_v3 = vld [vmem:[#allocation3 + $0x24] sm:$0x7] }
 0x4a0   : > { %v6232_v23 = vsel %vm15042_vm14, %v6227_v34, %v6231_v2 }
 0x4a1   : > { %v6352_v62 = vsel %vm15042_vm14, %v6347_v8, %v6351_v56  ;;  %6251 = vrot.lane.b32.xlu0 %v6232_v23, %s16314_s22  ;;  %v6470_v50 = vcombine.high %v6462_v35, %v6462_v35  ;;  %v6469_v38 = vrot.slane %v6455_v1, %v15143_v11 }
 0x4a2   : > { %6371 = vrot.lane.b32.xlu1 %v6352_v62, %s16314_s22 }
 0x4a3   : > { %6700 = vmatprep.mubr.bf16.mxu0 %v6470_v50  ;;  %v6471_v12 = vcombine.high %v6469_v38, %v6469_v38 }
 0x4a4   : > { %6701 = vmatmul.mubr.bf16.vlgmr.msra.gmra.mrb[20].mxu0 %v6462_v35 }
 0x4a5   : > { %6012 = vrot.lane.b32.xlu0 %v6232_v23, %s16314_s22  ;;  %6740 = vmatprep.mubr.bf16.mxu1 %v6471_v12 }
 0x4a6   : > { %6133 = vrot.lane.b32.xlu1 %v6352_v62, %s16314_s22  ;;  %6741 = vmatmul.mubr.bf16.vlgmr.msra.gmra.mrb[20].mxu1 %v6469_v38 }
 0x4a7   : > { %11061 = vmatpush3.bf16.msra.mxu0 %v11633_v59  ;;  %11083 = vmatpush3.bf16.msra.mxu1 %v11635_v9 }
 0x4a8   : > { %11062 = vmatprep.subr.bf16.mxu0 %v11636_v43  ;;  %11084 = vmatprep.subr.bf16.mxu1 %v11638_v42 }
 0x4ab   : > { %11063 = vmatpush3.bf16.msra.mxu0 %v11637_v24  ;;  %11085 = vmatpush3.bf16.msra.mxu1 %v11639_v58 }
 0x4ac   : > { %11064 = vmatprep.subr.bf16.mxu0 %v11640_v49  ;;  %11086 = vmatprep.subr.bf16.mxu1 %v11642_v47 }
 0x4af   : > { %11065 = vmatpush3.bf16.msra.mxu0 %v11641_v21  ;;  %11087 = vmatpush3.bf16.msra.mxu1 %v11643_v29 }
 0x4b0   : > { %11066 = vmatprep.subr.bf16.mxu0 %v11644_v60  ;;  %11088 = vmatprep.subr.bf16.mxu1 %v11646_v37  ;;  %v11665_v37 = vld [vmem:[%s16138_s3] sm:$0xff]  }
 0x4b3   : > { %11067 = vmatpush3.bf16.msra.mxu0 %v11645_v55  ;;  %11089 = vmatpush3.bf16.msra.mxu1 %v11647_v4  ;;  %v11669_v4 = vld [vmem:[%s16138_s3 + $0x48] sm:$0xff]  }
 0x4b4   : > { %11068 = vmatprep.subr.bf16.mxu0 %v11648_v44  ;;  %11090 = vmatprep.subr.bf16.mxu1 %v11650_v7  ;;  %v11671_v7 = vld [vmem:[%s16138_s3 + $0xc8] sm:$0xff]  }
 0x4b7   : > { %11069 = vmatpush3.bf16.msra.mxu0 %v11649_v32  ;;  %11091 = vmatpush3.bf16.msra.mxu1 %v11651_v48  ;;  %v11670_v32 = vld [vmem:[%s16138_s3 + $0x8] sm:$0xff]   ;;  %v11673_v48 = vld [vmem:[%s16138_s3 + $0x50] sm:$0xff]  }
 0x4b8   : > { %11070 = vmatprep.subr.bf16.mxu0 %v11652_v14  ;;  %11092 = vmatprep.subr.bf16.mxu1 %v11654_v52  ;;  %v11672_v14 = vld [vmem:[%s16138_s3 + $0x88] sm:$0xff]   ;;  %v11675_v52 = vld [vmem:[%s16138_s3 + $0xd0] sm:$0xff]  }
 0x4bb   : > { %11071 = vmatpush3.bf16.msra.mxu0 %v11653_v0  ;;  %11093 = vmatpush3.bf16.msra.mxu1 %v11655_v13  ;;  %v11674_v0 = vld [vmem:[%s16138_s3 + $0x10] sm:$0xff]   ;;  %v11677_v13 = vld [vmem:[%s16138_s3 + $0x58] sm:$0xff]  }
 0x4bc   : > { %11072 = vmatprep.subr.bf16.mxu0 %v11656_v57  ;;  %11094 = vmatprep.subr.bf16.mxu1 %v11658_v6  ;;  %v11676_v57 = vld [vmem:[%s16138_s3 + $0x90] sm:$0xff]   ;;  %v11679_v6 = vld [vmem:[%s16138_s3 + $0xd8] sm:$0xff]  }
 0x4bf   : > { %11073 = vmatpush3.bf16.msra.mxu0 %v11657_v41  ;;  %11095 = vmatpush3.bf16.msra.mxu1 %v11659_v28  ;;  %v11678_v41 = vld [vmem:[%s16138_s3 + $0x18] sm:$0xff]   ;;  %v11681_v28 = vld [vmem:[%s16138_s3 + $0x60] sm:$0xff]  }
 0x4c0   : > { %11074 = vmatprep.subr.bf16.mxu0 %v11660_v10  ;;  %11096 = vmatprep.subr.bf16.mxu1 %v11662_v30  ;;  %v11680_v10 = vld [vmem:[%s16138_s3 + $0x98] sm:$0xff]  }
 0x4c3   : > { %11075 = vmatpush3.bf16.msra.mxu0 %v11661_v16  ;;  %11097 = vmatpush3.bf16.msra.mxu1 %v11663_v27  ;;  %v11683_v16 = vld [vmem:[%s16138_s3 + $0xe0] sm:$0xff]  }
 0x4c4   : > { %11104 = vmatprep.subr.bf16.mxu0 %v11664_v39  ;;  %11126 = vmatprep.subr.bf16.mxu1 %v11667_v15  ;;  %v11682_v39 = vld [vmem:[%s16138_s3 + $0x20] sm:$0xff]   ;;  %v11685_v15 = vld [vmem:[%s16138_s3 + $0x68] sm:$0xff]  }
 0x4ee   : > { %v5673_v54 = vpop.permute.xlu0 %5672  ;;  %v5891_v45 = vpop.permute.xlu1 %5890 }
 0x4ef   : > { %v5676_v63 = vsel %vm12544_vm9, %v5673_v54, %v5675_v19  ;;  %v5894_v61 = vsel %vm12544_vm9, %v5891_v45, %v5893_v3  ;;  %v11684_v19 = vld [vmem:[%s16138_s3 + $0xa0] sm:$0xff]   ;;  %v11686_v45 = vld [vmem:[%s16138_s3 + $0x28] sm:$0xff]   ;;  %vm7868_vm9 = vsmask.f32 256 }
 0x4f0   : > { %5677 = vst [vmem:[#allocation3 + $0x20] sm:$0x7] %v5676_v63  ;;  %5895 = vst [vmem:[#allocation3 + $0x24] sm:$0x7] %v5894_v61  ;;  %v11687_v63 = vld [vmem:[%s16138_s3 + $0xe8] sm:$0xff]   ;;  %v11689_v61 = vld [vmem:[%s16138_s3 + $0x70] sm:$0xff]  }
 0x4f1   : > { %vm7870_vm0 = vmor %vm7868_vm9, %vm7869_vm5 }
 0x4f2   : > { %v6009_v25 = vpop.permute.xlu0 %6008  ;;  %v6130_v33 = vpop.permute.xlu1 %6129  ;;  %vm7872_vm4 = vmor %vm7870_vm0, %vm7871_vm7  ;;  %vm7907_vm0 = vcmask 1040896   ;;  %vm8443_vm7 = vcmask 523264  }
 0x4f3   : > { %6020 = vst.msk [vmem:[#allocation4 + $0x8] sm:$0x3] %vm6018_vm2, %v6009_v25  ;;  %6140 = vst.msk [vmem:[#allocation4 + $0xa] sm:$0x3] %vm6018_vm2, %v6130_v33  ;;  %v11688_v25 = vld [vmem:[%s16138_s3 + $0xa8] sm:$0xff]   ;;  %v11691_v33 = vld [vmem:[%s16138_s3 + $0xf0] sm:$0xff]  }
 0x4f4   : > { %vm7874_vm13 = vmor %vm7872_vm4, %vm7873_vm11 }
 0x4f5   : > { %vm7876_vm1 = vmor %vm7874_vm13, %vm7875_vm15 }
 0x4f6   : > { %v6250_v40 = vpop.permute.xlu0 %6249  ;;  %v6370_v36 = vpop.permute.xlu1 %6369  ;;  %vm7878_vm6 = vmor %vm7876_vm1, %vm7877_vm3 }
 0x4f7   : > { %6260 = vst.msk [vmem:[#allocation4 + $0xc] sm:$0x3] %vm6018_vm2, %v6250_v40  ;;  %v10445_v5 = vld.sshfl [vmem:[#allocation3 + $0x20] sm:$0x13 pattern:$0x76325410]  ;;  %vm7880_vm12 = vmor %vm7878_vm6, %vm7879_vm8 }
 0x4f8   : > { %v6146_v17 = vld [vmem:[#allocation3 + $0x20] sm:$0x3]  ;;  %v6190_v26 = vcombine.high %v10445_v5, %v10445_v5  ;;  %v6234_v53 = vshrl.u32 %v10445_v5, 16  ;;  %v6237_v18 = vshll.u32 %v10445_v5, 16  ;;  %6380 = vst.msk [vmem:[#allocation4 + $0xe] sm:$0x3] %vm6018_vm2, %v6370_v36  ;;  %vm8598_vm11 = vmand %vm7907_vm0, %vm7868_vm9 }
 0x4f9   : > { %6150 = vst.msk [vmem:[#allocation4 + $0x1c] sm:$0x3] %vm5900_vm10, %v6146_v17  ;;  %v10449_v51 = vld.sshfl [vmem:[#allocation3 + $0x24] sm:$0x13 pattern:$0x76325410] }
 0x4fa   : > { %v6011_v46 = vpop.permute.xlu0 %6010  ;;  %v6236_v34 = vrot.slane %v6234_v53, 6  ;;  %v6239_v2 = vrot.slane %v6237_v18, 7  ;;  %v6310_v8 = vcombine.high %v10449_v51, %v10449_v51  ;;  %v6354_v56 = vshrl.u32 %v10449_v51, 16  ;;  %v6266_v35 = vld [vmem:[#allocation3 + $0x24] sm:$0x3]  ;;  %v6132_v62 = vpop.permute.xlu1 %6131  ;;  %v11690_v40 = vld [vmem:[%s16138_s3 + $0x30] sm:$0xff]  }
 0x4fb   : > { %6021 = vst.msk [vmem:[#allocation4 + $0x10] sm:$0x3] %vm6018_vm2, %v6011_v46  ;;  %v6357_v20 = vshll.u32 %v10449_v51, 16  ;;  %v6243_v23 = vshll.u32 %v6190_v26, 16  ;;  %6141 = vst.msk [vmem:[#allocation4 + $0x12] sm:$0x3] %vm6018_vm2, %v6132_v62 }
 0x4fc   : > { %v6240_v1 = vor.u32 %v6239_v2, %v6236_v34  ;;  %6270 = vst.msk [vmem:[#allocation4 + $0x1e] sm:$0x3] %vm5900_vm10, %v6266_v35  ;;  %v6356_v50 = vrot.slane %v6354_v56, 6  ;;  %v6363_v59 = vshll.u32 %v6310_v8, 16  ;;  %v11693_v17 = vld [vmem:[%s16138_s3 + $0x78] sm:$0xff]   ;;  %v11692_v18 = vld [vmem:[%s16138_s3 + $0xb0] sm:$0xff]  }
 0x4fd   : > { %v6359_v38 = vrot.slane %v6357_v20, 7  ;;  %v6245_v9 = vrot.slane %v6243_v23, 7  ;;  %v11695_v46 = vld [vmem:[%s16138_s3 + $0xf8] sm:$0xff]   ;;  %v11698_v8 = vld [vmem:[%s16138_s3 + $0x40] sm:$0xff]   ;;  %v11702_v35 = vld [vmem:[%s16138_s3 + $0x48] sm:$0xff]  }
 0x4fe   : > { %v6241_v12 = vrot.slane %v6240_v1, 2  ;;  %v6365_v58 = vrot.slane %v6363_v59, 7  ;;  %v11694_v34 = vld [vmem:[%s16138_s3 + $0x38] sm:$0xff]   ;;  %v11700_v20 = vld [vmem:[%s16138_s3 + $0xc0] sm:$0xff]   ;;  %v11704_v62 = vld [vmem:[%s16138_s3 + $0xc8] sm:$0xff]  }
 0x4ff   : > { %v6360_v43 = vor.u32 %v6359_v38, %v6356_v50  ;;  %v6752_v49 = vld [vmem:[#allocation4 + $0x8] sm:$0xff]  ;;  %v11696_v56 = vld [vmem:[%s16138_s3 + $0xb8] sm:$0xff]   ;;  %v11699_v23 = vld [vmem:[%s16138_s3] sm:$0xff]  }
 0x500   : > { %v6246_v42 = vsel %vm15042_vm14, %v6241_v12, %v6245_v9  ;;  %v6825_v47 = vrot.slane %v6752_v49, %v15143_v11  ;;  %v6818_v21 = vcombine.high %v6752_v49, %v6752_v49  ;;  %v11701_v1 = vld [vmem:[%s16138_s3 + $0x80] sm:$0xff]   ;;  %v11703_v50 = vld [vmem:[%s16138_s3 + $0x8] sm:$0xff]   ;;  %v11706_v38 = vld [vmem:[%s16138_s3 + $0x50] sm:$0xff]  }
 0x501   : > { %v6361_v24 = vrot.slane %v6360_v43, 2  ;;  %6253 = vrot.lane.b32.xlu0 %v6246_v42, %s16314_s22  ;;  %v11705_v59 = vld [vmem:[%s16138_s3 + $0x88] sm:$0xff]   ;;  %v11708_v12 = vld [vmem:[%s16138_s3 + $0xd0] sm:$0xff]   ;;  %v11710_v43 = vld [vmem:[%s16138_s3 + $0x58] sm:$0xff]  }
 0x502   : > { %v6833_v60 = vcombine.high %v6825_v47, %v6825_v47  ;;  %v6832_v55 = vrot.slane %v6818_v21, %v15143_v11  ;;  %v11707_v9 = vld [vmem:[%s16138_s3 + $0x10] sm:$0xff]   ;;  %v11714_v49 = vld [vmem:[%s16138_s3 + $0x60] sm:$0xff]  }
 0x503   : > { %v6366_v29 = vsel %vm15042_vm14, %v6361_v24, %v6365_v58  ;;  %v11709_v42 = vld [vmem:[%s16138_s3 + $0x90] sm:$0xff]   ;;  %v11712_v24 = vld [vmem:[%s16138_s3 + $0xd8] sm:$0xff]   ;;  %v11716_v21 = vld [vmem:[%s16138_s3 + $0xe0] sm:$0xff]   ;;  %vm7881_vm14 = vsmask.f32 7452 }
 0x504   : > { %6373 = vrot.lane.b32.xlu1 %v6366_v29, %s16314_s22  ;;  %7063 = vmatprep.mubr.bf16.mxu0 %v6833_v60  ;;  %v6834_v44 = vcombine.high %v6832_v55, %v6832_v55  ;;  %v11711_v58 = vld [vmem:[%s16138_s3 + $0x18] sm:$0xff]   ;;  %v11715_v29 = vld [vmem:[%s16138_s3 + $0x20] sm:$0xff]   ;;  %v11718_v60 = vld [vmem:[%s16138_s3 + $0x68] sm:$0xff]  }
 0x505   : > { %7064 = vmatmul.mubr.bf16.vlgmr.msra.gmra.mrb[24].mxu0 %v6825_v47  ;;  %v11713_v47 = vld [vmem:[%s16138_s3 + $0x98] sm:$0xff]   ;;  %vm15476_vm5 = vmor %vm7880_vm12, %vm7881_vm14 }
 0x506   : > { %11105 = vmatpush3.bf16.msra.mxu0 %v11665_v37  ;;  %7103 = vmatprep.mubr.bf16.mxu1 %v6834_v44  ;;  %v11717_v37 = vld [vmem:[%s16138_s3 + $0xa0] sm:$0xff]   ;;  %v11722_v44 = vld [vmem:[%s16138_s3 + $0x70] sm:$0xff]  }
 0x507   : > { %7104 = vmatmul.mubr.bf16.vlgmr.msra.gmra.mrb[24].mxu1 %v6832_v55  ;;  %11106 = vmatprep.subr.bf16.mxu0 %v11669_v4  ;;  %v11720_v55 = vld [vmem:[%s16138_s3 + $0xe8] sm:$0xff]  }
 0x508   : > { %11127 = vmatpush3.bf16.msra.mxu1 %v11668_v22  ;;  %v11719_v4 = vld [vmem:[%s16138_s3 + $0x28] sm:$0xff]  }
 0x509   : > { %11128 = vmatprep.subr.bf16.mxu1 %v11671_v7  ;;  %v11721_v22 = vld [vmem:[%s16138_s3 + $0xa8] sm:$0xff]   ;;  %v11724_v7 = vld [vmem:[%s16138_s3 + $0xf0] sm:$0xff]  }
 0x50a   : > { %11107 = vmatpush3.bf16.msra.mxu0 %v11670_v32  ;;  %v11723_v32 = vld [vmem:[%s16138_s3 + $0x30] sm:$0xff]  }
 0x50b   : > { %11108 = vmatprep.subr.bf16.mxu0 %v11673_v48  ;;  %v11726_v48 = vld [vmem:[%s16138_s3 + $0x78] sm:$0xff]  }
 0x50c   : > { %11129 = vmatpush3.bf16.msra.mxu1 %v11672_v14  ;;  %v11725_v14 = vld [vmem:[%s16138_s3 + $0xb0] sm:$0xff]  }
 0x50d   : > { %11130 = vmatprep.subr.bf16.mxu1 %v11675_v52  ;;  %v11728_v52 = vld [vmem:[%s16138_s3 + $0xf8] sm:$0xff]  }
 0x50e   : > { %11109 = vmatpush3.bf16.msra.mxu0 %v11674_v0  ;;  %v11727_v0 = vld [vmem:[%s16138_s3 + $0x38] sm:$0xff]  }
 0x50f   : > { %11110 = vmatprep.subr.bf16.mxu0 %v11677_v13  ;;  %v11729_v13 = vld [vmem:[%s16138_s3 + $0xb8] sm:$0xff]  }
 0x510   : > { %11131 = vmatpush3.bf16.msra.mxu1 %v11676_v57 }
 0x511   : > { %11132 = vmatprep.subr.bf16.mxu1 %v11679_v6 }
 0x512   : > { %11111 = vmatpush3.bf16.msra.mxu0 %v11678_v41 }
 0x513   : > { %v6252_v30 = vpop.permute.xlu0 %6251  ;;  %11112 = vmatprep.subr.bf16.mxu0 %v11681_v28  ;;  %v15469_v28 = vld [vmem:[%s16139_s4] ss:$0 sm:$0xff] }
 0x514   : > { %v6372_v27 = vpop.permute.xlu1 %6371  ;;  %6261 = vst.msk [vmem:[#allocation4 + $0x14] sm:$0x3] %vm6018_vm2, %v6252_v30  ;;  %11133 = vmatpush3.bf16.msra.mxu1 %v11680_v10 }
 0x515   : > { %6381 = vst.msk [vmem:[#allocation4 + $0x16] sm:$0x3] %vm6018_vm2, %v6372_v27  ;;  %11134 = vmatprep.subr.bf16.mxu1 %v11683_v16 }
 0x516   : > { %11113 = vmatpush3.bf16.msra.mxu0 %v11682_v39 }
 0x517   : > { %v6013_v54 = vpop.permute.xlu0 %6012  ;;  %11114 = vmatprep.subr.bf16.mxu0 %v11685_v15 }
 0x518   : > { %v6134_v3 = vpop.permute.xlu1 %6133  ;;  %6022 = vst.msk [vmem:[#allocation4 + $0x18] sm:$0x3] %vm6018_vm2, %v6013_v54  ;;  %11135 = vmatpush3.bf16.msra.mxu1 %v11684_v19 }
 0x519   : > { %6142 = vst.msk [vmem:[#allocation4 + $0x1a] sm:$0x3] %vm6018_vm2, %v6134_v3  ;;  %11136 = vmatprep.subr.bf16.mxu1 %v11687_v63 }
 0x51a   : > { %11115 = vmatpush3.bf16.msra.mxu0 %v11686_v45 }
 0x51b   : > { %11116 = vmatprep.subr.bf16.mxu0 %v11689_v61 }
 0x51c   : > { %v7116_v5 = vld [vmem:[#allocation4 + $0x10] sm:$0xff]  ;;  %11137 = vmatpush3.bf16.msra.mxu1 %v11688_v25 }
 0x51d   : > { %v7189_v26 = vrot.slane %v7116_v5, %v15143_v11  ;;  %v7182_v53 = vcombine.high %v7116_v5, %v7116_v5  ;;  %11138 = vmatprep.subr.bf16.mxu1 %v11691_v33 }
 0x51e   : > { %11117 = vmatpush3.bf16.msra.mxu0 %v11690_v40 }
 0x51f   : > { %v7197_v36 = vcombine.high %v7189_v26, %v7189_v26  ;;  %v7196_v51 = vrot.slane %v7182_v53, %v15143_v11  ;;  %11118 = vmatprep.subr.bf16.mxu0 %v11693_v17 }
 0x520   : > { %11139 = vmatpush3.bf16.msra.mxu1 %v11692_v18 }
 0x521   : > { %7427 = vmatprep.mubr.bf16.mxu0 %v7197_v36  ;;  %v7198_v2 = vcombine.high %v7196_v51, %v7196_v51  ;;  %11140 = vmatprep.subr.bf16.mxu1 %v11695_v46 }
 0x522   : > { %11119 = vmatpush3.bf16.msra.mxu0 %v11694_v34 }
 0x523   : > { %7467 = vmatprep.mubr.bf16.mxu1 %v7198_v2  ;;  %11148 = vmatprep.subr.bf16.mxu0 %v11698_v8 }
 0x524   : > { %11141 = vmatpush3.bf16.msra.mxu1 %v11696_v56 }
 0x525   : > { %7428 = vmatmul.mubr.bf16.vlgmr.msra.gmra.mrb[28].mxu0 %v7189_v26  ;;  %11170 = vmatprep.subr.bf16.mxu1 %v11700_v20 }
 0x526   : > { %11149 = vmatpush3.bf16.msra.mxu0 %v11699_v23 }
 0x527   : > { %7468 = vmatmul.mubr.bf16.vlgmr.msra.gmra.mrb[28].mxu1 %v7196_v51  ;;  %11150 = vmatprep.subr.bf16.mxu0 %v11702_v35 }
 0x528   : > { %11171 = vmatpush3.bf16.msra.mxu1 %v11701_v1 }
 0x529   : > { %11172 = vmatprep.subr.bf16.mxu1 %v11704_v62 }
 0x52a   : > { %11151 = vmatpush3.bf16.msra.mxu0 %v11703_v50 }
 0x52b   : > { %11152 = vmatprep.subr.bf16.mxu0 %v11706_v38 }
 0x52c   : > { %11173 = vmatpush3.bf16.msra.mxu1 %v11705_v59 }
 0x52d   : > { %11174 = vmatprep.subr.bf16.mxu1 %v11708_v12 }
 0x52e   : > { %11153 = vmatpush3.bf16.msra.mxu0 %v11707_v9 }
 0x52f   : > { %11154 = vmatprep.subr.bf16.mxu0 %v11710_v43 }
 0x530   : > { %11175 = vmatpush3.bf16.msra.mxu1 %v11709_v42 }
 0x531   : > { %11176 = vmatprep.subr.bf16.mxu1 %v11712_v24 }
 0x532   : > { %11155 = vmatpush3.bf16.msra.mxu0 %v11711_v58 }
 0x533   : > { %11156 = vmatprep.subr.bf16.mxu0 %v11714_v49 }
 0x534   : > { %11177 = vmatpush3.bf16.msra.mxu1 %v11713_v47 }
 0x535   : > { %11178 = vmatprep.subr.bf16.mxu1 %v11716_v21 }
 0x536   : > { %11157 = vmatpush3.bf16.msra.mxu0 %v11715_v29 }
 0x537   : > { %11158 = vmatprep.subr.bf16.mxu0 %v11718_v60 }
 0x538   : > { %11179 = vmatpush3.bf16.msra.mxu1 %v11717_v37 }
 0x539   : > { %11180 = vmatprep.subr.bf16.mxu1 %v11720_v55  ;;  %v11731_v55 = vld [vmem:[%s16140_s5 + $0x40] sm:$0xff]  }
 0x53a   : > { %11159 = vmatpush3.bf16.msra.mxu0 %v11719_v4  ;;  %v11732_v4 = vld [vmem:[%s16140_s5] sm:$0xff]  }
 0x53b   : > { %11160 = vmatprep.subr.bf16.mxu0 %v11722_v44  ;;  %v11733_v44 = vld [vmem:[%s16140_s5 + $0xc0] sm:$0xff]  }
 0x53c   : > { %11181 = vmatpush3.bf16.msra.mxu1 %v11721_v22 }
 0x53d   : > { %11182 = vmatprep.subr.bf16.mxu1 %v11724_v7 }
 0x53e   : > { %11161 = vmatpush3.bf16.msra.mxu0 %v11723_v32  ;;  %v11734_v32 = vld [vmem:[%s16140_s5 + $0x48] sm:$0xff]  }
 0x53f   : > { %11162 = vmatprep.subr.bf16.mxu0 %v11726_v48  ;;  %v11735_v48 = vld [vmem:[%s16140_s5 + $0x80] sm:$0xff]  }
 0x540   : > { %11183 = vmatpush3.bf16.msra.mxu1 %v11725_v14  ;;  %v11737_v14 = vld [vmem:[%s16140_s5 + $0xc8] sm:$0xff]  }
 0x541   : > { %11184 = vmatprep.subr.bf16.mxu1 %v11728_v52 }
 0x542   : > { %11163 = vmatpush3.bf16.msra.mxu0 %v11727_v0  ;;  %v11736_v0 = vld [vmem:[%s16140_s5 + $0x8] sm:$0xff]  }
 0x543   : > { %11192 = vmatprep.subr.bf16.mxu0 %v11731_v55 }
 0x544   : > { %11185 = vmatpush3.bf16.msra.mxu1 %v11729_v13  ;;  %v11739_v13 = vld [vmem:[%s16140_s5 + $0x88] sm:$0xff]  }
 0x545   : > { %11214 = vmatprep.subr.bf16.mxu1 %v11733_v44 }
 0x573   : > { %v6254_v57 = vpop.permute.xlu0 %6253 }
 0x574   : > { %6262 = vst.msk [vmem:[#allocation4 + $0x1c] sm:$0x3] %vm6018_vm2, %v6254_v57  ;;  %v11738_v57 = vld [vmem:[%s16140_s5 + $0x50] sm:$0xff]  }
 0x576   : > { %v6374_v6 = vpop.permute.xlu1 %6373 }
 0x577   : > { %6382 = vst.msk [vmem:[#allocation4 + $0x1e] sm:$0x3] %vm6018_vm2, %v6374_v6  ;;  %v11032_v41 = vpop.f32.mrb[20].mxu0  ;;  %vm7845_vm2 = vcmask 516096   ;;  %v11741_v6 = vld [vmem:[%s16140_s5 + $0xd0] sm:$0xff]  }
 0x578   : > { %v11033_v10 = vpop.f32.mrb[21].mxu0  ;;  %vm15783_vm4 = vmand %vm7845_vm2, %vm7868_vm9 }
 0x579   : > { %v11034_v30 = vadd.f32 %v11033_v10, %v11032_v41  ;;  %v11035_v16 = vpop.f32.mrb[22].mxu0  ;;  %v11054_v27 = vpop.f32.mrb[20].mxu1  ;;  %v11740_v41 = vld [vmem:[%s16140_s5 + $0x10] sm:$0xff]  }
 0x57a   : > { %v11036_v39 = vpop.f32.mrb[23].mxu0  ;;  %v11055_v15 = vpop.f32.mrb[21].mxu1  ;;  %v11743_v10 = vld [vmem:[%s16140_s5 + $0x90] sm:$0xff]  }
 0x57b   : > { %v6703_v19 = vadd.f32 %v11034_v30, %v15469_v28  ;;  %v11056_v54 = vadd.f32 %v11055_v15, %v11054_v27  ;;  %v11057_v63 = vpop.f32.mrb[22].mxu1  ;;  %v11742_v30 = vld [vmem:[%s16140_s5 + $0x58] sm:$0xff]  }
 0x57c   : > { %v11058_v3 = vpop.f32.mrb[23].mxu1 }
 0x57d   : > { %v6743_v45 = vadd.f32 %v11056_v54, %v6703_v19  ;;  %v11744_v54 = vld [vmem:[%s16140_s5 + $0x18] sm:$0xff]  }
 0x57e   : > { %v7480_v61 = vld [vmem:[#allocation4 + $0x18] sm:$0xff] }
 0x57f   : > { %v7553_v25 = vrot.slane %v7480_v61, %v15143_v11  ;;  %v7546_v33 = vcombine.high %v7480_v61, %v7480_v61  ;;  %v6748_v40 = vmax.f32 %v6743_v45, 0.0 }
 0x581   : > { %v7561_v5 = vcombine.high %v7553_v25, %v7553_v25  ;;  %v7560_v17 = vrot.slane %v7546_v33, %v15143_v11  ;;  %v6749_v26 = vpack.c.bf16 %v6748_v40, %v6748_v40 }
 0x583   : > { %7791 = vmatprep.mubr.bf16.mxu0 %v7561_v5  ;;  %v7562_v53 = vcombine.high %v7560_v17, %v7560_v17  ;;  %6750 = vst.msk [vmem:[#allocation5] sm:$0x3] %vm5900_vm10, %v6749_v26  ;;  %v11745_v26 = vld [vmem:[%s16140_s5 + $0xd8] sm:$0xff]  }
 0x584   : > { %7792 = vmatmul.mubr.bf16.vlgmr.msra.gmra.mrb[32].mxu0 %v7553_v25 }
 0x585   : > { %7831 = vmatprep.mubr.bf16.mxu1 %v7562_v53  ;;  %11193 = vmatpush3.bf16.msra.mxu0 %v11732_v4  ;;  %v11746_v53 = vld [vmem:[%s16140_s5 + $0x60] sm:$0xff]  }
 0x586   : > { %7832 = vmatmul.mubr.bf16.vlgmr.msra.gmra.mrb[32].mxu1 %v7560_v17  ;;  %11194 = vmatprep.subr.bf16.mxu0 %v11734_v32 }
 0x587   : > { %11215 = vmatpush3.bf16.msra.mxu1 %v11735_v48 }
 0x588   : > { %11216 = vmatprep.subr.bf16.mxu1 %v11737_v14 }
 0x589   : > { %11195 = vmatpush3.bf16.msra.mxu0 %v11736_v0 }
 0x58a   : > { %v10579_v18 = vld.sshfl [vmem:[#allocation5] sm:$0x11 pattern:$0x75316420]  ;;  %11196 = vmatprep.subr.bf16.mxu0 %v11738_v57 }
 0x58b   : > { %v7859_v36 = vcombine.high %v10579_v18, %v10579_v18  ;;  %v7843_v11 = vld [vmem:[#allocation5] sm:$0x1]  ;;  %v10583_v51 = vld.sshfl [vmem:[#allocation5] sm:$0x10 pattern:$0x75316420]  ;;  %11217 = vmatpush3.bf16.msra.mxu1 %v11739_v13 }
 0x58c   : > { %7846 = vst.msk [vmem:[#allocation6] sm:$0x1] %vm7845_vm2, %v7843_v11  ;;  %v7884_v34 = vshrl.u32 %v10579_v18, 16  ;;  %v7921_v8 = vcombine.high %v10583_v51, %v10583_v51  ;;  %11218 = vmatprep.subr.bf16.mxu1 %v11741_v6  ;;  %v11747_v18 = vld [vmem:[%s16140_s5 + $0x98] sm:$0xff]   ;;  %v11748_v11 = vld [vmem:[%s16140_s5 + $0x20] sm:$0xff]  }
 0x58d   : > { %v7889_v2 = vshll.u32 %v7859_v36, 16  ;;  %11197 = vmatpush3.bf16.msra.mxu0 %v11740_v41  ;;  %v11749_v51 = vld [vmem:[%s16140_s5 + $0xe0] sm:$0xff]  }
 0x58e   : > { %7932 = vst.msk [vmem:[#allocation6 + $0x1] sm:$0x1] %vm7845_vm2, %v7921_v8  ;;  %11198 = vmatprep.subr.bf16.mxu0 %v11742_v30  ;;  %v11752_v8 = vld [vmem:[%s16140_s5 + $0x28] sm:$0xff]  }
 0x58f   : > { %v7891_v56 = vsel %vm15476_vm5, %v7884_v34, %v7889_v2  ;;  %11219 = vmatpush3.bf16.msra.mxu1 %v11743_v10  ;;  %v11750_v34 = vld [vmem:[%s16140_s5 + $0x68] sm:$0xff]   ;;  %v11751_v2 = vld [vmem:[%s16140_s5 + $0xa0] sm:$0xff]  }
 0x590   : > { %7901 = vrot.lane.b32.xlu0 %v7891_v56, %s16314_s22  ;;  %11220 = vmatprep.subr.bf16.mxu1 %v11745_v26  ;;  %v11753_v56 = vld [vmem:[%s16140_s5 + $0xe8] sm:$0xff]  }
 0x591   : > { %11199 = vmatpush3.bf16.msra.mxu0 %v11744_v54 }
 0x592   : > { %11200 = vmatprep.subr.bf16.mxu0 %v11746_v53 }
 0x593   : > { %11221 = vmatpush3.bf16.msra.mxu1 %v11747_v18 }
 0x594   : > { %11222 = vmatprep.subr.bf16.mxu1 %v11749_v51 }
 0x595   : > { %11201 = vmatpush3.bf16.msra.mxu0 %v11748_v11  ;;  %v11764_v11 = vld [vmem:[%s16140_s5 + $0x100] sm:$0xff]  }
 0x596   : > { %11202 = vmatprep.subr.bf16.mxu0 %v11750_v34  ;;  %v11769_v34 = vld [vmem:[%s16140_s5] sm:$0xff]  }
 0x597   : > { %11223 = vmatpush3.bf16.msra.mxu1 %v11751_v2 }
 0x598   : > { %11224 = vmatprep.subr.bf16.mxu1 %v11753_v56  ;;  %v11765_v56 = vld [vmem:[%s16140_s5 + $0x108] sm:$0xff]  }
 0x599   : > { %11203 = vmatpush3.bf16.msra.mxu0 %v11752_v8  ;;  %v11771_v8 = vld [vmem:[%s16140_s5 + $0x48] sm:$0xff]  }
 0x5d8   : > { %v11076_v20 = vpop.f32.mrb[24].mxu0 }
 0x5d9   : > { %v11077_v23 = vpop.f32.mrb[25].mxu0 }
 0x5da   : > { %v11078_v35 = vadd.f32 %v11077_v23, %v11076_v20  ;;  %v11079_v1 = vpop.f32.mrb[26].mxu0  ;;  %v11098_v62 = vpop.f32.mrb[24].mxu1  ;;  %v11754_v20 = vld [vmem:[%s16140_s5 + $0x70] sm:$0xff]   ;;  %v11755_v23 = vld [vmem:[%s16140_s5 + $0xa8] sm:$0xff]  }
 0x5db   : > { %v11080_v50 = vpop.f32.mrb[27].mxu0  ;;  %v11099_v38 = vpop.f32.mrb[25].mxu1  ;;  %v11757_v1 = vld [vmem:[%s16140_s5 + $0xf0] sm:$0xff]   ;;  %11204 = vmatprep.subr.bf16.mxu0 %v11754_v20  ;;  %11225 = vmatpush3.bf16.msra.mxu1 %v11755_v23  ;;  %v11773_v20 = vld [vmem:[%s16140_s5 + $0x8] sm:$0xff]  }
 0x5dc   : > { %v7066_v59 = vadd.f32 %v11078_v35, %v15469_v28  ;;  %v11100_v12 = vadd.f32 %v11099_v38, %v11098_v62  ;;  %v11101_v9 = vpop.f32.mrb[26].mxu1  ;;  %v11756_v35 = vld [vmem:[%s16140_s5 + $0x30] sm:$0xff]   ;;  %v11758_v62 = vld [vmem:[%s16140_s5 + $0x78] sm:$0xff]   ;;  %11226 = vmatprep.subr.bf16.mxu1 %v11757_v1 }
 0x5dd   : > { %v11102_v43 = vpop.f32.mrb[27].mxu1  ;;  %11205 = vmatpush3.bf16.msra.mxu0 %v11756_v35  ;;  %v11759_v9 = vld [vmem:[%s16140_s5 + $0xb0] sm:$0xff]  }
 0x5de   : > { %v7106_v42 = vadd.f32 %v11100_v12, %v7066_v59  ;;  %v11760_v43 = vld [vmem:[%s16140_s5 + $0x38] sm:$0xff]   ;;  %11206 = vmatprep.subr.bf16.mxu0 %v11758_v62  ;;  %v11775_v23 = vld [vmem:[%s16140_s5 + $0x50] sm:$0xff]  }
 0x5df   : > { %11227 = vmatpush3.bf16.msra.mxu1 %v11759_v9  ;;  %v11766_v35 = vld [vmem:[%s16140_s5 + $0x110] sm:$0xff]   ;;  %v11781_v9 = vld [vmem:[%s16140_s5 + $0x18] sm:$0xff]  }
 0x5e0   : > { %v7111_v24 = vmax.f32 %v7106_v42, 0.0  ;;  %v11777_v62 = vld [vmem:[%s16140_s5 + $0x10] sm:$0xff]  }
 0x5e1   : > { %11207 = vmatpush3.bf16.msra.mxu0 %v11760_v43  ;;  %v11783_v43 = vld [vmem:[%s16140_s5 + $0x60] sm:$0xff]  }
 0x5e2   : > { %v7112_v58 = vpack.c.bf16 %v7111_v24, %v7111_v24  ;;  %v11761_v24 = vld [vmem:[%s16140_s5 + $0xf8] sm:$0xff]  }
 0x5e3   : > { %11228 = vmatprep.subr.bf16.mxu1 %v11761_v24 }
 0x5e4   : > { %7114 = vst.msk [vmem:[#allocation5 + $0x2] sm:$0x3] %vm5900_vm10, %v7112_v58 }
 0x5eb   : > { %v10585_v49 = vld.sshfl [vmem:[#allocation5 + $0x2] sm:$0x1 pattern:$0x75316420] }
 0x5ec   : > { %v7844_v47 = vld [vmem:[#allocation5 + $0x2] sm:$0x1]  ;;  %7952 = vrot.lane.b32.xlu1 %v10585_v49, %s16314_s22  ;;  %v10591_v21 = vld.sshfl [vmem:[#allocation5 + $0x2] sm:$0x10 pattern:$0x75316420] }
 0x5ed   : > { %7847 = vst.msk [vmem:[#allocation6 + $0x5] sm:$0x1] %vm7845_vm2, %v7844_v47  ;;  %v8013_v29 = vcombine.high %v10591_v21, %v10591_v21  ;;  %v10580_v60 = vld.sshfl [vmem:[#allocation5 + $0x2] sm:$0x11 pattern:$0x75316420] }
 0x5ee   : > { %v7867_v37 = vcombine.high %v10580_v60, %v10580_v60  ;;  %v7893_v22 = vshrl.u32 %v10580_v60, 16  ;;  %v11763_v21 = vld [vmem:[%s16140_s5 + $0xb8] sm:$0xff]  }
 0x5ef   : > { %8022 = vrot.lane.b32.xlu0 %v8013_v29, %s16314_s22  ;;  %7933 = vst.msk [vmem:[#allocation6 + $0x6] sm:$0x1] %vm7845_vm2, %v8013_v29  ;;  %v12007_v29 = vmov 0.0   ;;  %11229 = vmatpush3.bf16.msra.mxu1 %v11763_v21  ;;  %v11776_v21 = vld [vmem:[%s16140_s5 + $0x88] sm:$0xff]  }
 0x5f0   : > { %v7898_v7 = vshll.u32 %v7867_v37, 16  ;;  %11334 = vmatprep.subr.bf16.mxu0 %v12007_v29  ;;  %v11768_v37 = vld [vmem:[%s16140_s5 + $0x40] sm:$0xff]  }
 0x5f1   : > { %11241 = vmatprep.subr.bf16.mxu1 %v11768_v37  ;;  %v11789_v37 = vld [vmem:[%s16140_s5 + $0x28] sm:$0xff]  }
 0x5f2   : > { %v7900_v52 = vsel %vm15476_vm5, %v7893_v22, %v7898_v7 }
 0x5f3   : > { %7903 = vrot.lane.b32.xlu0 %v7900_v52, %s16314_s22  ;;  %8000 = vst.msk [vmem:[#allocation6 + $0x2] sm:$0x1] %vm7845_vm2, %v7900_v52 }
 0x5f8   : > { %v11120_v16 = vpop.f32.mrb[28].mxu0 }
 0x5f9   : > { %v11121_v27 = vpop.f32.mrb[29].mxu0 }
 0x5fa   : > { %v11122_v39 = vadd.f32 %v11121_v27, %v11120_v16  ;;  %v11123_v15 = vpop.f32.mrb[30].mxu0  ;;  %v11142_v19 = vpop.f32.mrb[28].mxu1 }
 0x5fb   : > { %v11124_v63 = vpop.f32.mrb[31].mxu0  ;;  %v11143_v3 = vpop.f32.mrb[29].mxu1 }
 0x5fc   : > { %v7430_v45 = vadd.f32 %v11122_v39, %v15469_v28  ;;  %v11144_v61 = vadd.f32 %v11143_v3, %v11142_v19  ;;  %v11145_v25 = vpop.f32.mrb[30].mxu1 }
 0x5fd   : > { %v11146_v33 = vpop.f32.mrb[31].mxu1 }
 0x5fe   : > { %v7470_v40 = vadd.f32 %v11144_v61, %v7430_v45  ;;  %v12008_v61 = vmov 1966171168  }
 0x5ff   : > { %v8186_v25 = vunpack.c.l.s4 %v12008_v61 }
 0x600   : > { %v7475_v5 = vmax.f32 %v7470_v40, 0.0 }
 0x601   : > { %v8187_v40 = vunpack.c.0.s8 %v8186_v25  ;;  %v11804_v25 = vld [vmem:[%s16140_s5 + $0x118] sm:$0xff]  }
 0x602   : > { %v7902_v17 = vpop.permute.xlu0 %7901  ;;  %v7476_v36 = vpack.c.bf16 %v7475_v5, %v7475_v5 }
 0x603   : > { %7908 = vst.msk [vmem:[#allocation6] sm:$0x1] %vm7907_vm0, %v7902_v17  ;;  %v15619_v17 = vsub.s32 %v8187_v40, %v15135_v31 }
 0x604   : > { %7478 = vst.msk [vmem:[#allocation5 + $0x4] sm:$0x3] %vm5900_vm10, %v7476_v36 }
 0x60b   : > { %v10597_v50 = vld.sshfl [vmem:[#allocation5 + $0x4] sm:$0x10 pattern:$0x75316420]  ;;  %v8030_v38 = vld [vmem:[#allocation5 + $0x4] sm:$0x1] }
 0x60c   : > { %v8091_v59 = vcombine.high %v10597_v50, %v10597_v50  ;;  %v10593_v12 = vld.sshfl [vmem:[#allocation5 + $0x4] sm:$0x11 pattern:$0x75316420]  ;;  %8032 = vst.msk [vmem:[#allocation6 + $0x3] sm:$0x1] %vm7845_vm2, %v8030_v38 }
 0x60d   : > { %v8045_v42 = vcombine.high %v10593_v12, %v10593_v12  ;;  %v8055_v58 = vshrl.u32 %v10593_v12, 16  ;;  %v10586_v60 = vld.sshfl [vmem:[#allocation5 + $0x4] sm:$0x1 pattern:$0x75316420]  ;;  %v11779_v50 = vld [vmem:[%s16140_s5 + $0x58] sm:$0xff]  }
 0x60e   : > { %8102 = vst.msk [vmem:[#allocation6 + $0x4] sm:$0x1] %vm7845_vm2, %v8091_v59  ;;  %8024 = vrot.lane.b32.xlu0 %v8091_v59, %s16314_s22  ;;  %v11767_v38 = vld [vmem:[%s16140_s5 + $0x118] sm:$0xff]   ;;  %v11770_v12 = vld [vmem:[%s16140_s5 + $0xc0] sm:$0xff]  }
 0x60f   : > { %v8060_v49 = vshll.u32 %v8045_v42, 16  ;;  %v11772_v42 = vld [vmem:[%s16140_s5 + $0x80] sm:$0xff]  }
 0x611   : > { %v8062_v47 = vsel %vm15476_vm5, %v8055_v58, %v8060_v49  ;;  %v11774_v58 = vld [vmem:[%s16140_s5 + $0xc8] sm:$0xff]   ;;  %v11785_v49 = vld [vmem:[%s16140_s5 + $0x20] sm:$0xff]  }
 0x612   : > { %8072 = vrot.lane.b32.xlu1 %v8062_v47, %s16314_s22  ;;  %8001 = vst.msk [vmem:[#allocation6 + $0x7] sm:$0x1] %vm7845_vm2, %v8062_v47  ;;  %v11787_v47 = vld [vmem:[%s16140_s5 + $0x68] sm:$0xff]  }
 0x616   : > { %7954 = vrot.lane.b32.xlu1 %v10586_v60, %s16314_s22  ;;  %v11778_v60 = vld [vmem:[%s16140_s5 + $0xd0] sm:$0xff]  }
 0x657   : > { %v11164_v55 = vpop.f32.mrb[32].mxu0 }
 0x658   : > { %v11165_v4 = vpop.f32.mrb[33].mxu0 }
 0x659   : > { %v11166_v44 = vadd.f32 %v11165_v4, %v11164_v55  ;;  %v11167_v22 = vpop.f32.mrb[34].mxu0  ;;  %v11186_v7 = vpop.f32.mrb[32].mxu1  ;;  %v11791_v55 = vld [vmem:[%s16140_s5 + $0x70] sm:$0xff]  }
 0x65a   : > { %v11168_v32 = vpop.f32.mrb[35].mxu0  ;;  %v11187_v48 = vpop.f32.mrb[33].mxu1  ;;  %v11780_v4 = vld [vmem:[%s16140_s5 + $0x90] sm:$0xff]  }
 0x65b   : > { %v7794_v14 = vadd.f32 %v11166_v44, %v15469_v28  ;;  %v11188_v52 = vadd.f32 %v11187_v48, %v11186_v7  ;;  %v11189_v0 = vpop.f32.mrb[34].mxu1  ;;  %v11782_v44 = vld [vmem:[%s16140_s5 + $0xd8] sm:$0xff]   ;;  %v11793_v22 = vld [vmem:[%s16140_s5 + $0x30] sm:$0xff]   ;;  %v11786_v48 = vld [vmem:[%s16140_s5 + $0xe0] sm:$0xff]  }
 0x65c   : > { %v11190_v13 = vpop.f32.mrb[35].mxu1  ;;  %v11795_v7 = vld [vmem:[%s16140_s5 + $0x78] sm:$0xff]   ;;  %v11790_v0 = vld [vmem:[%s16140_s5 + $0xe8] sm:$0xff]  }
 0x65d   : > { %v7834_v57 = vadd.f32 %v11188_v52, %v7794_v14  ;;  %v11784_v32 = vld [vmem:[%s16140_s5 + $0x98] sm:$0xff]   ;;  %v11788_v52 = vld [vmem:[%s16140_s5 + $0xa0] sm:$0xff]   ;;  %v11792_v13 = vld [vmem:[%s16140_s5 + $0xa8] sm:$0xff]  }
 0x65e   : > { %v7953_v41 = vpop.permute.xlu1 %7952  ;;  %v11797_v14 = vld [vmem:[%s16140_s5 + $0x38] sm:$0xff]  }
 0x65f   : > { %v7839_v6 = vmax.f32 %v7834_v57, 0.0  ;;  %7958 = vst.msk [vmem:[#allocation6 + $0x1] sm:$0x1] %vm7907_vm0, %v7953_v41  ;;  %v11794_v57 = vld [vmem:[%s16140_s5 + $0xf0] sm:$0xff]   ;;  %v11798_v41 = vld [vmem:[%s16140_s5 + $0xf8] sm:$0xff]  }
 0x661   : > { %v7840_v10 = vpack.c.bf16 %v7839_v6, %v7839_v6  ;;  %v8023_v30 = vpop.permute.xlu0 %8022  ;;  %v11796_v6 = vld [vmem:[%s16140_s5 + $0xb0] sm:$0xff]  }
 0x662   : > { %8028 = vst.msk [vmem:[#allocation6 + $0x2] sm:$0x1] %vm7907_vm0, %v8023_v30 }
 0x663   : > { %7842 = vst.msk [vmem:[#allocation5 + $0x6] sm:$0x3] %vm5900_vm10, %v7840_v10  ;;  %vm12009_vm10 = vmmov 0   ;;  %v11800_v10 = vld [vmem:[%s16140_s5 + $0xb8] sm:$0xff]  }
 0x665   : > { %v7904_v16 = vpop.permute.xlu0 %7903 }
 0x666   : > { %7909 = vst.msk [vmem:[#allocation6 + $0x5] sm:$0x1] %vm7907_vm0, %v7904_v16 }
 0x66a   : > { %v10598_v27 = vld.sshfl [vmem:[#allocation5 + $0x6] sm:$0x10 pattern:$0x75316420]  ;;  %v8031_v39 = vld [vmem:[#allocation5 + $0x6] sm:$0x1] }
 0x66b   : > { %v8099_v28 = vcombine.high %v10598_v27, %v10598_v27  ;;  %v10594_v15 = vld.sshfl [vmem:[#allocation5 + $0x6] sm:$0x11 pattern:$0x75316420]  ;;  %8033 = vst.msk [vmem:[#allocation6 + $0x8] sm:$0x1] %vm7845_vm2, %v8031_v39 }
 0x66c   : > { %v8053_v19 = vcombine.high %v10594_v15, %v10594_v15  ;;  %v8064_v54 = vshrl.u32 %v10594_v15, 16 }
 0x66d   : > { %8103 = vst.msk [vmem:[#allocation6 + $0x9] sm:$0x1] %vm7845_vm2, %v8099_v28 }
 0x66e   : > { %v8069_v63 = vshll.u32 %v8053_v19, 16  ;;  %v11801_v19 = vld [vmem:[%s16140_s5 + $0x100] sm:$0xff]  }
 0x670   : > { %v8071_v3 = vsel %vm15476_vm5, %v8064_v54, %v8069_v63 }
 0x671   : > { %8074 = vrot.lane.b32.xlu1 %v8071_v3, %s16314_s22  ;;  %v11802_v3 = vld [vmem:[%s16140_s5 + $0x108] sm:$0xff]  }
 0x680   : > { %v8025_v45 = vpop.permute.xlu0 %8024 }
 0x681   : > { %8029 = vst.msk [vmem:[#allocation6 + $0x7] sm:$0x1] %vm7907_vm0, %v8025_v45  ;;  %v11803_v45 = vld [vmem:[%s16140_s5 + $0x110] sm:$0xff]  }
 0x684   : > { %v8073_v33 = vpop.permute.xlu1 %8072 }
 0x685   : > { %8078 = vst.msk [vmem:[#allocation6 + $0x3] sm:$0x1] %vm7907_vm0, %v8073_v33 }
 0x688   : > { %v7955_v5 = vpop.permute.xlu1 %7954 }
 0x689   : > { %7959 = vst.msk [vmem:[#allocation6 + $0x6] sm:$0x1] %vm7907_vm0, %v7955_v5 }
 0x68c   : > { %v8104_v26 = vld [vmem:[#allocation6] sm:$0x1f] }
 0x68d   : > { %v8191_v46 = vrot.slane %v8104_v26, %v15619_v17  ;;  %v8184_v1 = vcombine.high %v8104_v26, %v8104_v26  ;;  %v15766_v26 = vld [vmem:[%s16141_s6] ss:$0 sm:$0xff] }
 0x68f   : > { %v8199_v53 = vcombine.high %v8191_v46, %v8191_v46  ;;  %v8206_v18 = vrot.slane %v8191_v46, %v15619_v17  ;;  %v8198_v59 = vrot.slane %v8184_v1, %v15619_v17  ;;  %v11805_v1 = vld [vmem:[%s16142_s7] ss:$16 sps:$4 sm:$0xff]  }
 0x691   : > { %v8220_v36 = vrot.slane %v8199_v53, %v15619_v17  ;;  %v8221_v2 = vcombine.high %v8206_v18, %v8206_v18  ;;  %v8213_v24 = vrot.slane %v8198_v59, %v15619_v17  ;;  %v11810_v59 = vld [vmem:[%s16142_s7 + $0xc] ss:$16 sps:$4 sm:$0xff]  }
 0x693   : > { %8479 = vmatprep.mubr.bf16.mxu0 %v8220_v36  ;;  %v8222_v51 = vcombine.high %v8220_v36, %v8220_v36 }
 0x694   : > { %8480 = vmatmul.mubr.bf16.vlgmr.msra.gmra.mrb[36].mxu0 %v8206_v18 }
 0x695   : > { %11335 = vmatpush3.bf16.msra.mxu0 %v11764_v11  ;;  %8519 = vmatprep.mubr.bf16.mxu1 %v8222_v51 }
 0x696   : > { %8520 = vmatmul.mubr.bf16.vlgmr.msra.gmra.mrb[36].mxu1 %v8221_v2  ;;  %11336 = vmatprep.subr.bf16.mxu0 %v12007_v29 }
 0x697   : > { %11342 = vmatprep.mubr.msk.bf16.mxu0 %vm12009_vm10, %v12007_v29  ;;  %11242 = vmatpush3.bf16.msra.mxu1 %v11769_v34 }
 0x698   : > { %11243 = vmatprep.subr.bf16.mxu1 %v11771_v8 }
 0x699   : > { %11337 = vmatpush3.bf16.msra.mxu0 %v11765_v56 }
 0x69a   : > { %11338 = vmatprep.subr.bf16.mxu0 %v12007_v29 }
 0x69b   : > { %11244 = vmatpush3.bf16.msra.mxu1 %v11773_v20 }
 0x69c   : > { %11245 = vmatprep.subr.bf16.mxu1 %v11775_v23 }
 0x69d   : > { %11339 = vmatpush3.bf16.msra.mxu0 %v11766_v35 }
 0x69e   : > { %11340 = vmatprep.subr.bf16.mxu0 %v12007_v29 }
 0x69f   : > { %11246 = vmatpush3.bf16.msra.mxu1 %v11777_v62  ;;  %v11807_v62 = vld [vmem:[%s16142_s7 + $0x4] ss:$16 sps:$4 sm:$0xff]  }
 0x6a0   : > { %11247 = vmatprep.subr.bf16.mxu1 %v11779_v50 }
 0x6a1   : > { %11341 = vmatpush3.bf16.msra.mxu0 %v11767_v38  ;;  %v11808_v38 = vld [vmem:[%s16142_s7 + $0x8] ss:$16 sps:$4 sm:$0xff]  }
 0x6a2   : > { %11263 = vmatprep.subr.bf16.mxu0 %v11770_v12 }
 0x6a3   : > { %11248 = vmatpush3.bf16.msra.mxu1 %v11781_v9  ;;  %v11901_v9 = vld [vmem:[%s16144_s9 + $0x40] sm:$0xff]  }
 0x6a4   : > { %11343 = vmatmul.mubr.msk.bf16.vlgmr.msra.gmra.mrb[40].mxu0 %vm8443_vm7, %v8213_v24  ;;  %11249 = vmatprep.subr.bf16.mxu1 %v11783_v43  ;;  %v8571_v24 = vld [vmem:[#allocation7] sm:$0x1] }
 0x6a5   : > { %11264 = vmatpush3.bf16.msra.mxu0 %v11772_v42  ;;  %v11813_v42 = vld [vmem:[%s16142_s7 + $0x24] ss:$16 sps:$4 sm:$0xff]  }
 0x6a6   : > { %11265 = vmatprep.subr.bf16.mxu0 %v11774_v58  ;;  %v11811_v58 = vld [vmem:[%s16142_s7 + $0x20] ss:$16 sps:$4 sm:$0xff]  }
 0x6a7   : > { %11250 = vmatpush3.bf16.msra.mxu1 %v11785_v49  ;;  %v11816_v49 = vld [vmem:[%s16142_s7 + $0x2c] ss:$16 sps:$4 sm:$0xff]  }
 0x6a8   : > { %11251 = vmatprep.subr.bf16.mxu1 %v11787_v47 }
 0x6a9   : > { %11266 = vmatpush3.bf16.msra.mxu0 %v11776_v21  ;;  %v11814_v21 = vld [vmem:[%s16142_s7 + $0x28] ss:$16 sps:$4 sm:$0xff]  }
 0x6aa   : > { %11267 = vmatprep.subr.bf16.mxu0 %v11778_v60  ;;  %v11819_v60 = vld [vmem:[%s16142_s7 + $0x44] ss:$16 sps:$4 sm:$0xff]  }
 0x6ab   : > { %11252 = vmatpush3.bf16.msra.mxu1 %v11789_v37  ;;  %v11822_v37 = vld [vmem:[%s16142_s7 + $0x4c] ss:$16 sps:$4 sm:$0xff]  }
 0x6ac   : > { %11253 = vmatprep.subr.bf16.mxu1 %v11791_v55 }
 0x6ad   : > { %11268 = vmatpush3.bf16.msra.mxu0 %v11780_v4 }
 0x6ae   : > { %11269 = vmatprep.subr.bf16.mxu0 %v11782_v44  ;;  %v11817_v44 = vld [vmem:[%s16142_s7 + $0x40] ss:$16 sps:$4 sm:$0xff]  }
 0x6af   : > { %11254 = vmatpush3.bf16.msra.mxu1 %v11793_v22 }
 0x6b0   : > { %11255 = vmatprep.subr.bf16.mxu1 %v11795_v7  ;;  %v11820_v7 = vld [vmem:[%s16142_s7 + $0x48] ss:$16 sps:$4 sm:$0xff]  }
 0x6b1   : > { %11270 = vmatpush3.bf16.msra.mxu0 %v11784_v32  ;;  %v11825_v32 = vld [vmem:[%s16142_s7 + $0x64] ss:$16 sps:$4 sm:$0xff]  }
 0x6b2   : > { %11271 = vmatprep.subr.bf16.mxu0 %v11786_v48  ;;  %v11828_v48 = vld [vmem:[%s16142_s7 + $0x6c] ss:$16 sps:$4 sm:$0xff]  }
 0x6b3   : > { %11256 = vmatpush3.bf16.msra.mxu1 %v11797_v14 }
 0x6b4   : > { %11346 = vmatprep.subr.bf16.mxu1 %v12007_v29 }
 0x6b5   : > { %11272 = vmatpush3.bf16.msra.mxu0 %v11788_v52  ;;  %v11823_v52 = vld [vmem:[%s16142_s7 + $0x60] ss:$16 sps:$4 sm:$0xff]  }
 0x6b6   : > { %11273 = vmatprep.subr.bf16.mxu0 %v11790_v0  ;;  %v11826_v0 = vld [vmem:[%s16142_s7 + $0x68] ss:$16 sps:$4 sm:$0xff]  }
 0x6b9   : > { %11274 = vmatpush3.bf16.msra.mxu0 %v11792_v13  ;;  %v11831_v13 = vld [vmem:[%s16142_s7 + $0x84] ss:$16 sps:$4 sm:$0xff]  }
 0x6ba   : > { %11275 = vmatprep.subr.bf16.mxu0 %v11794_v57  ;;  %v11834_v57 = vld [vmem:[%s16142_s7 + $0x8c] ss:$16 sps:$4 sm:$0xff]  }
 0x6bd   : > { %11276 = vmatpush3.bf16.msra.mxu0 %v11796_v6  ;;  %v11829_v6 = vld [vmem:[%s16142_s7 + $0x80] ss:$16 sps:$4 sm:$0xff]  }
 0x6be   : > { %11277 = vmatprep.subr.bf16.mxu0 %v11798_v41  ;;  %v11832_v41 = vld [vmem:[%s16142_s7 + $0x88] ss:$16 sps:$4 sm:$0xff]  }
 0x6c1   : > { %11278 = vmatpush3.bf16.msra.mxu0 %v11800_v10  ;;  %v11837_v10 = vld [vmem:[%s16142_s7 + $0xa4] ss:$16 sps:$4 sm:$0xff]  }
 0x6c2   : > { %9522 = vmatprep.subr.bf16.mxu0 %v11807_v62 }
 0x6e3   : > { %v8075_v30 = vpop.permute.xlu1 %8074 }
 0x6e4   : > { %8079 = vst.msk [vmem:[#allocation6 + $0x8] sm:$0x1] %vm7907_vm0, %v8075_v30  ;;  %v11840_v30 = vld [vmem:[%s16142_s7 + $0xac] ss:$16 sps:$4 sm:$0xff]  }
 0x6eb   : > { %v8603_v16 = vld [vmem:[#allocation6 + $0x5] sm:$0x1f] }
 0x6ec   : > { %v8684_v27 = vrot.slane %v8603_v16, %v15619_v17  ;;  %v8677_v61 = vcombine.high %v8603_v16, %v8603_v16  ;;  %v11835_v16 = vld [vmem:[%s16142_s7 + $0xa0] ss:$16 sps:$4 sm:$0xff]  }
 0x6ee   : > { %v8692_v39 = vcombine.high %v8684_v27, %v8684_v27  ;;  %v8699_v28 = vrot.slane %v8684_v27, %v15619_v17  ;;  %v8691_v33 = vrot.slane %v8677_v61, %v15619_v17  ;;  %v11838_v27 = vld [vmem:[%s16142_s7 + $0xa8] ss:$16 sps:$4 sm:$0xff]   ;;  %v11855_v61 = vld [vmem:[%s16142_s7 + $0x104] ss:$16 sps:$4 sm:$0xff]  }
 0x6f0   : > { %v8713_v15 = vrot.slane %v8692_v39, %v15619_v17  ;;  %v8714_v63 = vcombine.high %v8699_v28, %v8699_v28  ;;  %v8706_v40 = vrot.slane %v8691_v33, %v15619_v17  ;;  %v11843_v39 = vld [vmem:[%s16142_s7 + $0xc4] ss:$16 sps:$4 sm:$0xff]   ;;  %v11853_v33 = vld [vmem:[%s16142_s7 + $0x100] ss:$16 sps:$4 sm:$0xff]  }
 0x6f2   : > { %8971 = vmatprep.mubr.bf16.mxu1 %v8713_v15  ;;  %v8715_v54 = vcombine.high %v8713_v15, %v8713_v15  ;;  %v11841_v15 = vld [vmem:[%s16142_s7 + $0xc0] ss:$16 sps:$4 sm:$0xff]  }
 0x6f3   : > { %8972 = vmatmul.mubr.bf16.vlgmr.msra.gmra.mrb[40].mxu1 %v8699_v28  ;;  %v11846_v28 = vld [vmem:[%s16142_s7 + $0xcc] ss:$16 sps:$4 sm:$0xff]  }
 0x6f4   : > { %11347 = vmatpush3.bf16.msra.mxu1 %v11801_v19  ;;  %9011 = vmatprep.mubr.bf16.mxu0 %v8715_v54  ;;  %v11844_v19 = vld [vmem:[%s16142_s7 + $0xc8] ss:$16 sps:$4 sm:$0xff]   ;;  %v11849_v54 = vld [vmem:[%s16142_s7 + $0xe4] ss:$16 sps:$4 sm:$0xff]  }
 0x6f5   : > { %9012 = vmatmul.mubr.bf16.vlgmr.msra.gmra.mrb[44].mxu0 %v8714_v63  ;;  %11348 = vmatprep.subr.bf16.mxu1 %v12007_v29  ;;  %v11852_v63 = vld [vmem:[%s16142_s7 + $0xec] ss:$16 sps:$4 sm:$0xff]  }
 0x6f6   : > { %11354 = vmatprep.mubr.msk.bf16.mxu1 %vm12009_vm10, %v12007_v29  ;;  %9523 = vmatpush1.bf16.msra.mxu0 %v11805_v1  ;;  %v11880_v1 = vld [vmem:[%s16142_s7 + $0x188] ss:$16 sps:$4 sm:$0xff]  }
 0x6f7   : > { %9524 = vmatprep.subr.bf16.mxu0 %v11813_v42 }
 0x6f8   : > { %11349 = vmatpush3.bf16.msra.mxu1 %v11802_v3  ;;  %v11847_v3 = vld [vmem:[%s16142_s7 + $0xe0] ss:$16 sps:$4 sm:$0xff]  }
 0x6f9   : > { %11350 = vmatprep.subr.bf16.mxu1 %v12007_v29 }
 0x6fa   : > { %9525 = vmatpush1.bf16.msra.mxu0 %v11811_v58 }
 0x6fb   : > { %9526 = vmatprep.subr.bf16.mxu0 %v11819_v60 }
 0x6fc   : > { %11351 = vmatpush3.bf16.msra.mxu1 %v11803_v45  ;;  %v11850_v45 = vld [vmem:[%s16142_s7 + $0xe8] ss:$16 sps:$4 sm:$0xff]  }
 0x6fd   : > { %11352 = vmatprep.subr.bf16.mxu1 %v12007_v29 }
 0x6fe   : > { %9527 = vmatpush1.bf16.msra.mxu0 %v11817_v44  ;;  %v11885_v44 = vld [vmem:[%s16142_s7 + $0x1a4] ss:$16 sps:$4 sm:$0xff]  }
 0x6ff   : > { %9528 = vmatprep.subr.bf16.mxu0 %v11825_v32 }
 0x700   : > { %11353 = vmatpush3.bf16.msra.mxu1 %v11804_v25  ;;  %v11858_v25 = vld [vmem:[%s16142_s7 + $0x10c] ss:$16 sps:$4 sm:$0xff]  }
 0x701   : > { %9563 = vmatprep.subr.bf16.mxu1 %v11810_v59 }
 0x702   : > { %9529 = vmatpush1.bf16.msra.mxu0 %v11823_v52  ;;  %v9061_v52 = vld [vmem:[#allocation7 + $0x1] sm:$0x1] }
 0x703   : > { %11355 = vmatmul.mubr.msk.bf16.vlgmr.msra.gmra.mrb[44].mxu1 %vm8443_vm7, %v8706_v40  ;;  %9530 = vmatprep.subr.bf16.mxu0 %v11831_v13  ;;  %v11856_v40 = vld [vmem:[%s16142_s7 + $0x108] ss:$16 sps:$4 sm:$0xff]   ;;  %v11894_v13 = vld [vmem:[%s16142_s7 + $0x1cc] ss:$16 sps:$4 sm:$0xff]  }
 0x704   : > { %9564 = vmatpush1.bf16.msra.mxu1 %v11808_v38 }
 0x705   : > { %9565 = vmatprep.subr.bf16.mxu1 %v11816_v49 }
 0x706   : > { %9531 = vmatpush1.bf16.msra.mxu0 %v11829_v6  ;;  %v11892_v6 = vld [vmem:[%s16142_s7 + $0x1c8] ss:$16 sps:$4 sm:$0xff]  }
 0x707   : > { %9532 = vmatprep.subr.bf16.mxu0 %v11837_v10  ;;  %v11900_v10 = vld [vmem:[%s16142_s7 + $0x1ec] ss:$16 sps:$4 sm:$0xff]  }
 0x708   : > { %9566 = vmatpush1.bf16.msra.mxu1 %v11814_v21 }
 0x709   : > { %9567 = vmatprep.subr.bf16.mxu1 %v11822_v37 }
 0x70a   : > { %9533 = vmatpush1.bf16.msra.mxu0 %v11835_v16 }
 0x70b   : > { %9534 = vmatprep.subr.bf16.mxu0 %v11843_v39 }
 0x70c   : > { %9568 = vmatpush1.bf16.msra.mxu1 %v11820_v7  ;;  %v11888_v7 = vld [vmem:[%s16142_s7 + $0x1ac] ss:$16 sps:$4 sm:$0xff]  }
 0x70d   : > { %9569 = vmatprep.subr.bf16.mxu1 %v11828_v48 }
 0x70e   : > { %9535 = vmatpush1.bf16.msra.mxu0 %v11841_v15 }
 0x70f   : > { %9536 = vmatprep.subr.bf16.mxu0 %v11849_v54 }
 0x710   : > { %9570 = vmatpush1.bf16.msra.mxu1 %v11826_v0  ;;  %v11889_v0 = vld [vmem:[%s16142_s7 + $0x1c0] ss:$16 sps:$4 sm:$0xff]  }
 0x711   : > { %9571 = vmatprep.subr.bf16.mxu1 %v11834_v57 }
 0x712   : > { %9537 = vmatpush1.bf16.msra.mxu0 %v11847_v3 }
 0x713   : > { %9538 = vmatprep.subr.bf16.mxu0 %v11855_v61 }
 0x714   : > { %9572 = vmatpush1.bf16.msra.mxu1 %v11832_v41  ;;  %v11897_v41 = vld [vmem:[%s16142_s7 + $0x1e4] ss:$16 sps:$4 sm:$0xff]  }
 0x715   : > { %9573 = vmatprep.subr.bf16.mxu1 %v11840_v30 }
 0x716   : > { %9539 = vmatpush1.bf16.msra.mxu0 %v11853_v33 }
 0x718   : > { %9574 = vmatpush1.bf16.msra.mxu1 %v11838_v27  ;;  %v11895_v27 = vld [vmem:[%s16142_s7 + $0x1e0] ss:$16 sps:$4 sm:$0xff]  }
 0x719   : > { %9575 = vmatprep.subr.bf16.mxu1 %v11846_v28  ;;  %v11898_v28 = vld [vmem:[%s16142_s7 + $0x1e8] ss:$16 sps:$4 sm:$0xff]  }
 0x71c   : > { %9576 = vmatpush1.bf16.msra.mxu1 %v11844_v19  ;;  %v11902_v19 = vld [vmem:[%s16144_s9 + $0xc0] sm:$0xff]  }
 0x71d   : > { %9577 = vmatprep.subr.bf16.mxu1 %v11852_v63 }
 0x720   : > { %9578 = vmatpush1.bf16.msra.mxu1 %v11850_v45 }
 0x721   : > { %9579 = vmatprep.subr.bf16.mxu1 %v11858_v25 }
 0x724   : > { %9580 = vmatpush1.bf16.msra.mxu1 %v11856_v40 }
 0x767   : > { %v11208_v5 = vpop.f32.mrb[36].mxu0 }
 0x768   : > { %v11209_v46 = vpop.f32.mrb[37].mxu0 }
 0x769   : > { %v11210_v53 = vadd.f32 %v11209_v46, %v11208_v5  ;;  %v11211_v18 = vpop.f32.mrb[38].mxu0  ;;  %v11230_v36 = vpop.f32.mrb[36].mxu1  ;;  %v11861_v5 = vld [vmem:[%s16142_s7 + $0x124] ss:$16 sps:$4 sm:$0xff]   ;;  %v11864_v46 = vld [vmem:[%s16142_s7 + $0x12c] ss:$16 sps:$4 sm:$0xff]  }
 0x76a   : > { %v11212_v11 = vpop.f32.mrb[39].mxu0  ;;  %v11231_v51 = vpop.f32.mrb[37].mxu1  ;;  %9540 = vmatprep.subr.bf16.mxu0 %v11861_v5  ;;  %v11862_v18 = vld [vmem:[%s16142_s7 + $0x128] ss:$16 sps:$4 sm:$0xff]   ;;  %9581 = vmatprep.subr.bf16.mxu1 %v11864_v46  ;;  %v11903_v46 = vld [vmem:[%s16144_s9] sm:$0xff]  }
 0x76b   : > { %v8482_v34 = vadd.f32 %v11210_v53, %v15766_v26  ;;  %v11232_v29 = vadd.f32 %v11231_v51, %v11230_v36  ;;  %v11233_v2 = vpop.f32.mrb[38].mxu1  ;;  %v11859_v53 = vld [vmem:[%s16142_s7 + $0x120] ss:$16 sps:$4 sm:$0xff]   ;;  %v11867_v36 = vld [vmem:[%s16142_s7 + $0x144] ss:$16 sps:$4 sm:$0xff]   ;;  %9582 = vmatpush1.bf16.msra.mxu1 %v11862_v18 }
 0x76c   : > { %v11234_v8 = vpop.f32.mrb[39].mxu1  ;;  %v11870_v11 = vld [vmem:[%s16142_s7 + $0x14c] ss:$16 sps:$4 sm:$0xff]   ;;  %9541 = vmatpush1.bf16.msra.mxu0 %v11859_v53  ;;  %v11865_v51 = vld [vmem:[%s16142_s7 + $0x140] ss:$16 sps:$4 sm:$0xff]  }
 0x76d   : > { %v8522_v56 = vadd.f32 %v11232_v29, %v8482_v34  ;;  %9542 = vmatprep.subr.bf16.mxu0 %v11867_v36  ;;  %v11868_v34 = vld [vmem:[%s16142_s7 + $0x148] ss:$16 sps:$4 sm:$0xff]   ;;  %v11873_v29 = vld [vmem:[%s16142_s7 + $0x164] ss:$16 sps:$4 sm:$0xff]   ;;  %9583 = vmatprep.subr.bf16.mxu1 %v11870_v11  ;;  %v11876_v2 = vld [vmem:[%s16142_s7 + $0x16c] ss:$16 sps:$4 sm:$0xff]  }
 0x76e   : > { %v11871_v8 = vld [vmem:[%s16142_s7 + $0x160] ss:$16 sps:$4 sm:$0xff]   ;;  %v11905_v36 = vld [vmem:[%s16144_s9 + $0x48] sm:$0xff]  }
 0x76f   : > { %9584 = vmatpush1.bf16.msra.mxu1 %v11868_v34  ;;  %v11904_v53 = vld [vmem:[%s16144_s9 + $0x80] sm:$0xff]   ;;  %v11906_v11 = vld [vmem:[%s16144_s9 + $0xc8] sm:$0xff]   ;;  %v11909_v34 = vld [vmem:[%s16144_s9 + $0x50] sm:$0xff]  }
 0x770   : > { %9543 = vmatpush1.bf16.msra.mxu0 %v11865_v51  ;;  %9585 = vmatprep.subr.bf16.mxu1 %v11876_v2  ;;  %v11907_v51 = vld [vmem:[%s16144_s9 + $0x8] sm:$0xff]   ;;  %v11911_v2 = vld [vmem:[%s16144_s9 + $0x10] sm:$0xff]  }
 0x771   : > { %9544 = vmatprep.subr.bf16.mxu0 %v11873_v29  ;;  %v11910_v29 = vld [vmem:[%s16144_s9 + $0xd0] sm:$0xff]  }
 0x774   : > { %9545 = vmatpush1.bf16.msra.mxu0 %v11871_v8  ;;  %v11912_v8 = vld [vmem:[%s16144_s9 + $0x90] sm:$0xff]  }
 0x777   : > { %v8561_v20 = vpop.f32.mrb[40].mxu0 }
 0x778   : > { %v8562_v23 = vadd.f32 %v8561_v20, %v8522_v56  ;;  %v11344_v35 = vpop.f32.mrb[41].mxu0  ;;  %v11874_v56 = vld [vmem:[%s16142_s7 + $0x168] ss:$16 sps:$4 sm:$0xff]   ;;  %v11879_v20 = vld [vmem:[%s16142_s7 + $0x184] ss:$16 sps:$4 sm:$0xff]  }
 0x779   : > { %v8564_v50 = vpop.f32.mrb[42].mxu0  ;;  %v11877_v35 = vld [vmem:[%s16142_s7 + $0x180] ss:$16 sps:$4 sm:$0xff]   ;;  %9586 = vmatpush1.bf16.msra.mxu1 %v11874_v56  ;;  %9546 = vmatprep.subr.bf16.mxu0 %v11879_v20  ;;  %v11913_v56 = vld [vmem:[%s16144_s9 + $0x58] sm:$0xff]  }
 0x77a   : > { %v8567_v12 = vmax.f32 %v8562_v23, 0.0  ;;  %v11345_v43 = vpop.f32.mrb[43].mxu0  ;;  %v11882_v23 = vld [vmem:[%s16142_s7 + $0x18c] ss:$16 sps:$4 sm:$0xff]   ;;  %9547 = vmatpush1.bf16.msra.mxu0 %v11877_v35 }
 0x77b   : > { %9587 = vmatprep.subr.bf16.mxu1 %v11882_v23  ;;  %9548 = vmatprep.subr.bf16.mxu0 %v11885_v44  ;;  %v11914_v20 = vld [vmem:[%s16144_s9 + $0xd8] sm:$0xff]   ;;  %v9512_v44 = vsub.s32 2, %v15135_v31 }
 0x77c   : > { %v8568_v47 = vpack.c.bf16 %v8567_v12, %v8567_v12  ;;  %v11915_v23 = vld [vmem:[%s16144_s9 + $0x18] sm:$0xff]  }
 0x77d   : > { %9588 = vmatpush1.bf16.msra.mxu1 %v11880_v1  ;;  %v11916_v35 = vld [vmem:[%s16144_s9 + $0x98] sm:$0xff]   ;;  %v11917_v1 = vld [vmem:[%s16144_s9 + $0x60] sm:$0xff]  }
 0x77e   : > { %v8572_v55 = vsel %vm15783_vm4, %v8568_v47, %v8571_v24  ;;  %v8581_v4 = vrot.slane %v8568_v47, %v15619_v17  ;;  %9589 = vmatprep.subr.bf16.mxu1 %v11888_v7  ;;  %v9516_v7 = vsub.s32 3, %v15135_v31 }
 0x77f   : > { %8573 = vst [vmem:[#allocation7] sm:$0x1] %v8572_v55 }
 0x780   : > { %v8588_v22 = vrot.slane %v8581_v4, %v15619_v17  ;;  %v11883_v4 = vld [vmem:[%s16142_s7 + $0x1a0] ss:$16 sps:$4 sm:$0xff]  }
 0x781   : > { %9549 = vmatpush1.bf16.msra.mxu0 %v11883_v4  ;;  %v9504_v4 = vsub.s32 0, %v15135_v31 }
 0x782   : > { %v8590_v14 = vshrl.u32 %v8588_v22, 16 }
 0x784   : > { %8594 = vrot.lane.b32.xlu0 %v8590_v14, %s16314_s22  ;;  %v11891_v14 = vld [vmem:[%s16142_s7 + $0x1c4] ss:$16 sps:$4 sm:$0xff]  }
 0x785   : > { %9550 = vmatprep.subr.bf16.mxu0 %v11891_v14 }
 0x786   : > { %9551 = vmatpush1.bf16.msra.mxu0 %v11889_v0  ;;  %v8599_v63 = vld [vmem:[#allocation7] sm:$0x1] }
 0x787   : > { %9552 = vmatprep.subr.bf16.mxu0 %v11897_v41 }
 0x78a   : > { %9553 = vmatpush1.bf16.msra.mxu0 %v11895_v27 }
 0x78b   : > { %11290 = vmatprep.subr.bf16.mxu0 %v11901_v9 }
 0x7c6   : > { %v11257_v62 = vpop.f32.mrb[40].mxu1 }
 0x7c7   : > { %v11258_v50 = vpop.f32.mrb[41].mxu1 }
 0x7c8   : > { %v11259_v38 = vadd.f32 %v11258_v50, %v11257_v62  ;;  %v11260_v59 = vpop.f32.mrb[42].mxu1  ;;  %v11279_v12 = vpop.f32.mrb[44].mxu0  ;;  %v11918_v62 = vld [vmem:[%s16144_s9 + $0xe0] sm:$0xff]  }
 0x7c9   : > { %v11261_v43 = vpop.f32.mrb[43].mxu1  ;;  %v11280_v42 = vpop.f32.mrb[45].mxu0  ;;  %v11919_v50 = vld [vmem:[%s16144_s9 + $0x20] sm:$0xff]   ;;  %v11921_v59 = vld [vmem:[%s16144_s9 + $0x68] sm:$0xff]  }
 0x7ca   : > { %v8974_v24 = vadd.f32 %v11259_v38, %v15766_v26  ;;  %v11281_v58 = vadd.f32 %v11280_v42, %v11279_v12  ;;  %v11282_v49 = vpop.f32.mrb[46].mxu0  ;;  %v11886_v26 = vld [vmem:[%s16142_s7 + $0x1a8] ss:$16 sps:$4 sm:$0xff]   ;;  %v11920_v38 = vld [vmem:[%s16144_s9 + $0xa0] sm:$0xff]  }
 0x7cb   : > { %v11283_v47 = vpop.f32.mrb[47].mxu0  ;;  %9590 = vmatpush1.bf16.msra.mxu1 %v11886_v26  ;;  %v11922_v12 = vld [vmem:[%s16144_s9 + $0xe8] sm:$0xff]   ;;  %v11927_v49 = vld [vmem:[%s16144_s9 + $0x30] sm:$0xff]   ;;  %v9508_v26 = vsub.s32 1, %v15135_v31 }
 0x7cc   : > { %v9014_v21 = vadd.f32 %v11281_v58, %v8974_v24  ;;  %9591 = vmatprep.subr.bf16.mxu1 %v11894_v13  ;;  %v11923_v43 = vld [vmem:[%s16144_s9 + $0x28] sm:$0xff]   ;;  %v11925_v24 = vld [vmem:[%s16144_s9 + $0x70] sm:$0xff]  }
 0x7cd   : > { %v11924_v42 = vld [vmem:[%s16144_s9 + $0xa8] sm:$0xff]   ;;  %v11926_v58 = vld [vmem:[%s16144_s9 + $0xf0] sm:$0xff]  }
 0x7ce   : > { %v11928_v47 = vld [vmem:[%s16144_s9 + $0xb0] sm:$0xff]  }
 0x7cf   : > { %9592 = vmatpush1.bf16.msra.mxu1 %v11892_v6 }
 0x7d0   : > { %9593 = vmatprep.subr.bf16.mxu1 %v11900_v10 }
 0x7d3   : > { %9594 = vmatpush1.bf16.msra.mxu1 %v11898_v28 }
 0x7d4   : > { %11312 = vmatprep.subr.bf16.mxu1 %v11902_v19 }
 0x7d6   : > { %v9053_v60 = vpop.f32.mrb[44].mxu1 }
 0x7d7   : > { %v9054_v37 = vadd.f32 %v9053_v60, %v9014_v21  ;;  %v11356_v55 = vpop.f32.mrb[45].mxu1  ;;  %v11929_v21 = vld [vmem:[%s16144_s9 + $0x78] sm:$0xff]  }
 0x7d8   : > { %v9056_v22 = vpop.f32.mrb[46].mxu1  ;;  %v11930_v60 = vld [vmem:[%s16144_s9 + $0xf8] sm:$0xff]  }
 0x7d9   : > { %v9059_v32 = vmax.f32 %v9054_v37, 0.0  ;;  %v11357_v48 = vpop.f32.mrb[47].mxu1  ;;  %v11931_v37 = vld [vmem:[%s16144_s9 + $0x38] sm:$0xff]   ;;  %v9155_v22 = vld [vmem:[%s16143_s8] sm:$0xf] }
 0x7da   : > { %v11932_v55 = vld [vmem:[%s16144_s9 + $0xb8] sm:$0xff]   ;;  %v9513_v48 = vrot.slane %v9155_v22, %v9512_v44  ;;  %v9509_v14 = vrot.slane %v9155_v22, %v9508_v26 }
 0x7db   : > { %v9060_v57 = vpack.c.bf16 %v9059_v32, %v9059_v32  ;;  %v9505_v32 = vrot.slane %v9155_v22, %v9504_v4 }
 0x7dd   : > { %v9062_v30 = vsel %vm15783_vm4, %v9060_v57, %v9061_v52  ;;  %v9071_v16 = vrot.slane %v9060_v57, %v15619_v17  ;;  %v9517_v52 = vrot.slane %v9155_v22, %v9516_v7 }
 0x7de   : > { %9063 = vst [vmem:[#allocation7 + $0x1] sm:$0x1] %v9062_v30 }
 0x7df   : > { %v9078_v39 = vrot.slane %v9071_v16, %v15619_v17 }
 0x7e1   : > { %v9080_v15 = vshrl.u32 %v9078_v39, 16 }
 0x7e3   : > { %9084 = vrot.lane.b32.xlu1 %v9080_v15, %s16314_s22 }
 0x7e5   : > { %v9087_v61 = vld [vmem:[#allocation7 + $0x1] sm:$0x1] }
 0x7f6   : > { %v8595_v54 = vpop.permute.xlu0 %8594 }
 0x7f7   : > { %v8600_v3 = vsel %vm8598_vm11, %v8595_v54, %v8599_v63 }
 0x7f8   : > { %8601 = vst [vmem:[#allocation7] sm:$0x1] %v8600_v3 }
 0x855   : > { %v9085_v45 = vpop.permute.xlu1 %9084 }
 0x856   : > { %v9088_v25 = vsel %vm8598_vm11, %v9085_v45, %v9087_v61 }
 0x857   : > { %9089 = vst [vmem:[#allocation7 + $0x1] sm:$0x1] %v9088_v25 }
 0x85e   : > { %v10676_v33 = vld.sshfl [vmem:[#allocation7] sm:$0x11 pattern:$0x75316420] }
 0x85f   : > { %v9164_v40 = vcombine.high %v10676_v33, %v10676_v33  ;;  %v9171_v18 = vrot.slane %v10676_v33, %v15619_v17 }
 0x861   : > { %v9178_v5 = vrot.slane %v9164_v40, %v15619_v17  ;;  %v11908_v17 = vld [vmem:[%s16144_s9 + $0x88] sm:$0xff]   ;;  %v9676_v40 = vld [vmem:[%s16145_s10] sm:$0x1] }
 0x863   : > { %9554 = vmatprep.mubr.bf16.mxu0 %v9178_v5  ;;  %9595 = vmatprep.mubr.bf16.mxu1 %v9178_v5 }
 0x864   : > { %9555 = vmatmul.mubr.bf16.vlgmr.msra.gmra.mrb[48].mxu0 %v9171_v18  ;;  %9596 = vmatmul.mubr.bf16.vlgmr.msra.gmra.mrb[48].mxu1 %v9171_v18 }
 0x865   : > { %11291 = vmatpush3.bf16.msra.mxu0 %v11903_v46  ;;  %11313 = vmatpush3.bf16.msra.mxu1 %v11904_v53 }
 0x866   : > { %11292 = vmatprep.subr.bf16.mxu0 %v11905_v36  ;;  %11314 = vmatprep.subr.bf16.mxu1 %v11906_v11 }
 0x869   : > { %11293 = vmatpush3.bf16.msra.mxu0 %v11907_v51  ;;  %11315 = vmatpush3.bf16.msra.mxu1 %v11908_v17 }
 0x86a   : > { %11294 = vmatprep.subr.bf16.mxu0 %v11909_v34  ;;  %11316 = vmatprep.subr.bf16.mxu1 %v11910_v29 }
 0x86d   : > { %11295 = vmatpush3.bf16.msra.mxu0 %v11911_v2  ;;  %11317 = vmatpush3.bf16.msra.mxu1 %v11912_v8 }
 0x86e   : > { %11296 = vmatprep.subr.bf16.mxu0 %v11913_v56  ;;  %11318 = vmatprep.subr.bf16.mxu1 %v11914_v20 }
 0x871   : > { %11297 = vmatpush3.bf16.msra.mxu0 %v11915_v23  ;;  %11319 = vmatpush3.bf16.msra.mxu1 %v11916_v35 }
 0x872   : > { %11298 = vmatprep.subr.bf16.mxu0 %v11917_v1  ;;  %11320 = vmatprep.subr.bf16.mxu1 %v11918_v62 }
 0x875   : > { %11299 = vmatpush3.bf16.msra.mxu0 %v11919_v50  ;;  %11321 = vmatpush3.bf16.msra.mxu1 %v11920_v38 }
 0x876   : > { %11300 = vmatprep.subr.bf16.mxu0 %v11921_v59  ;;  %11322 = vmatprep.subr.bf16.mxu1 %v11922_v12 }
 0x879   : > { %11301 = vmatpush3.bf16.msra.mxu0 %v11923_v43  ;;  %11323 = vmatpush3.bf16.msra.mxu1 %v11924_v42 }
 0x87a   : > { %11302 = vmatprep.subr.bf16.mxu0 %v11925_v24  ;;  %11324 = vmatprep.subr.bf16.mxu1 %v11926_v58 }
 0x87d   : > { %11303 = vmatpush3.bf16.msra.mxu0 %v11927_v49  ;;  %11325 = vmatpush3.bf16.msra.mxu1 %v11928_v47 }
 0x87e   : > { %11304 = vmatprep.subr.bf16.mxu0 %v11929_v21  ;;  %11326 = vmatprep.subr.bf16.mxu1 %v11930_v60 }
 0x881   : > { %11305 = vmatpush3.bf16.msra.mxu0 %v11931_v37  ;;  %11327 = vmatpush3.bf16.msra.mxu1 %v11932_v55 }
 0x937   : > { %v9556_v0 = vpop.f32.mrb[48].mxu0  ;;  %v9597_v13 = vpop.f32.mrb[48].mxu1 }
 0x938   : > { %v9557_v57 = vadd.f32 %v9556_v0, %v9505_v32  ;;  %v9598_v6 = vadd.f32 %v9597_v13, %v9513_v48  ;;  %v9558_v41 = vpop.f32.mrb[49].mxu0  ;;  %v9599_v10 = vpop.f32.mrb[49].mxu1 }
 0x939   : > { %v9559_v30 = vadd.f32 %v9558_v41, %v9509_v14  ;;  %v9600_v16 = vadd.f32 %v9599_v10, %v9517_v52  ;;  %v9560_v27 = vpop.f32.mrb[50].mxu0  ;;  %v9601_v39 = vpop.f32.mrb[50].mxu1 }
 0x93a   : > { %v9604_v28 = vmax.f32 %v9557_v57, 0.0  ;;  %v9606_v15 = vmax.f32 %v9598_v6, 0.0  ;;  %v9561_v9 = vpop.f32.mrb[51].mxu0  ;;  %v9602_v19 = vpop.f32.mrb[51].mxu1 }
 0x93b   : > { %v9605_v31 = vmax.f32 %v9559_v30, 0.0  ;;  %v9607_v54 = vmax.f32 %v9600_v16, 0.0 }
 0x93c   : > { %v9608_v45 = vpack.c.bf16 %v9604_v28, %v9604_v28  ;;  %v9610_v61 = vpack.c.bf16 %v9606_v15, %v9606_v15 }
 0x93d   : > { %v9609_v63 = vpack.c.bf16 %v9605_v31, %v9605_v31  ;;  %v9611_v3 = vpack.c.bf16 %v9607_v54, %v9607_v54 }
 0x93f   : > { %9901 = vmatprep.mubr.bf16.mxu0 %v9609_v63  ;;  %9941 = vmatprep.mubr.bf16.mxu1 %v9611_v3 }
 0x940   : > { %9902 = vmatmul.mubr.bf16.vlgmr.msra.gmra.mrb[52].mxu0 %v9608_v45  ;;  %9942 = vmatmul.mubr.bf16.vlgmr.msra.gmra.mrb[52].mxu1 %v9610_v61 }
 0xa13   : > { %v11306_v25 = vpop.f32.mrb[52].mxu0  ;;  %v11328_v33 = vpop.f32.mrb[52].mxu1 }
 0xa14   : > { %v11307_v5 = vpop.f32.mrb[53].mxu0  ;;  %v11329_v46 = vpop.f32.mrb[53].mxu1 }
 0xa15   : > { %v11308_v53 = vadd.f32 %v11307_v5, %v11306_v25  ;;  %v11330_v18 = vadd.f32 %v11329_v46, %v11328_v33  ;;  %v11309_v36 = vpop.f32.mrb[54].mxu0  ;;  %v11331_v11 = vpop.f32.mrb[54].mxu1 }
 0xa16   : > { %v11310_v51 = vpop.f32.mrb[55].mxu0  ;;  %v11332_v17 = vpop.f32.mrb[55].mxu1 }
 0xa17   : > { %v9904_v34 = vadd.f32 %v11308_v53, %v9676_v40 }
 0xa19   : > { %v9944_v29 = vadd.f32 %v11330_v18, %v9904_v34 }
 0xa1b   : > { %9949 = vst [vmem:[%s378_s25] sm:$0x1] %v9944_v29 }
 0xa1c   : > { %11948 = shalt.err (!%p11945_p3)
}
 0xa1d   : > { %s11949_s29 = scalar_lea.hbm %s16093_s19, 16  ;;  %s11953_s23 = scalar_lea.hbm %s16146_s11, 32 }
 0xa1e   : > { %p11950_p4 = scmp.ne.s32.totalorder %s16093_s19, %s11949_s29  ;;  %p11954_p9 = scmp.lt.u32.totalorder %s16093_s19, %s16146_s11 }
 0xa1f   : > { %p11955_p10 = scmp.lt.u32.totalorder %s11953_s23, %s11949_s29  ;;  %p11957_p12 = scmp.lt.u32.totalorder %s11949_s29, %s16093_s19 }
 0xa20   : > { %p11951_p7 = pnand %p11950_p4, %p12109_p5 }
 0xa21   : > { %p11956_p11 = por %p11955_p10, %p11954_p9 }
 0xa22   : > { %p11952_p8 = pneg %p11951_p7 }
 0xa23   : > { %p11958_p13 = por %p11957_p12, %p11956_p11 }
 0xa25   : > { %p11959_p0 = pnand %p11958_p13, %p11952_p8 }
 0xa27   : > { %11962 = shalt.err (!%p11959_p0)
}
 0xa28   : > { %11359 = dma.vmem_to_hbm [thread:$0]  (%p12109_p5), %s16095_s0, 16, %s16093_s19, %s9951_s26  }
 0xa29 PF: > { %s16556_s17 = sld [smem:[#allocation11_spill]]  ;;  %p11365_p1 = scmp.ge.s32.totalorder %s11997_s20, 2 }
 0xa2b   : > { %p11362_p2 = pnand %p11365_p1, %p12113_p6 }
 0xa2f   : > { %s9975_s28 = sand.u32 1, %s16556_s17  }
 0xa30   : > { %s9976_s30 = scalar_lea.sflag [#allocation9], %s9975_s28 }
 0xa31   : > { %11980 = dma.done.wait (!%p11362_p2), %s9976_s30, 16  }
 0xa32   : > { %11982 = vsyncadd (!%p11362_p2), %s9976_s30, 4294967280  ;;  %s16558_s20 = sld [smem:[#allocation13_spill]]  ;;  %s16559_s16 = sld [smem:[#allocation12_spill]] }
 0xa33   : > { %s16560_s19 = sld [smem:[#allocation14_spill]]  ;;  %s16561_s17 = smov %s11989_s18 }
 0xa38   : > { %p21_p3 = scmp.ge.s32.totalorder %s16558_s20, 4   ;;  %s16562_s18 = smov %s16559_s16 }
 0xa3a   :  { %23 = sbr.rel (!%p21_p3) target bundleno = 5 (0x5), region = 131 }
 0xa41   :  { %9980 = vsyncpa [#allocation9], 1 }
 0xa42   :  { %9982 = vsyncpa [#allocation9 + $0x1], 1 }

</bundles_post_ra>
